<compile_context>
chip_gen: v5e
topology: v5e:2x2
jax: 0.10.0
libtpu: 0.0.40
codegen_flags: <defaults>
</compile_context>

<pallas_src>
import jax
import jax.numpy as jnp
import numpy as np
from jax.experimental import pallas as pl
from jax.experimental.pallas import tpu as pltpu

# ----------------------------- configuration (small demo shapes) -----------------------------
B = 2            # batch
T = 8            # encoder time steps (== number of decoder steps)
ENC = 32         # enc_channels
HID = 32         # hidden_channels
D_OUT = 4        # out_channels
RED = 2          # reduction_factor (must be 2 so go_frame (D*2) matches D*R)
PRE_IN = D_OUT * RED      # prenet input channels (= D*2)
PRE_INNER = 16            # pre_inner_channels
N_LAYERS = 2              # LSTM layers (kernel hardcodes 2 cells)
CONV_CH = 8               # attention conv_channels
CONV_K = 5                # attention conv_kernel_size
DR = D_OUT * RED


# --------------------------------------- Pallas kernel ---------------------------------------
def decoder_kernel(enc_ref, encflat_ref, att0_ref, addmask_ref, encout_ref,
                   attmat_ref, gmat_ref,
                   w1_ref, b1_ref, w2_ref, b2_ref,
                   w0cat_ref, lb0_ref, w1cat_ref, lb1_ref,
                   wouth_ref,
                   out_ref, attw_ref):
    f32 = jnp.float32
    Bk, Tk, _ = enc_ref.shape
    Hk = wouth_ref.shape[0]
    DRk = wouth_ref.shape[1]

    # hoist all loads of step-invariant data out of the decode loop
    enc = enc_ref[...]            # (B, T, E)
    encflat = encflat_ref[...]    # (B, T*H)     flattened encoder projection
    addmask = addmask_ref[...]    # (B, T)       0 / -1e30 additive energy mask
    attmat = attmat_ref[...]      # (H+T, T*H)   [tiled Wdec ; folded location conv]
    gmat = gmat_ref[...]          # (T*H, T)     block-diagonal energy vector
    w1 = w1_ref[...]; b1 = b1_ref[...]
    w2 = w2_ref[...]; b2 = b2_ref[...]
    w0c = w0cat_ref[...]; lb0 = lb0_ref[...]
    w1c = w1cat_ref[...]; lb1 = lb1_ref[...]
    wouth = wouth_ref[...]        # (H, D*R)     hidden-state part of the output projection

    def lstm_cell(gates, c):
        i = jax.nn.sigmoid(gates[:, 0 * Hk:1 * Hk])
        f = jax.nn.sigmoid(gates[:, 1 * Hk:2 * Hk])
        g = jnp.tanh(gates[:, 2 * Hk:3 * Hk])
        o = jax.nn.sigmoid(gates[:, 3 * Hk:4 * Hk])
        c_new = f * c + i * g
        return o * jnp.tanh(c_new), c_new

    def step(t, carry):
        h0, c0, h1, c1, prev, attcum = carry

        # ------------- location-sensitive attention: single fused 2-D MXU matmul -------------
        att_in = jnp.concatenate([h0, attcum], axis=1)                      # (B, H+T)
        feat = jnp.tanh(encflat + jnp.dot(att_in, attmat,
                                          preferred_element_type=f32))      # (B, T*H)
        energy = jnp.dot(feat, gmat, preferred_element_type=f32) + addmask  # (B, T)
        emax = jnp.max(energy, axis=1, keepdims=True)
        eexp = jnp.exp(energy - emax)
        denom = jnp.sum(eexp, axis=1, keepdims=True)
        att_w = eexp * pl.reciprocal(denom, approx=True)                    # (B, T)
        att_c = jnp.sum(att_w[:, :, None] * enc, axis=1)                    # (B, E)

        # ---------------- prenet (eval mode: dropout is identity) ----------------
        p1 = jnp.maximum(jnp.dot(prev, w1, preferred_element_type=f32) + b1, 0.0)
        pre = jnp.maximum(jnp.dot(p1, w2, preferred_element_type=f32) + b2, 0.0)
        # TODO(synk): nn.Dropout (train-time prenet / rnn-input dropout) is identity here.

        # ---------------- 2-layer LSTM with fused (input|hidden) weight matmuls ----------------
        gates0 = jnp.dot(jnp.concatenate([pre, att_c, h0], axis=1), w0c,
                         preferred_element_type=f32) + lb0                  # (B, 4H)
        h0n, c0n = lstm_cell(gates0, c0)
        gates1 = jnp.dot(jnp.concatenate([h0n, h1], axis=1), w1c,
                         preferred_element_type=f32) + lb1                  # (B, 4H)
        h1n, c1n = lstm_cell(gates1, c1)

        # ------- output projection: h-part in-kernel, encoder part precomputed per-t -------
        out = jnp.dot(h1n, wouth, preferred_element_type=f32) + encout_ref[t]   # (B, D*R)

        # stage per-step results into the VMEM-resident output slabs (one HBM DMA at the end)
        out_ref[t] = out
        attw_ref[t] = att_w

        attcum_n = jnp.where(t == 0, att_w, attcum + att_w)                 # cumulative att
        return (h0n, c0n, h1n, c1n, out, attcum_n)

    z = jnp.zeros((Bk, Hk), f32)
    init = (z, z, z, z, jnp.zeros((Bk, DRk), f32), att0_ref[...])
    jax.lax.fori_loop(0, Tk, step, init, unroll=True)


# --------------------------------------- JAX wrapper ---------------------------------------
def _const_spec(shape):
    nd = len(shape)
    return pl.BlockSpec(shape, lambda i, _nd=nd: (0,) * _nd)


def rnn_decoder_forward(params, enc_output, data_len):
    """enc_output: (B, T, ENC), data_len: (B,) int.  Returns (out (B, D, R*T), att_w (B, T, T))."""
    Bx, Tx, Ex = enc_output.shape
    f32 = jnp.float32
    H = HID

    # ---- pad batch to a multiple of 8 (full sublane / MXU-M utilization) ----
    BT = 8
    Bp = ((Bx + BT - 1) // BT) * BT
    nB = Bp // BT
    enc_p = jnp.pad(enc_output.astype(f32), ((0, Bp - Bx), (0, 0), (0, 0)))
    dlen_pad = jnp.full((Bp - Bx,), Tx * RED, dtype=jnp.int32)
    dlen_all = jnp.concatenate([data_len.astype(jnp.int32), dlen_pad])

    dlen = jnp.maximum(dlen_all // RED, 1)             # guard: fully-empty sequences unsupported
    pos = jnp.arange(Tx, dtype=jnp.int32)[None, :]
    padmask = pos >= dlen[:, None]
    att0 = jnp.where(padmask, 0.0, 1.0 / dlen[:, None].astype(f32))   # uniform initial attention
    addmask = jnp.where(padmask, -1e30, 0.0).astype(f32)              # additive energy mask

    # ---- one-time folding of all step-invariant attention tensors (plain XLA glue) ----
    enc_proj = enc_p @ params["att_V"] + params["att_bV"][None, None, :]          # (Bp, T, H)
    encflat = enc_proj.reshape(Bp, Tx * H)                                        # (Bp, T*H)
    wu = jnp.einsum("ck,ch->kh", params["att_Wconv"][:, 0, :], params["att_U"])   # (K, H)
    padk = (CONV_K - 1) // 2
    ii = jnp.arange(Tx)[:, None, None]
    jj = jnp.arange(Tx)[None, :, None]
    kk = jnp.arange(CONV_K)[None, None, :]
    sel = (ii == jj + kk - padk).astype(f32)                                      # (T, T, K)
    locm = jnp.einsum("ijk,kh->ijh", sel, wu).reshape(Tx, Tx * H)                 # (T, T*H)
    wdec_t = jnp.tile(params["att_Wdec"], (1, Tx))                                # (H, T*H)
    attmat = jnp.concatenate([wdec_t, locm], axis=0)                              # (H+T, T*H)
    gmat = jnp.einsum("jk,h->jhk", jnp.eye(Tx, dtype=f32),
                      params["att_g"]).reshape(Tx * H, Tx)                        # (T*H, T)

    # fused LSTM weights ([input | hidden] stacked once)
    w0cat = jnp.concatenate([params["lstm0_Wih"], params["lstm0_Whh"]], axis=0)   # (H+E+H, 4H)
    w1cat = jnp.concatenate([params["lstm1_Wih"], params["lstm1_Whh"]], axis=0)   # (2H, 4H)

    # precompute the encoder-frame part of the output projection (+ bias) for every step t
    wout_h = params["out_W"][:H, :]                                               # (H, D*R)
    wout_e = params["out_W"][H:, :]                                               # (E, D*R)
    encout = jnp.transpose(enc_p @ wout_e + params["out_b"][None, None, :],
                           (1, 0, 2))                                             # (T, Bp, D*R)

    inputs = (enc_p, encflat, att0, addmask, encout,
              attmat, gmat,
              params["pre_W1"], params["pre_b1"].reshape(1, -1),
              params["pre_W2"], params["pre_b2"].reshape(1, -1),
              w0cat, params["lstm0_b"].reshape(1, -1),
              w1cat, params["lstm1_b"].reshape(1, -1),
              wout_h)

    batch_specs = [pl.BlockSpec((BT, Tx, Ex), lambda i: (i, 0, 0)),
                   pl.BlockSpec((BT, Tx * H), lambda i: (i, 0)),
                   pl.BlockSpec((BT, Tx), lambda i: (i, 0)),
                   pl.BlockSpec((BT, Tx), lambda i: (i, 0)),
                   pl.BlockSpec((Tx, BT, DR), lambda i: (0, i, 0))]
    weight_specs = [_const_spec(x.shape) for x in inputs[5:]]

    out_shapes = (jax.ShapeDtypeStruct((Tx, Bp, DR), f32),
                  jax.ShapeDtypeStruct((Tx, Bp, Tx), f32))
    out_specs = [pl.BlockSpec((Tx, BT, DR), lambda i: (0, i, 0)),
                 pl.BlockSpec((Tx, BT, Tx), lambda i: (0, i, 0))]

    grid_spec = pltpu.PrefetchScalarGridSpec(
        num_scalar_prefetch=0,
        grid=(nB,),                        # batch shards only; the time loop is in-kernel
        in_specs=batch_specs + weight_specs,
        out_specs=out_specs)

    outs, attws = pl.pallas_call(
        decoder_kernel,
        out_shape=out_shapes,
        grid_spec=grid_spec,
        compiler_params=pltpu.CompilerParams(
            dimension_semantics=("parallel",)),   # batch shards may split across TCs (v7x)
    )(*inputs)

    # drop batch padding, re-layout to PyTorch conventions
    outs = outs[:, :Bx]
    attws = attws[:, :Bx]
    out = outs.reshape(Tx, Bx, D_OUT, RED).transpose(1, 2, 0, 3).reshape(Bx, D_OUT, Tx * RED)
    att_w = attws.transpose(1, 2, 0)   # (B, T_enc, T_decoder_steps)
    return out, att_w


# ------------------------------- pure-JAX reference (for check) -------------------------------
def reference_forward(params, enc_output, data_len):
    Bx, Tx, Ex = enc_output.shape
    dlen = (data_len // RED).astype(jnp.int32)
    pos = jnp.arange(Tx)[None, :]
    mask = pos >= dlen[:, None]
    att0 = jnp.where(mask, 0.0, 1.0 / dlen[:, None].astype(jnp.float32))
    enc_proj = enc_output @ params["att_V"] + params["att_bV"]
    h = [jnp.zeros((Bx, HID)) for _ in range(N_LAYERS)]
    c = [jnp.zeros((Bx, HID)) for _ in range(N_LAYERS)]
    prev_out = jnp.zeros((Bx, DR))
    prev_att = None
    outs, attws = [], []
    padk = (CONV_K - 1) // 2

    def cell(x, hh, cc, Wih, Whh, b):
        g = x @ Wih + hh @ Whh + b
        i, f, gg, o = jnp.split(g, 4, axis=1)
        cn = jax.nn.sigmoid(f) * cc + jax.nn.sigmoid(i) * jnp.tanh(gg)
        hn = jax.nn.sigmoid(o) * jnp.tanh(cn)
        return hn, cn

    for t in range(Tx):
        att_prev = att0 if prev_att is None else prev_att
        xp = jnp.pad(att_prev, ((0, 0), (padk, padk)))
        loc_feat = jnp.stack([xp[:, k:k + Tx] for k in range(CONV_K)], axis=-1)       # (B,T,K)
        conv_out = jnp.einsum("btk,ck->btc", loc_feat, params["att_Wconv"][:, 0, :])  # (B,T,C)
        loc_proj = conv_out @ params["att_U"]                                          # (B,T,H)
        dec_proj = h[0] @ params["att_Wdec"]
        feat = jnp.tanh(enc_proj + dec_proj[:, None, :] + loc_proj)
        energy = feat @ params["att_g"]
        energy = jnp.where(mask, -1e30, energy)
        att_w = jax.nn.softmax(energy, axis=1)
        att_c = jnp.einsum("bt,bte->be", att_w, enc_output)

        p1 = jax.nn.relu(prev_out @ params["pre_W1"] + params["pre_b1"])
        pre = jax.nn.relu(p1 @ params["pre_W2"] + params["pre_b2"])
        rnn_in = jnp.concatenate([pre, att_c], axis=1)
        h[0], c[0] = cell(rnn_in, h[0], c[0], params["lstm0_Wih"], params["lstm0_Whh"], params["lstm0_b"])
        h[1], c[1] = cell(h[0], h[1], c[1], params["lstm1_Wih"], params["lstm1_Whh"], params["lstm1_b"])

        hcs = jnp.concatenate([h[1], enc_output[:, t, :]], axis=1)
        out = hcs @ params["out_W"] + params["out_b"]
        outs.append(out.reshape(Bx, D_OUT, RED))
        attws.append(att_w)
        prev_out = out
        prev_att = att_w if prev_att is None else prev_att + att_w
    return jnp.concatenate(outs, axis=-1), jnp.stack(attws, axis=-1)


# --------------------------------------- parameters ---------------------------------------
def init_params(key):
    ks = jax.random.split(key, 18)

    def norm(k, shape, scale=0.1):
        return jax.random.normal(k, shape, dtype=jnp.float32) * scale

    p = {}
    p["att_V"] = norm(ks[0], (ENC, HID))                # mlp_enc weight
    p["att_bV"] = norm(ks[1], (HID,), 0.01)             # mlp_enc bias
    p["att_Wdec"] = norm(ks[2], (HID, HID))             # mlp_dec (bias-free)
    p["att_Wconv"] = norm(ks[3], (CONV_CH, 1, CONV_K))  # location conv1d (bias-free)
    p["att_U"] = norm(ks[4], (CONV_CH, HID))            # location linear (bias-free)
    p["att_g"] = norm(ks[5], (HID,))                    # energy vector
    p["pre_W1"] = norm(ks[6], (PRE_IN, PRE_INNER), 0.2)
    p["pre_b1"] = norm(ks[7], (PRE_INNER,), 0.01)
    p["pre_W2"] = norm(ks[8], (PRE_INNER, HID), 0.2)
    p["pre_b2"] = norm(ks[9], (HID,), 0.01)
    p["lstm0_Wih"] = norm(ks[10], (HID + ENC, 4 * HID))
    p["lstm0_Whh"] = norm(ks[11], (HID, 4 * HID))
    p["lstm0_b"] = norm(ks[12], (4 * HID,), 0.01)       # b_ih + b_hh combined
    p["lstm1_Wih"] = norm(ks[13], (HID, 4 * HID))
    p["lstm1_Whh"] = norm(ks[14], (HID, 4 * HID))
    p["lstm1_b"] = norm(ks[15], (4 * HID,), 0.01)
    p["out_W"] = norm(ks[16], (HID + ENC, DR))          # Conv1d kernel_size=1 == linear
    p["out_b"] = norm(ks[17], (DR,), 0.01)
    return p


if __name__ == "__main__":
    key = jax.random.PRNGKey(0)
    kp, ke = jax.random.split(key)
    params = init_params(kp)
    enc = jax.random.normal(ke, (B, T, ENC), dtype=jnp.float32)
    data_len = jnp.array([T * RED, T * RED - 4], dtype=jnp.int32)   # [16, 12]

    fwd = jax.jit(rnn_decoder_forward)
    out, att_w = fwd(params, enc, data_len)
    out = jax.block_until_ready(out)
    att_w = jax.block_until_ready(att_w)

    assert out.shape == (B, D_OUT, RED * T)
    assert att_w.shape == (B, T, T)

    ref_out, ref_att = reference_forward(params, enc, data_len)
    np.testing.assert_allclose(np.asarray(out), np.asarray(ref_out), rtol=5e-2, atol=5e-2)
    np.testing.assert_allclose(np.asarray(att_w), np.asarray(ref_att), rtol=5e-2, atol=5e-2)

    print("KERNEL_OK")
</pallas_src>

<mosaic_0001>
module attributes {stable_mosaic.version = 11 : i64} {
  func.func @decoder_kernel(%arg0: i32, %arg1: memref<8x8x32xf32, #tpu.memory_space<vmem>>, %arg2: memref<8x256xf32, #tpu.memory_space<vmem>>, %arg3: memref<8x8xf32, #tpu.memory_space<vmem>>, %arg4: memref<8x8xf32, #tpu.memory_space<vmem>>, %arg5: memref<8x8x8xf32, #tpu.memory_space<vmem>>, %arg6: memref<40x256xf32, #tpu.memory_space<vmem>>, %arg7: memref<256x8xf32, #tpu.memory_space<vmem>>, %arg8: memref<8x16xf32, #tpu.memory_space<vmem>>, %arg9: memref<1x16xf32, #tpu.memory_space<vmem>>, %arg10: memref<16x32xf32, #tpu.memory_space<vmem>>, %arg11: memref<1x32xf32, #tpu.memory_space<vmem>>, %arg12: memref<96x128xf32, #tpu.memory_space<vmem>>, %arg13: memref<1x128xf32, #tpu.memory_space<vmem>>, %arg14: memref<64x128xf32, #tpu.memory_space<vmem>>, %arg15: memref<1x128xf32, #tpu.memory_space<vmem>>, %arg16: memref<32x8xf32, #tpu.memory_space<vmem>>, %arg17: memref<8x8x8xf32, #tpu.memory_space<vmem>>, %arg18: memref<8x8x8xf32, #tpu.memory_space<vmem>>) attributes {dimension_semantics = [#tpu.dimension_semantics<parallel>], iteration_bounds = array<i64: 1>, scalar_prefetch = 0 : i64, scratch_operands = 0 : i64, tpu.core_type = #tpu.core_type<tc>, window_params = [{transform_indices = @transform_0, window_bounds = array<i64: 8, 8, 32>}, {transform_indices = @transform_1, window_bounds = array<i64: 8, 256>}, {transform_indices = @transform_2, window_bounds = array<i64: 8, 8>}, {transform_indices = @transform_3, window_bounds = array<i64: 8, 8>}, {transform_indices = @transform_4, window_bounds = array<i64: 8, 8, 8>}, {pipeline_mode = #tpu.pipeline_mode<synchronous>, transform_indices = @transform_5, window_bounds = array<i64: 40, 256>}, {pipeline_mode = #tpu.pipeline_mode<synchronous>, transform_indices = @transform_6, window_bounds = array<i64: 256, 8>}, {pipeline_mode = #tpu.pipeline_mode<synchronous>, transform_indices = @transform_7, window_bounds = array<i64: 8, 16>}, {pipeline_mode = #tpu.pipeline_mode<synchronous>, transform_indices = @transform_8, window_bounds = array<i64: 1, 16>}, {pipeline_mode = #tpu.pipeline_mode<synchronous>, transform_indices = @transform_9, window_bounds = array<i64: 16, 32>}, {pipeline_mode = #tpu.pipeline_mode<synchronous>, transform_indices = @transform_10, window_bounds = array<i64: 1, 32>}, {pipeline_mode = #tpu.pipeline_mode<synchronous>, transform_indices = @transform_11, window_bounds = array<i64: 96, 128>}, {pipeline_mode = #tpu.pipeline_mode<synchronous>, transform_indices = @transform_12, window_bounds = array<i64: 1, 128>}, {pipeline_mode = #tpu.pipeline_mode<synchronous>, transform_indices = @transform_13, window_bounds = array<i64: 64, 128>}, {pipeline_mode = #tpu.pipeline_mode<synchronous>, transform_indices = @transform_14, window_bounds = array<i64: 1, 128>}, {pipeline_mode = #tpu.pipeline_mode<synchronous>, transform_indices = @transform_15, window_bounds = array<i64: 32, 8>}, {transform_indices = @transform_16, window_bounds = array<i64: 8, 8, 8>}, {transform_indices = @transform_17, window_bounds = array<i64: 8, 8, 8>}]} {
    %c0 = arith.constant 0 : index
    %c0_0 = arith.constant 0 : index
    %c0_1 = arith.constant 0 : index
    %0 = vector.load %arg1[%c0, %c0_0, %c0_1] : memref<8x8x32xf32, #tpu.memory_space<vmem>>, vector<8x8x32xf32>
    %c0_2 = arith.constant 0 : index
    %c0_3 = arith.constant 0 : index
    %1 = vector.load %arg2[%c0_2, %c0_3] : memref<8x256xf32, #tpu.memory_space<vmem>>, vector<8x256xf32>
    %c0_4 = arith.constant 0 : index
    %c0_5 = arith.constant 0 : index
    %2 = vector.load %arg4[%c0_4, %c0_5] : memref<8x8xf32, #tpu.memory_space<vmem>>, vector<8x8xf32>
    %c0_6 = arith.constant 0 : index
    %c0_7 = arith.constant 0 : index
    %3 = vector.load %arg6[%c0_6, %c0_7] : memref<40x256xf32, #tpu.memory_space<vmem>>, vector<40x256xf32>
    %c0_8 = arith.constant 0 : index
    %c0_9 = arith.constant 0 : index
    %4 = vector.load %arg7[%c0_8, %c0_9] : memref<256x8xf32, #tpu.memory_space<vmem>>, vector<256x8xf32>
    %c0_10 = arith.constant 0 : index
    %c0_11 = arith.constant 0 : index
    %5 = vector.load %arg8[%c0_10, %c0_11] : memref<8x16xf32, #tpu.memory_space<vmem>>, vector<8x16xf32>
    %c0_12 = arith.constant 0 : index
    %c0_13 = arith.constant 0 : index
    %6 = vector.load %arg9[%c0_12, %c0_13] : memref<1x16xf32, #tpu.memory_space<vmem>>, vector<1x16xf32>
    %c0_14 = arith.constant 0 : index
    %c0_15 = arith.constant 0 : index
    %7 = vector.load %arg10[%c0_14, %c0_15] : memref<16x32xf32, #tpu.memory_space<vmem>>, vector<16x32xf32>
    %c0_16 = arith.constant 0 : index
    %c0_17 = arith.constant 0 : index
    %8 = vector.load %arg11[%c0_16, %c0_17] : memref<1x32xf32, #tpu.memory_space<vmem>>, vector<1x32xf32>
    %c0_18 = arith.constant 0 : index
    %c0_19 = arith.constant 0 : index
    %9 = vector.load %arg12[%c0_18, %c0_19] : memref<96x128xf32, #tpu.memory_space<vmem>>, vector<96x128xf32>
    %c0_20 = arith.constant 0 : index
    %c0_21 = arith.constant 0 : index
    %10 = vector.load %arg13[%c0_20, %c0_21] : memref<1x128xf32, #tpu.memory_space<vmem>>, vector<1x128xf32>
    %c0_22 = arith.constant 0 : index
    %c0_23 = arith.constant 0 : index
    %11 = vector.load %arg14[%c0_22, %c0_23] : memref<64x128xf32, #tpu.memory_space<vmem>>, vector<64x128xf32>
    %c0_24 = arith.constant 0 : index
    %c0_25 = arith.constant 0 : index
    %12 = vector.load %arg15[%c0_24, %c0_25] : memref<1x128xf32, #tpu.memory_space<vmem>>, vector<1x128xf32>
    %c0_26 = arith.constant 0 : index
    %c0_27 = arith.constant 0 : index
    %13 = vector.load %arg16[%c0_26, %c0_27] : memref<32x8xf32, #tpu.memory_space<vmem>>, vector<32x8xf32>
    %cst = arith.constant 0.000000e+00 : f32
    %14 = vector.broadcast %cst : f32 to vector<8x32xf32>
    %cst_28 = arith.constant 0.000000e+00 : f32
    %15 = vector.broadcast %cst_28 : f32 to vector<8x8xf32>
    %c0_29 = arith.constant 0 : index
    %c0_30 = arith.constant 0 : index
    %16 = vector.load %arg3[%c0_29, %c0_30] : memref<8x8xf32, #tpu.memory_space<vmem>>, vector<8x8xf32>
    %c0_i32 = arith.constant 0 : i32
    %17 = tpu.concatenate %14, %16 in 1 : vector<8x32xf32>, vector<8x8xf32> -> vector<8x40xf32>
    %cst_31 = arith.constant dense<0.000000e+00> : vector<8x256xf32>
    %18 = tpu.matmul %17, %3, %cst_31 {dimension_numbers = #tpu.dot_dimension_numbers<[1], [0], [0], [1], [0, 0, 1, 1], [], []>} : vector<8x40xf32>, vector<40x256xf32>, vector<8x256xf32> -> vector<8x256xf32>
    %19 = arith.addf %1, %18 : vector<8x256xf32>
    %20 = math.tanh %19 : vector<8x256xf32>
    %cst_32 = arith.constant dense<0.000000e+00> : vector<8x8xf32>
    %21 = tpu.matmul %20, %4, %cst_32 {dimension_numbers = #tpu.dot_dimension_numbers<[1], [0], [0], [1], [0, 0, 1, 1], [], []>} : vector<8x256xf32>, vector<256x8xf32>, vector<8x8xf32> -> vector<8x8xf32>
    %22 = arith.addf %21, %2 : vector<8x8xf32>
    %cst_33 = arith.constant dense<0xFF800000> : vector<8xf32>
    %23 = vector.multi_reduction <maximumf>, %22, %cst_33 [1] : vector<8x8xf32> to vector<8xf32>
    %24 = vector.shape_cast %23 : vector<8xf32> to vector<8x1xf32>
    %25 = vector.broadcast %24 : vector<8x1xf32> to vector<8x8xf32>
    %26 = arith.subf %22, %25 : vector<8x8xf32>
    %27 = math.exp %26 : vector<8x8xf32>
    %cst_34 = arith.constant dense<0.000000e+00> : vector<8xf32>
    %28 = vector.multi_reduction <add>, %27, %cst_34 [1] : vector<8x8xf32> to vector<8xf32>
    %29 = vector.shape_cast %28 : vector<8xf32> to vector<8x1xf32>
    %30 = tpu.reciprocal %29 {approx = true} : vector<8x1xf32> -> vector<8x1xf32>
    %31 = vector.broadcast %30 : vector<8x1xf32> to vector<8x8xf32>
    %32 = arith.mulf %27, %31 : vector<8x8xf32>
    %33 = vector.shape_cast %32 : vector<8x8xf32> to vector<8x8x1xf32>
    %34 = vector.broadcast %33 : vector<8x8x1xf32> to vector<8x8x32xf32>
    %35 = arith.mulf %34, %0 : vector<8x8x32xf32>
    %cst_35 = arith.constant dense<0.000000e+00> : vector<8x32xf32>
    %36 = vector.multi_reduction <add>, %35, %cst_35 [1] : vector<8x8x32xf32> to vector<8x32xf32>
    %cst_36 = arith.constant dense<0.000000e+00> : vector<8x16xf32>
    %37 = tpu.matmul %15, %5, %cst_36 {dimension_numbers = #tpu.dot_dimension_numbers<[1], [0], [0], [1], [0, 0, 1, 1], [], []>} : vector<8x8xf32>, vector<8x16xf32>, vector<8x16xf32> -> vector<8x16xf32>
    %38 = vector.broadcast %6 : vector<1x16xf32> to vector<8x16xf32>
    %39 = arith.addf %37, %38 : vector<8x16xf32>
    %cst_37 = arith.constant 0.000000e+00 : f32
    %40 = vector.broadcast %cst_37 : f32 to vector<8x16xf32>
    %41 = arith.maximumf %39, %40 : vector<8x16xf32>
    %cst_38 = arith.constant dense<0.000000e+00> : vector<8x32xf32>
    %42 = tpu.matmul %41, %7, %cst_38 {dimension_numbers = #tpu.dot_dimension_numbers<[1], [0], [0], [1], [0, 0, 1, 1], [], []>} : vector<8x16xf32>, vector<16x32xf32>, vector<8x32xf32> -> vector<8x32xf32>
    %43 = vector.broadcast %8 : vector<1x32xf32> to vector<8x32xf32>
    %44 = arith.addf %42, %43 : vector<8x32xf32>
    %cst_39 = arith.constant 0.000000e+00 : f32
    %45 = vector.broadcast %cst_39 : f32 to vector<8x32xf32>
    %46 = arith.maximumf %44, %45 : vector<8x32xf32>
    %47 = tpu.concatenate %46, %36, %14 in 1 : vector<8x32xf32>, vector<8x32xf32>, vector<8x32xf32> -> vector<8x96xf32>
    %cst_40 = arith.constant dense<0.000000e+00> : vector<8x128xf32>
    %48 = tpu.matmul %47, %9, %cst_40 {dimension_numbers = #tpu.dot_dimension_numbers<[1], [0], [0], [1], [0, 0, 1, 1], [], []>} : vector<8x96xf32>, vector<96x128xf32>, vector<8x128xf32> -> vector<8x128xf32>
    %49 = vector.broadcast %10 : vector<1x128xf32> to vector<8x128xf32>
    %50 = arith.addf %48, %49 : vector<8x128xf32>
    %51 = vector.extract_strided_slice %50 {offsets = [0, 0], sizes = [8, 32], strides = [1, 1]} : vector<8x128xf32> to vector<8x32xf32>
    %52 = arith.negf %51 : vector<8x32xf32>
    %53 = math.exp %52 : vector<8x32xf32>
    %cst_41 = arith.constant 1.000000e+00 : f32
    %54 = vector.broadcast %cst_41 : f32 to vector<8x32xf32>
    %55 = arith.addf %54, %53 : vector<8x32xf32>
    %56 = arith.divf %54, %55 : vector<8x32xf32>
    %57 = vector.extract_strided_slice %50 {offsets = [0, 32], sizes = [8, 32], strides = [1, 1]} : vector<8x128xf32> to vector<8x32xf32>
    %58 = arith.negf %57 : vector<8x32xf32>
    %59 = math.exp %58 : vector<8x32xf32>
    %cst_42 = arith.constant 1.000000e+00 : f32
    %60 = vector.broadcast %cst_42 : f32 to vector<8x32xf32>
    %61 = arith.addf %60, %59 : vector<8x32xf32>
    %62 = arith.divf %60, %61 : vector<8x32xf32>
    %63 = vector.extract_strided_slice %50 {offsets = [0, 64], sizes = [8, 32], strides = [1, 1]} : vector<8x128xf32> to vector<8x32xf32>
    %64 = math.tanh %63 : vector<8x32xf32>
    %65 = vector.extract_strided_slice %50 {offsets = [0, 96], sizes = [8, 32], strides = [1, 1]} : vector<8x128xf32> to vector<8x32xf32>
    %66 = arith.negf %65 : vector<8x32xf32>
    %67 = math.exp %66 : vector<8x32xf32>
    %cst_43 = arith.constant 1.000000e+00 : f32
    %68 = vector.broadcast %cst_43 : f32 to vector<8x32xf32>
    %69 = arith.addf %68, %67 : vector<8x32xf32>
    %70 = arith.divf %68, %69 : vector<8x32xf32>
    %71 = arith.mulf %62, %14 : vector<8x32xf32>
    %72 = arith.mulf %56, %64 : vector<8x32xf32>
    %73 = arith.addf %71, %72 : vector<8x32xf32>
    %74 = math.tanh %73 : vector<8x32xf32>
    %75 = arith.mulf %70, %74 : vector<8x32xf32>
    %76 = tpu.concatenate %75, %14 in 1 : vector<8x32xf32>, vector<8x32xf32> -> vector<8x64xf32>
    %cst_44 = arith.constant dense<0.000000e+00> : vector<8x128xf32>
    %77 = tpu.matmul %76, %11, %cst_44 {dimension_numbers = #tpu.dot_dimension_numbers<[1], [0], [0], [1], [0, 0, 1, 1], [], []>} : vector<8x64xf32>, vector<64x128xf32>, vector<8x128xf32> -> vector<8x128xf32>
    %78 = vector.broadcast %12 : vector<1x128xf32> to vector<8x128xf32>
    %79 = arith.addf %77, %78 : vector<8x128xf32>
    %80 = vector.extract_strided_slice %79 {offsets = [0, 0], sizes = [8, 32], strides = [1, 1]} : vector<8x128xf32> to vector<8x32xf32>
    %81 = arith.negf %80 : vector<8x32xf32>
    %82 = math.exp %81 : vector<8x32xf32>
    %cst_45 = arith.constant 1.000000e+00 : f32
    %83 = vector.broadcast %cst_45 : f32 to vector<8x32xf32>
    %84 = arith.addf %83, %82 : vector<8x32xf32>
    %85 = arith.divf %83, %84 : vector<8x32xf32>
    %86 = vector.extract_strided_slice %79 {offsets = [0, 32], sizes = [8, 32], strides = [1, 1]} : vector<8x128xf32> to vector<8x32xf32>
    %87 = arith.negf %86 : vector<8x32xf32>
    %88 = math.exp %87 : vector<8x32xf32>
    %cst_46 = arith.constant 1.000000e+00 : f32
    %89 = vector.broadcast %cst_46 : f32 to vector<8x32xf32>
    %90 = arith.addf %89, %88 : vector<8x32xf32>
    %91 = arith.divf %89, %90 : vector<8x32xf32>
    %92 = vector.extract_strided_slice %79 {offsets = [0, 64], sizes = [8, 32], strides = [1, 1]} : vector<8x128xf32> to vector<8x32xf32>
    %93 = math.tanh %92 : vector<8x32xf32>
    %94 = vector.extract_strided_slice %79 {offsets = [0, 96], sizes = [8, 32], strides = [1, 1]} : vector<8x128xf32> to vector<8x32xf32>
    %95 = arith.negf %94 : vector<8x32xf32>
    %96 = math.exp %95 : vector<8x32xf32>
    %cst_47 = arith.constant 1.000000e+00 : f32
    %97 = vector.broadcast %cst_47 : f32 to vector<8x32xf32>
    %98 = arith.addf %97, %96 : vector<8x32xf32>
    %99 = arith.divf %97, %98 : vector<8x32xf32>
    %100 = arith.mulf %91, %14 : vector<8x32xf32>
    %101 = arith.mulf %85, %93 : vector<8x32xf32>
    %102 = arith.addf %100, %101 : vector<8x32xf32>
    %103 = math.tanh %102 : vector<8x32xf32>
    %104 = arith.mulf %99, %103 : vector<8x32xf32>
    %cst_48 = arith.constant dense<0.000000e+00> : vector<8x8xf32>
    %105 = tpu.matmul %104, %13, %cst_48 {dimension_numbers = #tpu.dot_dimension_numbers<[1], [0], [0], [1], [0, 0, 1, 1], [], []>} : vector<8x32xf32>, vector<32x8xf32>, vector<8x8xf32> -> vector<8x8xf32>
    %106 = arith.index_cast %c0_i32 : i32 to index
    %c0_49 = arith.constant 0 : index
    %c0_50 = arith.constant 0 : index
    %107 = vector.load %arg5[%106, %c0_49, %c0_50] : memref<8x8x8xf32, #tpu.memory_space<vmem>>, vector<1x8x8xf32>
    %108 = vector.shape_cast %107 : vector<1x8x8xf32> to vector<8x8xf32>
    %109 = arith.addf %105, %108 : vector<8x8xf32>
    %110 = arith.index_cast %c0_i32 : i32 to index
    %c0_51 = arith.constant 0 : index
    %c0_52 = arith.constant 0 : index
    %111 = vector.load %arg17[%110, %c0_51, %c0_52] : memref<8x8x8xf32, #tpu.memory_space<vmem>>, vector<1x8x8xf32>
    %112 = vector.shape_cast %111 : vector<1x8x8xf32> to vector<8x8xf32>
    %113 = vector.shape_cast %109 : vector<8x8xf32> to vector<1x8x8xf32>
    tpu.vector_store %arg17[%110, %c0_51, %c0_52], %113 {strides = array<i32>} : memref<8x8x8xf32, #tpu.memory_space<vmem>>, vector<1x8x8xf32>,
    %114 = arith.index_cast %c0_i32 : i32 to index
    %c0_53 = arith.constant 0 : index
    %c0_54 = arith.constant 0 : index
    %115 = vector.load %arg18[%114, %c0_53, %c0_54] : memref<8x8x8xf32, #tpu.memory_space<vmem>>, vector<1x8x8xf32>
    %116 = vector.shape_cast %115 : vector<1x8x8xf32> to vector<8x8xf32>
    %117 = vector.shape_cast %32 : vector<8x8xf32> to vector<1x8x8xf32>
    tpu.vector_store %arg18[%114, %c0_53, %c0_54], %117 {strides = array<i32>} : memref<8x8x8xf32, #tpu.memory_space<vmem>>, vector<1x8x8xf32>,
    %c0_i32_55 = arith.constant 0 : i32
    %118 = arith.cmpi eq, %c0_i32, %c0_i32_55 : i32
    %119 = arith.addf %16, %32 : vector<8x8xf32>
    %120 = arith.select %118, %32, %119 : vector<8x8xf32>
    %c1_i32 = arith.constant 1 : i32
    %121 = tpu.concatenate %75, %120 in 1 : vector<8x32xf32>, vector<8x8xf32> -> vector<8x40xf32>
    %cst_56 = arith.constant dense<0.000000e+00> : vector<8x256xf32>
    %122 = tpu.matmul %121, %3, %cst_56 {dimension_numbers = #tpu.dot_dimension_numbers<[1], [0], [0], [1], [0, 0, 1, 1], [], []>} : vector<8x40xf32>, vector<40x256xf32>, vector<8x256xf32> -> vector<8x256xf32>
    %123 = arith.addf %1, %122 : vector<8x256xf32>
    %124 = math.tanh %123 : vector<8x256xf32>
    %cst_57 = arith.constant dense<0.000000e+00> : vector<8x8xf32>
    %125 = tpu.matmul %124, %4, %cst_57 {dimension_numbers = #tpu.dot_dimension_numbers<[1], [0], [0], [1], [0, 0, 1, 1], [], []>} : vector<8x256xf32>, vector<256x8xf32>, vector<8x8xf32> -> vector<8x8xf32>
    %126 = arith.addf %125, %2 : vector<8x8xf32>
    %cst_58 = arith.constant dense<0xFF800000> : vector<8xf32>
    %127 = vector.multi_reduction <maximumf>, %126, %cst_58 [1] : vector<8x8xf32> to vector<8xf32>
    %128 = vector.shape_cast %127 : vector<8xf32> to vector<8x1xf32>
    %129 = vector.broadcast %128 : vector<8x1xf32> to vector<8x8xf32>
    %130 = arith.subf %126, %129 : vector<8x8xf32>
    %131 = math.exp %130 : vector<8x8xf32>
    %cst_59 = arith.constant dense<0.000000e+00> : vector<8xf32>
    %132 = vector.multi_reduction <add>, %131, %cst_59 [1] : vector<8x8xf32> to vector<8xf32>
    %133 = vector.shape_cast %132 : vector<8xf32> to vector<8x1xf32>
    %134 = tpu.reciprocal %133 {approx = true} : vector<8x1xf32> -> vector<8x1xf32>
    %135 = vector.broadcast %134 : vector<8x1xf32> to vector<8x8xf32>
    %136 = arith.mulf %131, %135 : vector<8x8xf32>
    %137 = vector.shape_cast %136 : vector<8x8xf32> to vector<8x8x1xf32>
    %138 = vector.broadcast %137 : vector<8x8x1xf32> to vector<8x8x32xf32>
    %139 = arith.mulf %138, %0 : vector<8x8x32xf32>
    %cst_60 = arith.constant dense<0.000000e+00> : vector<8x32xf32>
    %140 = vector.multi_reduction <add>, %139, %cst_60 [1] : vector<8x8x32xf32> to vector<8x32xf32>
    %cst_61 = arith.constant dense<0.000000e+00> : vector<8x16xf32>
    %141 = tpu.matmul %109, %5, %cst_61 {dimension_numbers = #tpu.dot_dimension_numbers<[1], [0], [0], [1], [0, 0, 1, 1], [], []>} : vector<8x8xf32>, vector<8x16xf32>, vector<8x16xf32> -> vector<8x16xf32>
    %142 = vector.broadcast %6 : vector<1x16xf32> to vector<8x16xf32>
    %143 = arith.addf %141, %142 : vector<8x16xf32>
    %cst_62 = arith.constant 0.000000e+00 : f32
    %144 = vector.broadcast %cst_62 : f32 to vector<8x16xf32>
    %145 = arith.maximumf %143, %144 : vector<8x16xf32>
    %cst_63 = arith.constant dense<0.000000e+00> : vector<8x32xf32>
    %146 = tpu.matmul %145, %7, %cst_63 {dimension_numbers = #tpu.dot_dimension_numbers<[1], [0], [0], [1], [0, 0, 1, 1], [], []>} : vector<8x16xf32>, vector<16x32xf32>, vector<8x32xf32> -> vector<8x32xf32>
    %147 = vector.broadcast %8 : vector<1x32xf32> to vector<8x32xf32>
    %148 = arith.addf %146, %147 : vector<8x32xf32>
    %cst_64 = arith.constant 0.000000e+00 : f32
    %149 = vector.broadcast %cst_64 : f32 to vector<8x32xf32>
    %150 = arith.maximumf %148, %149 : vector<8x32xf32>
    %151 = tpu.concatenate %150, %140, %75 in 1 : vector<8x32xf32>, vector<8x32xf32>, vector<8x32xf32> -> vector<8x96xf32>
    %cst_65 = arith.constant dense<0.000000e+00> : vector<8x128xf32>
    %152 = tpu.matmul %151, %9, %cst_65 {dimension_numbers = #tpu.dot_dimension_numbers<[1], [0], [0], [1], [0, 0, 1, 1], [], []>} : vector<8x96xf32>, vector<96x128xf32>, vector<8x128xf32> -> vector<8x128xf32>
    %153 = vector.broadcast %10 : vector<1x128xf32> to vector<8x128xf32>
    %154 = arith.addf %152, %153 : vector<8x128xf32>
    %155 = vector.extract_strided_slice %154 {offsets = [0, 0], sizes = [8, 32], strides = [1, 1]} : vector<8x128xf32> to vector<8x32xf32>
    %156 = arith.negf %155 : vector<8x32xf32>
    %157 = math.exp %156 : vector<8x32xf32>
    %cst_66 = arith.constant 1.000000e+00 : f32
    %158 = vector.broadcast %cst_66 : f32 to vector<8x32xf32>
    %159 = arith.addf %158, %157 : vector<8x32xf32>
    %160 = arith.divf %158, %159 : vector<8x32xf32>
    %161 = vector.extract_strided_slice %154 {offsets = [0, 32], sizes = [8, 32], strides = [1, 1]} : vector<8x128xf32> to vector<8x32xf32>
    %162 = arith.negf %161 : vector<8x32xf32>
    %163 = math.exp %162 : vector<8x32xf32>
    %cst_67 = arith.constant 1.000000e+00 : f32
    %164 = vector.broadcast %cst_67 : f32 to vector<8x32xf32>
    %165 = arith.addf %164, %163 : vector<8x32xf32>
    %166 = arith.divf %164, %165 : vector<8x32xf32>
    %167 = vector.extract_strided_slice %154 {offsets = [0, 64], sizes = [8, 32], strides = [1, 1]} : vector<8x128xf32> to vector<8x32xf32>
    %168 = math.tanh %167 : vector<8x32xf32>
    %169 = vector.extract_strided_slice %154 {offsets = [0, 96], sizes = [8, 32], strides = [1, 1]} : vector<8x128xf32> to vector<8x32xf32>
    %170 = arith.negf %169 : vector<8x32xf32>
    %171 = math.exp %170 : vector<8x32xf32>
    %cst_68 = arith.constant 1.000000e+00 : f32
    %172 = vector.broadcast %cst_68 : f32 to vector<8x32xf32>
    %173 = arith.addf %172, %171 : vector<8x32xf32>
    %174 = arith.divf %172, %173 : vector<8x32xf32>
    %175 = arith.mulf %166, %73 : vector<8x32xf32>
    %176 = arith.mulf %160, %168 : vector<8x32xf32>
    %177 = arith.addf %175, %176 : vector<8x32xf32>
    %178 = math.tanh %177 : vector<8x32xf32>
    %179 = arith.mulf %174, %178 : vector<8x32xf32>
    %180 = tpu.concatenate %179, %104 in 1 : vector<8x32xf32>, vector<8x32xf32> -> vector<8x64xf32>
    %cst_69 = arith.constant dense<0.000000e+00> : vector<8x128xf32>
    %181 = tpu.matmul %180, %11, %cst_69 {dimension_numbers = #tpu.dot_dimension_numbers<[1], [0], [0], [1], [0, 0, 1, 1], [], []>} : vector<8x64xf32>, vector<64x128xf32>, vector<8x128xf32> -> vector<8x128xf32>
    %182 = vector.broadcast %12 : vector<1x128xf32> to vector<8x128xf32>
    %183 = arith.addf %181, %182 : vector<8x128xf32>
    %184 = vector.extract_strided_slice %183 {offsets = [0, 0], sizes = [8, 32], strides = [1, 1]} : vector<8x128xf32> to vector<8x32xf32>
    %185 = arith.negf %184 : vector<8x32xf32>
    %186 = math.exp %185 : vector<8x32xf32>
    %cst_70 = arith.constant 1.000000e+00 : f32
    %187 = vector.broadcast %cst_70 : f32 to vector<8x32xf32>
    %188 = arith.addf %187, %186 : vector<8x32xf32>
    %189 = arith.divf %187, %188 : vector<8x32xf32>
    %190 = vector.extract_strided_slice %183 {offsets = [0, 32], sizes = [8, 32], strides = [1, 1]} : vector<8x128xf32> to vector<8x32xf32>
    %191 = arith.negf %190 : vector<8x32xf32>
    %192 = math.exp %191 : vector<8x32xf32>
    %cst_71 = arith.constant 1.000000e+00 : f32
    %193 = vector.broadcast %cst_71 : f32 to vector<8x32xf32>
    %194 = arith.addf %193, %192 : vector<8x32xf32>
    %195 = arith.divf %193, %194 : vector<8x32xf32>
    %196 = vector.extract_strided_slice %183 {offsets = [0, 64], sizes = [8, 32], strides = [1, 1]} : vector<8x128xf32> to vector<8x32xf32>
    %197 = math.tanh %196 : vector<8x32xf32>
    %198 = vector.extract_strided_slice %183 {offsets = [0, 96], sizes = [8, 32], strides = [1, 1]} : vector<8x128xf32> to vector<8x32xf32>
    %199 = arith.negf %198 : vector<8x32xf32>
    %200 = math.exp %199 : vector<8x32xf32>
    %cst_72 = arith.constant 1.000000e+00 : f32
    %201 = vector.broadcast %cst_72 : f32 to vector<8x32xf32>
    %202 = arith.addf %201, %200 : vector<8x32xf32>
    %203 = arith.divf %201, %202 : vector<8x32xf32>
    %204 = arith.mulf %195, %102 : vector<8x32xf32>
    %205 = arith.mulf %189, %197 : vector<8x32xf32>
    %206 = arith.addf %204, %205 : vector<8x32xf32>
    %207 = math.tanh %206 : vector<8x32xf32>
    %208 = arith.mulf %203, %207 : vector<8x32xf32>
    %cst_73 = arith.constant dense<0.000000e+00> : vector<8x8xf32>
    %209 = tpu.matmul %208, %13, %cst_73 {dimension_numbers = #tpu.dot_dimension_numbers<[1], [0], [0], [1], [0, 0, 1, 1], [], []>} : vector<8x32xf32>, vector<32x8xf32>, vector<8x8xf32> -> vector<8x8xf32>
    %210 = arith.index_cast %c1_i32 : i32 to index
    %c0_74 = arith.constant 0 : index
    %c0_75 = arith.constant 0 : index
    %211 = vector.load %arg5[%210, %c0_74, %c0_75] : memref<8x8x8xf32, #tpu.memory_space<vmem>>, vector<1x8x8xf32>
    %212 = vector.shape_cast %211 : vector<1x8x8xf32> to vector<8x8xf32>
    %213 = arith.addf %209, %212 : vector<8x8xf32>
    %214 = arith.index_cast %c1_i32 : i32 to index
    %c0_76 = arith.constant 0 : index
    %c0_77 = arith.constant 0 : index
    %215 = vector.load %arg17[%214, %c0_76, %c0_77] : memref<8x8x8xf32, #tpu.memory_space<vmem>>, vector<1x8x8xf32>
    %216 = vector.shape_cast %215 : vector<1x8x8xf32> to vector<8x8xf32>
    %217 = vector.shape_cast %213 : vector<8x8xf32> to vector<1x8x8xf32>
    tpu.vector_store %arg17[%214, %c0_76, %c0_77], %217 {strides = array<i32>} : memref<8x8x8xf32, #tpu.memory_space<vmem>>, vector<1x8x8xf32>,
    %218 = arith.index_cast %c1_i32 : i32 to index
    %c0_78 = arith.constant 0 : index
    %c0_79 = arith.constant 0 : index
    %219 = vector.load %arg18[%218, %c0_78, %c0_79] : memref<8x8x8xf32, #tpu.memory_space<vmem>>, vector<1x8x8xf32>
    %220 = vector.shape_cast %219 : vector<1x8x8xf32> to vector<8x8xf32>
    %221 = vector.shape_cast %136 : vector<8x8xf32> to vector<1x8x8xf32>
    tpu.vector_store %arg18[%218, %c0_78, %c0_79], %221 {strides = array<i32>} : memref<8x8x8xf32, #tpu.memory_space<vmem>>, vector<1x8x8xf32>,
    %c0_i32_80 = arith.constant 0 : i32
    %222 = arith.cmpi eq, %c1_i32, %c0_i32_80 : i32
    %223 = arith.addf %120, %136 : vector<8x8xf32>
    %224 = arith.select %222, %136, %223 : vector<8x8xf32>
    %c2_i32 = arith.constant 2 : i32
    %225 = tpu.concatenate %179, %224 in 1 : vector<8x32xf32>, vector<8x8xf32> -> vector<8x40xf32>
    %cst_81 = arith.constant dense<0.000000e+00> : vector<8x256xf32>
    %226 = tpu.matmul %225, %3, %cst_81 {dimension_numbers = #tpu.dot_dimension_numbers<[1], [0], [0], [1], [0, 0, 1, 1], [], []>} : vector<8x40xf32>, vector<40x256xf32>, vector<8x256xf32> -> vector<8x256xf32>
    %227 = arith.addf %1, %226 : vector<8x256xf32>
    %228 = math.tanh %227 : vector<8x256xf32>
    %cst_82 = arith.constant dense<0.000000e+00> : vector<8x8xf32>
    %229 = tpu.matmul %228, %4, %cst_82 {dimension_numbers = #tpu.dot_dimension_numbers<[1], [0], [0], [1], [0, 0, 1, 1], [], []>} : vector<8x256xf32>, vector<256x8xf32>, vector<8x8xf32> -> vector<8x8xf32>
    %230 = arith.addf %229, %2 : vector<8x8xf32>
    %cst_83 = arith.constant dense<0xFF800000> : vector<8xf32>
    %231 = vector.multi_reduction <maximumf>, %230, %cst_83 [1] : vector<8x8xf32> to vector<8xf32>
    %232 = vector.shape_cast %231 : vector<8xf32> to vector<8x1xf32>
    %233 = vector.broadcast %232 : vector<8x1xf32> to vector<8x8xf32>
    %234 = arith.subf %230, %233 : vector<8x8xf32>
    %235 = math.exp %234 : vector<8x8xf32>
    %cst_84 = arith.constant dense<0.000000e+00> : vector<8xf32>
    %236 = vector.multi_reduction <add>, %235, %cst_84 [1] : vector<8x8xf32> to vector<8xf32>
    %237 = vector.shape_cast %236 : vector<8xf32> to vector<8x1xf32>
    %238 = tpu.reciprocal %237 {approx = true} : vector<8x1xf32> -> vector<8x1xf32>
    %239 = vector.broadcast %238 : vector<8x1xf32> to vector<8x8xf32>
    %240 = arith.mulf %235, %239 : vector<8x8xf32>
    %241 = vector.shape_cast %240 : vector<8x8xf32> to vector<8x8x1xf32>
    %242 = vector.broadcast %241 : vector<8x8x1xf32> to vector<8x8x32xf32>
    %243 = arith.mulf %242, %0 : vector<8x8x32xf32>
    %cst_85 = arith.constant dense<0.000000e+00> : vector<8x32xf32>
    %244 = vector.multi_reduction <add>, %243, %cst_85 [1] : vector<8x8x32xf32> to vector<8x32xf32>
    %cst_86 = arith.constant dense<0.000000e+00> : vector<8x16xf32>
    %245 = tpu.matmul %213, %5, %cst_86 {dimension_numbers = #tpu.dot_dimension_numbers<[1], [0], [0], [1], [0, 0, 1, 1], [], []>} : vector<8x8xf32>, vector<8x16xf32>, vector<8x16xf32> -> vector<8x16xf32>
    %246 = vector.broadcast %6 : vector<1x16xf32> to vector<8x16xf32>
    %247 = arith.addf %245, %246 : vector<8x16xf32>
    %cst_87 = arith.constant 0.000000e+00 : f32
    %248 = vector.broadcast %cst_87 : f32 to vector<8x16xf32>
    %249 = arith.maximumf %247, %248 : vector<8x16xf32>
    %cst_88 = arith.constant dense<0.000000e+00> : vector<8x32xf32>
    %250 = tpu.matmul %249, %7, %cst_88 {dimension_numbers = #tpu.dot_dimension_numbers<[1], [0], [0], [1], [0, 0, 1, 1], [], []>} : vector<8x16xf32>, vector<16x32xf32>, vector<8x32xf32> -> vector<8x32xf32>
    %251 = vector.broadcast %8 : vector<1x32xf32> to vector<8x32xf32>
    %252 = arith.addf %250, %251 : vector<8x32xf32>
    %cst_89 = arith.constant 0.000000e+00 : f32
    %253 = vector.broadcast %cst_89 : f32 to vector<8x32xf32>
    %254 = arith.maximumf %252, %253 : vector<8x32xf32>
    %255 = tpu.concatenate %254, %244, %179 in 1 : vector<8x32xf32>, vector<8x32xf32>, vector<8x32xf32> -> vector<8x96xf32>
    %cst_90 = arith.constant dense<0.000000e+00> : vector<8x128xf32>
    %256 = tpu.matmul %255, %9, %cst_90 {dimension_numbers = #tpu.dot_dimension_numbers<[1], [0], [0], [1], [0, 0, 1, 1], [], []>} : vector<8x96xf32>, vector<96x128xf32>, vector<8x128xf32> -> vector<8x128xf32>
    %257 = vector.broadcast %10 : vector<1x128xf32> to vector<8x128xf32>
    %258 = arith.addf %256, %257 : vector<8x128xf32>
    %259 = vector.extract_strided_slice %258 {offsets = [0, 0], sizes = [8, 32], strides = [1, 1]} : vector<8x128xf32> to vector<8x32xf32>
    %260 = arith.negf %259 : vector<8x32xf32>
    %261 = math.exp %260 : vector<8x32xf32>
    %cst_91 = arith.constant 1.000000e+00 : f32
    %262 = vector.broadcast %cst_91 : f32 to vector<8x32xf32>
    %263 = arith.addf %262, %261 : vector<8x32xf32>
    %264 = arith.divf %262, %263 : vector<8x32xf32>
    %265 = vector.extract_strided_slice %258 {offsets = [0, 32], sizes = [8, 32], strides = [1, 1]} : vector<8x128xf32> to vector<8x32xf32>
    %266 = arith.negf %265 : vector<8x32xf32>
    %267 = math.exp %266 : vector<8x32xf32>
    %cst_92 = arith.constant 1.000000e+00 : f32
    %268 = vector.broadcast %cst_92 : f32 to vector<8x32xf32>
    %269 = arith.addf %268, %267 : vector<8x32xf32>
    %270 = arith.divf %268, %269 : vector<8x32xf32>
    %271 = vector.extract_strided_slice %258 {offsets = [0, 64], sizes = [8, 32], strides = [1, 1]} : vector<8x128xf32> to vector<8x32xf32>
    %272 = math.tanh %271 : vector<8x32xf32>
    %273 = vector.extract_strided_slice %258 {offsets = [0, 96], sizes = [8, 32], strides = [1, 1]} : vector<8x128xf32> to vector<8x32xf32>
    %274 = arith.negf %273 : vector<8x32xf32>
    %275 = math.exp %274 : vector<8x32xf32>
    %cst_93 = arith.constant 1.000000e+00 : f32
    %276 = vector.broadcast %cst_93 : f32 to vector<8x32xf32>
    %277 = arith.addf %276, %275 : vector<8x32xf32>
    %278 = arith.divf %276, %277 : vector<8x32xf32>
    %279 = arith.mulf %270, %177 : vector<8x32xf32>
    %280 = arith.mulf %264, %272 : vector<8x32xf32>
    %281 = arith.addf %279, %280 : vector<8x32xf32>
    %282 = math.tanh %281 : vector<8x32xf32>
    %283 = arith.mulf %278, %282 : vector<8x32xf32>
    %284 = tpu.concatenate %283, %208 in 1 : vector<8x32xf32>, vector<8x32xf32> -> vector<8x64xf32>
    %cst_94 = arith.constant dense<0.000000e+00> : vector<8x128xf32>
    %285 = tpu.matmul %284, %11, %cst_94 {dimension_numbers = #tpu.dot_dimension_numbers<[1], [0], [0], [1], [0, 0, 1, 1], [], []>} : vector<8x64xf32>, vector<64x128xf32>, vector<8x128xf32> -> vector<8x128xf32>
    %286 = vector.broadcast %12 : vector<1x128xf32> to vector<8x128xf32>
    %287 = arith.addf %285, %286 : vector<8x128xf32>
    %288 = vector.extract_strided_slice %287 {offsets = [0, 0], sizes = [8, 32], strides = [1, 1]} : vector<8x128xf32> to vector<8x32xf32>
    %289 = arith.negf %288 : vector<8x32xf32>
    %290 = math.exp %289 : vector<8x32xf32>
    %cst_95 = arith.constant 1.000000e+00 : f32
    %291 = vector.broadcast %cst_95 : f32 to vector<8x32xf32>
    %292 = arith.addf %291, %290 : vector<8x32xf32>
    %293 = arith.divf %291, %292 : vector<8x32xf32>
    %294 = vector.extract_strided_slice %287 {offsets = [0, 32], sizes = [8, 32], strides = [1, 1]} : vector<8x128xf32> to vector<8x32xf32>
    %295 = arith.negf %294 : vector<8x32xf32>
    %296 = math.exp %295 : vector<8x32xf32>
    %cst_96 = arith.constant 1.000000e+00 : f32
    %297 = vector.broadcast %cst_96 : f32 to vector<8x32xf32>
    %298 = arith.addf %297, %296 : vector<8x32xf32>
    %299 = arith.divf %297, %298 : vector<8x32xf32>
    %300 = vector.extract_strided_slice %287 {offsets = [0, 64], sizes = [8, 32], strides = [1, 1]} : vector<8x128xf32> to vector<8x32xf32>
    %301 = math.tanh %300 : vector<8x32xf32>
    %302 = vector.extract_strided_slice %287 {offsets = [0, 96], sizes = [8, 32], strides = [1, 1]} : vector<8x128xf32> to vector<8x32xf32>
    %303 = arith.negf %302 : vector<8x32xf32>
    %304 = math.exp %303 : vector<8x32xf32>
    %cst_97 = arith.constant 1.000000e+00 : f32
    %305 = vector.broadcast %cst_97 : f32 to vector<8x32xf32>
    %306 = arith.addf %305, %304 : vector<8x32xf32>
    %307 = arith.divf %305, %306 : vector<8x32xf32>
    %308 = arith.mulf %299, %206 : vector<8x32xf32>
    %309 = arith.mulf %293, %301 : vector<8x32xf32>
    %310 = arith.addf %308, %309 : vector<8x32xf32>
    %311 = math.tanh %310 : vector<8x32xf32>
    %312 = arith.mulf %307, %311 : vector<8x32xf32>
    %cst_98 = arith.constant dense<0.000000e+00> : vector<8x8xf32>
    %313 = tpu.matmul %312, %13, %cst_98 {dimension_numbers = #tpu.dot_dimension_numbers<[1], [0], [0], [1], [0, 0, 1, 1], [], []>} : vector<8x32xf32>, vector<32x8xf32>, vector<8x8xf32> -> vector<8x8xf32>
    %314 = arith.index_cast %c2_i32 : i32 to index
    %c0_99 = arith.constant 0 : index
    %c0_100 = arith.constant 0 : index
    %315 = vector.load %arg5[%314, %c0_99, %c0_100] : memref<8x8x8xf32, #tpu.memory_space<vmem>>, vector<1x8x8xf32>
    %316 = vector.shape_cast %315 : vector<1x8x8xf32> to vector<8x8xf32>
    %317 = arith.addf %313, %316 : vector<8x8xf32>
    %318 = arith.index_cast %c2_i32 : i32 to index
    %c0_101 = arith.constant 0 : index
    %c0_102 = arith.constant 0 : index
    %319 = vector.load %arg17[%318, %c0_101, %c0_102] : memref<8x8x8xf32, #tpu.memory_space<vmem>>, vector<1x8x8xf32>
    %320 = vector.shape_cast %319 : vector<1x8x8xf32> to vector<8x8xf32>
    %321 = vector.shape_cast %317 : vector<8x8xf32> to vector<1x8x8xf32>
    tpu.vector_store %arg17[%318, %c0_101, %c0_102], %321 {strides = array<i32>} : memref<8x8x8xf32, #tpu.memory_space<vmem>>, vector<1x8x8xf32>,
    %322 = arith.index_cast %c2_i32 : i32 to index
    %c0_103 = arith.constant 0 : index
    %c0_104 = arith.constant 0 : index
    %323 = vector.load %arg18[%322, %c0_103, %c0_104] : memref<8x8x8xf32, #tpu.memory_space<vmem>>, vector<1x8x8xf32>
    %324 = vector.shape_cast %323 : vector<1x8x8xf32> to vector<8x8xf32>
    %325 = vector.shape_cast %240 : vector<8x8xf32> to vector<1x8x8xf32>
    tpu.vector_store %arg18[%322, %c0_103, %c0_104], %325 {strides = array<i32>} : memref<8x8x8xf32, #tpu.memory_space<vmem>>, vector<1x8x8xf32>,
    %c0_i32_105 = arith.constant 0 : i32
    %326 = arith.cmpi eq, %c2_i32, %c0_i32_105 : i32
    %327 = arith.addf %224, %240 : vector<8x8xf32>
    %328 = arith.select %326, %240, %327 : vector<8x8xf32>
    %c3_i32 = arith.constant 3 : i32
    %329 = tpu.concatenate %283, %328 in 1 : vector<8x32xf32>, vector<8x8xf32> -> vector<8x40xf32>
    %cst_106 = arith.constant dense<0.000000e+00> : vector<8x256xf32>
    %330 = tpu.matmul %329, %3, %cst_106 {dimension_numbers = #tpu.dot_dimension_numbers<[1], [0], [0], [1], [0, 0, 1, 1], [], []>} : vector<8x40xf32>, vector<40x256xf32>, vector<8x256xf32> -> vector<8x256xf32>
    %331 = arith.addf %1, %330 : vector<8x256xf32>
    %332 = math.tanh %331 : vector<8x256xf32>
    %cst_107 = arith.constant dense<0.000000e+00> : vector<8x8xf32>
    %333 = tpu.matmul %332, %4, %cst_107 {dimension_numbers = #tpu.dot_dimension_numbers<[1], [0], [0], [1], [0, 0, 1, 1], [], []>} : vector<8x256xf32>, vector<256x8xf32>, vector<8x8xf32> -> vector<8x8xf32>
    %334 = arith.addf %333, %2 : vector<8x8xf32>
    %cst_108 = arith.constant dense<0xFF800000> : vector<8xf32>
    %335 = vector.multi_reduction <maximumf>, %334, %cst_108 [1] : vector<8x8xf32> to vector<8xf32>
    %336 = vector.shape_cast %335 : vector<8xf32> to vector<8x1xf32>
    %337 = vector.broadcast %336 : vector<8x1xf32> to vector<8x8xf32>
    %338 = arith.subf %334, %337 : vector<8x8xf32>
    %339 = math.exp %338 : vector<8x8xf32>
    %cst_109 = arith.constant dense<0.000000e+00> : vector<8xf32>
    %340 = vector.multi_reduction <add>, %339, %cst_109 [1] : vector<8x8xf32> to vector<8xf32>
    %341 = vector.shape_cast %340 : vector<8xf32> to vector<8x1xf32>
    %342 = tpu.reciprocal %341 {approx = true} : vector<8x1xf32> -> vector<8x1xf32>
    %343 = vector.broadcast %342 : vector<8x1xf32> to vector<8x8xf32>
    %344 = arith.mulf %339, %343 : vector<8x8xf32>
    %345 = vector.shape_cast %344 : vector<8x8xf32> to vector<8x8x1xf32>
    %346 = vector.broadcast %345 : vector<8x8x1xf32> to vector<8x8x32xf32>
    %347 = arith.mulf %346, %0 : vector<8x8x32xf32>
    %cst_110 = arith.constant dense<0.000000e+00> : vector<8x32xf32>
    %348 = vector.multi_reduction <add>, %347, %cst_110 [1] : vector<8x8x32xf32> to vector<8x32xf32>
    %cst_111 = arith.constant dense<0.000000e+00> : vector<8x16xf32>
    %349 = tpu.matmul %317, %5, %cst_111 {dimension_numbers = #tpu.dot_dimension_numbers<[1], [0], [0], [1], [0, 0, 1, 1], [], []>} : vector<8x8xf32>, vector<8x16xf32>, vector<8x16xf32> -> vector<8x16xf32>
    %350 = vector.broadcast %6 : vector<1x16xf32> to vector<8x16xf32>
    %351 = arith.addf %349, %350 : vector<8x16xf32>
    %cst_112 = arith.constant 0.000000e+00 : f32
    %352 = vector.broadcast %cst_112 : f32 to vector<8x16xf32>
    %353 = arith.maximumf %351, %352 : vector<8x16xf32>
    %cst_113 = arith.constant dense<0.000000e+00> : vector<8x32xf32>
    %354 = tpu.matmul %353, %7, %cst_113 {dimension_numbers = #tpu.dot_dimension_numbers<[1], [0], [0], [1], [0, 0, 1, 1], [], []>} : vector<8x16xf32>, vector<16x32xf32>, vector<8x32xf32> -> vector<8x32xf32>
    %355 = vector.broadcast %8 : vector<1x32xf32> to vector<8x32xf32>
    %356 = arith.addf %354, %355 : vector<8x32xf32>
    %cst_114 = arith.constant 0.000000e+00 : f32
    %357 = vector.broadcast %cst_114 : f32 to vector<8x32xf32>
    %358 = arith.maximumf %356, %357 : vector<8x32xf32>
    %359 = tpu.concatenate %358, %348, %283 in 1 : vector<8x32xf32>, vector<8x32xf32>, vector<8x32xf32> -> vector<8x96xf32>
    %cst_115 = arith.constant dense<0.000000e+00> : vector<8x128xf32>
    %360 = tpu.matmul %359, %9, %cst_115 {dimension_numbers = #tpu.dot_dimension_numbers<[1], [0], [0], [1], [0, 0, 1, 1], [], []>} : vector<8x96xf32>, vector<96x128xf32>, vector<8x128xf32> -> vector<8x128xf32>
    %361 = vector.broadcast %10 : vector<1x128xf32> to vector<8x128xf32>
    %362 = arith.addf %360, %361 : vector<8x128xf32>
    %363 = vector.extract_strided_slice %362 {offsets = [0, 0], sizes = [8, 32], strides = [1, 1]} : vector<8x128xf32> to vector<8x32xf32>
    %364 = arith.negf %363 : vector<8x32xf32>
    %365 = math.exp %364 : vector<8x32xf32>
    %cst_116 = arith.constant 1.000000e+00 : f32
    %366 = vector.broadcast %cst_116 : f32 to vector<8x32xf32>
    %367 = arith.addf %366, %365 : vector<8x32xf32>
    %368 = arith.divf %366, %367 : vector<8x32xf32>
    %369 = vector.extract_strided_slice %362 {offsets = [0, 32], sizes = [8, 32], strides = [1, 1]} : vector<8x128xf32> to vector<8x32xf32>
    %370 = arith.negf %369 : vector<8x32xf32>
    %371 = math.exp %370 : vector<8x32xf32>
    %cst_117 = arith.constant 1.000000e+00 : f32
    %372 = vector.broadcast %cst_117 : f32 to vector<8x32xf32>
    %373 = arith.addf %372, %371 : vector<8x32xf32>
    %374 = arith.divf %372, %373 : vector<8x32xf32>
    %375 = vector.extract_strided_slice %362 {offsets = [0, 64], sizes = [8, 32], strides = [1, 1]} : vector<8x128xf32> to vector<8x32xf32>
    %376 = math.tanh %375 : vector<8x32xf32>
    %377 = vector.extract_strided_slice %362 {offsets = [0, 96], sizes = [8, 32], strides = [1, 1]} : vector<8x128xf32> to vector<8x32xf32>
    %378 = arith.negf %377 : vector<8x32xf32>
    %379 = math.exp %378 : vector<8x32xf32>
    %cst_118 = arith.constant 1.000000e+00 : f32
    %380 = vector.broadcast %cst_118 : f32 to vector<8x32xf32>
    %381 = arith.addf %380, %379 : vector<8x32xf32>
    %382 = arith.divf %380, %381 : vector<8x32xf32>
    %383 = arith.mulf %374, %281 : vector<8x32xf32>
    %384 = arith.mulf %368, %376 : vector<8x32xf32>
    %385 = arith.addf %383, %384 : vector<8x32xf32>
    %386 = math.tanh %385 : vector<8x32xf32>
    %387 = arith.mulf %382, %386 : vector<8x32xf32>
    %388 = tpu.concatenate %387, %312 in 1 : vector<8x32xf32>, vector<8x32xf32> -> vector<8x64xf32>
    %cst_119 = arith.constant dense<0.000000e+00> : vector<8x128xf32>
    %389 = tpu.matmul %388, %11, %cst_119 {dimension_numbers = #tpu.dot_dimension_numbers<[1], [0], [0], [1], [0, 0, 1, 1], [], []>} : vector<8x64xf32>, vector<64x128xf32>, vector<8x128xf32> -> vector<8x128xf32>
    %390 = vector.broadcast %12 : vector<1x128xf32> to vector<8x128xf32>
    %391 = arith.addf %389, %390 : vector<8x128xf32>
    %392 = vector.extract_strided_slice %391 {offsets = [0, 0], sizes = [8, 32], strides = [1, 1]} : vector<8x128xf32> to vector<8x32xf32>
    %393 = arith.negf %392 : vector<8x32xf32>
    %394 = math.exp %393 : vector<8x32xf32>
    %cst_120 = arith.constant 1.000000e+00 : f32
    %395 = vector.broadcast %cst_120 : f32 to vector<8x32xf32>
    %396 = arith.addf %395, %394 : vector<8x32xf32>
    %397 = arith.divf %395, %396 : vector<8x32xf32>
    %398 = vector.extract_strided_slice %391 {offsets = [0, 32], sizes = [8, 32], strides = [1, 1]} : vector<8x128xf32> to vector<8x32xf32>
    %399 = arith.negf %398 : vector<8x32xf32>
    %400 = math.exp %399 : vector<8x32xf32>
    %cst_121 = arith.constant 1.000000e+00 : f32
    %401 = vector.broadcast %cst_121 : f32 to vector<8x32xf32>
    %402 = arith.addf %401, %400 : vector<8x32xf32>
    %403 = arith.divf %401, %402 : vector<8x32xf32>
    %404 = vector.extract_strided_slice %391 {offsets = [0, 64], sizes = [8, 32], strides = [1, 1]} : vector<8x128xf32> to vector<8x32xf32>
    %405 = math.tanh %404 : vector<8x32xf32>
    %406 = vector.extract_strided_slice %391 {offsets = [0, 96], sizes = [8, 32], strides = [1, 1]} : vector<8x128xf32> to vector<8x32xf32>
    %407 = arith.negf %406 : vector<8x32xf32>
    %408 = math.exp %407 : vector<8x32xf32>
    %cst_122 = arith.constant 1.000000e+00 : f32
    %409 = vector.broadcast %cst_122 : f32 to vector<8x32xf32>
    %410 = arith.addf %409, %408 : vector<8x32xf32>
    %411 = arith.divf %409, %410 : vector<8x32xf32>
    %412 = arith.mulf %403, %310 : vector<8x32xf32>
    %413 = arith.mulf %397, %405 : vector<8x32xf32>
    %414 = arith.addf %412, %413 : vector<8x32xf32>
    %415 = math.tanh %414 : vector<8x32xf32>
    %416 = arith.mulf %411, %415 : vector<8x32xf32>
    %cst_123 = arith.constant dense<0.000000e+00> : vector<8x8xf32>
    %417 = tpu.matmul %416, %13, %cst_123 {dimension_numbers = #tpu.dot_dimension_numbers<[1], [0], [0], [1], [0, 0, 1, 1], [], []>} : vector<8x32xf32>, vector<32x8xf32>, vector<8x8xf32> -> vector<8x8xf32>
    %418 = arith.index_cast %c3_i32 : i32 to index
    %c0_124 = arith.constant 0 : index
    %c0_125 = arith.constant 0 : index
    %419 = vector.load %arg5[%418, %c0_124, %c0_125] : memref<8x8x8xf32, #tpu.memory_space<vmem>>, vector<1x8x8xf32>
    %420 = vector.shape_cast %419 : vector<1x8x8xf32> to vector<8x8xf32>
    %421 = arith.addf %417, %420 : vector<8x8xf32>
    %422 = arith.index_cast %c3_i32 : i32 to index
    %c0_126 = arith.constant 0 : index
    %c0_127 = arith.constant 0 : index
    %423 = vector.load %arg17[%422, %c0_126, %c0_127] : memref<8x8x8xf32, #tpu.memory_space<vmem>>, vector<1x8x8xf32>
    %424 = vector.shape_cast %423 : vector<1x8x8xf32> to vector<8x8xf32>
    %425 = vector.shape_cast %421 : vector<8x8xf32> to vector<1x8x8xf32>
    tpu.vector_store %arg17[%422, %c0_126, %c0_127], %425 {strides = array<i32>} : memref<8x8x8xf32, #tpu.memory_space<vmem>>, vector<1x8x8xf32>,
    %426 = arith.index_cast %c3_i32 : i32 to index
    %c0_128 = arith.constant 0 : index
    %c0_129 = arith.constant 0 : index
    %427 = vector.load %arg18[%426, %c0_128, %c0_129] : memref<8x8x8xf32, #tpu.memory_space<vmem>>, vector<1x8x8xf32>
    %428 = vector.shape_cast %427 : vector<1x8x8xf32> to vector<8x8xf32>
    %429 = vector.shape_cast %344 : vector<8x8xf32> to vector<1x8x8xf32>
    tpu.vector_store %arg18[%426, %c0_128, %c0_129], %429 {strides = array<i32>} : memref<8x8x8xf32, #tpu.memory_space<vmem>>, vector<1x8x8xf32>,
    %c0_i32_130 = arith.constant 0 : i32
    %430 = arith.cmpi eq, %c3_i32, %c0_i32_130 : i32
    %431 = arith.addf %328, %344 : vector<8x8xf32>
    %432 = arith.select %430, %344, %431 : vector<8x8xf32>
    %c4_i32 = arith.constant 4 : i32
    %433 = tpu.concatenate %387, %432 in 1 : vector<8x32xf32>, vector<8x8xf32> -> vector<8x40xf32>
    %cst_131 = arith.constant dense<0.000000e+00> : vector<8x256xf32>
    %434 = tpu.matmul %433, %3, %cst_131 {dimension_numbers = #tpu.dot_dimension_numbers<[1], [0], [0], [1], [0, 0, 1, 1], [], []>} : vector<8x40xf32>, vector<40x256xf32>, vector<8x256xf32> -> vector<8x256xf32>
    %435 = arith.addf %1, %434 : vector<8x256xf32>
    %436 = math.tanh %435 : vector<8x256xf32>
    %cst_132 = arith.constant dense<0.000000e+00> : vector<8x8xf32>
    %437 = tpu.matmul %436, %4, %cst_132 {dimension_numbers = #tpu.dot_dimension_numbers<[1], [0], [0], [1], [0, 0, 1, 1], [], []>} : vector<8x256xf32>, vector<256x8xf32>, vector<8x8xf32> -> vector<8x8xf32>
    %438 = arith.addf %437, %2 : vector<8x8xf32>
    %cst_133 = arith.constant dense<0xFF800000> : vector<8xf32>
    %439 = vector.multi_reduction <maximumf>, %438, %cst_133 [1] : vector<8x8xf32> to vector<8xf32>
    %440 = vector.shape_cast %439 : vector<8xf32> to vector<8x1xf32>
    %441 = vector.broadcast %440 : vector<8x1xf32> to vector<8x8xf32>
    %442 = arith.subf %438, %441 : vector<8x8xf32>
    %443 = math.exp %442 : vector<8x8xf32>
    %cst_134 = arith.constant dense<0.000000e+00> : vector<8xf32>
    %444 = vector.multi_reduction <add>, %443, %cst_134 [1] : vector<8x8xf32> to vector<8xf32>
    %445 = vector.shape_cast %444 : vector<8xf32> to vector<8x1xf32>
    %446 = tpu.reciprocal %445 {approx = true} : vector<8x1xf32> -> vector<8x1xf32>
    %447 = vector.broadcast %446 : vector<8x1xf32> to vector<8x8xf32>
    %448 = arith.mulf %443, %447 : vector<8x8xf32>
    %449 = vector.shape_cast %448 : vector<8x8xf32> to vector<8x8x1xf32>
    %450 = vector.broadcast %449 : vector<8x8x1xf32> to vector<8x8x32xf32>
    %451 = arith.mulf %450, %0 : vector<8x8x32xf32>
    %cst_135 = arith.constant dense<0.000000e+00> : vector<8x32xf32>
    %452 = vector.multi_reduction <add>, %451, %cst_135 [1] : vector<8x8x32xf32> to vector<8x32xf32>
    %cst_136 = arith.constant dense<0.000000e+00> : vector<8x16xf32>
    %453 = tpu.matmul %421, %5, %cst_136 {dimension_numbers = #tpu.dot_dimension_numbers<[1], [0], [0], [1], [0, 0, 1, 1], [], []>} : vector<8x8xf32>, vector<8x16xf32>, vector<8x16xf32> -> vector<8x16xf32>
    %454 = vector.broadcast %6 : vector<1x16xf32> to vector<8x16xf32>
    %455 = arith.addf %453, %454 : vector<8x16xf32>
    %cst_137 = arith.constant 0.000000e+00 : f32
    %456 = vector.broadcast %cst_137 : f32 to vector<8x16xf32>
    %457 = arith.maximumf %455, %456 : vector<8x16xf32>
    %cst_138 = arith.constant dense<0.000000e+00> : vector<8x32xf32>
    %458 = tpu.matmul %457, %7, %cst_138 {dimension_numbers = #tpu.dot_dimension_numbers<[1], [0], [0], [1], [0, 0, 1, 1], [], []>} : vector<8x16xf32>, vector<16x32xf32>, vector<8x32xf32> -> vector<8x32xf32>
    %459 = vector.broadcast %8 : vector<1x32xf32> to vector<8x32xf32>
    %460 = arith.addf %458, %459 : vector<8x32xf32>
    %cst_139 = arith.constant 0.000000e+00 : f32
    %461 = vector.broadcast %cst_139 : f32 to vector<8x32xf32>
    %462 = arith.maximumf %460, %461 : vector<8x32xf32>
    %463 = tpu.concatenate %462, %452, %387 in 1 : vector<8x32xf32>, vector<8x32xf32>, vector<8x32xf32> -> vector<8x96xf32>
    %cst_140 = arith.constant dense<0.000000e+00> : vector<8x128xf32>
    %464 = tpu.matmul %463, %9, %cst_140 {dimension_numbers = #tpu.dot_dimension_numbers<[1], [0], [0], [1], [0, 0, 1, 1], [], []>} : vector<8x96xf32>, vector<96x128xf32>, vector<8x128xf32> -> vector<8x128xf32>
    %465 = vector.broadcast %10 : vector<1x128xf32> to vector<8x128xf32>
    %466 = arith.addf %464, %465 : vector<8x128xf32>
    %467 = vector.extract_strided_slice %466 {offsets = [0, 0], sizes = [8, 32], strides = [1, 1]} : vector<8x128xf32> to vector<8x32xf32>
    %468 = arith.negf %467 : vector<8x32xf32>
    %469 = math.exp %468 : vector<8x32xf32>
    %cst_141 = arith.constant 1.000000e+00 : f32
    %470 = vector.broadcast %cst_141 : f32 to vector<8x32xf32>
    %471 = arith.addf %470, %469 : vector<8x32xf32>
    %472 = arith.divf %470, %471 : vector<8x32xf32>
    %473 = vector.extract_strided_slice %466 {offsets = [0, 32], sizes = [8, 32], strides = [1, 1]} : vector<8x128xf32> to vector<8x32xf32>
    %474 = arith.negf %473 : vector<8x32xf32>
    %475 = math.exp %474 : vector<8x32xf32>
    %cst_142 = arith.constant 1.000000e+00 : f32
    %476 = vector.broadcast %cst_142 : f32 to vector<8x32xf32>
    %477 = arith.addf %476, %475 : vector<8x32xf32>
    %478 = arith.divf %476, %477 : vector<8x32xf32>
    %479 = vector.extract_strided_slice %466 {offsets = [0, 64], sizes = [8, 32], strides = [1, 1]} : vector<8x128xf32> to vector<8x32xf32>
    %480 = math.tanh %479 : vector<8x32xf32>
    %481 = vector.extract_strided_slice %466 {offsets = [0, 96], sizes = [8, 32], strides = [1, 1]} : vector<8x128xf32> to vector<8x32xf32>
    %482 = arith.negf %481 : vector<8x32xf32>
    %483 = math.exp %482 : vector<8x32xf32>
    %cst_143 = arith.constant 1.000000e+00 : f32
    %484 = vector.broadcast %cst_143 : f32 to vector<8x32xf32>
    %485 = arith.addf %484, %483 : vector<8x32xf32>
    %486 = arith.divf %484, %485 : vector<8x32xf32>
    %487 = arith.mulf %478, %385 : vector<8x32xf32>
    %488 = arith.mulf %472, %480 : vector<8x32xf32>
    %489 = arith.addf %487, %488 : vector<8x32xf32>
    %490 = math.tanh %489 : vector<8x32xf32>
    %491 = arith.mulf %486, %490 : vector<8x32xf32>
    %492 = tpu.concatenate %491, %416 in 1 : vector<8x32xf32>, vector<8x32xf32> -> vector<8x64xf32>
    %cst_144 = arith.constant dense<0.000000e+00> : vector<8x128xf32>
    %493 = tpu.matmul %492, %11, %cst_144 {dimension_numbers = #tpu.dot_dimension_numbers<[1], [0], [0], [1], [0, 0, 1, 1], [], []>} : vector<8x64xf32>, vector<64x128xf32>, vector<8x128xf32> -> vector<8x128xf32>
    %494 = vector.broadcast %12 : vector<1x128xf32> to vector<8x128xf32>
    %495 = arith.addf %493, %494 : vector<8x128xf32>
    %496 = vector.extract_strided_slice %495 {offsets = [0, 0], sizes = [8, 32], strides = [1, 1]} : vector<8x128xf32> to vector<8x32xf32>
    %497 = arith.negf %496 : vector<8x32xf32>
    %498 = math.exp %497 : vector<8x32xf32>
    %cst_145 = arith.constant 1.000000e+00 : f32
    %499 = vector.broadcast %cst_145 : f32 to vector<8x32xf32>
    %500 = arith.addf %499, %498 : vector<8x32xf32>
    %501 = arith.divf %499, %500 : vector<8x32xf32>
    %502 = vector.extract_strided_slice %495 {offsets = [0, 32], sizes = [8, 32], strides = [1, 1]} : vector<8x128xf32> to vector<8x32xf32>
    %503 = arith.negf %502 : vector<8x32xf32>
    %504 = math.exp %503 : vector<8x32xf32>
    %cst_146 = arith.constant 1.000000e+00 : f32
    %505 = vector.broadcast %cst_146 : f32 to vector<8x32xf32>
    %506 = arith.addf %505, %504 : vector<8x32xf32>
    %507 = arith.divf %505, %506 : vector<8x32xf32>
    %508 = vector.extract_strided_slice %495 {offsets = [0, 64], sizes = [8, 32], strides = [1, 1]} : vector<8x128xf32> to vector<8x32xf32>
    %509 = math.tanh %508 : vector<8x32xf32>
    %510 = vector.extract_strided_slice %495 {offsets = [0, 96], sizes = [8, 32], strides = [1, 1]} : vector<8x128xf32> to vector<8x32xf32>
    %511 = arith.negf %510 : vector<8x32xf32>
    %512 = math.exp %511 : vector<8x32xf32>
    %cst_147 = arith.constant 1.000000e+00 : f32
    %513 = vector.broadcast %cst_147 : f32 to vector<8x32xf32>
    %514 = arith.addf %513, %512 : vector<8x32xf32>
    %515 = arith.divf %513, %514 : vector<8x32xf32>
    %516 = arith.mulf %507, %414 : vector<8x32xf32>
    %517 = arith.mulf %501, %509 : vector<8x32xf32>
    %518 = arith.addf %516, %517 : vector<8x32xf32>
    %519 = math.tanh %518 : vector<8x32xf32>
    %520 = arith.mulf %515, %519 : vector<8x32xf32>
    %cst_148 = arith.constant dense<0.000000e+00> : vector<8x8xf32>
    %521 = tpu.matmul %520, %13, %cst_148 {dimension_numbers = #tpu.dot_dimension_numbers<[1], [0], [0], [1], [0, 0, 1, 1], [], []>} : vector<8x32xf32>, vector<32x8xf32>, vector<8x8xf32> -> vector<8x8xf32>
    %522 = arith.index_cast %c4_i32 : i32 to index
    %c0_149 = arith.constant 0 : index
    %c0_150 = arith.constant 0 : index
    %523 = vector.load %arg5[%522, %c0_149, %c0_150] : memref<8x8x8xf32, #tpu.memory_space<vmem>>, vector<1x8x8xf32>
    %524 = vector.shape_cast %523 : vector<1x8x8xf32> to vector<8x8xf32>
    %525 = arith.addf %521, %524 : vector<8x8xf32>
    %526 = arith.index_cast %c4_i32 : i32 to index
    %c0_151 = arith.constant 0 : index
    %c0_152 = arith.constant 0 : index
    %527 = vector.load %arg17[%526, %c0_151, %c0_152] : memref<8x8x8xf32, #tpu.memory_space<vmem>>, vector<1x8x8xf32>
    %528 = vector.shape_cast %527 : vector<1x8x8xf32> to vector<8x8xf32>
    %529 = vector.shape_cast %525 : vector<8x8xf32> to vector<1x8x8xf32>
    tpu.vector_store %arg17[%526, %c0_151, %c0_152], %529 {strides = array<i32>} : memref<8x8x8xf32, #tpu.memory_space<vmem>>, vector<1x8x8xf32>,
    %530 = arith.index_cast %c4_i32 : i32 to index
    %c0_153 = arith.constant 0 : index
    %c0_154 = arith.constant 0 : index
    %531 = vector.load %arg18[%530, %c0_153, %c0_154] : memref<8x8x8xf32, #tpu.memory_space<vmem>>, vector<1x8x8xf32>
    %532 = vector.shape_cast %531 : vector<1x8x8xf32> to vector<8x8xf32>
    %533 = vector.shape_cast %448 : vector<8x8xf32> to vector<1x8x8xf32>
    tpu.vector_store %arg18[%530, %c0_153, %c0_154], %533 {strides = array<i32>} : memref<8x8x8xf32, #tpu.memory_space<vmem>>, vector<1x8x8xf32>,
    %c0_i32_155 = arith.constant 0 : i32
    %534 = arith.cmpi eq, %c4_i32, %c0_i32_155 : i32
    %535 = arith.addf %432, %448 : vector<8x8xf32>
    %536 = arith.select %534, %448, %535 : vector<8x8xf32>
    %c5_i32 = arith.constant 5 : i32
    %537 = tpu.concatenate %491, %536 in 1 : vector<8x32xf32>, vector<8x8xf32> -> vector<8x40xf32>
    %cst_156 = arith.constant dense<0.000000e+00> : vector<8x256xf32>
    %538 = tpu.matmul %537, %3, %cst_156 {dimension_numbers = #tpu.dot_dimension_numbers<[1], [0], [0], [1], [0, 0, 1, 1], [], []>} : vector<8x40xf32>, vector<40x256xf32>, vector<8x256xf32> -> vector<8x256xf32>
    %539 = arith.addf %1, %538 : vector<8x256xf32>
    %540 = math.tanh %539 : vector<8x256xf32>
    %cst_157 = arith.constant dense<0.000000e+00> : vector<8x8xf32>
    %541 = tpu.matmul %540, %4, %cst_157 {dimension_numbers = #tpu.dot_dimension_numbers<[1], [0], [0], [1], [0, 0, 1, 1], [], []>} : vector<8x256xf32>, vector<256x8xf32>, vector<8x8xf32> -> vector<8x8xf32>
    %542 = arith.addf %541, %2 : vector<8x8xf32>
    %cst_158 = arith.constant dense<0xFF800000> : vector<8xf32>
    %543 = vector.multi_reduction <maximumf>, %542, %cst_158 [1] : vector<8x8xf32> to vector<8xf32>
    %544 = vector.shape_cast %543 : vector<8xf32> to vector<8x1xf32>
    %545 = vector.broadcast %544 : vector<8x1xf32> to vector<8x8xf32>
    %546 = arith.subf %542, %545 : vector<8x8xf32>
    %547 = math.exp %546 : vector<8x8xf32>
    %cst_159 = arith.constant dense<0.000000e+00> : vector<8xf32>
    %548 = vector.multi_reduction <add>, %547, %cst_159 [1] : vector<8x8xf32> to vector<8xf32>
    %549 = vector.shape_cast %548 : vector<8xf32> to vector<8x1xf32>
    %550 = tpu.reciprocal %549 {approx = true} : vector<8x1xf32> -> vector<8x1xf32>
    %551 = vector.broadcast %550 : vector<8x1xf32> to vector<8x8xf32>
    %552 = arith.mulf %547, %551 : vector<8x8xf32>
    %553 = vector.shape_cast %552 : vector<8x8xf32> to vector<8x8x1xf32>
    %554 = vector.broadcast %553 : vector<8x8x1xf32> to vector<8x8x32xf32>
    %555 = arith.mulf %554, %0 : vector<8x8x32xf32>
    %cst_160 = arith.constant dense<0.000000e+00> : vector<8x32xf32>
    %556 = vector.multi_reduction <add>, %555, %cst_160 [1] : vector<8x8x32xf32> to vector<8x32xf32>
    %cst_161 = arith.constant dense<0.000000e+00> : vector<8x16xf32>
    %557 = tpu.matmul %525, %5, %cst_161 {dimension_numbers = #tpu.dot_dimension_numbers<[1], [0], [0], [1], [0, 0, 1, 1], [], []>} : vector<8x8xf32>, vector<8x16xf32>, vector<8x16xf32> -> vector<8x16xf32>
    %558 = vector.broadcast %6 : vector<1x16xf32> to vector<8x16xf32>
    %559 = arith.addf %557, %558 : vector<8x16xf32>
    %cst_162 = arith.constant 0.000000e+00 : f32
    %560 = vector.broadcast %cst_162 : f32 to vector<8x16xf32>
    %561 = arith.maximumf %559, %560 : vector<8x16xf32>
    %cst_163 = arith.constant dense<0.000000e+00> : vector<8x32xf32>
    %562 = tpu.matmul %561, %7, %cst_163 {dimension_numbers = #tpu.dot_dimension_numbers<[1], [0], [0], [1], [0, 0, 1, 1], [], []>} : vector<8x16xf32>, vector<16x32xf32>, vector<8x32xf32> -> vector<8x32xf32>
    %563 = vector.broadcast %8 : vector<1x32xf32> to vector<8x32xf32>
    %564 = arith.addf %562, %563 : vector<8x32xf32>
    %cst_164 = arith.constant 0.000000e+00 : f32
    %565 = vector.broadcast %cst_164 : f32 to vector<8x32xf32>
    %566 = arith.maximumf %564, %565 : vector<8x32xf32>
    %567 = tpu.concatenate %566, %556, %491 in 1 : vector<8x32xf32>, vector<8x32xf32>, vector<8x32xf32> -> vector<8x96xf32>
    %cst_165 = arith.constant dense<0.000000e+00> : vector<8x128xf32>
    %568 = tpu.matmul %567, %9, %cst_165 {dimension_numbers = #tpu.dot_dimension_numbers<[1], [0], [0], [1], [0, 0, 1, 1], [], []>} : vector<8x96xf32>, vector<96x128xf32>, vector<8x128xf32> -> vector<8x128xf32>
    %569 = vector.broadcast %10 : vector<1x128xf32> to vector<8x128xf32>
    %570 = arith.addf %568, %569 : vector<8x128xf32>
    %571 = vector.extract_strided_slice %570 {offsets = [0, 0], sizes = [8, 32], strides = [1, 1]} : vector<8x128xf32> to vector<8x32xf32>
    %572 = arith.negf %571 : vector<8x32xf32>
    %573 = math.exp %572 : vector<8x32xf32>
    %cst_166 = arith.constant 1.000000e+00 : f32
    %574 = vector.broadcast %cst_166 : f32 to vector<8x32xf32>
    %575 = arith.addf %574, %573 : vector<8x32xf32>
    %576 = arith.divf %574, %575 : vector<8x32xf32>
    %577 = vector.extract_strided_slice %570 {offsets = [0, 32], sizes = [8, 32], strides = [1, 1]} : vector<8x128xf32> to vector<8x32xf32>
    %578 = arith.negf %577 : vector<8x32xf32>
    %579 = math.exp %578 : vector<8x32xf32>
    %cst_167 = arith.constant 1.000000e+00 : f32
    %580 = vector.broadcast %cst_167 : f32 to vector<8x32xf32>
    %581 = arith.addf %580, %579 : vector<8x32xf32>
    %582 = arith.divf %580, %581 : vector<8x32xf32>
    %583 = vector.extract_strided_slice %570 {offsets = [0, 64], sizes = [8, 32], strides = [1, 1]} : vector<8x128xf32> to vector<8x32xf32>
    %584 = math.tanh %583 : vector<8x32xf32>
    %585 = vector.extract_strided_slice %570 {offsets = [0, 96], sizes = [8, 32], strides = [1, 1]} : vector<8x128xf32> to vector<8x32xf32>
    %586 = arith.negf %585 : vector<8x32xf32>
    %587 = math.exp %586 : vector<8x32xf32>
    %cst_168 = arith.constant 1.000000e+00 : f32
    %588 = vector.broadcast %cst_168 : f32 to vector<8x32xf32>
    %589 = arith.addf %588, %587 : vector<8x32xf32>
    %590 = arith.divf %588, %589 : vector<8x32xf32>
    %591 = arith.mulf %582, %489 : vector<8x32xf32>
    %592 = arith.mulf %576, %584 : vector<8x32xf32>
    %593 = arith.addf %591, %592 : vector<8x32xf32>
    %594 = math.tanh %593 : vector<8x32xf32>
    %595 = arith.mulf %590, %594 : vector<8x32xf32>
    %596 = tpu.concatenate %595, %520 in 1 : vector<8x32xf32>, vector<8x32xf32> -> vector<8x64xf32>
    %cst_169 = arith.constant dense<0.000000e+00> : vector<8x128xf32>
    %597 = tpu.matmul %596, %11, %cst_169 {dimension_numbers = #tpu.dot_dimension_numbers<[1], [0], [0], [1], [0, 0, 1, 1], [], []>} : vector<8x64xf32>, vector<64x128xf32>, vector<8x128xf32> -> vector<8x128xf32>
    %598 = vector.broadcast %12 : vector<1x128xf32> to vector<8x128xf32>
    %599 = arith.addf %597, %598 : vector<8x128xf32>
    %600 = vector.extract_strided_slice %599 {offsets = [0, 0], sizes = [8, 32], strides = [1, 1]} : vector<8x128xf32> to vector<8x32xf32>
    %601 = arith.negf %600 : vector<8x32xf32>
    %602 = math.exp %601 : vector<8x32xf32>
    %cst_170 = arith.constant 1.000000e+00 : f32
    %603 = vector.broadcast %cst_170 : f32 to vector<8x32xf32>
    %604 = arith.addf %603, %602 : vector<8x32xf32>
    %605 = arith.divf %603, %604 : vector<8x32xf32>
    %606 = vector.extract_strided_slice %599 {offsets = [0, 32], sizes = [8, 32], strides = [1, 1]} : vector<8x128xf32> to vector<8x32xf32>
    %607 = arith.negf %606 : vector<8x32xf32>
    %608 = math.exp %607 : vector<8x32xf32>
    %cst_171 = arith.constant 1.000000e+00 : f32
    %609 = vector.broadcast %cst_171 : f32 to vector<8x32xf32>
    %610 = arith.addf %609, %608 : vector<8x32xf32>
    %611 = arith.divf %609, %610 : vector<8x32xf32>
    %612 = vector.extract_strided_slice %599 {offsets = [0, 64], sizes = [8, 32], strides = [1, 1]} : vector<8x128xf32> to vector<8x32xf32>
    %613 = math.tanh %612 : vector<8x32xf32>
    %614 = vector.extract_strided_slice %599 {offsets = [0, 96], sizes = [8, 32], strides = [1, 1]} : vector<8x128xf32> to vector<8x32xf32>
    %615 = arith.negf %614 : vector<8x32xf32>
    %616 = math.exp %615 : vector<8x32xf32>
    %cst_172 = arith.constant 1.000000e+00 : f32
    %617 = vector.broadcast %cst_172 : f32 to vector<8x32xf32>
    %618 = arith.addf %617, %616 : vector<8x32xf32>
    %619 = arith.divf %617, %618 : vector<8x32xf32>
    %620 = arith.mulf %611, %518 : vector<8x32xf32>
    %621 = arith.mulf %605, %613 : vector<8x32xf32>
    %622 = arith.addf %620, %621 : vector<8x32xf32>
    %623 = math.tanh %622 : vector<8x32xf32>
    %624 = arith.mulf %619, %623 : vector<8x32xf32>
    %cst_173 = arith.constant dense<0.000000e+00> : vector<8x8xf32>
    %625 = tpu.matmul %624, %13, %cst_173 {dimension_numbers = #tpu.dot_dimension_numbers<[1], [0], [0], [1], [0, 0, 1, 1], [], []>} : vector<8x32xf32>, vector<32x8xf32>, vector<8x8xf32> -> vector<8x8xf32>
    %626 = arith.index_cast %c5_i32 : i32 to index
    %c0_174 = arith.constant 0 : index
    %c0_175 = arith.constant 0 : index
    %627 = vector.load %arg5[%626, %c0_174, %c0_175] : memref<8x8x8xf32, #tpu.memory_space<vmem>>, vector<1x8x8xf32>
    %628 = vector.shape_cast %627 : vector<1x8x8xf32> to vector<8x8xf32>
    %629 = arith.addf %625, %628 : vector<8x8xf32>
    %630 = arith.index_cast %c5_i32 : i32 to index
    %c0_176 = arith.constant 0 : index
    %c0_177 = arith.constant 0 : index
    %631 = vector.load %arg17[%630, %c0_176, %c0_177] : memref<8x8x8xf32, #tpu.memory_space<vmem>>, vector<1x8x8xf32>
    %632 = vector.shape_cast %631 : vector<1x8x8xf32> to vector<8x8xf32>
    %633 = vector.shape_cast %629 : vector<8x8xf32> to vector<1x8x8xf32>
    tpu.vector_store %arg17[%630, %c0_176, %c0_177], %633 {strides = array<i32>} : memref<8x8x8xf32, #tpu.memory_space<vmem>>, vector<1x8x8xf32>,
    %634 = arith.index_cast %c5_i32 : i32 to index
    %c0_178 = arith.constant 0 : index
    %c0_179 = arith.constant 0 : index
    %635 = vector.load %arg18[%634, %c0_178, %c0_179] : memref<8x8x8xf32, #tpu.memory_space<vmem>>, vector<1x8x8xf32>
    %636 = vector.shape_cast %635 : vector<1x8x8xf32> to vector<8x8xf32>
    %637 = vector.shape_cast %552 : vector<8x8xf32> to vector<1x8x8xf32>
    tpu.vector_store %arg18[%634, %c0_178, %c0_179], %637 {strides = array<i32>} : memref<8x8x8xf32, #tpu.memory_space<vmem>>, vector<1x8x8xf32>,
    %c0_i32_180 = arith.constant 0 : i32
    %638 = arith.cmpi eq, %c5_i32, %c0_i32_180 : i32
    %639 = arith.addf %536, %552 : vector<8x8xf32>
    %640 = arith.select %638, %552, %639 : vector<8x8xf32>
    %c6_i32 = arith.constant 6 : i32
    %641 = tpu.concatenate %595, %640 in 1 : vector<8x32xf32>, vector<8x8xf32> -> vector<8x40xf32>
    %cst_181 = arith.constant dense<0.000000e+00> : vector<8x256xf32>
    %642 = tpu.matmul %641, %3, %cst_181 {dimension_numbers = #tpu.dot_dimension_numbers<[1], [0], [0], [1], [0, 0, 1, 1], [], []>} : vector<8x40xf32>, vector<40x256xf32>, vector<8x256xf32> -> vector<8x256xf32>
    %643 = arith.addf %1, %642 : vector<8x256xf32>
    %644 = math.tanh %643 : vector<8x256xf32>
    %cst_182 = arith.constant dense<0.000000e+00> : vector<8x8xf32>
    %645 = tpu.matmul %644, %4, %cst_182 {dimension_numbers = #tpu.dot_dimension_numbers<[1], [0], [0], [1], [0, 0, 1, 1], [], []>} : vector<8x256xf32>, vector<256x8xf32>, vector<8x8xf32> -> vector<8x8xf32>
    %646 = arith.addf %645, %2 : vector<8x8xf32>
    %cst_183 = arith.constant dense<0xFF800000> : vector<8xf32>
    %647 = vector.multi_reduction <maximumf>, %646, %cst_183 [1] : vector<8x8xf32> to vector<8xf32>
    %648 = vector.shape_cast %647 : vector<8xf32> to vector<8x1xf32>
    %649 = vector.broadcast %648 : vector<8x1xf32> to vector<8x8xf32>
    %650 = arith.subf %646, %649 : vector<8x8xf32>
    %651 = math.exp %650 : vector<8x8xf32>
    %cst_184 = arith.constant dense<0.000000e+00> : vector<8xf32>
    %652 = vector.multi_reduction <add>, %651, %cst_184 [1] : vector<8x8xf32> to vector<8xf32>
    %653 = vector.shape_cast %652 : vector<8xf32> to vector<8x1xf32>
    %654 = tpu.reciprocal %653 {approx = true} : vector<8x1xf32> -> vector<8x1xf32>
    %655 = vector.broadcast %654 : vector<8x1xf32> to vector<8x8xf32>
    %656 = arith.mulf %651, %655 : vector<8x8xf32>
    %657 = vector.shape_cast %656 : vector<8x8xf32> to vector<8x8x1xf32>
    %658 = vector.broadcast %657 : vector<8x8x1xf32> to vector<8x8x32xf32>
    %659 = arith.mulf %658, %0 : vector<8x8x32xf32>
    %cst_185 = arith.constant dense<0.000000e+00> : vector<8x32xf32>
    %660 = vector.multi_reduction <add>, %659, %cst_185 [1] : vector<8x8x32xf32> to vector<8x32xf32>
    %cst_186 = arith.constant dense<0.000000e+00> : vector<8x16xf32>
    %661 = tpu.matmul %629, %5, %cst_186 {dimension_numbers = #tpu.dot_dimension_numbers<[1], [0], [0], [1], [0, 0, 1, 1], [], []>} : vector<8x8xf32>, vector<8x16xf32>, vector<8x16xf32> -> vector<8x16xf32>
    %662 = vector.broadcast %6 : vector<1x16xf32> to vector<8x16xf32>
    %663 = arith.addf %661, %662 : vector<8x16xf32>
    %cst_187 = arith.constant 0.000000e+00 : f32
    %664 = vector.broadcast %cst_187 : f32 to vector<8x16xf32>
    %665 = arith.maximumf %663, %664 : vector<8x16xf32>
    %cst_188 = arith.constant dense<0.000000e+00> : vector<8x32xf32>
    %666 = tpu.matmul %665, %7, %cst_188 {dimension_numbers = #tpu.dot_dimension_numbers<[1], [0], [0], [1], [0, 0, 1, 1], [], []>} : vector<8x16xf32>, vector<16x32xf32>, vector<8x32xf32> -> vector<8x32xf32>
    %667 = vector.broadcast %8 : vector<1x32xf32> to vector<8x32xf32>
    %668 = arith.addf %666, %667 : vector<8x32xf32>
    %cst_189 = arith.constant 0.000000e+00 : f32
    %669 = vector.broadcast %cst_189 : f32 to vector<8x32xf32>
    %670 = arith.maximumf %668, %669 : vector<8x32xf32>
    %671 = tpu.concatenate %670, %660, %595 in 1 : vector<8x32xf32>, vector<8x32xf32>, vector<8x32xf32> -> vector<8x96xf32>
    %cst_190 = arith.constant dense<0.000000e+00> : vector<8x128xf32>
    %672 = tpu.matmul %671, %9, %cst_190 {dimension_numbers = #tpu.dot_dimension_numbers<[1], [0], [0], [1], [0, 0, 1, 1], [], []>} : vector<8x96xf32>, vector<96x128xf32>, vector<8x128xf32> -> vector<8x128xf32>
    %673 = vector.broadcast %10 : vector<1x128xf32> to vector<8x128xf32>
    %674 = arith.addf %672, %673 : vector<8x128xf32>
    %675 = vector.extract_strided_slice %674 {offsets = [0, 0], sizes = [8, 32], strides = [1, 1]} : vector<8x128xf32> to vector<8x32xf32>
    %676 = arith.negf %675 : vector<8x32xf32>
    %677 = math.exp %676 : vector<8x32xf32>
    %cst_191 = arith.constant 1.000000e+00 : f32
    %678 = vector.broadcast %cst_191 : f32 to vector<8x32xf32>
    %679 = arith.addf %678, %677 : vector<8x32xf32>
    %680 = arith.divf %678, %679 : vector<8x32xf32>
    %681 = vector.extract_strided_slice %674 {offsets = [0, 32], sizes = [8, 32], strides = [1, 1]} : vector<8x128xf32> to vector<8x32xf32>
    %682 = arith.negf %681 : vector<8x32xf32>
    %683 = math.exp %682 : vector<8x32xf32>
    %cst_192 = arith.constant 1.000000e+00 : f32
    %684 = vector.broadcast %cst_192 : f32 to vector<8x32xf32>
    %685 = arith.addf %684, %683 : vector<8x32xf32>
    %686 = arith.divf %684, %685 : vector<8x32xf32>
    %687 = vector.extract_strided_slice %674 {offsets = [0, 64], sizes = [8, 32], strides = [1, 1]} : vector<8x128xf32> to vector<8x32xf32>
    %688 = math.tanh %687 : vector<8x32xf32>
    %689 = vector.extract_strided_slice %674 {offsets = [0, 96], sizes = [8, 32], strides = [1, 1]} : vector<8x128xf32> to vector<8x32xf32>
    %690 = arith.negf %689 : vector<8x32xf32>
    %691 = math.exp %690 : vector<8x32xf32>
    %cst_193 = arith.constant 1.000000e+00 : f32
    %692 = vector.broadcast %cst_193 : f32 to vector<8x32xf32>
    %693 = arith.addf %692, %691 : vector<8x32xf32>
    %694 = arith.divf %692, %693 : vector<8x32xf32>
    %695 = arith.mulf %686, %593 : vector<8x32xf32>
    %696 = arith.mulf %680, %688 : vector<8x32xf32>
    %697 = arith.addf %695, %696 : vector<8x32xf32>
    %698 = math.tanh %697 : vector<8x32xf32>
    %699 = arith.mulf %694, %698 : vector<8x32xf32>
    %700 = tpu.concatenate %699, %624 in 1 : vector<8x32xf32>, vector<8x32xf32> -> vector<8x64xf32>
    %cst_194 = arith.constant dense<0.000000e+00> : vector<8x128xf32>
    %701 = tpu.matmul %700, %11, %cst_194 {dimension_numbers = #tpu.dot_dimension_numbers<[1], [0], [0], [1], [0, 0, 1, 1], [], []>} : vector<8x64xf32>, vector<64x128xf32>, vector<8x128xf32> -> vector<8x128xf32>
    %702 = vector.broadcast %12 : vector<1x128xf32> to vector<8x128xf32>
    %703 = arith.addf %701, %702 : vector<8x128xf32>
    %704 = vector.extract_strided_slice %703 {offsets = [0, 0], sizes = [8, 32], strides = [1, 1]} : vector<8x128xf32> to vector<8x32xf32>
    %705 = arith.negf %704 : vector<8x32xf32>
    %706 = math.exp %705 : vector<8x32xf32>
    %cst_195 = arith.constant 1.000000e+00 : f32
    %707 = vector.broadcast %cst_195 : f32 to vector<8x32xf32>
    %708 = arith.addf %707, %706 : vector<8x32xf32>
    %709 = arith.divf %707, %708 : vector<8x32xf32>
    %710 = vector.extract_strided_slice %703 {offsets = [0, 32], sizes = [8, 32], strides = [1, 1]} : vector<8x128xf32> to vector<8x32xf32>
    %711 = arith.negf %710 : vector<8x32xf32>
    %712 = math.exp %711 : vector<8x32xf32>
    %cst_196 = arith.constant 1.000000e+00 : f32
    %713 = vector.broadcast %cst_196 : f32 to vector<8x32xf32>
    %714 = arith.addf %713, %712 : vector<8x32xf32>
    %715 = arith.divf %713, %714 : vector<8x32xf32>
    %716 = vector.extract_strided_slice %703 {offsets = [0, 64], sizes = [8, 32], strides = [1, 1]} : vector<8x128xf32> to vector<8x32xf32>
    %717 = math.tanh %716 : vector<8x32xf32>
    %718 = vector.extract_strided_slice %703 {offsets = [0, 96], sizes = [8, 32], strides = [1, 1]} : vector<8x128xf32> to vector<8x32xf32>
    %719 = arith.negf %718 : vector<8x32xf32>
    %720 = math.exp %719 : vector<8x32xf32>
    %cst_197 = arith.constant 1.000000e+00 : f32
    %721 = vector.broadcast %cst_197 : f32 to vector<8x32xf32>
    %722 = arith.addf %721, %720 : vector<8x32xf32>
    %723 = arith.divf %721, %722 : vector<8x32xf32>
    %724 = arith.mulf %715, %622 : vector<8x32xf32>
    %725 = arith.mulf %709, %717 : vector<8x32xf32>
    %726 = arith.addf %724, %725 : vector<8x32xf32>
    %727 = math.tanh %726 : vector<8x32xf32>
    %728 = arith.mulf %723, %727 : vector<8x32xf32>
    %cst_198 = arith.constant dense<0.000000e+00> : vector<8x8xf32>
    %729 = tpu.matmul %728, %13, %cst_198 {dimension_numbers = #tpu.dot_dimension_numbers<[1], [0], [0], [1], [0, 0, 1, 1], [], []>} : vector<8x32xf32>, vector<32x8xf32>, vector<8x8xf32> -> vector<8x8xf32>
    %730 = arith.index_cast %c6_i32 : i32 to index
    %c0_199 = arith.constant 0 : index
    %c0_200 = arith.constant 0 : index
    %731 = vector.load %arg5[%730, %c0_199, %c0_200] : memref<8x8x8xf32, #tpu.memory_space<vmem>>, vector<1x8x8xf32>
    %732 = vector.shape_cast %731 : vector<1x8x8xf32> to vector<8x8xf32>
    %733 = arith.addf %729, %732 : vector<8x8xf32>
    %734 = arith.index_cast %c6_i32 : i32 to index
    %c0_201 = arith.constant 0 : index
    %c0_202 = arith.constant 0 : index
    %735 = vector.load %arg17[%734, %c0_201, %c0_202] : memref<8x8x8xf32, #tpu.memory_space<vmem>>, vector<1x8x8xf32>
    %736 = vector.shape_cast %735 : vector<1x8x8xf32> to vector<8x8xf32>
    %737 = vector.shape_cast %733 : vector<8x8xf32> to vector<1x8x8xf32>
    tpu.vector_store %arg17[%734, %c0_201, %c0_202], %737 {strides = array<i32>} : memref<8x8x8xf32, #tpu.memory_space<vmem>>, vector<1x8x8xf32>,
    %738 = arith.index_cast %c6_i32 : i32 to index
    %c0_203 = arith.constant 0 : index
    %c0_204 = arith.constant 0 : index
    %739 = vector.load %arg18[%738, %c0_203, %c0_204] : memref<8x8x8xf32, #tpu.memory_space<vmem>>, vector<1x8x8xf32>
    %740 = vector.shape_cast %739 : vector<1x8x8xf32> to vector<8x8xf32>
    %741 = vector.shape_cast %656 : vector<8x8xf32> to vector<1x8x8xf32>
    tpu.vector_store %arg18[%738, %c0_203, %c0_204], %741 {strides = array<i32>} : memref<8x8x8xf32, #tpu.memory_space<vmem>>, vector<1x8x8xf32>,
    %c0_i32_205 = arith.constant 0 : i32
    %742 = arith.cmpi eq, %c6_i32, %c0_i32_205 : i32
    %743 = arith.addf %640, %656 : vector<8x8xf32>
    %744 = arith.select %742, %656, %743 : vector<8x8xf32>
    %c7_i32 = arith.constant 7 : i32
    %745 = tpu.concatenate %699, %744 in 1 : vector<8x32xf32>, vector<8x8xf32> -> vector<8x40xf32>
    %cst_206 = arith.constant dense<0.000000e+00> : vector<8x256xf32>
    %746 = tpu.matmul %745, %3, %cst_206 {dimension_numbers = #tpu.dot_dimension_numbers<[1], [0], [0], [1], [0, 0, 1, 1], [], []>} : vector<8x40xf32>, vector<40x256xf32>, vector<8x256xf32> -> vector<8x256xf32>
    %747 = arith.addf %1, %746 : vector<8x256xf32>
    %748 = math.tanh %747 : vector<8x256xf32>
    %cst_207 = arith.constant dense<0.000000e+00> : vector<8x8xf32>
    %749 = tpu.matmul %748, %4, %cst_207 {dimension_numbers = #tpu.dot_dimension_numbers<[1], [0], [0], [1], [0, 0, 1, 1], [], []>} : vector<8x256xf32>, vector<256x8xf32>, vector<8x8xf32> -> vector<8x8xf32>
    %750 = arith.addf %749, %2 : vector<8x8xf32>
    %cst_208 = arith.constant dense<0xFF800000> : vector<8xf32>
    %751 = vector.multi_reduction <maximumf>, %750, %cst_208 [1] : vector<8x8xf32> to vector<8xf32>
    %752 = vector.shape_cast %751 : vector<8xf32> to vector<8x1xf32>
    %753 = vector.broadcast %752 : vector<8x1xf32> to vector<8x8xf32>
    %754 = arith.subf %750, %753 : vector<8x8xf32>
    %755 = math.exp %754 : vector<8x8xf32>
    %cst_209 = arith.constant dense<0.000000e+00> : vector<8xf32>
    %756 = vector.multi_reduction <add>, %755, %cst_209 [1] : vector<8x8xf32> to vector<8xf32>
    %757 = vector.shape_cast %756 : vector<8xf32> to vector<8x1xf32>
    %758 = tpu.reciprocal %757 {approx = true} : vector<8x1xf32> -> vector<8x1xf32>
    %759 = vector.broadcast %758 : vector<8x1xf32> to vector<8x8xf32>
    %760 = arith.mulf %755, %759 : vector<8x8xf32>
    %761 = vector.shape_cast %760 : vector<8x8xf32> to vector<8x8x1xf32>
    %762 = vector.broadcast %761 : vector<8x8x1xf32> to vector<8x8x32xf32>
    %763 = arith.mulf %762, %0 : vector<8x8x32xf32>
    %cst_210 = arith.constant dense<0.000000e+00> : vector<8x32xf32>
    %764 = vector.multi_reduction <add>, %763, %cst_210 [1] : vector<8x8x32xf32> to vector<8x32xf32>
    %cst_211 = arith.constant dense<0.000000e+00> : vector<8x16xf32>
    %765 = tpu.matmul %733, %5, %cst_211 {dimension_numbers = #tpu.dot_dimension_numbers<[1], [0], [0], [1], [0, 0, 1, 1], [], []>} : vector<8x8xf32>, vector<8x16xf32>, vector<8x16xf32> -> vector<8x16xf32>
    %766 = vector.broadcast %6 : vector<1x16xf32> to vector<8x16xf32>
    %767 = arith.addf %765, %766 : vector<8x16xf32>
    %cst_212 = arith.constant 0.000000e+00 : f32
    %768 = vector.broadcast %cst_212 : f32 to vector<8x16xf32>
    %769 = arith.maximumf %767, %768 : vector<8x16xf32>
    %cst_213 = arith.constant dense<0.000000e+00> : vector<8x32xf32>
    %770 = tpu.matmul %769, %7, %cst_213 {dimension_numbers = #tpu.dot_dimension_numbers<[1], [0], [0], [1], [0, 0, 1, 1], [], []>} : vector<8x16xf32>, vector<16x32xf32>, vector<8x32xf32> -> vector<8x32xf32>
    %771 = vector.broadcast %8 : vector<1x32xf32> to vector<8x32xf32>
    %772 = arith.addf %770, %771 : vector<8x32xf32>
    %cst_214 = arith.constant 0.000000e+00 : f32
    %773 = vector.broadcast %cst_214 : f32 to vector<8x32xf32>
    %774 = arith.maximumf %772, %773 : vector<8x32xf32>
    %775 = tpu.concatenate %774, %764, %699 in 1 : vector<8x32xf32>, vector<8x32xf32>, vector<8x32xf32> -> vector<8x96xf32>
    %cst_215 = arith.constant dense<0.000000e+00> : vector<8x128xf32>
    %776 = tpu.matmul %775, %9, %cst_215 {dimension_numbers = #tpu.dot_dimension_numbers<[1], [0], [0], [1], [0, 0, 1, 1], [], []>} : vector<8x96xf32>, vector<96x128xf32>, vector<8x128xf32> -> vector<8x128xf32>
    %777 = vector.broadcast %10 : vector<1x128xf32> to vector<8x128xf32>
    %778 = arith.addf %776, %777 : vector<8x128xf32>
    %779 = vector.extract_strided_slice %778 {offsets = [0, 0], sizes = [8, 32], strides = [1, 1]} : vector<8x128xf32> to vector<8x32xf32>
    %780 = arith.negf %779 : vector<8x32xf32>
    %781 = math.exp %780 : vector<8x32xf32>
    %cst_216 = arith.constant 1.000000e+00 : f32
    %782 = vector.broadcast %cst_216 : f32 to vector<8x32xf32>
    %783 = arith.addf %782, %781 : vector<8x32xf32>
    %784 = arith.divf %782, %783 : vector<8x32xf32>
    %785 = vector.extract_strided_slice %778 {offsets = [0, 32], sizes = [8, 32], strides = [1, 1]} : vector<8x128xf32> to vector<8x32xf32>
    %786 = arith.negf %785 : vector<8x32xf32>
    %787 = math.exp %786 : vector<8x32xf32>
    %cst_217 = arith.constant 1.000000e+00 : f32
    %788 = vector.broadcast %cst_217 : f32 to vector<8x32xf32>
    %789 = arith.addf %788, %787 : vector<8x32xf32>
    %790 = arith.divf %788, %789 : vector<8x32xf32>
    %791 = vector.extract_strided_slice %778 {offsets = [0, 64], sizes = [8, 32], strides = [1, 1]} : vector<8x128xf32> to vector<8x32xf32>
    %792 = math.tanh %791 : vector<8x32xf32>
    %793 = vector.extract_strided_slice %778 {offsets = [0, 96], sizes = [8, 32], strides = [1, 1]} : vector<8x128xf32> to vector<8x32xf32>
    %794 = arith.negf %793 : vector<8x32xf32>
    %795 = math.exp %794 : vector<8x32xf32>
    %cst_218 = arith.constant 1.000000e+00 : f32
    %796 = vector.broadcast %cst_218 : f32 to vector<8x32xf32>
    %797 = arith.addf %796, %795 : vector<8x32xf32>
    %798 = arith.divf %796, %797 : vector<8x32xf32>
    %799 = arith.mulf %790, %697 : vector<8x32xf32>
    %800 = arith.mulf %784, %792 : vector<8x32xf32>
    %801 = arith.addf %799, %800 : vector<8x32xf32>
    %802 = math.tanh %801 : vector<8x32xf32>
    %803 = arith.mulf %798, %802 : vector<8x32xf32>
    %804 = tpu.concatenate %803, %728 in 1 : vector<8x32xf32>, vector<8x32xf32> -> vector<8x64xf32>
    %cst_219 = arith.constant dense<0.000000e+00> : vector<8x128xf32>
    %805 = tpu.matmul %804, %11, %cst_219 {dimension_numbers = #tpu.dot_dimension_numbers<[1], [0], [0], [1], [0, 0, 1, 1], [], []>} : vector<8x64xf32>, vector<64x128xf32>, vector<8x128xf32> -> vector<8x128xf32>
    %806 = vector.broadcast %12 : vector<1x128xf32> to vector<8x128xf32>
    %807 = arith.addf %805, %806 : vector<8x128xf32>
    %808 = vector.extract_strided_slice %807 {offsets = [0, 0], sizes = [8, 32], strides = [1, 1]} : vector<8x128xf32> to vector<8x32xf32>
    %809 = arith.negf %808 : vector<8x32xf32>
    %810 = math.exp %809 : vector<8x32xf32>
    %cst_220 = arith.constant 1.000000e+00 : f32
    %811 = vector.broadcast %cst_220 : f32 to vector<8x32xf32>
    %812 = arith.addf %811, %810 : vector<8x32xf32>
    %813 = arith.divf %811, %812 : vector<8x32xf32>
    %814 = vector.extract_strided_slice %807 {offsets = [0, 32], sizes = [8, 32], strides = [1, 1]} : vector<8x128xf32> to vector<8x32xf32>
    %815 = arith.negf %814 : vector<8x32xf32>
    %816 = math.exp %815 : vector<8x32xf32>
    %cst_221 = arith.constant 1.000000e+00 : f32
    %817 = vector.broadcast %cst_221 : f32 to vector<8x32xf32>
    %818 = arith.addf %817, %816 : vector<8x32xf32>
    %819 = arith.divf %817, %818 : vector<8x32xf32>
    %820 = vector.extract_strided_slice %807 {offsets = [0, 64], sizes = [8, 32], strides = [1, 1]} : vector<8x128xf32> to vector<8x32xf32>
    %821 = math.tanh %820 : vector<8x32xf32>
    %822 = vector.extract_strided_slice %807 {offsets = [0, 96], sizes = [8, 32], strides = [1, 1]} : vector<8x128xf32> to vector<8x32xf32>
    %823 = arith.negf %822 : vector<8x32xf32>
    %824 = math.exp %823 : vector<8x32xf32>
    %cst_222 = arith.constant 1.000000e+00 : f32
    %825 = vector.broadcast %cst_222 : f32 to vector<8x32xf32>
    %826 = arith.addf %825, %824 : vector<8x32xf32>
    %827 = arith.divf %825, %826 : vector<8x32xf32>
    %828 = arith.mulf %819, %726 : vector<8x32xf32>
    %829 = arith.mulf %813, %821 : vector<8x32xf32>
    %830 = arith.addf %828, %829 : vector<8x32xf32>
    %831 = math.tanh %830 : vector<8x32xf32>
    %832 = arith.mulf %827, %831 : vector<8x32xf32>
    %cst_223 = arith.constant dense<0.000000e+00> : vector<8x8xf32>
    %833 = tpu.matmul %832, %13, %cst_223 {dimension_numbers = #tpu.dot_dimension_numbers<[1], [0], [0], [1], [0, 0, 1, 1], [], []>} : vector<8x32xf32>, vector<32x8xf32>, vector<8x8xf32> -> vector<8x8xf32>
    %834 = arith.index_cast %c7_i32 : i32 to index
    %c0_224 = arith.constant 0 : index
    %c0_225 = arith.constant 0 : index
    %835 = vector.load %arg5[%834, %c0_224, %c0_225] : memref<8x8x8xf32, #tpu.memory_space<vmem>>, vector<1x8x8xf32>
    %836 = vector.shape_cast %835 : vector<1x8x8xf32> to vector<8x8xf32>
    %837 = arith.addf %833, %836 : vector<8x8xf32>
    %838 = arith.index_cast %c7_i32 : i32 to index
    %c0_226 = arith.constant 0 : index
    %c0_227 = arith.constant 0 : index
    %839 = vector.load %arg17[%838, %c0_226, %c0_227] : memref<8x8x8xf32, #tpu.memory_space<vmem>>, vector<1x8x8xf32>
    %840 = vector.shape_cast %839 : vector<1x8x8xf32> to vector<8x8xf32>
    %841 = vector.shape_cast %837 : vector<8x8xf32> to vector<1x8x8xf32>
    tpu.vector_store %arg17[%838, %c0_226, %c0_227], %841 {strides = array<i32>} : memref<8x8x8xf32, #tpu.memory_space<vmem>>, vector<1x8x8xf32>,
    %842 = arith.index_cast %c7_i32 : i32 to index
    %c0_228 = arith.constant 0 : index
    %c0_229 = arith.constant 0 : index
    %843 = vector.load %arg18[%842, %c0_228, %c0_229] : memref<8x8x8xf32, #tpu.memory_space<vmem>>, vector<1x8x8xf32>
    %844 = vector.shape_cast %843 : vector<1x8x8xf32> to vector<8x8xf32>
    %845 = vector.shape_cast %760 : vector<8x8xf32> to vector<1x8x8xf32>
    tpu.vector_store %arg18[%842, %c0_228, %c0_229], %845 {strides = array<i32>} : memref<8x8x8xf32, #tpu.memory_space<vmem>>, vector<1x8x8xf32>,
    %c0_i32_230 = arith.constant 0 : i32
    %846 = arith.cmpi eq, %c7_i32, %c0_i32_230 : i32
    %847 = arith.addf %744, %760 : vector<8x8xf32>
    %848 = arith.select %846, %760, %847 : vector<8x8xf32>
    %c8_i32 = arith.constant 8 : i32
    return
  }
  func.func @transform_0(%arg0: i32) -> (i32, i32, i32) {
    %c0_i32 = arith.constant 0 : i32
    %c0_i32_0 = arith.constant 0 : i32
    %c0_i32_1 = arith.constant 0 : i32
    return %arg0, %c0_i32, %c0_i32_0 : i32, i32, i32
  }
  func.func @transform_1(%arg0: i32) -> (i32, i32) {
    %c0_i32 = arith.constant 0 : i32
    %c0_i32_0 = arith.constant 0 : i32
    return %arg0, %c0_i32 : i32, i32
  }
  func.func @transform_2(%arg0: i32) -> (i32, i32) {
    %c0_i32 = arith.constant 0 : i32
    %c0_i32_0 = arith.constant 0 : i32
    return %arg0, %c0_i32 : i32, i32
  }
  func.func @transform_3(%arg0: i32) -> (i32, i32) {
    %c0_i32 = arith.constant 0 : i32
    %c0_i32_0 = arith.constant 0 : i32
    return %arg0, %c0_i32 : i32, i32
  }
  func.func @transform_4(%arg0: i32) -> (i32, i32, i32) {
    %c0_i32 = arith.constant 0 : i32
    %c0_i32_0 = arith.constant 0 : i32
    %c0_i32_1 = arith.constant 0 : i32
    return %c0_i32, %arg0, %c0_i32_0 : i32, i32, i32
  }
  func.func @transform_5(%arg0: i32) -> (i32, i32) {
    %c0_i32 = arith.constant 0 : i32
    %c0_i32_0 = arith.constant 0 : i32
    %c0_i32_1 = arith.constant 0 : i32
    return %c0_i32, %c0_i32_0 : i32, i32
  }
  func.func @transform_6(%arg0: i32) -> (i32, i32) {
    %c0_i32 = arith.constant 0 : i32
    %c0_i32_0 = arith.constant 0 : i32
    %c0_i32_1 = arith.constant 0 : i32
    return %c0_i32, %c0_i32_0 : i32, i32
  }
  func.func @transform_7(%arg0: i32) -> (i32, i32) {
    %c0_i32 = arith.constant 0 : i32
    %c0_i32_0 = arith.constant 0 : i32
    %c0_i32_1 = arith.constant 0 : i32
    return %c0_i32, %c0_i32_0 : i32, i32
  }
  func.func @transform_8(%arg0: i32) -> (i32, i32) {
    %c0_i32 = arith.constant 0 : i32
    %c0_i32_0 = arith.constant 0 : i32
    %c0_i32_1 = arith.constant 0 : i32
    return %c0_i32, %c0_i32_0 : i32, i32
  }
  func.func @transform_9(%arg0: i32) -> (i32, i32) {
    %c0_i32 = arith.constant 0 : i32
    %c0_i32_0 = arith.constant 0 : i32
    %c0_i32_1 = arith.constant 0 : i32
    return %c0_i32, %c0_i32_0 : i32, i32
  }
  func.func @transform_10(%arg0: i32) -> (i32, i32) {
    %c0_i32 = arith.constant 0 : i32
    %c0_i32_0 = arith.constant 0 : i32
    %c0_i32_1 = arith.constant 0 : i32
    return %c0_i32, %c0_i32_0 : i32, i32
  }
  func.func @transform_11(%arg0: i32) -> (i32, i32) {
    %c0_i32 = arith.constant 0 : i32
    %c0_i32_0 = arith.constant 0 : i32
    %c0_i32_1 = arith.constant 0 : i32
    return %c0_i32, %c0_i32_0 : i32, i32
  }
  func.func @transform_12(%arg0: i32) -> (i32, i32) {
    %c0_i32 = arith.constant 0 : i32
    %c0_i32_0 = arith.constant 0 : i32
    %c0_i32_1 = arith.constant 0 : i32
    return %c0_i32, %c0_i32_0 : i32, i32
  }
  func.func @transform_13(%arg0: i32) -> (i32, i32) {
    %c0_i32 = arith.constant 0 : i32
    %c0_i32_0 = arith.constant 0 : i32
    %c0_i32_1 = arith.constant 0 : i32
    return %c0_i32, %c0_i32_0 : i32, i32
  }
  func.func @transform_14(%arg0: i32) -> (i32, i32) {
    %c0_i32 = arith.constant 0 : i32
    %c0_i32_0 = arith.constant 0 : i32
    %c0_i32_1 = arith.constant 0 : i32
    return %c0_i32, %c0_i32_0 : i32, i32
  }
  func.func @transform_15(%arg0: i32) -> (i32, i32) {
    %c0_i32 = arith.constant 0 : i32
    %c0_i32_0 = arith.constant 0 : i32
    %c0_i32_1 = arith.constant 0 : i32
    return %c0_i32, %c0_i32_0 : i32, i32
  }
  func.func @transform_16(%arg0: i32) -> (i32, i32, i32) {
    %c0_i32 = arith.constant 0 : i32
    %c0_i32_0 = arith.constant 0 : i32
    %c0_i32_1 = arith.constant 0 : i32
    return %c0_i32, %arg0, %c0_i32_0 : i32, i32, i32
  }
  func.func @transform_17(%arg0: i32) -> (i32, i32, i32) {
    %c0_i32 = arith.constant 0 : i32
    %c0_i32_0 = arith.constant 0 : i32
    %c0_i32_1 = arith.constant 0 : i32
    return %c0_i32, %arg0, %c0_i32_0 : i32, i32, i32
  }
}

</mosaic_0001>

<bundles_post_ra>
// kernel: tile.9
= control target key start
LH: loop header
LB: loop body
LE: loop exit
PB: predicated region body
PF: predicated region fallthrough
CT: control target
= control target key end

     0   :  { %vm92_vm0 = vcmask 1047556   ;;  %s459_s14 = smov 96   ;;  %s460_s22 = smov 64   ;;  %vm3_vm1 = vcmask 261120   ;;  %vm96_vm2 = vcmask 1048320   ;;  %vm183_vm3 = vcmask 785920   ;;  %s896_s0 = inlined_call_operand.vmem [shape: f32[32,8,32], index: 0, kind: input, shape index: {}]   ;;  %s897_s1 = inlined_call_operand.vmem [shape: f32[32,256], index: 1, kind: output, shape index: {}]  }
   0x1   :  { %v392_v0 = vld [vmem:[%s896_s0 + $0x7] ss:$8 sm:$0xf]   ;;  %v387_v3 = vld [vmem:[%s896_s0 + $0x3] ss:$8 sm:$0xf]  }
   0x2   :  { %v393_v1 = vld [vmem:[%s896_s0 + $0x7] ss:$8 sm:$0xf0]   ;;  %v388_v4 = vld [vmem:[%s896_s0 + $0x3] ss:$8 sm:$0xf0]  }
   0x3   :  { %v114_v2 = vsel %vm92_vm0, %v393_v1, %v392_v0  ;;  %v93_v5 = vsel %vm92_vm0, %v388_v4, %v387_v3  ;;  %v395_v6 = vld [vmem:[%s896_s0 + $0x87] ss:$8 sm:$0xf]   ;;  %v389_v8 = vld [vmem:[%s896_s0 + $0x83] ss:$8 sm:$0xf]  }
   0x4   :  { %115 = vrot.lane.b32.xlu1 %v114_v2, %s459_s14  ;;  %94 = vrot.lane.b32.xlu0 %v93_v5, %s459_s14  ;;  %v396_v7 = vld [vmem:[%s896_s0 + $0x87] ss:$8 sm:$0xf0]   ;;  %v390_v9 = vld [vmem:[%s896_s0 + $0x83] ss:$8 sm:$0xf0]  }
   0x5   :  { %v398_v10 = vld [vmem:[%s896_s0 + $0x43] ss:$8 sm:$0xf]   ;;  %v125_v12 = vsel %vm92_vm0, %v396_v7, %v395_v6  ;;  %v103_v14 = vsel %vm92_vm0, %v390_v9, %v389_v8  ;;  %v407_v17 = vld [vmem:[%s896_s0 + $0xc7] ss:$8 sm:$0xf]  }
   0x6   :  { %v399_v11 = vld [vmem:[%s896_s0 + $0x43] ss:$8 sm:$0xf0]   ;;  %v408_v18 = vld [vmem:[%s896_s0 + $0xc7] ss:$8 sm:$0xf0]  }
   0x7   :  { %v136_v13 = vsel %vm92_vm0, %v399_v11, %v398_v10  ;;  %v401_v15 = vld [vmem:[%s896_s0 + $0xc3] ss:$8 sm:$0xf]   ;;  %v404_v19 = vld [vmem:[%s896_s0 + $0x47] ss:$8 sm:$0xf]   ;;  %v169_v22 = vsel %vm92_vm0, %v408_v18, %v407_v17 }
   0x8   :  { %137 = vrot.lane.b32.xlu2 %v136_v13, %s459_s14  ;;  %v402_v16 = vld [vmem:[%s896_s0 + $0xc3] ss:$8 sm:$0xf0]   ;;  %v405_v20 = vld [vmem:[%s896_s0 + $0x47] ss:$8 sm:$0xf0]  }
   0x9   :  { %v147_v21 = vsel %vm92_vm0, %v402_v16, %v401_v15  ;;  %v158_v23 = vsel %vm92_vm0, %v405_v20, %v404_v19  ;;  %v410_v24 = vld [vmem:[%s896_s0 + $0x2] ss:$8 sm:$0xf]   ;;  %v415_v26 = vld [vmem:[%s896_s0 + $0x6] ss:$8 sm:$0xf]  }
   0xa   :  { %v411_v25 = vld [vmem:[%s896_s0 + $0x2] ss:$8 sm:$0xf0]   ;;  %v416_v27 = vld [vmem:[%s896_s0 + $0x6] ss:$8 sm:$0xf0]  }
   0xb   :  { %v412_v28 = vld [vmem:[%s896_s0 + $0x82] ss:$8 sm:$0xf]   ;;  %v180_v30 = vsel %vm92_vm0, %v411_v25, %v410_v24  ;;  %v201_v31 = vsel %vm92_vm0, %v416_v27, %v415_v26  ;;  %v418_v33 = vld [vmem:[%s896_s0 + $0x86] ss:$8 sm:$0xf]  }
   0xc   :  { %126 = vrot.lane.b32.xlu1 %v125_v12, %s459_s14  ;;  %104 = vrot.lane.b32.xlu0 %v103_v14, %s459_s14  ;;  %v413_v29 = vld [vmem:[%s896_s0 + $0x82] ss:$8 sm:$0xf0]   ;;  %v419_v34 = vld [vmem:[%s896_s0 + $0x86] ss:$8 sm:$0xf0]  }
   0xd   :  { %v190_v32 = vsel %vm92_vm0, %v413_v29, %v412_v28  ;;  %v424_v35 = vld [vmem:[%s896_s0 + $0xc2] ss:$8 sm:$0xf]   ;;  %v212_v39 = vsel %vm92_vm0, %v419_v34, %v418_v33  ;;  %v427_v42 = vld [vmem:[%s896_s0 + $0x46] ss:$8 sm:$0xf]  }
   0xe   :  { %v425_v36 = vld [vmem:[%s896_s0 + $0xc2] ss:$8 sm:$0xf0]   ;;  %v428_v43 = vld [vmem:[%s896_s0 + $0x46] ss:$8 sm:$0xf0]  }
   0xf   :  { %v421_v37 = vld [vmem:[%s896_s0 + $0x42] ss:$8 sm:$0xf]   ;;  %v234_v40 = vsel %vm92_vm0, %v425_v36, %v424_v35  ;;  %v433_v44 = vld [vmem:[%s896_s0 + $0x1] ss:$8 sm:$0xf]   ;;  %v245_v48 = vsel %vm92_vm0, %v428_v43, %v427_v42 }
  0x10   :  { %148 = vrot.lane.b32.xlu2 %v147_v21, %s459_s14  ;;  %v422_v38 = vld [vmem:[%s896_s0 + $0x42] ss:$8 sm:$0xf0]   ;;  %v434_v45 = vld [vmem:[%s896_s0 + $0x1] ss:$8 sm:$0xf0]  }
  0x11   :  { %v223_v41 = vsel %vm92_vm0, %v422_v38, %v421_v37  ;;  %v430_v46 = vld [vmem:[%s896_s0 + $0xc6] ss:$8 sm:$0xf]   ;;  %v267_v49 = vsel %vm92_vm0, %v434_v45, %v433_v44  ;;  %s461_s18 = smov 32   ;;  %v2_v8 = vld [vmem:[%s896_s0] ss:$4 sm:$0xff]  }
  0x12   :  { %v431_v47 = vld [vmem:[%s896_s0 + $0xc6] ss:$8 sm:$0xf0]   ;;  %v435_v51 = vld [vmem:[%s896_s0 + $0x81] ss:$8 sm:$0xf]  }
  0x13   :  { %v256_v50 = vsel %vm92_vm0, %v431_v47, %v430_v46  ;;  %v436_v52 = vld [vmem:[%s896_s0 + $0x81] ss:$8 sm:$0xf0]   ;;  %v441_v53 = vld [vmem:[%s896_s0 + $0x85] ss:$8 sm:$0xf]  }
  0x14   :  { %170 = vrot.lane.b32.xlu1 %v169_v22, %s459_s14  ;;  %159 = vrot.lane.b32.xlu0 %v158_v23, %s459_s14  ;;  %v442_v54 = vld [vmem:[%s896_s0 + $0x85] ss:$8 sm:$0xf0]   ;;  %v277_v57 = vsel %vm92_vm0, %v436_v52, %v435_v51  ;;  %v444_v60 = vld [vmem:[%s896_s0 + $0x41] ss:$8 sm:$0xf]  }
  0x15   :  { %v438_v55 = vld [vmem:[%s896_s0 + $0x5] ss:$8 sm:$0xf]   ;;  %v299_v58 = vsel %vm92_vm0, %v442_v54, %v441_v53  ;;  %v445_v61 = vld [vmem:[%s896_s0 + $0x41] ss:$8 sm:$0xf0]  }
  0x16   :  { %v439_v56 = vld [vmem:[%s896_s0 + $0x5] ss:$8 sm:$0xf0]   ;;  %v447_v0 = vld [vmem:[%s896_s0 + $0xc1] ss:$8 sm:$0xf]   ;;  %v310_v2 = vsel %vm92_vm0, %v445_v61, %v444_v60 }
  0x17   :  { %v288_v59 = vsel %vm92_vm0, %v439_v56, %v438_v55  ;;  %v450_v62 = vld [vmem:[%s896_s0 + $0x45] ss:$8 sm:$0xf]   ;;  %v448_v1 = vld [vmem:[%s896_s0 + $0xc1] ss:$8 sm:$0xf0]  }
  0x18   :  { %181 = vrot.lane.b32.xlu2 %v180_v30, %s460_s22  ;;  %v451_v63 = vld [vmem:[%s896_s0 + $0x45] ss:$8 sm:$0xf0]   ;;  %v321_v4 = vsel %vm92_vm0, %v448_v1, %v447_v0  ;;  %4 = vst.msk [vmem:[%s897_s1] ss:$8 sm:$0x3] %vm3_vm1, %v2_v8  }
  0x19   :  { %v332_v3 = vsel %vm92_vm0, %v451_v63, %v450_v62  ;;  %v453_v5 = vld [vmem:[%s896_s0 + $0xc5] ss:$8 sm:$0xf]   ;;  %349 = vst.msk [vmem:[%s897_s1 - $0xf] ss:$8 sm:$0xc] %vm3_vm1, %v2_v8  }
  0x1a   :  { %v454_v6 = vld [vmem:[%s896_s0 + $0xc5] ss:$8 sm:$0xf0]   ;;  %v352_v9 = vld [vmem:[%s896_s0 + $0x20] ss:$4 sm:$0xff]   ;;  %vm270_vm4 = vcmask 523520  }
  0x1b   :  { %v343_v7 = vsel %vm92_vm0, %v454_v6, %v453_v5  ;;  %350 = vst.msk [vmem:[%s897_s1 - $0x1e] ss:$8 sm:$0x30] %vm3_vm1, %v2_v8   ;;  %v367_v10 = vld [vmem:[%s896_s0 + $0x80] ss:$4 sm:$0xff]  }
  0x1c   :  { %202 = vrot.lane.b32.xlu1 %v201_v31, %s460_s22  ;;  %191 = vrot.lane.b32.xlu0 %v190_v32, %s460_s22  ;;  %351 = vst.msk [vmem:[%s897_s1 - $0x2d] ss:$8 sm:$0xc0] %vm3_vm1, %v2_v8   ;;  %v372_v11 = vld [vmem:[%s896_s0 + $0xa0] ss:$4 sm:$0xff]  }
  0x1d   :  { %353 = vst.msk [vmem:[%s897_s1 + $0x4] ss:$8 sm:$0x3] %vm3_vm1, %v352_v9   ;;  %v357_v13 = vld [vmem:[%s896_s0 + $0x40] ss:$4 sm:$0xff]  }
  0x1e   :  { %354 = vst.msk [vmem:[%s897_s1 - $0xb] ss:$8 sm:$0xc] %vm3_vm1, %v352_v9   ;;  %v362_v14 = vld [vmem:[%s896_s0 + $0x60] ss:$4 sm:$0xff]  }
  0x1f   :  { %355 = vst.msk [vmem:[%s897_s1 - $0x1a] ss:$8 sm:$0x30] %vm3_vm1, %v352_v9   ;;  %v377_v16 = vld [vmem:[%s896_s0 + $0xc0] ss:$4 sm:$0xff]  }
  0x20   :  { %213 = vrot.lane.b32.xlu2 %v212_v39, %s460_s22  ;;  %356 = vst.msk [vmem:[%s897_s1 - $0x29] ss:$8 sm:$0xc0] %vm3_vm1, %v352_v9   ;;  %v382_v17 = vld [vmem:[%s896_s0 + $0xe0] ss:$4 sm:$0xff]  }
  0x21   :  { %368 = vst.msk [vmem:[%s897_s1 + $0x20] ss:$8 sm:$0x3] %vm3_vm1, %v367_v10  }
  0x22   :  { %369 = vst.msk [vmem:[%s897_s1 + $0x11] ss:$8 sm:$0xc] %vm3_vm1, %v367_v10  }
  0x23   :  { %370 = vst.msk [vmem:[%s897_s1 + $0x2] ss:$8 sm:$0x30] %vm3_vm1, %v367_v10  }
  0x24   :  { %235 = vrot.lane.b32.xlu1 %v234_v40, %s460_s22  ;;  %224 = vrot.lane.b32.xlu0 %v223_v41, %s460_s22  ;;  %371 = vst.msk [vmem:[%s897_s1 - $0xd] ss:$8 sm:$0xc0] %vm3_vm1, %v367_v10  }
  0x25   :  { %373 = vst.msk [vmem:[%s897_s1 + $0x24] ss:$8 sm:$0x3] %vm3_vm1, %v372_v11  }
  0x26   :  { %374 = vst.msk [vmem:[%s897_s1 + $0x15] ss:$8 sm:$0xc] %vm3_vm1, %v372_v11  }
  0x27   :  { %375 = vst.msk [vmem:[%s897_s1 + $0x6] ss:$8 sm:$0x30] %vm3_vm1, %v372_v11  }
  0x28   :  { %246 = vrot.lane.b32.xlu2 %v245_v48, %s460_s22  ;;  %376 = vst.msk [vmem:[%s897_s1 - $0x9] ss:$8 sm:$0xc0] %vm3_vm1, %v372_v11  }
  0x29   :  { %358 = vst.msk [vmem:[%s897_s1 + $0x10] ss:$8 sm:$0x3] %vm3_vm1, %v357_v13  }
  0x2a   :  { %359 = vst.msk [vmem:[%s897_s1 + $0x1] ss:$8 sm:$0xc] %vm3_vm1, %v357_v13  }
  0x2b   :  { %360 = vst.msk [vmem:[%s897_s1 - $0xe] ss:$8 sm:$0x30] %vm3_vm1, %v357_v13  }
  0x2c   :  { %268 = vrot.lane.b32.xlu1 %v267_v49, %s461_s18  ;;  %257 = vrot.lane.b32.xlu0 %v256_v50, %s460_s22  ;;  %361 = vst.msk [vmem:[%s897_s1 - $0x1d] ss:$8 sm:$0xc0] %vm3_vm1, %v357_v13  }
  0x2d   :  { %363 = vst.msk [vmem:[%s897_s1 + $0x14] ss:$8 sm:$0x3] %vm3_vm1, %v362_v14  }
  0x2e   :  { %364 = vst.msk [vmem:[%s897_s1 + $0x5] ss:$8 sm:$0xc] %vm3_vm1, %v362_v14  }
  0x2f   :  { %365 = vst.msk [vmem:[%s897_s1 - $0xa] ss:$8 sm:$0x30] %vm3_vm1, %v362_v14  }
  0x30   :  { %278 = vrot.lane.b32.xlu2 %v277_v57, %s461_s18  ;;  %366 = vst.msk [vmem:[%s897_s1 - $0x19] ss:$8 sm:$0xc0] %vm3_vm1, %v362_v14  }
  0x31   :  { %378 = vst.msk [vmem:[%s897_s1 + $0x30] ss:$8 sm:$0x3] %vm3_vm1, %v377_v16  }
  0x32   :  { %379 = vst.msk [vmem:[%s897_s1 + $0x21] ss:$8 sm:$0xc] %vm3_vm1, %v377_v16  }
  0x33   :  { %380 = vst.msk [vmem:[%s897_s1 + $0x12] ss:$8 sm:$0x30] %vm3_vm1, %v377_v16  }
  0x34   :  { %300 = vrot.lane.b32.xlu1 %v299_v58, %s461_s18  ;;  %289 = vrot.lane.b32.xlu0 %v288_v59, %s461_s18  ;;  %381 = vst.msk [vmem:[%s897_s1 + $0x3] ss:$8 sm:$0xc0] %vm3_vm1, %v377_v16  }
  0x35   :  { %383 = vst.msk [vmem:[%s897_s1 + $0x34] ss:$8 sm:$0x3] %vm3_vm1, %v382_v17  }
  0x36   :  { %384 = vst.msk [vmem:[%s897_s1 + $0x25] ss:$8 sm:$0xc] %vm3_vm1, %v382_v17  }
  0x37   :  { %385 = vst.msk [vmem:[%s897_s1 + $0x16] ss:$8 sm:$0x30] %vm3_vm1, %v382_v17  }
  0x38   :  { %311 = vrot.lane.b32.xlu2 %v310_v2, %s461_s18  ;;  %386 = vst.msk [vmem:[%s897_s1 + $0x7] ss:$8 sm:$0xc0] %vm3_vm1, %v382_v17  }
  0x3c   :  { %333 = vrot.lane.b32.xlu1 %v332_v3, %s461_s18  ;;  %322 = vrot.lane.b32.xlu0 %v321_v4, %s461_s18 }
  0x40   :  { %344 = vrot.lane.b32.xlu2 %v343_v7, %s461_s18 }
  0x62   :  { %v138_v12 = vpop.permute.xlu2 %137  }
  0x63   :  { %400 = vst.msk [vmem:[%s897_s1 + $0x10] sm:$0xff] %vm96_vm2, %v138_v12  }
  0x6a   :  { %v149_v15 = vpop.permute.xlu2 %148  }
  0x6b   :  { %403 = vst.msk [vmem:[%s897_s1 + $0x30] sm:$0xff] %vm96_vm2, %v149_v15  }
  0x72   :  { %v182_v18 = vpop.permute.xlu2 %181  }
  0x76   :  { %v116_v19 = vpop.permute.xlu1 %115   ;;  %v95_v20 = vpop.permute.xlu0 %94  }
  0x77   :  { %394 = vst.msk [vmem:[%s897_s1 + $0x8] sm:$0xff] %vm96_vm2, %v116_v19  }
  0x78   :  { %97 = vst.msk [vmem:[%s897_s1] sm:$0xff] %vm96_vm2, %v95_v20  }
  0x79   :  { %184 = vst.msk [vmem:[%s897_s1] sm:$0xff] %vm183_vm3, %v182_v18  }
  0x7a   :  { %v214_v21 = vpop.permute.xlu2 %213  }
  0x7e   :  { %v127_v22 = vpop.permute.xlu1 %126   ;;  %v105_v23 = vpop.permute.xlu0 %104  }
  0x7f   :  { %397 = vst.msk [vmem:[%s897_s1 + $0x28] sm:$0xff] %vm96_vm2, %v127_v22  }
  0x80   :  { %420 = vst.msk [vmem:[%s897_s1 + $0x28] sm:$0xff] %vm183_vm3, %v214_v21  }
  0x81   :  { %391 = vst.msk [vmem:[%s897_s1 + $0x20] sm:$0xff] %vm96_vm2, %v105_v23  }
  0x82   :  { %v247_v24 = vpop.permute.xlu2 %246  }
  0x86   :  { %v171_v25 = vpop.permute.xlu1 %170   ;;  %v160_v26 = vpop.permute.xlu0 %159  }
  0x87   :  { %409 = vst.msk [vmem:[%s897_s1 + $0x38] sm:$0xff] %vm96_vm2, %v171_v25  }
  0x88   :  { %406 = vst.msk [vmem:[%s897_s1 + $0x18] sm:$0xff] %vm96_vm2, %v160_v26  }
  0x89   :  { %429 = vst.msk [vmem:[%s897_s1 + $0x18] sm:$0xff] %vm183_vm3, %v247_v24  }
  0x8a   :  { %v279_v27 = vpop.permute.xlu2 %278  }
  0x8e   :  { %v203_v28 = vpop.permute.xlu1 %202   ;;  %v192_v29 = vpop.permute.xlu0 %191  }
  0x8f   :  { %417 = vst.msk [vmem:[%s897_s1 + $0x8] sm:$0xff] %vm183_vm3, %v203_v28  }
  0x90   :  { %414 = vst.msk [vmem:[%s897_s1 + $0x20] sm:$0xff] %vm183_vm3, %v192_v29  }
  0x91   :  { %437 = vst.msk [vmem:[%s897_s1 + $0x20] sm:$0xff] %vm270_vm4, %v279_v27  }
  0x92   :  { %v312_v30 = vpop.permute.xlu2 %311  }
  0x96   :  { %v236_v31 = vpop.permute.xlu1 %235   ;;  %v225_v32 = vpop.permute.xlu0 %224  }
  0x97   :  { %426 = vst.msk [vmem:[%s897_s1 + $0x30] sm:$0xff] %vm183_vm3, %v236_v31  }
  0x98   :  { %423 = vst.msk [vmem:[%s897_s1 + $0x10] sm:$0xff] %vm183_vm3, %v225_v32  }
  0x99   :  { %446 = vst.msk [vmem:[%s897_s1 + $0x10] sm:$0xff] %vm270_vm4, %v312_v30  }
  0x9a   :  { %v345_v33 = vpop.permute.xlu2 %344  }
  0x9e   :  { %v269_v34 = vpop.permute.xlu1 %268   ;;  %v258_v35 = vpop.permute.xlu0 %257  }
  0x9f   :  { %271 = vst.msk [vmem:[%s897_s1] sm:$0xff] %vm270_vm4, %v269_v34  }
  0xa0   :  { %432 = vst.msk [vmem:[%s897_s1 + $0x38] sm:$0xff] %vm183_vm3, %v258_v35  }
  0xa1   :  { %455 = vst.msk [vmem:[%s897_s1 + $0x38] sm:$0xff] %vm270_vm4, %v345_v33  }
  0xa6   :  { %v301_v36 = vpop.permute.xlu1 %300   ;;  %v290_v37 = vpop.permute.xlu0 %289  }
  0xa7   :  { %443 = vst.msk [vmem:[%s897_s1 + $0x28] sm:$0xff] %vm270_vm4, %v301_v36  }
  0xa8   :  { %440 = vst.msk [vmem:[%s897_s1 + $0x8] sm:$0xff] %vm270_vm4, %v290_v37  }
  0xae   :  { %v334_v38 = vpop.permute.xlu1 %333   ;;  %v323_v39 = vpop.permute.xlu0 %322  }
  0xaf   :  { %452 = vst.msk [vmem:[%s897_s1 + $0x18] sm:$0xff] %vm270_vm4, %v334_v38  }
  0xb0   :  { %449 = vst.msk [vmem:[%s897_s1 + $0x30] sm:$0xff] %vm270_vm4, %v323_v39  }

// kernel: rnn_decoder_forward.1
= control target key start
LH: loop header
LB: loop body
LE: loop exit
PB: predicated region body
PF: predicated region fallthrough
CT: control target
= control target key end

     0   :  { %s4335_s30 = smov 32   ;;  %vm144_vm0 = vcmask 261120   ;;  %vm146_vm1 = vcmask 326656   ;;  %vm234_vm2 = vcmask 64512   ;;  %vm396_vm3 = vcmask 130048   ;;  %s4337_s19 = smov 64   ;;  %s7181_s2 = inlined_call_operand.vmem [shape: f32[8,8], index: 2, kind: input, shape index: {}]   ;;  %s7182_s5 = inlined_call_operand.vmem [shape: f32[40,256], index: 5, kind: input, shape index: {}]   ;;  %s7183_s6 = inlined_call_operand.vmem [shape: f32[256,8], index: 6, kind: input, shape index: {}]   ;;  %s7184_s1 = inlined_call_operand.vmem [shape: f32[8,256], index: 1, kind: input, shape index: {}]   ;;  %s7185_s3 = inlined_call_operand.vmem [shape: f32[8,8], index: 3, kind: input, shape index: {}]   ;;  %s7186_s7 = inlined_call_operand.vmem [shape: f32[8,16], index: 7, kind: input, shape index: {}]   ;;  %s7187_s17 = inlined_call_operand.vmem [shape: f32[8,8,8], index: 17, kind: output, shape index: {1}]   ;;  %s7188_s8 = inlined_call_operand.vmem [shape: f32[1,16], index: 8, kind: input, shape index: {}]   ;;  %s7189_s10 = inlined_call_operand.vmem [shape: f32[1,32], index: 10, kind: input, shape index: {}]   ;;  %s7190_s9 = inlined_call_operand.vmem [shape: f32[16,32], index: 9, kind: input, shape index: {}]   ;;  %s7191_s0 = inlined_call_operand.vmem [shape: f32[8,8,32], index: 0, kind: input, shape index: {}]   ;;  %s7192_s11 = inlined_call_operand.vmem [shape: f32[96,128], index: 11, kind: input, shape index: {}]   ;;  %s7193_s12 = inlined_call_operand.vmem [shape: f32[1,128], index: 12, kind: input, shape index: {}]   ;;  %s7194_s14 = inlined_call_operand.vmem [shape: f32[1,128], index: 14, kind: input, shape index: {}]   ;;  %s7195_s13 = inlined_call_operand.vmem [shape: f32[64,128], index: 13, kind: input, shape index: {}]   ;;  %s7196_s15 = inlined_call_operand.vmem [shape: f32[32,8], index: 15, kind: input, shape index: {}]   ;;  %s7197_s4 = inlined_call_operand.vmem [shape: f32[8,8,8], index: 4, kind: input, shape index: {}]   ;;  %s7198_s16 = inlined_call_operand.vmem [shape: f32[8,8,8], index: 16, kind: output, shape index: {0}]  }
   0x1   :  { %7302 = sst [smem:[#allocation31_spill]] %s7181_s2  ;;  %v4496_v11 = vld [vmem:[%s7183_s6 + $0x78] sm:$0xff]  ;;  %v4506_v13 = vld [vmem:[%s7183_s6 + $0x70] sm:$0xff]  ;;  %v4518_v15 = vld [vmem:[%s7183_s6 + $0x68] sm:$0xff]  ;;  %vm429_vm4 = vcmask 1041409   ;;  %vm431_vm5 = vcmask 1042434  }
   0x2   :  { %7303 = sst [smem:[#allocation32_spill]] %s7182_s5  ;;  %v4501_v12 = vld [vmem:[%s7183_s6 + $0xf8] sm:$0xff]  ;;  %194 = vmatpush.msra.mxu2 %v4496_v11  ;;  %v4513_v14 = vld [vmem:[%s7183_s6 + $0xf0] sm:$0xff]  ;;  %v4523_v16 = vld [vmem:[%s7183_s6 + $0xe8] sm:$0xff]  ;;  %vm433_vm6 = vcmask 1043459   ;;  %vm435_vm7 = vcmask 1044484  }
   0x3   :  { %7304 = sst [smem:[#allocation33_spill]] %s7193_s12  ;;  %214 = vmatpush.msra.mxu3 %v4501_v12  ;;  %v4530_v17 = vld [vmem:[%s7183_s6 + $0x60] sm:$0xff]  ;;  %v4542_v19 = vld [vmem:[%s7183_s6 + $0x58] sm:$0xff]  ;;  %v4554_v21 = vld [vmem:[%s7183_s6 + $0x50] sm:$0xff]  ;;  %vm437_vm8 = vcmask 1045509   ;;  %vm439_vm9 = vcmask 1046534  }
   0x4   :  { %s7305_s26 = sld [smem:[#allocation31_spill]]  ;;  %195 = vmatpush.msra.mxu2 %v4506_v13  ;;  %v4535_v18 = vld [vmem:[%s7183_s6 + $0xe0] sm:$0xff]  ;;  %7312 = vst [vmem:[#allocation7_spill] sm:$0xff] %v4542_v19  ;;  %v4547_v20 = vld [vmem:[%s7183_s6 + $0xd8] sm:$0xff]  ;;  %v4559_v22 = vld [vmem:[%s7183_s6 + $0xd0] sm:$0xff]  ;;  %vm441_vm10 = vcmask 1047559  }
   0x5   :  { %s7306_s12 = sld [smem:[#allocation32_spill]]  ;;  %215 = vmatpush.msra.mxu3 %v4513_v14  ;;  %7313 = vst [vmem:[#allocation8_spill] sm:$0xff] %v4554_v21  ;;  %v4566_v23 = vld [vmem:[%s7183_s6 + $0x48] sm:$0xff]  ;;  %v4578_v25 = vld [vmem:[%s7183_s6 + $0x40] sm:$0xff]  ;;  %v4590_v27 = vld [vmem:[%s7183_s6 + $0x38] sm:$0xff]  ;;  %vm447_vm11 = vcmask 523264  }
   0x6   :  { %196 = vmatpush.msra.mxu2 %v4518_v15  ;;  %7314 = vst [vmem:[#allocation9_spill] sm:$0xff] %v4566_v23  ;;  %v4571_v24 = vld [vmem:[%s7183_s6 + $0xc8] sm:$0xff]  ;;  %v4583_v26 = vld [vmem:[%s7183_s6 + $0xc0] sm:$0xff]  ;;  %v4595_v28 = vld [vmem:[%s7183_s6 + $0xb8] sm:$0xff]  ;;  %vm7242_vm12 = vcmask 785408   ;;  %s7336_s18 = sld [smem:[#allocation33_spill]] }
   0x7   :  { %216 = vmatpush.msra.mxu3 %v4523_v16  ;;  %7315 = vst [vmem:[#allocation10_spill] sm:$0xff] %v4578_v25  ;;  %v4602_v29 = vld [vmem:[%s7183_s6 + $0x30] sm:$0xff]  ;;  %v4614_v31 = vld [vmem:[%s7183_s6 + $0x28] sm:$0xff]  ;;  %v4631_v35 = vld [vmem:[%s7183_s6 + $0x20] sm:$0xff]  ;;  %s4338_s27 = smov 96  }
   0x8   :  { %197 = vmatpush.msra.mxu2 %v4530_v17  ;;  %7316 = vst [vmem:[#allocation11_spill] sm:$0xff] %v4590_v27  ;;  %v4607_v30 = vld [vmem:[%s7183_s6 + $0xb0] sm:$0xff]  ;;  %v4619_v32 = vld [vmem:[%s7183_s6 + $0xa8] sm:$0xff]  ;;  %v4636_v36 = vld [vmem:[%s7183_s6 + $0xa0] sm:$0xff] }
   0x9   :  { %217 = vmatpush.msra.mxu3 %v4535_v18  ;;  %7317 = vst [vmem:[#allocation12_spill] sm:$0xff] %v4602_v29  ;;  %v4643_v37 = vld [vmem:[%s7183_s6 + $0x18] sm:$0xff]  ;;  %v4655_v39 = vld [vmem:[%s7183_s6 + $0x10] sm:$0xff]  ;;  %v4665_v41 = vld [vmem:[%s7183_s6 + $0x8] sm:$0xff] }
   0xa   :  { %v139_v0 = vld [vmem:[%s7305_s26] sm:$0xff]  ;;  %198 = vmatpush.msra.mxu2 %v4542_v19  ;;  %7318 = vst [vmem:[#allocation13_spill] sm:$0xff] %v4614_v31  ;;  %v4648_v38 = vld [vmem:[%s7183_s6 + $0x98] sm:$0xff]  ;;  %v4660_v40 = vld [vmem:[%s7183_s6 + $0x90] sm:$0xff] }
   0xb   :  { %v4435_v1 = vld [vmem:[%s7306_s12 + $0x40] sm:$0xff]  ;;  %v4440_v2 = vld [vmem:[%s7306_s12 + $0x48] sm:$0xff]  ;;  %141 = vrot.lane.b32.xlu0 %v139_v0, %s4335_s30  ;;  %v4447_v3 = vld [vmem:[%s7306_s12 + $0x30] sm:$0xff]  ;;  %218 = vmatpush.msra.mxu3 %v4547_v20  ;;  %7319 = vst [vmem:[#allocation14_spill] sm:$0xff] %v4631_v35  ;;  %v247_v0 = vlaneseq }
   0xc   :  { %7307 = vst [vmem:[#allocation2_spill] sm:$0xff] %v4435_v1  ;;  %161 = vmatpush.msra.mxu0 %v4435_v1  ;;  %v4452_v4 = vld [vmem:[%s7306_s12 + $0x38] sm:$0xff]  ;;  %181 = vmatpush.msra.mxu1 %v4440_v2  ;;  %v4458_v5 = vld [vmem:[%s7306_s12 + $0x20] sm:$0xff]  ;;  %v4464_v6 = vld [vmem:[%s7306_s12 + $0x28] sm:$0xff] }
   0xd   :  { %7308 = vst [vmem:[#allocation3_spill] sm:$0xff] %v4447_v3  ;;  %v4470_v7 = vld [vmem:[%s7306_s12 + $0x10] sm:$0xff]  ;;  %v4476_v8 = vld [vmem:[%s7306_s12 + $0x18] sm:$0xff]  ;;  %v4484_v9 = vld [vmem:[%s7306_s12] sm:$0xff]  ;;  %199 = vmatpush.msra.mxu2 %v4554_v21  ;;  %219 = vmatpush.msra.mxu3 %v4559_v22 }
   0xe   :  { %7309 = vst [vmem:[#allocation4_spill] sm:$0xff] %v4458_v5  ;;  %162 = vmatpush.msra.mxu0 %v4447_v3  ;;  %182 = vmatpush.msra.mxu1 %v4452_v4  ;;  %v4489_v10 = vld [vmem:[%s7306_s12 + $0x8] sm:$0xff]  ;;  %v4677_v43 = vld [vmem:[%s7183_s6] sm:$0xff] }
   0xf   :  { %7310 = vst [vmem:[#allocation5_spill] sm:$0xff] %v4470_v7  ;;  %200 = vmatpush.msra.mxu2 %v4566_v23  ;;  %220 = vmatpush.msra.mxu3 %v4571_v24  ;;  %v4670_v42 = vld [vmem:[%s7183_s6 + $0x88] sm:$0xff]  ;;  %v4682_v44 = vld [vmem:[%s7183_s6 + $0x80] sm:$0xff] }
  0x10   :  { %163 = vmatpush.msra.mxu0 %v4458_v5  ;;  %183 = vmatpush.msra.mxu1 %v4464_v6  ;;  %7311 = vst [vmem:[#allocation6_spill] sm:$0xff] %v4484_v9  ;;  %v4696_v45 = vld [vmem:[%s7184_s1] sm:$0xff]  ;;  %v4701_v46 = vld [vmem:[%s7184_s1 + $0x8] sm:$0xff] }
  0x11   :  { %201 = vmatpush.msra.mxu2 %v4578_v25  ;;  %221 = vmatpush.msra.mxu3 %v4583_v26  ;;  %7320 = vst [vmem:[#allocation15_spill] sm:$0xff] %v4643_v37  ;;  %v4708_v53 = vld [vmem:[%s7185_s3] sm:$0xff] }
  0x12   :  { %164 = vmatpush.msra.mxu0 %v4470_v7  ;;  %184 = vmatpush.msra.mxu1 %v4476_v8  ;;  %7321 = vst [vmem:[#allocation16_spill] sm:$0xff] %v4655_v39 }
  0x13   :  { %202 = vmatpush.msra.mxu2 %v4590_v27  ;;  %222 = vmatpush.msra.mxu3 %v4595_v28  ;;  %7322 = vst [vmem:[#allocation17_spill] sm:$0xff] %v4665_v41 }
  0x14   :  { %165 = vmatpush.msra.mxu0 %v4484_v9  ;;  %185 = vmatpush.msra.mxu1 %v4489_v10  ;;  %7323 = vst [vmem:[#allocation18_spill] sm:$0xff] %v4677_v43 }
  0x15   :  { %203 = vmatpush.msra.mxu2 %v4602_v29  ;;  %223 = vmatpush.msra.mxu3 %v4607_v30  ;;  %7324 = vst [vmem:[#allocation19_spill] sm:$0xff] %v4696_v45 }
  0x16   :  { %7325 = vst [vmem:[#allocation20_spill] sm:$0xff] %v4708_v53 }
  0x17   :  { %204 = vmatpush.msra.mxu2 %v4614_v31  ;;  %224 = vmatpush.msra.mxu3 %v4619_v32 }
  0x19   :  { %205 = vmatpush.msra.mxu2 %v4631_v35  ;;  %225 = vmatpush.msra.mxu3 %v4636_v36 }
  0x1b   :  { %206 = vmatpush.msra.mxu2 %v4643_v37  ;;  %226 = vmatpush.msra.mxu3 %v4648_v38 }
  0x1d   :  { %207 = vmatpush.msra.mxu2 %v4655_v39  ;;  %227 = vmatpush.msra.mxu3 %v4660_v40 }
  0x1f   :  { %208 = vmatpush.msra.mxu2 %v4665_v41  ;;  %228 = vmatpush.msra.mxu3 %v4670_v42 }
  0x21   :  { %209 = vmatpush.msra.mxu2 %v4677_v43  ;;  %229 = vmatpush.msra.mxu3 %v4682_v44 }
  0x23   :  { %628 = vmatpush.msrb.mxu3 %v4435_v1 }
  0x25   :  { %629 = vmatpush.msrb.mxu3 %v4447_v3 }
  0x27   :  { %630 = vmatpush.msrb.mxu3 %v4458_v5 }
  0x29   :  { %631 = vmatpush.msrb.mxu3 %v4470_v7  ;;  %v4825_v7 = vld [vmem:[%s7192_s11 + $0x38] sm:$0xff] }
  0x2b   :  { %632 = vmatpush.msrb.mxu3 %v4484_v9 }
  0x7d   :  { %v142_v33 = vpop.permute.xlu0 %141 }
  0x7e   :  { %v145_v34 = vsel %vm144_vm0, 0.0, %v142_v33  ;;  %v248_v33 = vshrl.u32 %v247_v0, 7 }
  0x7f   :  { %3794 = vmatmul.msk.f32.vlgmr.msra.gmra.mxu0 %vm146_vm1, %v145_v34  ;;  %3795 = vmatmul.msk.f32.vlgmr.msra.gmra.mxu1 %vm146_vm1, %v145_v34  ;;  %v4716_v34 = vld [vmem:[%s7186_s7] sm:$0xff] }
  0x80   :  { %3891 = vset.pattern.permute.xlu2 %v248_v33  ;;  %3890 = vset.pattern.permute.xlu1 %v248_v33  ;;  %7326 = vst [vmem:[#allocation21_spill] sm:$0xff] %v4716_v34 }
  0x81   :  { %3892 = vset.pattern.permute.xlu0 %v248_v33  ;;  %387 = vmatpush.msrb.mxu0 %v4716_v34 }
  0xfc   :  { %v167_v47 = vpop.f32.mrf.mxu0  ;;  %v187_v48 = vpop.f32.mrf.mxu1 }
  0xfd   :  { %v190_v49 = vadd.f32 %v167_v47, %v4696_v45  ;;  %v191_v50 = vadd.f32 %v187_v48, %v4701_v46  ;;  %v4336_v47 = vmov 0.0   ;;  %v4833_v45 = vld [vmem:[%s7192_s11 + $0x30] sm:$0xff] }
  0xfe   :  { %388 = vmatmul.f32.vlgmr.msrb.gmra.mxu0 %v4336_v47 }
  0xff   :  { %3897 = vtanh.f32 %v190_v49 }
 0x100   :  { %3899 = vtanh.f32 %v191_v50 }
 0x105   :  { %v3898_v51 = vpop.eup %3897 }
 0x106   :  { %v3900_v52 = vpop.eup %3899  ;;  %210 = vmatmul.f32.vlgmr.msra.gmra.mxu2 %v3898_v51 }
 0x107   :  { %230 = vmatmul.f32.vlgmr.msra.gmra.mxu3 %v3900_v52 }
 0x108   :  { %850 = vmatpush.msra.mxu3 %v4716_v34  ;;  %v4809_v34 = vld [vmem:[%s7192_s11 + $0x40] sm:$0xff] }
 0x189   :  { %v211_v54 = vpop.f32.mrf.mxu2 }
 0x18a   :  { %v212_v55 = vadd.f32 %v211_v54, %v4708_v53  ;;  %v231_v56 = vpop.f32.mrf.mxu3 }
 0x18c   :  { %v232_v57 = vadd.f32 %v231_v56, %v212_v55 }
 0x18e   :  { %v235_v58 = vsel %vm234_vm2, %v232_v57, -inf }
 0x18f   :  { %236 = vmax.xlane.f32.xlu0 %v235_v58 }
 0x202   :  { %v237_v59 = vpop.xlane.xlu0 %236 }
 0x203   :  { %v238_v60 = vsub.f32 %v232_v57, %v237_v59 }
 0x205   :  { %v239_v61 = vmul.f32 1.442695, %v238_v60 }
 0x207   :  { %3901 = vpow2.f32 %v239_v61  ;;  %v4738_v61 = vld [vmem:[%s7188_s8] ss:$0 sm:$0xff] }
 0x208   :  { %7327 = vst [vmem:[#allocation22_spill] sm:$0xff] %v4738_v61 }
 0x20d   :  { %v3902_v62 = vpop.eup %3901 }
 0x20e   :  { %v241_v63 = vsel %vm234_vm2, %v3902_v62, 0.0 }
 0x20f   :  { %242 = vadd.xlane.f32.xlu1 %v241_v63  ;;  %v4743_v63 = vld [vmem:[%s7190_s9 + $0x8] sm:$0xff] }
 0x210   :  { %414 = vmatpush.msrb.mxu1 %v4743_v63 }
 0x282   :  { %v243_v48 = vpop.xlane.xlu1 %242 }
 0x283   :  { %3903 = vrcp.f32 %v243_v48  ;;  %v4750_v48 = vld [vmem:[%s7190_s9] sm:$0xff] }
 0x284   :  { %415 = vmatpush.msrb.mxu1 %v4750_v48 }
 0x289   :  { %v3904_v49 = vpop.eup %3903 }
 0x28a   :  { %v4720_v50 = vmul.f32 %v3904_v49, %v3902_v62  ;;  %v389_v62 = vpop.f32.mrf.mxu0  ;;  %v4755_v49 = vld [vmem:[%s7191_s0 + $0x8] sm:$0xff] }
 0x28b   :  { %v390_v0 = vadd.f32 %v4738_v61, %v389_v62  ;;  %7328 = vst [vmem:[#allocation23_spill] sm:$0xff] %v4755_v49  ;;  %v4777_v62 = vld [vmem:[%s7191_s0 + $0x20] sm:$0xff]  ;;  %v4795_v61 = vld [vmem:[%s7192_s11 + $0x50] sm:$0xff] }
 0x28c   :  { %v253_v51 = vperm.slane %v4720_v50, 1  ;;  %v246_v52 = vperm.slane %v4720_v50, 0  ;;  %608 = vst.msk [vmem:[%s7187_s17] sm:$0xff] %vm234_vm2, %v4720_v50  ;;  %v260_v54 = vperm.slane %v4720_v50, 2  ;;  %v288_v55 = vperm.slane %v4720_v50, 6 }
 0x28d   :  { %v267_v56 = vperm.slane %v4720_v50, 3  ;;  %v274_v57 = vperm.slane %v4720_v50, 4  ;;  %v281_v58 = vperm.slane %v4720_v50, 5  ;;  %v295_v59 = vperm.slane %v4720_v50, 7  ;;  %7331 = vst [vmem:[#allocation26_spill] sm:$0xff] %v4777_v62 }
 0x28e   :  { %258 = vperm.xlu2 %3891, %v253_v51   ;;  %251 = vperm.xlu1 %3890, %v246_v52   ;;  %v392_v47 = vmax.f32 %v390_v0, 0.0  ;;  %v4763_v52 = vld [vmem:[%s7191_s0 + $0x10] sm:$0xff]  ;;  %v4782_v0 = vld [vmem:[%s7191_s0] sm:$0xff] }
 0x28f   :  { %7329 = vst [vmem:[#allocation24_spill] sm:$0xff] %v4763_v52 }
 0x290   :  { %3796 = vmatmul.msk.f32.vlgmr.msrb.gmra.mxu1 %vm396_vm3, %v392_v47  ;;  %7332 = vst [vmem:[#allocation27_spill] sm:$0xff] %v4782_v0 }
 0x296   :  { %265 = vperm.xlu2 %3891, %v260_v54   ;;  %293 = vperm.xlu1 %3890, %v288_v55  }
 0x29e   :  { %272 = vperm.xlu2 %3891, %v267_v56   ;;  %v4769_v56 = vld [vmem:[%s7191_s0 + $0x18] sm:$0xff] }
 0x29f   :  { %7330 = vst [vmem:[#allocation25_spill] sm:$0xff] %v4769_v56 }
 0x2a6   :  { %279 = vperm.xlu2 %3891, %v274_v57  }
 0x2ae   :  { %286 = vperm.xlu2 %3891, %v281_v58  }
 0x2b6   :  { %300 = vperm.xlu2 %3891, %v295_v59  }
 0x2e8   :  { %v259_v60 = vpop.permute.xlu2 %258 }
 0x2e9   :  { %v303_v51 = vmul.f32 %v259_v60, %v4755_v49 }
 0x2eb   :  { %v317_v57 = vsel %vm144_vm0, %v303_v51, 0.0 }
 0x2ec   :  { %v318_v59 = vrot.slane %v317_v57, 4 }
 0x2f0   :  { %v266_v33 = vpop.permute.xlu2 %265 }
 0x2f1   :  { %v304_v54 = vmul.f32 %v266_v33, %v4763_v52  ;;  %v319_v52 = vadd.f32 %v318_v59, %v317_v57 }
 0x2f3   :  { %v324_v60 = vsel %vm144_vm0, %v304_v54, 0.0 }
 0x2f4   :  { %v325_v33 = vrot.slane %v324_v60, 4 }
 0x2f6   :  { %v326_v57 = vadd.f32 %v325_v33, %v324_v60 }
 0x2f8   :  { %v273_v55 = vpop.permute.xlu2 %272  ;;  %v327_v9 = vrot.slane %v326_v57, 2 }
 0x2f9   :  { %v305_v58 = vmul.f32 %v273_v55, %v4769_v56  ;;  %v4790_v56 = vld [vmem:[%s7192_s11 + $0x58] sm:$0xff] }
 0x2fa   :  { %460 = vmatpush.msra.mxu0 %v4790_v56 }
 0x2fb   :  { %v331_v47 = vsel %vm144_vm0, %v305_v58, 0.0 }
 0x2fc   :  { %v332_v53 = vrot.slane %v331_v47, 4  ;;  %461 = vmatpush.msra.mxu0 %v4795_v61 }
 0x2fe   :  { %v333_v60 = vadd.f32 %v332_v53, %v331_v47 }
 0x300   :  { %v280_v51 = vpop.permute.xlu2 %279  ;;  %v252_v49 = vpop.permute.xlu1 %251  ;;  %v334_v43 = vrot.slane %v333_v60, 2 }
 0x301   :  { %v306_v55 = vmul.f32 %v280_v51, %v4777_v62  ;;  %v302_v54 = vmul.f32 %v252_v49, %v4782_v0  ;;  %v4803_v49 = vld [vmem:[%s7192_s11 + $0x48] sm:$0xff]  ;;  %v320_v51 = vrot.slane %v319_v52, 2 }
 0x302   :  { %462 = vmatpush.msra.mxu0 %v4803_v49 }
 0x303   :  { %v338_v58 = vsel %vm144_vm0, %v306_v55, 0.0  ;;  %v310_v59 = vsel %vm144_vm0, %v302_v54, 0.0  ;;  %v4814_v55 = vld [vmem:[%s7191_s0 + $0x28] sm:$0xff]  ;;  %v4819_v54 = vld [vmem:[%s7191_s0 + $0x30] sm:$0xff]  ;;  %v321_v53 = vadd.f32 %v320_v51, %v319_v52  ;;  %v328_v52 = vadd.f32 %v327_v9, %v326_v57  ;;  %v4847_v9 = vld [vmem:[%s7192_s11 + $0x20] sm:$0xff] }
 0x304   :  { %v311_v62 = vrot.slane %v310_v59, 4  ;;  %v339_v0 = vrot.slane %v338_v58, 4  ;;  %7333 = vst [vmem:[#allocation28_spill] sm:$0xff] %v4814_v55  ;;  %463 = vmatpush.msra.mxu0 %v4809_v34 }
 0x305   :  { %7334 = vst [vmem:[#allocation29_spill] sm:$0xff] %v4819_v54  ;;  %v329_v37 = vrot.slane %v328_v52, 1 }
 0x306   :  { %v312_v33 = vadd.f32 %v311_v62, %v310_v59  ;;  %v340_v5 = vadd.f32 %v339_v0, %v338_v58  ;;  %464 = vmatpush.msra.mxu0 %v4825_v7  ;;  %v4841_v0 = vld [vmem:[%s7192_s11 + $0x28] sm:$0xff]  ;;  %v322_v58 = vrot.slane %v321_v53, 1 }
 0x308   :  { %v313_v62 = vrot.slane %v312_v33, 2  ;;  %v287_v47 = vpop.permute.xlu2 %286  ;;  %v294_v59 = vpop.permute.xlu1 %293  ;;  %465 = vmatpush.msra.mxu0 %v4833_v45  ;;  %v323_v35 = vadd.f32 %v322_v58, %v321_v53 }
 0x309   :  { %v307_v3 = vmul.f32 %v287_v47, %v4814_v55  ;;  %v308_v1 = vmul.f32 %v294_v59, %v4819_v54  ;;  %v341_v55 = vrot.slane %v340_v5, 2 }
 0x30a   :  { %v314_v41 = vadd.f32 %v313_v62, %v312_v33  ;;  %v4852_v62 = vld [vmem:[%s7191_s0 + $0x38] sm:$0xff]  ;;  %466 = vmatpush.msra.mxu0 %v4841_v0 }
 0x30b   :  { %v345_v51 = vsel %vm144_vm0, %v307_v3, 0.0  ;;  %v352_v39 = vsel %vm144_vm0, %v308_v1, 0.0  ;;  %v335_v3 = vadd.f32 %v334_v43, %v333_v60  ;;  %7335 = vst [vmem:[#allocation30_spill] sm:$0xff] %v4852_v62  ;;  %v342_v25 = vadd.f32 %v341_v55, %v340_v5 }
 0x30c   :  { %v315_v47 = vrot.slane %v314_v41, 1  ;;  %v346_v59 = vrot.slane %v345_v51, 4  ;;  %v353_v54 = vrot.slane %v352_v39, 4  ;;  %467 = vmatpush.msra.mxu0 %v4847_v9 }
 0x30d   :  { %v336_v43 = vrot.slane %v335_v3, 1  ;;  %v343_v53 = vrot.slane %v342_v25, 1 }
 0x30e   :  { %v316_v57 = vadd.f32 %v315_v47, %v314_v41  ;;  %v347_v1 = vadd.f32 %v346_v59, %v345_v51  ;;  %v354_v33 = vadd.f32 %v353_v54, %v352_v39  ;;  %v330_v54 = vadd.f32 %v329_v37, %v328_v52 }
 0x30f   :  { %v337_v21 = vadd.f32 %v336_v43, %v335_v3 }
 0x310   :  { %v348_v31 = vrot.slane %v347_v1, 2  ;;  %v355_v29 = vrot.slane %v354_v33, 2  ;;  %v301_v27 = vpop.permute.xlu2 %300  ;;  %v430_v39 = vsel %vm429_vm4, %v323_v35, %v316_v57 }
 0x311   :  { %v309_v41 = vmul.f32 %v301_v27, %v4852_v62  ;;  %v432_v58 = vsel %vm431_vm5, %v330_v54, %v430_v39 }
 0x312   :  { %v349_v60 = vadd.f32 %v348_v31, %v347_v1  ;;  %v356_v51 = vadd.f32 %v355_v29, %v354_v33  ;;  %v434_v62 = vsel %vm433_vm6, %v337_v21, %v432_v58  ;;  %v344_v31 = vadd.f32 %v343_v53, %v342_v25  ;;  %v4869_v21 = vld [vmem:[%s7192_s11 + $0x18] sm:$0xff]  ;;  %v4880_v25 = vld [vmem:[%s7192_s11 + $0x8] sm:$0xff]  ;;  %v4887_v33 = vld [vmem:[%s7192_s11] sm:$0xff] }
 0x313   :  { %v359_v47 = vsel %vm144_vm0, %v309_v41, 0.0  ;;  %468 = vmatpush.msra.mxu0 %v4869_v21 }
 0x314   :  { %v350_v59 = vrot.slane %v349_v60, 1  ;;  %v360_v23 = vrot.slane %v359_v47, 4  ;;  %v357_v5 = vrot.slane %v356_v51, 1  ;;  %v436_v37 = vsel %vm435_vm7, %v344_v31, %v434_v62  ;;  %v4935_v31 = vld [vmem:[%s7195_s13 + $0x38] sm:$0xff] }
 0x315   :  { %532 = vmatpush.msra.mxu1 %v4935_v31 }
 0x316   :  { %v361_v19 = vadd.f32 %v360_v23, %v359_v47  ;;  %v351_v55 = vadd.f32 %v350_v59, %v349_v60  ;;  %v358_v29 = vadd.f32 %v357_v5, %v356_v51 }
 0x318   :  { %v362_v27 = vrot.slane %v361_v19, 2  ;;  %v438_v57 = vsel %vm437_vm8, %v351_v55, %v436_v37  ;;  %v4952_v37 = vld [vmem:[%s7195_s13 + $0x20] sm:$0xff] }
 0x319   :  { %v440_v23 = vsel %vm439_vm9, %v358_v29, %v438_v57  ;;  %v4946_v29 = vld [vmem:[%s7195_s13 + $0x28] sm:$0xff]  ;;  %v4964_v57 = vld [vmem:[%s7195_s13 + $0x10] sm:$0xff] }
 0x31a   :  { %v363_v35 = vadd.f32 %v362_v27, %v361_v19  ;;  %v4874_v19 = vld [vmem:[%s7192_s11 + $0x10] sm:$0xff] }
 0x31b   :  { %469 = vmatpush.msra.mxu0 %v4874_v19 }
 0x31c   :  { %v364_v52 = vrot.slane %v363_v35, 1 }
 0x31d   :  { %470 = vmatpush.msra.mxu0 %v4880_v25 }
 0x31e   :  { %v365_v1 = vadd.f32 %v364_v52, %v363_v35  ;;  %v4940_v35 = vld [vmem:[%s7195_s13 + $0x30] sm:$0xff]  ;;  %v4958_v52 = vld [vmem:[%s7195_s13 + $0x18] sm:$0xff] }
 0x31f   :  { %471 = vmatpush.msra.mxu0 %v4887_v33  ;;  %533 = vmatpush.msra.mxu1 %v4940_v35 }
 0x320   :  { %v442_v3 = vsel %vm441_vm10, %v365_v1, %v440_v23  ;;  %v4970_v1 = vld [vmem:[%s7195_s13 + $0x8] sm:$0xff] }
 0x321   :  { %443 = vrot.lane.b32.xlu1 %v442_v3, %s4335_s30  ;;  %681 = vmatpush.msrb.mxu0 %v4501_v12  ;;  %v4902_v12 = vld [vmem:[%s7189_s10] ss:$0 sm:$0xff] }
 0x322   :  { %534 = vmatpush.msra.mxu1 %v4946_v29 }
 0x323   :  { %682 = vmatpush.msrb.mxu0 %v4513_v14  ;;  %v417_v14 = vpop.f32.mrf.mxu1 }
 0x324   :  { %535 = vmatpush.msra.mxu1 %v4952_v37 }
 0x325   :  { %683 = vmatpush.msrb.mxu0 %v4523_v16  ;;  %v418_v16 = vadd.f32 %v4902_v12, %v417_v14  ;;  %v4981_v14 = vld [vmem:[%s7195_s13] sm:$0xff] }
 0x326   :  { %536 = vmatpush.msra.mxu1 %v4958_v52 }
 0x327   :  { %684 = vmatpush.msrb.mxu0 %v4535_v18  ;;  %v420_v18 = vmax.f32 %v418_v16, 0.0 }
 0x328   :  { %537 = vmatpush.msra.mxu1 %v4964_v57 }
 0x329   :  { %685 = vmatpush.msrb.mxu0 %v4547_v20 }
 0x32a   :  { %538 = vmatpush.msra.mxu1 %v4970_v1 }
 0x32b   :  { %686 = vmatpush.msrb.mxu0 %v4559_v22 }
 0x32c   :  { %539 = vmatpush.msra.mxu1 %v4981_v14 }
 0x32d   :  { %687 = vmatpush.msrb.mxu0 %v4571_v24 }
 0x32e   :  { %648 = vmatpush.msrb.mxu1 %v4440_v2 }
 0x32f   :  { %688 = vmatpush.msrb.mxu0 %v4583_v26  ;;  %v4923_v26 = vld [vmem:[%s7336_s18] ss:$0 sm:$0xff] }
 0x330   :  { %649 = vmatpush.msrb.mxu1 %v4452_v4 }
 0x331   :  { %689 = vmatpush.msrb.mxu0 %v4595_v28 }
 0x332   :  { %650 = vmatpush.msrb.mxu1 %v4464_v6 }
 0x333   :  { %690 = vmatpush.msrb.mxu0 %v4607_v30 }
 0x334   :  { %651 = vmatpush.msrb.mxu1 %v4476_v8 }
 0x335   :  { %691 = vmatpush.msrb.mxu0 %v4619_v32 }
 0x336   :  { %652 = vmatpush.msrb.mxu1 %v4489_v10 }
 0x337   :  { %692 = vmatpush.msrb.mxu0 %v4636_v36 }
 0x339   :  { %693 = vmatpush.msrb.mxu0 %v4648_v38 }
 0x33b   :  { %694 = vmatpush.msrb.mxu0 %v4660_v40 }
 0x33d   :  { %695 = vmatpush.msrb.mxu0 %v4670_v42 }
 0x33f   :  { %696 = vmatpush.msrb.mxu0 %v4682_v44 }
 0x393   :  { %v444_v20 = vpop.permute.xlu1 %443 }
 0x394   :  { %v446_v22 = vsel %vm144_vm0, %v420_v18, %v444_v20 }
 0x395   :  { %v448_v24 = vsel %vm447_vm11, %v446_v22, 0.0 }
 0x396   :  { %3797 = vmatmul.msk.f32.vlgmr.msra.gmra.mxu0 %vm7242_vm12, %v448_v24 }
 0x397   :  { %1102 = vmatpush.msra.mxu0 %v4440_v2  ;;  %v4996_v2 = vld [vmem:[%s7194_s14] ss:$0 sm:$0xff] }
 0x399   :  { %1103 = vmatpush.msra.mxu0 %v4452_v4 }
 0x39b   :  { %1104 = vmatpush.msra.mxu0 %v4464_v6 }
 0x39d   :  { %1105 = vmatpush.msra.mxu0 %v4476_v8 }
 0x39f   :  { %1106 = vmatpush.msra.mxu0 %v4489_v10 }
 0x413   :  { %v473_v28 = vpop.f32.mrf.mxu0 }
 0x414   :  { %v474_v30 = vadd.f32 %v4923_v26, %v473_v28 }
 0x416   :  { %3905 = vtanh.f32 %v474_v30  ;;  %v3798_v36 = vmul.f32 -1.442695, %v474_v30 }
 0x418   :  { %3907 = vpow2.f32 %v3798_v36 }
 0x41c   :  { %v3906_v32 = vpop.eup %3905 }
 0x41d   :  { %498 = vrot.lane.b32.xlu2 %v3906_v32, %s4337_s19 }
 0x41e   :  { %v3908_v38 = vpop.eup %3907 }
 0x41f   :  { %v479_v40 = vadd.f32 1.0, %v3908_v38 }
 0x421   :  { %3909 = vrcp.f32 %v479_v40  ;;  %v491_v39 = vand.u32 2147483648, %v479_v40  ;;  %vm485_vm14 = vweird.f32 %v479_v40  ;;  %v489_v60 = vand.u32 2147483647, %v479_v40 }
 0x423   :  { %v492_v51 = vor.u32 1.1754944e-38, %v491_v39  ;;  %vm490_vm12 = vcmp.eq.f32.partialorder %v489_v60, 8.507059e+37 }
 0x427   :  { %v3910_v42 = vpop.eup %3909 }
 0x428   :  { %v481_v44 = vmul.f32 %v3910_v42, %v479_v40  ;;  %vm486_vm13 = vweird.f32 %v3910_v42 }
 0x429   :  { %vm487_vm15 = vmor %vm485_vm14, %vm486_vm13 }
 0x42a   :  { %v482_v62 = vsub.f32 1.0, %v481_v44 }
 0x42c   :  { %v483_v41 = vmul.f32 %v3910_v42, %v482_v62 }
 0x42e   :  { %v484_v43 = vadd.f32 %v3910_v42, %v483_v41 }
 0x430   :  { %v488_v54 = vsel %vm487_vm15, %v3910_v42, %v484_v43 }
 0x431   :  { %v493_v59 = vsel %vm490_vm12, %v492_v51, %v488_v54 }
 0x432   :  { %v496_v58 = vmul.f32 0.0, %v493_v59 }
 0x477   :  { %v499_v47 = vpop.permute.xlu2 %498 }
 0x478   :  { %v501_v53 = vmul.f32 %v499_v47, %v493_v59 }
 0x47a   :  { %503 = vrot.lane.b32.xlu1 %v501_v53, %s4335_s30 }
 0x4ec   :  { %v504_v5 = vpop.permute.xlu1 %503 }
 0x4ed   :  { %v4928_v55 = vadd.f32 %v504_v5, %v496_v58 }
 0x4ef   :  { %3911 = vtanh.f32 %v4928_v55 }
 0x4f5   :  { %v3912_v27 = vpop.eup %3911 }
 0x4f6   :  { %509 = vrot.lane.b32.xlu0 %v3912_v27, %s4337_s19  ;;  %v5040_v27 = vld [vmem:[%s7196_s15 + $0x18] sm:$0xff] }
 0x4f7   :  { %599 = vmatpush.msrb.mxu2 %v5040_v27 }
 0x568   :  { %v510_v23 = vpop.permute.xlu0 %509 }
 0x569   :  { %v4974_v3 = vmul.f32 %v510_v23, %v493_v59  ;;  %v7337_v23 = vld [vmem:[#allocation7_spill] sm:$0xff] }
 0x56b   :  { %514 = vrot.lane.b32.xlu2 %v4974_v3, %s4335_s30 }
 0x5c5   :  { %v515_v16 = vpop.permute.xlu2 %514 }
 0x5c6   :  { %v517_v18 = vsel %vm144_vm0, %v515_v16, 0.0 }
 0x5c7   :  { %3799 = vmatmul.msk.f32.vlgmr.msra.gmra.mxu1 %vm447_vm11, %v517_v18  ;;  %v7339_v18 = vld [vmem:[#allocation9_spill] sm:$0xff] }
 0x5c8   :  { %873 = vmatpush.msra.mxu1 %v4743_v63 }
 0x5ca   :  { %874 = vmatpush.msra.mxu1 %v4750_v48 }
 0x644   :  { %v541_v4 = vpop.f32.mrf.mxu1 }
 0x645   :  { %v542_v6 = vadd.f32 %v4996_v2, %v541_v4  ;;  %v7340_v4 = vld [vmem:[#allocation10_spill] sm:$0xff] }
 0x647   :  { %3913 = vtanh.f32 %v542_v6  ;;  %v3800_v10 = vmul.f32 -1.442695, %v542_v6  ;;  %v7341_v6 = vld [vmem:[#allocation11_spill] sm:$0xff] }
 0x649   :  { %3915 = vpow2.f32 %v3800_v10  ;;  %v7343_v10 = vld [vmem:[#allocation13_spill] sm:$0xff] }
 0x64d   :  { %v3914_v8 = vpop.eup %3913 }
 0x64e   :  { %566 = vrot.lane.b32.xlu1 %v3914_v8, %s4337_s19  ;;  %v7342_v8 = vld [vmem:[#allocation12_spill] sm:$0xff] }
 0x64f   :  { %v3916_v20 = vpop.eup %3915 }
 0x650   :  { %v547_v22 = vadd.f32 1.0, %v3916_v20  ;;  %v7344_v20 = vld [vmem:[#allocation14_spill] sm:$0xff] }
 0x652   :  { %3917 = vrcp.f32 %v547_v22  ;;  %v559_v38 = vand.u32 2147483648, %v547_v22  ;;  %vm553_vm13 = vweird.f32 %v547_v22  ;;  %v557_v40 = vand.u32 2147483647, %v547_v22 }
 0x654   :  { %v560_v44 = vor.u32 1.1754944e-38, %v559_v38  ;;  %vm558_vm15 = vcmp.eq.f32.partialorder %v557_v40, 8.507059e+37 }
 0x656   :  { %610 = vrot.lane.b32.xlu1 %v4720_v50, %s4335_s30 }
 0x658   :  { %v3918_v24 = vpop.eup %3917 }
 0x659   :  { %v549_v28 = vmul.f32 %v3918_v24, %v547_v22  ;;  %vm554_vm12 = vweird.f32 %v3918_v24  ;;  %v7345_v22 = vld [vmem:[#allocation15_spill] sm:$0xff] }
 0x65a   :  { %vm555_vm14 = vmor %vm553_vm13, %vm554_vm12  ;;  %vm7366_vm12 = vcmask 785408  }
 0x65b   :  { %v550_v30 = vsub.f32 1.0, %v549_v28  ;;  %v7347_v28 = vld [vmem:[#allocation17_spill] sm:$0xff] }
 0x65d   :  { %v551_v32 = vmul.f32 %v3918_v24, %v550_v30  ;;  %v7348_v30 = vld [vmem:[#allocation18_spill] sm:$0xff] }
 0x65f   :  { %v552_v36 = vadd.f32 %v3918_v24, %v551_v32 }
 0x661   :  { %v556_v42 = vsel %vm555_vm14, %v3918_v24, %v552_v36  ;;  %v7346_v24 = vld [vmem:[#allocation16_spill] sm:$0xff]  ;;  %v7349_v36 = vld [vmem:[#allocation19_spill] sm:$0xff] }
 0x662   :  { %v561_v41 = vsel %vm558_vm15, %v560_v44, %v556_v42  ;;  %v7350_v42 = vld [vmem:[#allocation2_spill] sm:$0xff]  ;;  %v7351_v44 = vld [vmem:[#allocation3_spill] sm:$0xff] }
 0x6c0   :  { %v567_v62 = vpop.permute.xlu1 %566 }
 0x6c1   :  { %v569_v43 = vmul.f32 %v567_v62, %v561_v41  ;;  %v7352_v62 = vld [vmem:[#allocation4_spill] sm:$0xff] }
 0x6c3   :  { %571 = vrot.lane.b32.xlu2 %v569_v43, %s4335_s30  ;;  %v7353_v43 = vld [vmem:[#allocation5_spill] sm:$0xff] }
 0x6c8   :  { %v611_v39 = vpop.permute.xlu1 %610 }
 0x6c9   :  { %v613_v60 = vsel %vm144_vm0, %v515_v16, %v611_v39  ;;  %v7338_v16 = vld [vmem:[#allocation8_spill] sm:$0xff]  ;;  %v7354_v39 = vld [vmem:[#allocation6_spill] sm:$0xff] }
 0x6ca   :  { %3802 = vmatmul.msk.f32.vlgmr.msrb.gmra.mxu3 %vm146_vm1, %v613_v60  ;;  %3803 = vmatmul.msk.f32.vlgmr.msrb.gmra.mxu1 %vm146_vm1, %v613_v60  ;;  %v7355_v60 = vld [vmem:[#allocation21_spill] sm:$0xff] }
 0x6cb   :  { %910 = vmatpush.msrb.mxu3 %v4790_v56  ;;  %982 = vmatpush.msrb.mxu1 %v4935_v31 }
 0x6cd   :  { %911 = vmatpush.msrb.mxu3 %v4795_v61  ;;  %983 = vmatpush.msrb.mxu1 %v4940_v35  ;;  %v564_v61 = vmul.f32 0.0, %v561_v41 }
 0x6cf   :  { %912 = vmatpush.msrb.mxu3 %v4803_v49  ;;  %984 = vmatpush.msrb.mxu1 %v4946_v29 }
 0x6d1   :  { %913 = vmatpush.msrb.mxu3 %v4809_v34  ;;  %985 = vmatpush.msrb.mxu1 %v4952_v37 }
 0x6d3   :  { %914 = vmatpush.msrb.mxu3 %v4825_v7  ;;  %986 = vmatpush.msrb.mxu1 %v4958_v52 }
 0x6d5   :  { %915 = vmatpush.msrb.mxu3 %v4833_v45  ;;  %987 = vmatpush.msrb.mxu1 %v4964_v57 }
 0x6d7   :  { %916 = vmatpush.msrb.mxu3 %v4841_v0  ;;  %988 = vmatpush.msrb.mxu1 %v4970_v1 }
 0x6d9   :  { %917 = vmatpush.msrb.mxu3 %v4847_v9  ;;  %989 = vmatpush.msrb.mxu1 %v4981_v14 }
 0x6db   :  { %918 = vmatpush.msrb.mxu3 %v4869_v21 }
 0x6dd   :  { %919 = vmatpush.msrb.mxu3 %v4874_v19 }
 0x6df   :  { %920 = vmatpush.msrb.mxu3 %v4880_v25 }
 0x6e1   :  { %921 = vmatpush.msrb.mxu3 %v4887_v33 }
 0x71d   :  { %v572_v56 = vpop.permute.xlu2 %571 }
 0x71e   :  { %v5026_v54 = vadd.f32 %v572_v56, %v564_v61  ;;  %v581_v61 = vld [vmem:[%s7197_s4] sm:$0xff] }
 0x720   :  { %3919 = vtanh.f32 %v5026_v54 }
 0x726   :  { %v3920_v51 = vpop.eup %3919 }
 0x727   :  { %577 = vrot.lane.b32.xlu0 %v3920_v51, %s4337_s19 }
 0x747   :  { %v654_v47 = vpop.f32.mrf.mxu1 }
 0x748   :  { %v658_v59 = vadd.f32 %v654_v47, %v4701_v46  ;;  %v5045_v46 = vld [vmem:[%s7196_s15 + $0x10] sm:$0xff] }
 0x749   :  { %600 = vmatpush.msrb.mxu2 %v5045_v46 }
 0x74a   :  { %3921 = vtanh.f32 %v658_v59  ;;  %v7356_v59 = vld [vmem:[#allocation20_spill] sm:$0xff] }
 0x74d   :  { %v634_v32 = vpop.f32.mrf.mxu3 }
 0x74e   :  { %v657_v38 = vadd.f32 %v634_v32, %v7349_v36 }
 0x750   :  { %v3922_v53 = vpop.eup %3921  ;;  %3923 = vtanh.f32 %v657_v38 }
 0x751   :  { %697 = vmatmul.f32.vlgmr.msrb.gmra.mxu0 %v3922_v53 }
 0x752   :  { %1327 = vmatpush.msrb.mxu0 %v4743_v63  ;;  %v5051_v63 = vld [vmem:[%s7196_s15 + $0x8] sm:$0xff] }
 0x753   :  { %601 = vmatpush.msrb.mxu2 %v5051_v63 }
 0x754   :  { %1328 = vmatpush.msrb.mxu0 %v4750_v48  ;;  %v5057_v48 = vld [vmem:[%s7196_s15] sm:$0xff] }
 0x755   :  { %602 = vmatpush.msrb.mxu2 %v5057_v48 }
 0x757   :  { %661 = vmatpush.msra.mxu2 %v4496_v11 }
 0x759   :  { %662 = vmatpush.msra.mxu2 %v4506_v13 }
 0x75b   :  { %663 = vmatpush.msra.mxu2 %v4518_v15 }
 0x75d   :  { %664 = vmatpush.msra.mxu2 %v4530_v17 }
 0x75f   :  { %665 = vmatpush.msra.mxu2 %v7337_v23 }
 0x761   :  { %666 = vmatpush.msra.mxu2 %v7338_v16 }
 0x763   :  { %667 = vmatpush.msra.mxu2 %v7339_v18 }
 0x765   :  { %668 = vmatpush.msra.mxu2 %v7340_v4 }
 0x767   :  { %669 = vmatpush.msra.mxu2 %v7341_v6 }
 0x769   :  { %670 = vmatpush.msra.mxu2 %v7342_v8 }
 0x76b   :  { %671 = vmatpush.msra.mxu2 %v7343_v10 }
 0x76d   :  { %672 = vmatpush.msra.mxu2 %v7344_v20 }
 0x76f   :  { %673 = vmatpush.msra.mxu2 %v7345_v22 }
 0x771   :  { %674 = vmatpush.msra.mxu2 %v7346_v24 }
 0x773   :  { %675 = vmatpush.msra.mxu2 %v7347_v28 }
 0x775   :  { %676 = vmatpush.msra.mxu2 %v7348_v30 }
 0x799   :  { %v578_v58 = vpop.permute.xlu0 %577 }
 0x79a   :  { %v5033_v5 = vmul.f32 %v578_v58, %v561_v41  ;;  %v3924_v41 = vpop.eup %3923 }
 0x79c   :  { %583 = vrot.lane.b32.xlu2 %v5033_v5, %s4335_s30 }
 0x7ce   :  { %v698_v58 = vpop.f32.mrf.mxu0 }
 0x7f6   :  { %v584_v40 = vpop.permute.xlu2 %583 }
 0x7f7   :  { %3801 = vmatmul.msk.f32.vlgmr.msrb.gmra.mxu2 %vm144_vm0, %v584_v40 }
 0x7f8   :  { %1082 = vmatpush.msrb.mxu2 %v7350_v42 }
 0x7fa   :  { %1083 = vmatpush.msrb.mxu2 %v7351_v44 }
 0x7fc   :  { %1084 = vmatpush.msrb.mxu2 %v7352_v62 }
 0x7fe   :  { %1085 = vmatpush.msrb.mxu2 %v7353_v43  ;;  %v7358_v43 = vld [vmem:[#allocation23_spill] sm:$0xff] }
 0x7ff   :  { %677 = vmatmul.f32.vlgmr.msra.gmra.mxu2 %v3924_v41 }
 0x800   :  { %1086 = vmatpush.msrb.mxu2 %v7354_v39 }
 0x802   :  { %1304 = vmatpush.msra.mxu2 %v7355_v60 }
 0x87a   :  { %v604_v56 = vpop.f32.mrf.mxu2 }
 0x87b   :  { %v605_v51 = vadd.f32 %v604_v56, %v581_v61  ;;  %v7359_v61 = vld [vmem:[#allocation27_spill] sm:$0xff] }
 0x87d   :  { %607 = vst.msk [vmem:[%s7198_s16] sm:$0xff] %vm234_vm2, %v605_v51  ;;  %3804 = vmatmul.msk.f32.vlgmr.msra.gmra.mxu3 %vm234_vm2, %v605_v51  ;;  %v7360_v51 = vld [vmem:[#allocation24_spill] sm:$0xff] }
 0x87e   :  { %1115 = vmatpush.msra.mxu3 %v4496_v11 }
 0x880   :  { %1116 = vmatpush.msra.mxu3 %v4506_v13 }
 0x882   :  { %v678_v47 = vpop.f32.mrf.mxu2  ;;  %1117 = vmatpush.msra.mxu3 %v4518_v15 }
 0x883   :  { %v679_v53 = vadd.f32 %v678_v47, %v7356_v59 }
 0x884   :  { %1118 = vmatpush.msra.mxu3 %v4530_v17 }
 0x885   :  { %v699_v32 = vadd.f32 %v698_v58, %v679_v53 }
 0x886   :  { %1119 = vmatpush.msra.mxu3 %v7337_v23  ;;  %v7357_v23 = vld [vmem:[#allocation22_spill] sm:$0xff] }
 0x887   :  { %v701_v36 = vsel %vm234_vm2, %v699_v32, -inf }
 0x888   :  { %702 = vmax.xlane.f32.xlu1 %v701_v36  ;;  %1120 = vmatpush.msra.mxu3 %v7338_v16 }
 0x88a   :  { %1121 = vmatpush.msra.mxu3 %v7339_v18 }
 0x88c   :  { %1122 = vmatpush.msra.mxu3 %v7340_v4 }
 0x88e   :  { %1123 = vmatpush.msra.mxu3 %v7341_v6 }
 0x890   :  { %1124 = vmatpush.msra.mxu3 %v7342_v8 }
 0x892   :  { %1125 = vmatpush.msra.mxu3 %v7343_v10 }
 0x894   :  { %1126 = vmatpush.msra.mxu3 %v7344_v20 }
 0x896   :  { %1127 = vmatpush.msra.mxu3 %v7345_v22 }
 0x898   :  { %1128 = vmatpush.msra.mxu3 %v7346_v24 }
 0x89a   :  { %1129 = vmatpush.msra.mxu3 %v7347_v28 }
 0x89c   :  { %1130 = vmatpush.msra.mxu3 %v7348_v30 }
 0x8fb   :  { %v703_v11 = vpop.xlane.xlu1 %702 }
 0x8fc   :  { %v704_v13 = vsub.f32 %v699_v32, %v703_v11 }
 0x8fe   :  { %v705_v15 = vmul.f32 1.442695, %v704_v13 }
 0x900   :  { %3925 = vpow2.f32 %v705_v15  ;;  %v852_v17 = vpop.f32.mrf.mxu3 }
 0x901   :  { %v853_v16 = vadd.f32 %v7357_v23, %v852_v17  ;;  %v7361_v17 = vld [vmem:[#allocation28_spill] sm:$0xff] }
 0x903   :  { %v855_v18 = vmax.f32 %v853_v16, 0.0 }
 0x905   :  { %3805 = vmatmul.msk.f32.vlgmr.msra.gmra.mxu1 %vm396_vm3, %v855_v18  ;;  %v7362_v18 = vld [vmem:[#allocation25_spill] sm:$0xff] }
 0x906   :  { %v3926_v4 = vpop.eup %3925  ;;  %1050 = vmatpush.msra.mxu1 %v5040_v27 }
 0x907   :  { %v707_v6 = vsel %vm234_vm2, %v3926_v4, 0.0 }
 0x908   :  { %708 = vadd.xlane.f32.xlu0 %v707_v6  ;;  %1051 = vmatpush.msra.mxu1 %v5045_v46 }
 0x90a   :  { %1052 = vmatpush.msra.mxu1 %v5051_v63 }
 0x90c   :  { %1053 = vmatpush.msra.mxu1 %v5057_v48 }
 0x97b   :  { %v709_v8 = vpop.xlane.xlu0 %708 }
 0x97c   :  { %3927 = vrcp.f32 %v709_v8  ;;  %v7363_v8 = vld [vmem:[#allocation29_spill] sm:$0xff] }
 0x982   :  { %v3928_v10 = vpop.eup %3927 }
 0x983   :  { %v5118_v20 = vmul.f32 %v3928_v10, %v3926_v4 }
 0x985   :  { %3813 = vst.msk [vmem:[%s7187_s17 + $0x8] sm:$0xff] %vm234_vm2, %v5118_v20  ;;  %v754_v22 = vperm.slane %v5118_v20, 6  ;;  %v747_v24 = vperm.slane %v5118_v20, 5  ;;  %v712_v28 = vperm.slane %v5118_v20, 0  ;;  %v719_v30 = vperm.slane %v5118_v20, 1 }
 0x986   :  { %v726_v38 = vperm.slane %v5118_v20, 2  ;;  %v733_v40 = vperm.slane %v5118_v20, 3  ;;  %v740_v42 = vperm.slane %v5118_v20, 4  ;;  %v761_v44 = vperm.slane %v5118_v20, 7 }
 0x987   :  { %759 = vperm.xlu0 %3892, %v754_v22   ;;  %752 = vperm.xlu1 %3890, %v747_v24  }
 0x988   :  { %717 = vperm.xlu2 %3891, %v712_v28  }
 0x990   :  { %724 = vperm.xlu2 %3891, %v719_v30  }
 0x998   :  { %731 = vperm.xlu2 %3891, %v726_v38  }
 0x9a0   :  { %738 = vperm.xlu2 %3891, %v733_v40  }
 0x9a8   :  { %745 = vperm.xlu2 %3891, %v740_v42  }
 0x9b0   :  { %766 = vperm.xlu2 %3891, %v761_v44  }
 0x9e2   :  { %v718_v62 = vpop.permute.xlu2 %717 }
 0x9e3   :  { %v768_v56 = vmul.f32 %v718_v62, %v7359_v61 }
 0x9e5   :  { %v776_v58 = vsel %vm144_vm0, %v768_v56, 0.0  ;;  %v7364_v56 = vld [vmem:[#allocation26_spill] sm:$0xff] }
 0x9e6   :  { %v777_v15 = vrot.slane %v776_v58, 4 }
 0x9e8   :  { %v778_v30 = vadd.f32 %v777_v15, %v776_v58 }
 0x9ea   :  { %v725_v41 = vpop.permute.xlu2 %724 }
 0x9eb   :  { %v769_v39 = vmul.f32 %v725_v41, %v7358_v43  ;;  %v779_v43 = vrot.slane %v778_v30, 2 }
 0x9ed   :  { %v783_v59 = vsel %vm144_vm0, %v769_v39, 0.0 }
 0x9ee   :  { %v784_v32 = vrot.slane %v783_v59, 4 }
 0x9f0   :  { %v785_v6 = vadd.f32 %v784_v32, %v783_v59 }
 0x9f2   :  { %v732_v60 = vpop.permute.xlu2 %731  ;;  %v786_v40 = vrot.slane %v785_v6, 2 }
 0x9f3   :  { %v770_v47 = vmul.f32 %v732_v60, %v7360_v51 }
 0x9f5   :  { %v790_v53 = vsel %vm144_vm0, %v770_v47, 0.0  ;;  %v787_v47 = vadd.f32 %v786_v40, %v785_v6 }
 0x9f6   :  { %v791_v36 = vrot.slane %v790_v53, 4 }
 0x9f7   :  { %v788_v15 = vrot.slane %v787_v47, 1 }
 0x9f8   :  { %v792_v22 = vadd.f32 %v791_v36, %v790_v53  ;;  %v780_v36 = vadd.f32 %v779_v43, %v778_v30 }
 0x9f9   :  { %v760_v11 = vpop.permute.xlu0 %759  ;;  %v753_v13 = vpop.permute.xlu1 %752  ;;  %v789_v6 = vadd.f32 %v788_v15, %v787_v47 }
 0x9fa   :  { %v773_v23 = vmul.f32 %v753_v13, %v7361_v17  ;;  %v739_v16 = vpop.permute.xlu2 %738  ;;  %v774_v10 = vmul.f32 %v760_v11, %v7363_v8  ;;  %v793_v41 = vrot.slane %v792_v22, 2 }
 0x9fb   :  { %v771_v4 = vmul.f32 %v739_v16, %v7362_v18  ;;  %v781_v18 = vrot.slane %v780_v36, 1 }
 0x9fc   :  { %v811_v24 = vsel %vm144_vm0, %v773_v23, 0.0  ;;  %v818_v42 = vsel %vm144_vm0, %v774_v10, 0.0  ;;  %v794_v53 = vadd.f32 %v793_v41, %v792_v22 }
 0x9fd   :  { %v797_v28 = vsel %vm144_vm0, %v771_v4, 0.0  ;;  %v812_v44 = vrot.slane %v811_v24, 4  ;;  %v819_v61 = vrot.slane %v818_v42, 4 }
 0x9fe   :  { %v798_v38 = vrot.slane %v797_v28, 4  ;;  %v795_v16 = vrot.slane %v794_v53, 1 }
 0x9ff   :  { %v813_v59 = vadd.f32 %v812_v44, %v811_v24  ;;  %v820_v13 = vadd.f32 %v819_v61, %v818_v42  ;;  %v782_v44 = vadd.f32 %v781_v18, %v780_v36 }
 0xa00   :  { %v799_v62 = vadd.f32 %v798_v38, %v797_v28  ;;  %v7365_v38 = vld [vmem:[#allocation30_spill] sm:$0xff]  ;;  %v796_v40 = vadd.f32 %v795_v16, %v794_v53 }
 0xa01   :  { %v814_v17 = vrot.slane %v813_v59, 2  ;;  %v821_v28 = vrot.slane %v820_v13, 2 }
 0xa02   :  { %v800_v39 = vrot.slane %v799_v62, 2  ;;  %v746_v60 = vpop.permute.xlu2 %745 }
 0xa03   :  { %v772_v51 = vmul.f32 %v746_v60, %v7364_v56  ;;  %v815_v24 = vadd.f32 %v814_v17, %v813_v59  ;;  %v822_v43 = vadd.f32 %v821_v28, %v820_v13 }
 0xa04   :  { %v801_v58 = vadd.f32 %v800_v39, %v799_v62  ;;  %v888_v39 = vsel %vm429_vm4, %v789_v6, %v782_v44 }
 0xa05   :  { %v804_v32 = vsel %vm144_vm0, %v772_v51, 0.0  ;;  %v816_v61 = vrot.slane %v815_v24, 1  ;;  %v823_v59 = vrot.slane %v822_v43, 1 }
 0xa06   :  { %v805_v11 = vrot.slane %v804_v32, 4  ;;  %v802_v4 = vrot.slane %v801_v58, 1 }
 0xa07   :  { %v817_v15 = vadd.f32 %v816_v61, %v815_v24 }
 0xa08   :  { %v806_v23 = vadd.f32 %v805_v11, %v804_v32  ;;  %v803_v62 = vadd.f32 %v802_v4, %v801_v58  ;;  %v889_v32 = vsel %vm431_vm5, %v796_v40, %v888_v39  ;;  %v876_v4 = vpop.f32.mrf.mxu1 }
 0xa0a   :  { %v807_v8 = vrot.slane %v806_v23, 2  ;;  %v767_v10 = vpop.permute.xlu2 %766  ;;  %v890_v47 = vsel %vm433_vm6, %v803_v62, %v889_v32 }
 0xa0b   :  { %v775_v60 = vmul.f32 %v767_v10, %v7365_v38  ;;  %v877_v10 = vadd.f32 %v4902_v12, %v876_v4 }
 0xa0c   :  { %v808_v22 = vadd.f32 %v807_v8, %v806_v23  ;;  %v824_v23 = vadd.f32 %v823_v59, %v822_v43 }
 0xa0d   :  { %v825_v30 = vsel %vm144_vm0, %v775_v60, 0.0  ;;  %v879_v28 = vmax.f32 %v877_v10, 0.0 }
 0xa0e   :  { %v809_v42 = vrot.slane %v808_v22, 1  ;;  %v826_v41 = vrot.slane %v825_v30, 4 }
 0xa10   :  { %v810_v56 = vadd.f32 %v809_v42, %v808_v22  ;;  %v827_v51 = vadd.f32 %v826_v41, %v825_v30 }
 0xa12   :  { %v828_v11 = vrot.slane %v827_v51, 2  ;;  %v891_v53 = vsel %vm435_vm7, %v810_v56, %v890_v47  ;;  %v5179_v47 = vadd.f32 %v5118_v20, %v4720_v50  ;;  %v5195_v50 = vld [vmem:[%s7183_s6 + $0xf8] sm:$0xff] }
 0xa13   :  { %v892_v58 = vsel %vm437_vm8, %v817_v15, %v891_v53  ;;  %v5201_v20 = vld [vmem:[%s7192_s11 + $0x58] sm:$0xff] }
 0xa14   :  { %v829_v17 = vadd.f32 %v828_v11, %v827_v51  ;;  %v893_v16 = vsel %vm439_vm9, %v824_v23, %v892_v58  ;;  %v4091_v58 = vld [vmem:[%s7183_s6 + $0xf0] sm:$0xff] }
 0xa15   :  { %v5211_v23 = vld [vmem:[%s7192_s11 + $0x50] sm:$0xff] }
 0xa16   :  { %v830_v36 = vrot.slane %v829_v17, 1 }
 0xa18   :  { %v831_v13 = vadd.f32 %v830_v36, %v829_v17 }
 0xa1a   :  { %v894_v18 = vsel %vm441_vm10, %v831_v13, %v893_v16  ;;  %v4093_v13 = vld [vmem:[%s7183_s6 + $0xe8] sm:$0xff] }
 0xa1b   :  { %895 = vrot.lane.b32.xlu2 %v894_v18, %s4335_s30 }
 0xa23   :  { %898 = vrot.lane.b32.xlu2 %v4974_v3, %s4338_s27 }
 0xa75   :  { %v896_v8 = vpop.permute.xlu2 %895 }
 0xa76   :  { %v901_v38 = vsel %vm144_vm0, %v879_v28, %v896_v8 }
 0xa7d   :  { %v899_v60 = vpop.permute.xlu2 %898 }
 0xa7e   :  { %v902_v6 = vsel %vm447_vm11, %v901_v38, %v899_v60 }
 0xa7f   :  { %3806 = vmatmul.msk.f32.vlgmr.msrb.gmra.mxu3 %vm7366_vm12, %v902_v6 }
 0xa80   :  { %1504 = vmatpush.msrb.mxu3 %v5040_v27 }
 0xa82   :  { %1505 = vmatpush.msrb.mxu3 %v5045_v46 }
 0xa84   :  { %1506 = vmatpush.msrb.mxu3 %v5051_v63 }
 0xa86   :  { %1507 = vmatpush.msrb.mxu3 %v5057_v48 }
 0xb02   :  { %v923_v3 = vpop.f32.mrf.mxu3 }
 0xb03   :  { %v924_v24 = vadd.f32 %v4923_v26, %v923_v3 }
 0xb05   :  { %3929 = vtanh.f32 %v924_v24  ;;  %v3807_v22 = vmul.f32 -1.442695, %v924_v24 }
 0xb07   :  { %3931 = vpow2.f32 %v3807_v22 }
 0xb0b   :  { %v3930_v12 = vpop.eup %3929 }
 0xb0c   :  { %948 = vrot.lane.b32.xlu1 %v3930_v12, %s4337_s19 }
 0xb0d   :  { %v3932_v40 = vpop.eup %3931 }
 0xb0e   :  { %v929_v30 = vadd.f32 1.0, %v3932_v40 }
 0xb10   :  { %3933 = vrcp.f32 %v929_v30  ;;  %v941_v63 = vand.u32 2147483648, %v929_v30  ;;  %vm935_vm14 = vweird.f32 %v929_v30  ;;  %v939_v48 = vand.u32 2147483647, %v929_v30 }
 0xb12   :  { %v942_v41 = vor.u32 1.1754944e-38, %v941_v63  ;;  %vm940_vm12 = vcmp.eq.f32.partialorder %v939_v48, 8.507059e+37 }
 0xb16   :  { %v3934_v44 = vpop.eup %3933 }
 0xb17   :  { %v931_v27 = vmul.f32 %v3934_v44, %v929_v30  ;;  %vm936_vm13 = vweird.f32 %v3934_v44 }
 0xb18   :  { %vm937_vm15 = vmor %vm935_vm14, %vm936_vm13 }
 0xb19   :  { %v932_v62 = vsub.f32 1.0, %v931_v27 }
 0xb1b   :  { %v933_v46 = vmul.f32 %v3934_v44, %v932_v62 }
 0xb1d   :  { %v934_v42 = vadd.f32 %v3934_v44, %v933_v46 }
 0xb1f   :  { %v938_v26 = vsel %vm937_vm15, %v3934_v44, %v934_v42 }
 0xb20   :  { %v943_v39 = vsel %vm940_vm12, %v942_v41, %v938_v26  ;;  %v5295_v41 = vld [vmem:[%s7184_s1 + $0x8] sm:$0xff] }
 0xb21   :  { %v946_v56 = vmul.f32 %v943_v39, %v4928_v55 }
 0xb7e   :  { %v949_v43 = vpop.permute.xlu1 %948 }
 0xb7f   :  { %v951_v61 = vmul.f32 %v949_v43, %v943_v39 }
 0xb81   :  { %953 = vrot.lane.b32.xlu2 %v951_v61, %s4335_s30  ;;  %v5308_v61 = vld [vmem:[%s7306_s12 + $0x38] sm:$0xff] }
 0xbdb   :  { %v954_v51 = vpop.permute.xlu2 %953 }
 0xbdc   :  { %v5171_v32 = vadd.f32 %v954_v51, %v946_v56  ;;  %v5314_v56 = vld [vmem:[%s7306_s12 + $0x28] sm:$0xff] }
 0xbde   :  { %3935 = vtanh.f32 %v5171_v32 }
 0xbe4   :  { %v3936_v11 = vpop.eup %3935 }
 0xbe5   :  { %959 = vrot.lane.b32.xlu1 %v3936_v11, %s4337_s19  ;;  %v5320_v11 = vld [vmem:[%s7306_s12 + $0x18] sm:$0xff] }
 0xbed   :  { %967 = vrot.lane.b32.xlu1 %v5033_v5, %s4337_s19 }
 0xbf5   :  { %1064 = vrot.lane.b32.xlu1 %v5179_v47, %s4335_s30 }
 0xc57   :  { %v960_v59 = vpop.permute.xlu1 %959 }
 0xc58   :  { %v5183_v55 = vmul.f32 %v960_v59, %v943_v39  ;;  %v5302_v39 = vld [vmem:[%s7306_s12 + $0x48] sm:$0xff] }
 0xc59   :  { %v5326_v59 = vld [vmem:[%s7306_s12 + $0x8] sm:$0xff] }
 0xc5a   :  { %964 = vrot.lane.b32.xlu2 %v5183_v55, %s4335_s30 }
 0xc5f   :  { %v968_v53 = vpop.permute.xlu1 %967 }
 0xc67   :  { %v1065_v15 = vpop.permute.xlu1 %1064 }
 0xcb4   :  { %v965_v17 = vpop.permute.xlu2 %964 }
 0xcb5   :  { %v970_v36 = vsel %vm144_vm0, %v965_v17, %v968_v53  ;;  %v1067_v5 = vsel %vm144_vm0, %v965_v17, %v1065_v15  ;;  %v5332_v53 = vld [vmem:[%s7190_s9 + $0x8] sm:$0xff]  ;;  %v5338_v15 = vld [vmem:[%s7190_s9] sm:$0xff] }
 0xcb6   :  { %3808 = vmatmul.msk.f32.vlgmr.msrb.gmra.mxu1 %vm447_vm11, %v970_v36  ;;  %3814 = vmatmul.msk.f32.vlgmr.msrb.gmra.mxu2 %vm146_vm1, %v1067_v5  ;;  %v3810_v17 = vld [vmem:[%s7197_s4 + $0x8] sm:$0xff] }
 0xcb7   :  { %3815 = vmatmul.msk.f32.vlgmr.msra.gmra.mxu0 %vm146_vm1, %v1067_v5  ;;  %1135 = vmatpush.msrb.mxu1 %v5195_v50 }
 0xcb8   :  { %1364 = vmatpush.msrb.mxu2 %v5201_v20  ;;  %1436 = vmatpush.msra.mxu0 %v4935_v31  ;;  %v4094_v31 = vld [vmem:[%s7183_s6 + $0xe0] sm:$0xff] }
 0xcb9   :  { %1136 = vmatpush.msrb.mxu1 %v4091_v58 }
 0xcba   :  { %1365 = vmatpush.msrb.mxu2 %v5211_v23  ;;  %1437 = vmatpush.msra.mxu0 %v4940_v35  ;;  %v4095_v35 = vld [vmem:[%s7183_s6 + $0xd8] sm:$0xff] }
 0xcbb   :  { %1137 = vmatpush.msrb.mxu1 %v4093_v13 }
 0xcbc   :  { %1366 = vmatpush.msrb.mxu2 %v4803_v49  ;;  %1438 = vmatpush.msra.mxu0 %v4946_v29  ;;  %v4096_v49 = vld [vmem:[%s7183_s6 + $0xd0] sm:$0xff]  ;;  %v4102_v29 = vld [vmem:[%s7183_s6 + $0xa0] sm:$0xff] }
 0xcbd   :  { %1138 = vmatpush.msrb.mxu1 %v4094_v31 }
 0xcbe   :  { %1367 = vmatpush.msrb.mxu2 %v4809_v34  ;;  %1439 = vmatpush.msra.mxu0 %v4952_v37  ;;  %v4097_v34 = vld [vmem:[%s7183_s6 + $0xc8] sm:$0xff]  ;;  %v4106_v37 = vld [vmem:[%s7183_s6 + $0x80] sm:$0xff] }
 0xcbf   :  { %1139 = vmatpush.msrb.mxu1 %v4095_v35 }
 0xcc0   :  { %1368 = vmatpush.msrb.mxu2 %v4825_v7  ;;  %1440 = vmatpush.msra.mxu0 %v4958_v52  ;;  %v4098_v7 = vld [vmem:[%s7183_s6 + $0xc0] sm:$0xff] }
 0xcc1   :  { %1140 = vmatpush.msrb.mxu1 %v4096_v49 }
 0xcc2   :  { %1369 = vmatpush.msrb.mxu2 %v4833_v45  ;;  %1441 = vmatpush.msra.mxu0 %v4964_v57  ;;  %v4099_v45 = vld [vmem:[%s7183_s6 + $0xb8] sm:$0xff] }
 0xcc3   :  { %1141 = vmatpush.msrb.mxu1 %v4097_v34 }
 0xcc4   :  { %1370 = vmatpush.msrb.mxu2 %v4841_v0  ;;  %1442 = vmatpush.msra.mxu0 %v4970_v1  ;;  %v4100_v0 = vld [vmem:[%s7183_s6 + $0xb0] sm:$0xff]  ;;  %v5277_v1 = vld [vmem:[%s7184_s1] sm:$0xff] }
 0xcc5   :  { %1142 = vmatpush.msrb.mxu1 %v4098_v7 }
 0xcc6   :  { %1371 = vmatpush.msrb.mxu2 %v4847_v9  ;;  %1443 = vmatpush.msra.mxu0 %v4981_v14  ;;  %v4101_v9 = vld [vmem:[%s7183_s6 + $0xa8] sm:$0xff] }
 0xcc7   :  { %1143 = vmatpush.msrb.mxu1 %v4099_v45 }
 0xcc8   :  { %1372 = vmatpush.msrb.mxu2 %v4869_v21  ;;  %v4103_v21 = vld [vmem:[%s7183_s6 + $0x98] sm:$0xff] }
 0xcc9   :  { %1144 = vmatpush.msrb.mxu1 %v4100_v0 }
 0xcca   :  { %1373 = vmatpush.msrb.mxu2 %v4874_v19  ;;  %v4104_v19 = vld [vmem:[%s7183_s6 + $0x90] sm:$0xff] }
 0xccb   :  { %1145 = vmatpush.msrb.mxu1 %v4101_v9 }
 0xccc   :  { %1374 = vmatpush.msrb.mxu2 %v4880_v25  ;;  %v4105_v25 = vld [vmem:[%s7183_s6 + $0x88] sm:$0xff] }
 0xccd   :  { %1146 = vmatpush.msrb.mxu1 %v4102_v29 }
 0xcce   :  { %1375 = vmatpush.msrb.mxu2 %v4887_v33 }
 0xccf   :  { %1147 = vmatpush.msrb.mxu1 %v4103_v21 }
 0xcd1   :  { %1148 = vmatpush.msrb.mxu1 %v4104_v19 }
 0xcd3   :  { %1149 = vmatpush.msrb.mxu1 %v4105_v25 }
 0xcd5   :  { %1150 = vmatpush.msrb.mxu1 %v4106_v37 }
 0xd33   :  { %v991_v33 = vpop.f32.mrf.mxu1 }
 0xd34   :  { %v992_v52 = vadd.f32 %v4996_v2, %v991_v33  ;;  %v1108_v26 = vpop.f32.mrf.mxu0  ;;  %v5419_v33 = vld [vmem:[%s7183_s6 + $0x28] sm:$0xff] }
 0xd35   :  { %7368 = vst [vmem:[#allocation8_spill] sm:$0xff] %v5419_v33 }
 0xd36   :  { %3937 = vtanh.f32 %v992_v52  ;;  %v3809_v2 = vmul.f32 -1.442695, %v992_v52  ;;  %v5425_v52 = vld [vmem:[%s7183_s6 + $0x20] sm:$0xff] }
 0xd37   :  { %7369 = vst [vmem:[#allocation9_spill] sm:$0xff] %v5425_v52 }
 0xd39   :  { %v1088_v57 = vpop.f32.mrf.mxu2 }
 0xd3a   :  { %v1111_v14 = vadd.f32 %v5277_v1, %v1088_v57  ;;  %v5431_v57 = vld [vmem:[%s7183_s6 + $0x18] sm:$0xff] }
 0xd3b   :  { %7370 = vst [vmem:[#allocation10_spill] sm:$0xff] %v5431_v57 }
 0xd3c   :  { %v3938_v16 = vpop.eup %3937  ;;  %3939 = vtanh.f32 %v1111_v14  ;;  %v5437_v14 = vld [vmem:[%s7183_s6 + $0x10] sm:$0xff] }
 0xd3d   :  { %1016 = vrot.lane.b32.xlu0 %v3938_v16, %s4337_s19  ;;  %3941 = vpow2.f32 %v3809_v2  ;;  %7371 = vst [vmem:[#allocation11_spill] sm:$0xff] %v5437_v14  ;;  %v5443_v16 = vld [vmem:[%s7183_s6 + $0x8] sm:$0xff] }
 0xd3e   :  { %7372 = vst [vmem:[#allocation12_spill] sm:$0xff] %v5443_v16 }
 0xd42   :  { %v3940_v18 = vpop.eup %3939 }
 0xd43   :  { %1131 = vmatmul.f32.vlgmr.msra.gmra.mxu3 %v3940_v18  ;;  %v3942_v4 = vpop.eup %3941  ;;  %v5449_v18 = vld [vmem:[%s7183_s6] sm:$0xff] }
 0xd44   :  { %1589 = vmatpush.msra.mxu3 %v5195_v50  ;;  %v997_v8 = vadd.f32 1.0, %v3942_v4  ;;  %7373 = vst [vmem:[#allocation13_spill] sm:$0xff] %v5449_v18 }
 0xd46   :  { %1590 = vmatpush.msra.mxu3 %v4091_v58  ;;  %3943 = vrcp.f32 %v997_v8  ;;  %v1009_v3 = vand.u32 2147483648, %v997_v8  ;;  %vm1003_vm14 = vweird.f32 %v997_v8  ;;  %v1007_v24 = vand.u32 2147483647, %v997_v8  ;;  %v5352_v58 = vld [vmem:[%s7183_s6 + $0x78] sm:$0xff] }
 0xd48   :  { %1591 = vmatpush.msra.mxu3 %v4093_v13  ;;  %v1010_v22 = vor.u32 1.1754944e-38, %v1009_v3  ;;  %vm1008_vm12 = vcmp.eq.f32.partialorder %v1007_v24, 8.507059e+37  ;;  %v5358_v13 = vld [vmem:[%s7183_s6 + $0x70] sm:$0xff]  ;;  %v5463_v24 = vld [vmem:[%s7306_s12 + $0x40] sm:$0xff] }
 0xd4a   :  { %1592 = vmatpush.msra.mxu3 %v4094_v31  ;;  %v5364_v31 = vld [vmem:[%s7185_s3] sm:$0xff] }
 0xd4c   :  { %1593 = vmatpush.msra.mxu3 %v4095_v35  ;;  %v3944_v10 = vpop.eup %3943 }
 0xd4d   :  { %v999_v28 = vmul.f32 %v3944_v10, %v997_v8  ;;  %vm1004_vm13 = vweird.f32 %v3944_v10 }
 0xd4e   :  { %1594 = vmatpush.msra.mxu3 %v4096_v49  ;;  %vm1005_vm15 = vmor %vm1003_vm14, %vm1004_vm13  ;;  %vm7383_vm13 = vcmask 785408  }
 0xd4f   :  { %v1000_v38 = vsub.f32 1.0, %v999_v28  ;;  %v5455_v28 = vld [vmem:[%s7188_s8] ss:$0 sm:$0xff] }
 0xd50   :  { %1595 = vmatpush.msra.mxu3 %v4097_v34  ;;  %v5370_v34 = vld [vmem:[%s7183_s6 + $0x68] sm:$0xff]  ;;  %7374 = vst [vmem:[#allocation14_spill] sm:$0xff] %v5455_v28 }
 0xd51   :  { %v1001_v60 = vmul.f32 %v3944_v10, %v1000_v38 }
 0xd52   :  { %1596 = vmatpush.msra.mxu3 %v4098_v7 }
 0xd53   :  { %v1002_v6 = vadd.f32 %v3944_v10, %v1001_v60 }
 0xd54   :  { %1597 = vmatpush.msra.mxu3 %v4099_v45  ;;  %v5376_v45 = vld [vmem:[%s7183_s6 + $0x60] sm:$0xff] }
 0xd55   :  { %v1006_v12 = vsel %vm1005_vm15, %v3944_v10, %v1002_v6 }
 0xd56   :  { %1598 = vmatpush.msra.mxu3 %v4100_v0  ;;  %v1011_v30 = vsel %vm1008_vm12, %v1010_v22, %v1006_v12  ;;  %v5469_v12 = vld [vmem:[%s7306_s12 + $0x30] sm:$0xff]  ;;  %v5475_v22 = vld [vmem:[%s7306_s12 + $0x20] sm:$0xff] }
 0xd57   :  { %v1014_v27 = vmul.f32 %v1011_v30, %v5026_v54  ;;  %v1112_v54 = vadd.f32 %v5295_v41, %v1108_v26 }
 0xd58   :  { %1599 = vmatpush.msra.mxu3 %v4101_v9  ;;  %v5383_v9 = vld [vmem:[%s7183_s6 + $0x58] sm:$0xff] }
 0xd5a   :  { %1600 = vmatpush.msra.mxu3 %v4102_v29  ;;  %v5389_v29 = vld [vmem:[%s7183_s6 + $0x50] sm:$0xff] }
 0xd5c   :  { %1601 = vmatpush.msra.mxu3 %v4103_v21  ;;  %v5395_v21 = vld [vmem:[%s7183_s6 + $0x48] sm:$0xff] }
 0xd5e   :  { %1602 = vmatpush.msra.mxu3 %v4104_v19  ;;  %v5401_v19 = vld [vmem:[%s7183_s6 + $0x40] sm:$0xff] }
 0xd60   :  { %1603 = vmatpush.msra.mxu3 %v4105_v25  ;;  %v5407_v25 = vld [vmem:[%s7183_s6 + $0x38] sm:$0xff] }
 0xd62   :  { %1604 = vmatpush.msra.mxu3 %v4106_v37  ;;  %v5413_v37 = vld [vmem:[%s7183_s6 + $0x30] sm:$0xff] }
 0xd63   :  { %7367 = vst [vmem:[#allocation7_spill] sm:$0xff] %v5413_v37 }
 0xdaf   :  { %v1017_v40 = vpop.permute.xlu0 %1016 }
 0xdb0   :  { %v1019_v44 = vmul.f32 %v1017_v40, %v1011_v30  ;;  %v5481_v40 = vld [vmem:[%s7306_s12 + $0x10] sm:$0xff] }
 0xdb2   :  { %1021 = vrot.lane.b32.xlu2 %v1019_v44, %s4335_s30 }
 0xdc6   :  { %v1132_v50 = vpop.f32.mrf.mxu3 }
 0xdc7   :  { %v1133_v35 = vadd.f32 %v5364_v31, %v1132_v50 }
 0xe0c   :  { %v1022_v62 = vpop.permute.xlu2 %1021 }
 0xe0d   :  { %v5284_v46 = vadd.f32 %v1022_v62, %v1014_v27 }
 0xe0f   :  { %3945 = vtanh.f32 %v5284_v46 }
 0xe10   :  { %3947 = vtanh.f32 %v1112_v54 }
 0xe15   :  { %v3946_v42 = vpop.eup %3945 }
 0xe16   :  { %1027 = vrot.lane.b32.xlu0 %v3946_v42, %s4337_s19  ;;  %v3948_v51 = vpop.eup %3947 }
 0xe88   :  { %v1028_v63 = vpop.permute.xlu0 %1027 }
 0xe89   :  { %v5288_v48 = vmul.f32 %v1028_v63, %v1011_v30  ;;  %v5487_v30 = vld [vmem:[%s7306_s12] sm:$0xff] }
 0xe8b   :  { %1034 = vrot.lane.b32.xlu2 %v5288_v48, %s4335_s30 }
 0xee5   :  { %v1035_v43 = vpop.permute.xlu2 %1034 }
 0xee6   :  { %3811 = vmatmul.msk.f32.vlgmr.msra.gmra.mxu1 %vm144_vm0, %v1035_v43 }
 0xee7   :  { %1556 = vmatpush.msra.mxu1 %v5302_v39 }
 0xee9   :  { %1557 = vmatpush.msra.mxu1 %v5308_v61 }
 0xeeb   :  { %1558 = vmatpush.msra.mxu1 %v5314_v56 }
 0xeed   :  { %1559 = vmatpush.msra.mxu1 %v5320_v11 }
 0xeee   :  { %1151 = vmatmul.f32.vlgmr.msrb.gmra.mxu1 %v3948_v51 }
 0xeef   :  { %1560 = vmatpush.msra.mxu1 %v5326_v59 }
 0xef1   :  { %1781 = vmatpush.msrb.mxu1 %v5332_v53 }
 0xef3   :  { %1782 = vmatpush.msrb.mxu1 %v5338_v15 }
 0xf63   :  { %v1055_v36 = vpop.f32.mrf.mxu1 }
 0xf64   :  { %v1056_v5 = vadd.f32 %v3810_v17, %v1055_v36 }
 0xf66   :  { %3812 = vst.msk [vmem:[%s7198_s16 + $0x8] sm:$0xff] %vm234_vm2, %v1056_v5  ;;  %3816 = vmatmul.msk.f32.vlgmr.msra.gmra.mxu2 %vm234_vm2, %v1056_v5 }
 0xf67   :  { %1569 = vmatpush.msra.mxu2 %v5352_v58 }
 0xf69   :  { %1570 = vmatpush.msra.mxu2 %v5358_v13 }
 0xf6b   :  { %v1152_v49 = vpop.f32.mrf.mxu1  ;;  %1571 = vmatpush.msra.mxu2 %v5370_v34 }
 0xf6c   :  { %v1153_v7 = vadd.f32 %v1152_v49, %v1133_v35  ;;  %v5508_v49 = vld [vmem:[%s7191_s0 + $0x8] sm:$0xff] }
 0xf6d   :  { %1572 = vmatpush.msra.mxu2 %v5376_v45  ;;  %7375 = vst [vmem:[#allocation15_spill] sm:$0xff] %v5508_v49 }
 0xf6e   :  { %v1155_v0 = vsel %vm234_vm2, %v1153_v7, -inf }
 0xf6f   :  { %1156 = vmax.xlane.f32.xlu1 %v1155_v0  ;;  %1573 = vmatpush.msra.mxu2 %v5383_v9  ;;  %v5514_v0 = vld [vmem:[%s7191_s0 + $0x10] sm:$0xff] }
 0xf70   :  { %7376 = vst [vmem:[#allocation16_spill] sm:$0xff] %v5514_v0 }
 0xf71   :  { %1574 = vmatpush.msra.mxu2 %v5389_v29 }
 0xf73   :  { %1575 = vmatpush.msra.mxu2 %v5395_v21 }
 0xf75   :  { %1576 = vmatpush.msra.mxu2 %v5401_v19 }
 0xf77   :  { %1577 = vmatpush.msra.mxu2 %v5407_v25 }
 0xf79   :  { %1578 = vmatpush.msra.mxu2 %v5413_v37 }
 0xf7b   :  { %1579 = vmatpush.msra.mxu2 %v5419_v33 }
 0xf7d   :  { %1580 = vmatpush.msra.mxu2 %v5425_v52 }
 0xf7f   :  { %1581 = vmatpush.msra.mxu2 %v5431_v57 }
 0xf81   :  { %1582 = vmatpush.msra.mxu2 %v5437_v14 }
 0xf83   :  { %1583 = vmatpush.msra.mxu2 %v5443_v16 }
 0xf85   :  { %1584 = vmatpush.msra.mxu2 %v5449_v18 }
 0xfe2   :  { %v1157_v2 = vpop.xlane.xlu1 %1156 }
 0xfe3   :  { %v1158_v4 = vsub.f32 %v1153_v7, %v1157_v2 }
 0xfe5   :  { %v1159_v8 = vmul.f32 1.442695, %v1158_v4  ;;  %v5520_v4 = vld [vmem:[%s7191_s0] sm:$0xff] }
 0xfe6   :  { %7377 = vst [vmem:[#allocation17_spill] sm:$0xff] %v5520_v4 }
 0xfe7   :  { %3949 = vpow2.f32 %v1159_v8 }
 0xfe9   :  { %v1306_v10 = vpop.f32.mrf.mxu2 }
 0xfea   :  { %v1307_v38 = vadd.f32 %v5455_v28, %v1306_v10 }
 0xfec   :  { %v1309_v60 = vmax.f32 %v1307_v38, 0.0 }
 0xfed   :  { %v3950_v6 = vpop.eup %3949 }
 0xfee   :  { %3817 = vmatmul.msk.f32.vlgmr.msrb.gmra.mxu0 %vm396_vm3, %v1309_v60  ;;  %v1161_v3 = vsel %vm234_vm2, %v3950_v6, 0.0 }
 0xfef   :  { %1162 = vadd.xlane.f32.xlu0 %v1161_v3  ;;  %1536 = vmatpush.msrb.mxu0 %v5463_v24 }
 0xff1   :  { %1537 = vmatpush.msrb.mxu0 %v5469_v12 }
 0xff3   :  { %1538 = vmatpush.msrb.mxu0 %v5475_v22 }
 0xff5   :  { %1539 = vmatpush.msrb.mxu0 %v5481_v40 }
 0xff7   :  { %1540 = vmatpush.msrb.mxu0 %v5487_v30 }
0x1062   :  { %v1163_v44 = vpop.xlane.xlu0 %1162 }
0x1063   :  { %3951 = vrcp.f32 %v1163_v44 }
0x1069   :  { %v3952_v27 = vpop.eup %3951 }
0x106a   :  { %v5490_v62 = vmul.f32 %v3952_v27, %v3950_v6 }
0x106c   :  { %3825 = vst.msk [vmem:[%s7187_s17 + $0x10] sm:$0xff] %vm234_vm2, %v5490_v62  ;;  %v1215_v42 = vperm.slane %v5490_v62, 7  ;;  %v1201_v63 = vperm.slane %v5490_v62, 5  ;;  %v1166_v26 = vperm.slane %v5490_v62, 0  ;;  %v1173_v54 = vperm.slane %v5490_v62, 1 }
0x106d   :  { %v1180_v43 = vperm.slane %v5490_v62, 2  ;;  %v1187_v51 = vperm.slane %v5490_v62, 3  ;;  %v1194_v17 = vperm.slane %v5490_v62, 4  ;;  %v1208_v36 = vperm.slane %v5490_v62, 6 }
0x106e   :  { %1220 = vperm.xlu0 %3892, %v1215_v42   ;;  %1206 = vperm.xlu1 %3890, %v1201_v63   ;;  %v5529_v42 = vld [vmem:[%s7191_s0 + $0x18] sm:$0xff] }
0x106f   :  { %1171 = vperm.xlu2 %3891, %v1166_v26   ;;  %7378 = vst [vmem:[#allocation18_spill] sm:$0xff] %v5529_v42 }
0x1077   :  { %1178 = vperm.xlu2 %3891, %v1173_v54   ;;  %v5535_v54 = vld [vmem:[%s7191_s0 + $0x28] sm:$0xff] }
0x1078   :  { %7379 = vst [vmem:[#allocation19_spill] sm:$0xff] %v5535_v54 }
0x107f   :  { %1185 = vperm.xlu2 %3891, %v1180_v43  }
0x1087   :  { %1192 = vperm.xlu2 %3891, %v1187_v51  }
0x108f   :  { %1199 = vperm.xlu2 %3891, %v1194_v17  }
0x1097   :  { %1213 = vperm.xlu2 %3891, %v1208_v36   ;;  %v5542_v36 = vld [vmem:[%s7191_s0 + $0x38] sm:$0xff] }
0x1098   :  { %7380 = vst [vmem:[#allocation2_spill] sm:$0xff] %v5542_v36 }
0x10c9   :  { %v1172_v5 = vpop.permute.xlu2 %1171 }
0x10ca   :  { %v1222_v8 = vmul.f32 %v5520_v4, %v1172_v5 }
0x10cc   :  { %v1230_v6 = vsel %vm144_vm0, %v1222_v8, 0.0 }
0x10cd   :  { %v1231_v51 = vrot.slane %v1230_v6, 4 }
0x10cf   :  { %v1232_v8 = vadd.f32 %v1231_v51, %v1230_v6 }
0x10d1   :  { %v1179_v50 = vpop.permute.xlu2 %1178 }
0x10d2   :  { %v1223_v7 = vmul.f32 %v5508_v49, %v1179_v50 }
0x10d4   :  { %v1237_v10 = vsel %vm144_vm0, %v1223_v7, 0.0 }
0x10d5   :  { %v1238_v44 = vrot.slane %v1237_v10, 4 }
0x10d9   :  { %v1186_v35 = vpop.permute.xlu2 %1185 }
0x10da   :  { %v1224_v2 = vmul.f32 %v5514_v0, %v1186_v35  ;;  %v1239_v35 = vadd.f32 %v1238_v44, %v1237_v10 }
0x10dc   :  { %v1244_v38 = vsel %vm144_vm0, %v1224_v2, 0.0 }
0x10dd   :  { %v1245_v26 = vrot.slane %v1244_v38, 4 }
0x10df   :  { %v1246_v7 = vadd.f32 %v1245_v26, %v1244_v38 }
0x10e0   :  { %v1207_v60 = vpop.permute.xlu1 %1206  ;;  %v1221_v27 = vpop.permute.xlu0 %1220 }
0x10e1   :  { %v1193_v3 = vpop.permute.xlu2 %1192  ;;  %v1227_v43 = vmul.f32 %v5535_v54, %v1207_v60  ;;  %v1229_v5 = vmul.f32 %v5542_v36, %v1221_v27  ;;  %v1240_v54 = vrot.slane %v1239_v35, 2  ;;  %v1247_v27 = vrot.slane %v1246_v7, 2 }
0x10e2   :  { %v1225_v63 = vmul.f32 %v5529_v42, %v1193_v3  ;;  %v1233_v36 = vrot.slane %v1232_v8, 2 }
0x10e3   :  { %v1265_v2 = vsel %vm144_vm0, %v1227_v43, 0.0  ;;  %v1279_v42 = vsel %vm144_vm0, %v1229_v5, 0.0  ;;  %v1241_v26 = vadd.f32 %v1240_v54, %v1239_v35  ;;  %v1248_v51 = vadd.f32 %v1247_v27, %v1246_v7 }
0x10e4   :  { %v1251_v17 = vsel %vm144_vm0, %v1225_v63, 0.0  ;;  %v1266_v0 = vrot.slane %v1265_v2, 4  ;;  %v5550_v63 = vld [vmem:[%s7191_s0 + $0x20] sm:$0xff]  ;;  %v1280_v10 = vrot.slane %v1279_v42, 4  ;;  %v1234_v5 = vadd.f32 %v1233_v36, %v1232_v8 }
0x10e5   :  { %v1252_v50 = vrot.slane %v1251_v17, 4  ;;  %7381 = vst [vmem:[#allocation3_spill] sm:$0xff] %v5550_v63  ;;  %v1242_v16 = vrot.slane %v1241_v26, 1 }
0x10e6   :  { %v1267_v43 = vadd.f32 %v1266_v0, %v1265_v2  ;;  %v1235_v54 = vrot.slane %v1234_v5, 1 }
0x10e7   :  { %v1253_v3 = vadd.f32 %v1252_v50, %v1251_v17  ;;  %v1281_v50 = vadd.f32 %v1280_v10, %v1279_v42  ;;  %v1243_v2 = vadd.f32 %v1242_v16, %v1241_v26 }
0x10e8   :  { %v1268_v14 = vrot.slane %v1267_v43, 2  ;;  %v1236_v10 = vadd.f32 %v1235_v54, %v1234_v5 }
0x10e9   :  { %v1200_v60 = vpop.permute.xlu2 %1199  ;;  %v1254_v38 = vrot.slane %v1253_v3, 2  ;;  %v1282_v0 = vrot.slane %v1281_v50, 2 }
0x10ea   :  { %v1226_v4 = vmul.f32 %v5550_v63, %v1200_v60  ;;  %v5557_v60 = vld [vmem:[%s7191_s0 + $0x30] sm:$0xff]  ;;  %v1269_v8 = vadd.f32 %v1268_v14, %v1267_v43 }
0x10eb   :  { %v1255_v49 = vadd.f32 %v1254_v38, %v1253_v3  ;;  %7382 = vst [vmem:[#allocation4_spill] sm:$0xff] %v5557_v60  ;;  %v1283_v38 = vadd.f32 %v1282_v0, %v1281_v50  ;;  %v5574_v50 = vld [vmem:[%s7189_s10] ss:$0 sm:$0xff] }
0x10ec   :  { %v1258_v44 = vsel %vm144_vm0, %v1226_v4, 0.0  ;;  %v1249_v4 = vrot.slane %v1248_v51, 1  ;;  %v5588_v0 = vld [vmem:[%s7336_s18] ss:$0 sm:$0xff] }
0x10ed   :  { %v1259_v6 = vrot.slane %v1258_v44, 4  ;;  %v1256_v35 = vrot.slane %v1255_v49, 1  ;;  %v1284_v33 = vrot.slane %v1283_v38, 1 }
0x10ee   :  { %v1250_v3 = vadd.f32 %v1249_v4, %v1248_v51 }
0x10ef   :  { %v1260_v17 = vadd.f32 %v1259_v6, %v1258_v44  ;;  %v1257_v44 = vadd.f32 %v1256_v35, %v1255_v49  ;;  %v1285_v43 = vadd.f32 %v1284_v33, %v1283_v38 }
0x10f1   :  { %v1261_v28 = vrot.slane %v1260_v17, 2  ;;  %v1214_v18 = vpop.permute.xlu2 %1213 }
0x10f2   :  { %v1228_v63 = vmul.f32 %v5557_v60, %v1214_v18  ;;  %v1342_v18 = vsel %vm429_vm4, %v1243_v2, %v1236_v10  ;;  %v1270_v60 = vrot.slane %v1269_v8, 1 }
0x10f3   :  { %v1262_v57 = vadd.f32 %v1261_v28, %v1260_v17  ;;  %v1343_v28 = vsel %vm431_vm5, %v1250_v3, %v1342_v18 }
0x10f4   :  { %v1272_v36 = vsel %vm144_vm0, %v1228_v63, 0.0  ;;  %v1344_v63 = vsel %vm433_vm6, %v1257_v44, %v1343_v28  ;;  %v1271_v14 = vadd.f32 %v1270_v60, %v1269_v8 }
0x10f5   :  { %v1263_v42 = vrot.slane %v1262_v57, 1  ;;  %v1273_v7 = vrot.slane %v1272_v36, 4 }
0x10f7   :  { %v1274_v27 = vadd.f32 %v1273_v7, %v1272_v36  ;;  %v1264_v6 = vadd.f32 %v1263_v42, %v1262_v57 }
0x10f9   :  { %v1275_v52 = vrot.slane %v1274_v27, 2  ;;  %v1345_v16 = vsel %vm435_vm7, %v1264_v6, %v1344_v63 }
0x10fa   :  { %v1346_v51 = vsel %vm437_vm8, %v1271_v14, %v1345_v16  ;;  %v5597_v14 = vadd.f32 %v5490_v62, %v5179_v47 }
0x10fb   :  { %v1276_v17 = vadd.f32 %v1275_v52, %v1274_v27  ;;  %v1330_v52 = vpop.f32.mrf.mxu0 }
0x10fd   :  { %v1277_v37 = vrot.slane %v1276_v17, 1 }
0x10ff   :  { %v1278_v26 = vadd.f32 %v1277_v37, %v1276_v17  ;;  %v1331_v37 = vadd.f32 %v5574_v50, %v1330_v52 }
0x1101   :  { %v1347_v57 = vsel %vm439_vm9, %v1278_v26, %v1346_v51  ;;  %v1333_v33 = vmax.f32 %v1331_v37, 0.0  ;;  %v5617_v37 = vld [vmem:[%s7186_s7] sm:$0xff] }
0x1102   :  { %v1348_v49 = vsel %vm441_vm10, %v1285_v43, %v1347_v57  ;;  %7384 = vst [vmem:[#allocation5_spill] sm:$0xff] %v5617_v37 }
0x1103   :  { %1349 = vrot.lane.b32.xlu2 %v1348_v49, %s4335_s30 }
0x110b   :  { %1352 = vrot.lane.b32.xlu2 %v5183_v55, %s4338_s27 }
0x115d   :  { %v1350_v5 = vpop.permute.xlu2 %1349 }
0x115e   :  { %v1355_v60 = vsel %vm144_vm0, %v1333_v33, %v1350_v5  ;;  %v5623_v33 = vld [vmem:[%s7195_s13 + $0x38] sm:$0xff] }
0x1165   :  { %v1353_v4 = vpop.permute.xlu2 %1352 }
0x1166   :  { %v1356_v54 = vsel %vm447_vm11, %v1355_v60, %v1353_v4  ;;  %v5629_v60 = vld [vmem:[%s7195_s13 + $0x30] sm:$0xff]  ;;  %v5635_v4 = vld [vmem:[%s7195_s13 + $0x28] sm:$0xff] }
0x1167   :  { %3818 = vmatmul.msk.f32.vlgmr.msrb.gmra.mxu2 %vm7383_vm13, %v1356_v54  ;;  %v5641_v54 = vld [vmem:[%s7195_s13 + $0x20] sm:$0xff] }
0x1168   :  { %1990 = vmatpush.msrb.mxu2 %v5463_v24 }
0x116a   :  { %1991 = vmatpush.msrb.mxu2 %v5469_v12 }
0x116c   :  { %1992 = vmatpush.msrb.mxu2 %v5475_v22 }
0x116e   :  { %1993 = vmatpush.msrb.mxu2 %v5481_v40 }
0x1170   :  { %1994 = vmatpush.msrb.mxu2 %v5487_v30 }
0x11ea   :  { %v1377_v55 = vpop.f32.mrf.mxu2 }
0x11eb   :  { %v1378_v35 = vadd.f32 %v5588_v0, %v1377_v55  ;;  %v5649_v55 = vld [vmem:[%s7195_s13 + $0x18] sm:$0xff] }
0x11ed   :  { %3953 = vtanh.f32 %v1378_v35  ;;  %v3819_v42 = vmul.f32 -1.442695, %v1378_v35  ;;  %v5656_v35 = vld [vmem:[%s7195_s13 + $0x10] sm:$0xff] }
0x11ef   :  { %3955 = vpow2.f32 %v3819_v42  ;;  %v5680_v42 = vld [vmem:[%s7195_s13] sm:$0xff] }
0x11f3   :  { %v3954_v36 = vpop.eup %3953 }
0x11f4   :  { %1402 = vrot.lane.b32.xlu0 %v3954_v36, %s4337_s19  ;;  %v5668_v36 = vld [vmem:[%s7195_s13 + $0x8] sm:$0xff] }
0x11f5   :  { %v3956_v7 = vpop.eup %3955 }
0x11f6   :  { %v1383_v2 = vadd.f32 1.0, %v3956_v7  ;;  %v5686_v7 = vld [vmem:[%s7192_s11 + $0x38] sm:$0xff] }
0x11f8   :  { %3957 = vrcp.f32 %v1383_v2  ;;  %v1395_v44 = vand.u32 2147483648, %v1383_v2  ;;  %vm1389_vm15 = vweird.f32 %v1383_v2  ;;  %v1393_v6 = vand.u32 2147483647, %v1383_v2 }
0x11fa   :  { %v1396_v28 = vor.u32 1.1754944e-38, %v1395_v44  ;;  %vm1394_vm13 = vcmp.eq.f32.partialorder %v1393_v6, 8.507059e+37  ;;  %v5728_v44 = vld [vmem:[%s7192_s11] sm:$0xff] }
0x11fe   :  { %v3958_v8 = vpop.eup %3957 }
0x11ff   :  { %v1385_v3 = vmul.f32 %v3958_v8, %v1383_v2  ;;  %vm1390_vm14 = vweird.f32 %v3958_v8  ;;  %v5692_v2 = vld [vmem:[%s7192_s11 + $0x30] sm:$0xff] }
0x1200   :  { %vm1391_vm12 = vmor %vm1389_vm15, %vm1390_vm14 }
0x1201   :  { %v1386_v27 = vsub.f32 1.0, %v1385_v3  ;;  %v5704_v3 = vld [vmem:[%s7192_s11 + $0x20] sm:$0xff] }
0x1203   :  { %v1387_v10 = vmul.f32 %v3958_v8, %v1386_v27  ;;  %v5710_v27 = vld [vmem:[%s7192_s11 + $0x18] sm:$0xff] }
0x1205   :  { %v1388_v38 = vadd.f32 %v3958_v8, %v1387_v10  ;;  %v5716_v10 = vld [vmem:[%s7192_s11 + $0x10] sm:$0xff] }
0x1207   :  { %v1392_v18 = vsel %vm1391_vm12, %v3958_v8, %v1388_v38  ;;  %v5698_v8 = vld [vmem:[%s7192_s11 + $0x28] sm:$0xff] }
0x1208   :  { %v1397_v63 = vsel %vm1394_vm13, %v1396_v28, %v1392_v18  ;;  %v5722_v38 = vld [vmem:[%s7192_s11 + $0x8] sm:$0xff]  ;;  %v5734_v18 = vld [vmem:[%s7194_s14] ss:$0 sm:$0xff] }
0x1209   :  { %v1400_v26 = vmul.f32 %v1397_v63, %v5171_v32 }
0x1266   :  { %v1403_v17 = vpop.permute.xlu0 %1402 }
0x1267   :  { %v1405_v16 = vmul.f32 %v1403_v17, %v1397_v63 }
0x1269   :  { %1407 = vrot.lane.b32.xlu1 %v1405_v16, %s4335_s30 }
0x1271   :  { %1421 = vrot.lane.b32.xlu1 %v5288_v48, %s4337_s19 }
0x1279   :  { %1518 = vrot.lane.b32.xlu1 %v5597_v14, %s4335_s30 }
0x12db   :  { %v1408_v43 = vpop.permute.xlu1 %1407 }
0x12dc   :  { %v5602_v51 = vadd.f32 %v1408_v43, %v1400_v26 }
0x12de   :  { %3959 = vtanh.f32 %v5602_v51 }
0x12e3   :  { %v1422_v47 = vpop.permute.xlu1 %1421 }
0x12e4   :  { %v3960_v57 = vpop.eup %3959 }
0x12e5   :  { %1413 = vrot.lane.b32.xlu2 %v3960_v57, %s4337_s19 }
0x12eb   :  { %v1519_v48 = vpop.permute.xlu1 %1518 }
0x133f   :  { %v1414_v49 = vpop.permute.xlu2 %1413 }
0x1340   :  { %v5606_v52 = vmul.f32 %v1414_v49, %v1397_v63 }
0x1342   :  { %1418 = vrot.lane.b32.xlu0 %v5606_v52, %s4335_s30 }
0x13b4   :  { %v1419_v62 = vpop.permute.xlu0 %1418 }
0x13b5   :  { %v1424_v5 = vsel %vm144_vm0, %v1419_v62, %v1422_v47  ;;  %v1521_v32 = vsel %vm144_vm0, %v1419_v62, %v1519_v48 }
0x13b6   :  { %3820 = vmatmul.msk.f32.vlgmr.msra.gmra.mxu0 %vm447_vm11, %v1424_v5  ;;  %3827 = vmatmul.msk.f32.vlgmr.msra.gmra.mxu1 %vm146_vm1, %v1521_v32 }
0x13b7   :  { %1758 = vmatpush.msra.mxu0 %v5617_v37  ;;  %1890 = vmatpush.msra.mxu1 %v5623_v33 }
0x13b9   :  { %1891 = vmatpush.msra.mxu1 %v5629_v60 }
0x13bb   :  { %1892 = vmatpush.msra.mxu1 %v5635_v4 }
0x13bd   :  { %1893 = vmatpush.msra.mxu1 %v5641_v54 }
0x13be   :  { %3826 = vmatmul.msk.f32.vlgmr.msrb.gmra.mxu0 %vm146_vm1, %v1521_v32 }
0x13bf   :  { %1818 = vmatpush.msrb.mxu0 %v5201_v20  ;;  %1894 = vmatpush.msra.mxu1 %v5649_v55  ;;  %v5662_v20 = vld [vmem:[%s7192_s11 + $0x48] sm:$0xff] }
0x13c1   :  { %1819 = vmatpush.msrb.mxu0 %v5211_v23  ;;  %1895 = vmatpush.msra.mxu1 %v5656_v35  ;;  %v5674_v23 = vld [vmem:[%s7192_s11 + $0x40] sm:$0xff] }
0x13c3   :  { %1820 = vmatpush.msrb.mxu0 %v5662_v20  ;;  %1896 = vmatpush.msra.mxu1 %v5668_v36 }
0x13c5   :  { %1821 = vmatpush.msrb.mxu0 %v5674_v23  ;;  %1897 = vmatpush.msra.mxu1 %v5680_v42 }
0x13c7   :  { %1822 = vmatpush.msrb.mxu0 %v5686_v7 }
0x13c9   :  { %1823 = vmatpush.msrb.mxu0 %v5692_v2 }
0x13cb   :  { %1824 = vmatpush.msrb.mxu0 %v5698_v8 }
0x13cd   :  { %1825 = vmatpush.msrb.mxu0 %v5704_v3 }
0x13cf   :  { %1826 = vmatpush.msrb.mxu0 %v5710_v27 }
0x13d1   :  { %1827 = vmatpush.msrb.mxu0 %v5716_v10 }
0x13d3   :  { %1828 = vmatpush.msrb.mxu0 %v5722_v38 }
0x13d5   :  { %1829 = vmatpush.msrb.mxu0 %v5728_v44 }
0x1433   :  { %v1445_v6 = vpop.f32.mrf.mxu0 }
0x1434   :  { %v1446_v28 = vadd.f32 %v5734_v18, %v1445_v6 }
0x1436   :  { %3961 = vtanh.f32 %v1446_v28  ;;  %v3821_v43 = vmul.f32 -1.442695, %v1446_v28 }
0x143b   :  { %v1542_v17 = vpop.f32.mrf.mxu0 }
0x143c   :  { %v3962_v63 = vpop.eup %3961  ;;  %v1565_v16 = vadd.f32 %v5277_v1, %v1542_v17 }
0x143d   :  { %1470 = vrot.lane.b32.xlu2 %v3962_v63, %s4337_s19 }
0x143e   :  { %3963 = vtanh.f32 %v1565_v16 }
0x143f   :  { %3965 = vpow2.f32 %v3821_v43 }
0x1444   :  { %v3964_v26 = vpop.eup %3963 }
0x1445   :  { %1585 = vmatmul.f32.vlgmr.msra.gmra.mxu2 %v3964_v26  ;;  %v3966_v57 = vpop.eup %3965 }
0x1446   :  { %2212 = vmatpush.msra.mxu2 %v5617_v37  ;;  %v1451_v49 = vadd.f32 1.0, %v3966_v57 }
0x1448   :  { %3967 = vrcp.f32 %v1451_v49  ;;  %v1463_v6 = vand.u32 2147483648, %v1451_v49  ;;  %vm1457_vm15 = vweird.f32 %v1451_v49  ;;  %v1461_v1 = vand.u32 2147483647, %v1451_v49 }
0x144a   :  { %v1464_v63 = vor.u32 1.1754944e-38, %v1463_v6  ;;  %vm1462_vm13 = vcmp.eq.f32.partialorder %v1461_v1, 8.507059e+37 }
0x144e   :  { %v3968_v47 = vpop.eup %3967 }
0x144f   :  { %v1453_v48 = vmul.f32 %v3968_v47, %v1451_v49  ;;  %vm1458_vm14 = vweird.f32 %v3968_v47 }
0x1450   :  { %vm1459_vm12 = vmor %vm1457_vm15, %vm1458_vm14  ;;  %vm7406_vm14 = vcmask 785408  }
0x1451   :  { %v1454_v62 = vsub.f32 1.0, %v1453_v48 }
0x1453   :  { %v1455_v5 = vmul.f32 %v3968_v47, %v1454_v62 }
0x1455   :  { %v1456_v32 = vadd.f32 %v3968_v47, %v1455_v5 }
0x1457   :  { %v1460_v17 = vsel %vm1459_vm12, %v3968_v47, %v1456_v32  ;;  %v1562_v47 = vpop.f32.mrf.mxu1 }
0x1458   :  { %v1465_v26 = vsel %vm1462_vm13, %v1464_v63, %v1460_v17  ;;  %v1566_v5 = vadd.f32 %v5295_v41, %v1562_v47  ;;  %v3822_v41 = vld [vmem:[%s7197_s4 + $0x10] sm:$0xff] }
0x1459   :  { %v1468_v43 = vmul.f32 %v1465_v26, %v5284_v46 }
0x1497   :  { %v1471_v16 = vpop.permute.xlu2 %1470 }
0x1498   :  { %v1473_v28 = vmul.f32 %v1471_v16, %v1465_v26  ;;  %v5790_v16 = vld [vmem:[%s7196_s15 + $0x18] sm:$0xff] }
0x1499   :  { %7394 = vst [vmem:[#allocation21_spill] sm:$0xff] %v5790_v16 }
0x149a   :  { %1475 = vrot.lane.b32.xlu0 %v1473_v28, %s4335_s30 }
0x150c   :  { %v1476_v57 = vpop.permute.xlu0 %1475 }
0x150d   :  { %v5742_v37 = vadd.f32 %v1476_v57, %v1468_v43  ;;  %v5802_v43 = vld [vmem:[%s7196_s15 + $0x8] sm:$0xff] }
0x150e   :  { %7396 = vst [vmem:[#allocation22_spill] sm:$0xff] %v5802_v43 }
0x150f   :  { %7385 = vst [vmem:[#allocation6_spill] sm:$0xff] %v5742_v37  ;;  %3969 = vtanh.f32 %v5742_v37  ;;  %v7405_v37 = vld [vmem:[#allocation2_spill] sm:$0xff] }
0x1510   :  { %3971 = vtanh.f32 %v1566_v5 }
0x1515   :  { %v3970_v48 = vpop.eup %3969 }
0x1516   :  { %1481 = vrot.lane.b32.xlu2 %v3970_v48, %s4337_s19  ;;  %v3972_v46 = vpop.eup %3971  ;;  %v5809_v48 = vld [vmem:[%s7196_s15] sm:$0xff] }
0x1517   :  { %7397 = vst [vmem:[#allocation23_spill] sm:$0xff] %v5809_v48 }
0x1570   :  { %v1482_v49 = vpop.permute.xlu2 %1481 }
0x1571   :  { %v5746_v62 = vmul.f32 %v1482_v49, %v1465_v26  ;;  %v5796_v26 = vld [vmem:[%s7196_s15 + $0x10] sm:$0xff] }
0x1572   :  { %7395 = vst [vmem:[#allocation20_spill] sm:$0xff] %v5796_v26 }
0x1573   :  { %1488 = vrot.lane.b32.xlu0 %v5746_v62, %s4335_s30 }
0x15e5   :  { %v1489_v32 = vpop.permute.xlu0 %1488 }
0x15e6   :  { %3823 = vmatmul.msk.f32.vlgmr.msrb.gmra.mxu3 %vm144_vm0, %v1489_v32 }
0x15e7   :  { %2010 = vmatpush.msrb.mxu3 %v5302_v39 }
0x15e9   :  { %2011 = vmatpush.msrb.mxu3 %v5308_v61  ;;  %v1586_v61 = vpop.f32.mrf.mxu2 }
0x15eb   :  { %2012 = vmatpush.msrb.mxu3 %v5314_v56  ;;  %v1587_v56 = vadd.f32 %v5364_v31, %v1586_v61  ;;  %v7389_v31 = vld [vmem:[#allocation10_spill] sm:$0xff] }
0x15ed   :  { %2013 = vmatpush.msrb.mxu3 %v5320_v11 }
0x15ee   :  { %1605 = vmatmul.f32.vlgmr.msra.gmra.mxu3 %v3972_v46 }
0x15ef   :  { %2014 = vmatpush.msrb.mxu3 %v5326_v59 }
0x15f1   :  { %2235 = vmatpush.msra.mxu3 %v5332_v53 }
0x15f3   :  { %2236 = vmatpush.msra.mxu3 %v5338_v15  ;;  %v7386_v15 = vld [vmem:[#allocation7_spill] sm:$0xff] }
0x1669   :  { %v1509_v6 = vpop.f32.mrf.mxu3 }
0x166a   :  { %v1510_v39 = vadd.f32 %v3822_v41, %v1509_v6 }
0x166c   :  { %3824 = vst.msk [vmem:[%s7198_s16 + $0x10] sm:$0xff] %vm234_vm2, %v1510_v39  ;;  %3828 = vmatmul.msk.f32.vlgmr.msra.gmra.mxu0 %vm234_vm2, %v1510_v39 }
0x166d   :  { %2023 = vmatpush.msra.mxu0 %v5352_v58  ;;  %v7387_v58 = vld [vmem:[#allocation8_spill] sm:$0xff] }
0x166f   :  { %2024 = vmatpush.msra.mxu0 %v5358_v13  ;;  %v7388_v13 = vld [vmem:[#allocation9_spill] sm:$0xff] }
0x1671   :  { %v1606_v11 = vpop.f32.mrf.mxu3  ;;  %2025 = vmatpush.msra.mxu0 %v5370_v34  ;;  %v7390_v34 = vld [vmem:[#allocation11_spill] sm:$0xff] }
0x1672   :  { %v1607_v59 = vadd.f32 %v1606_v11, %v1587_v56 }
0x1673   :  { %2026 = vmatpush.msra.mxu0 %v5376_v45  ;;  %v7391_v45 = vld [vmem:[#allocation12_spill] sm:$0xff] }
0x1674   :  { %v1609_v53 = vsel %vm234_vm2, %v1607_v59, -inf }
0x1675   :  { %1610 = vmax.xlane.f32.xlu1 %v1609_v53  ;;  %2027 = vmatpush.msra.mxu0 %v5383_v9  ;;  %v7392_v9 = vld [vmem:[#allocation13_spill] sm:$0xff] }
0x1677   :  { %2028 = vmatpush.msra.mxu0 %v5389_v29 }
0x1679   :  { %2029 = vmatpush.msra.mxu0 %v5395_v21 }
0x167b   :  { %2030 = vmatpush.msra.mxu0 %v5401_v19  ;;  %v7393_v19 = vld [vmem:[#allocation14_spill] sm:$0xff] }
0x167d   :  { %2031 = vmatpush.msra.mxu0 %v5407_v25 }
0x167f   :  { %2032 = vmatpush.msra.mxu0 %v7386_v15  ;;  %v7398_v15 = vld [vmem:[#allocation15_spill] sm:$0xff] }
0x1681   :  { %2033 = vmatpush.msra.mxu0 %v7387_v58 }
0x1683   :  { %2034 = vmatpush.msra.mxu0 %v7388_v13 }
0x1685   :  { %2035 = vmatpush.msra.mxu0 %v7389_v31  ;;  %v7399_v31 = vld [vmem:[#allocation17_spill] sm:$0xff] }
0x1687   :  { %2036 = vmatpush.msra.mxu0 %v7390_v34 }
0x1689   :  { %2037 = vmatpush.msra.mxu0 %v7391_v45  ;;  %v7400_v45 = vld [vmem:[#allocation16_spill] sm:$0xff] }
0x168b   :  { %2038 = vmatpush.msra.mxu0 %v7392_v9 }
0x16e8   :  { %v1611_v29 = vpop.xlane.xlu1 %1610 }
0x16e9   :  { %v1612_v21 = vsub.f32 %v1607_v59, %v1611_v29  ;;  %v1760_v1 = vpop.f32.mrf.mxu0 }
0x16ea   :  { %v1761_v17 = vadd.f32 %v7393_v19, %v1760_v1 }
0x16eb   :  { %v1613_v25 = vmul.f32 1.442695, %v1612_v21 }
0x16ec   :  { %v1763_v63 = vmax.f32 %v1761_v17, 0.0 }
0x16ed   :  { %3973 = vpow2.f32 %v1613_v25 }
0x16ee   :  { %3829 = vmatmul.msk.f32.vlgmr.msrb.gmra.mxu1 %vm396_vm3, %v1763_v63  ;;  %v7401_v63 = vld [vmem:[#allocation19_spill] sm:$0xff] }
0x16ef   :  { %1958 = vmatpush.msrb.mxu1 %v5790_v16 }
0x16f1   :  { %1959 = vmatpush.msrb.mxu1 %v5796_v26 }
0x16f3   :  { %v3974_v28 = vpop.eup %3973  ;;  %1960 = vmatpush.msrb.mxu1 %v5802_v43 }
0x16f4   :  { %v1615_v57 = vsel %vm234_vm2, %v3974_v28, 0.0 }
0x16f5   :  { %1616 = vadd.xlane.f32.xlu2 %v1615_v57  ;;  %1961 = vmatpush.msrb.mxu1 %v5809_v48 }
0x1768   :  { %v1617_v49 = vpop.xlane.xlu2 %1616 }
0x1769   :  { %3975 = vrcp.f32 %v1617_v49 }
0x176f   :  { %v3976_v47 = vpop.eup %3975 }
0x1770   :  { %v5812_v5 = vmul.f32 %v3976_v47, %v3974_v28 }
0x1772   :  { %3837 = vst.msk [vmem:[%s7187_s17 + $0x18] sm:$0xff] %vm234_vm2, %v5812_v5  ;;  %v1662_v32 = vperm.slane %v5812_v5, 6  ;;  %v1655_v46 = vperm.slane %v5812_v5, 5  ;;  %v1620_v41 = vperm.slane %v5812_v5, 0  ;;  %v1627_v6 = vperm.slane %v5812_v5, 1 }
0x1773   :  { %v1634_v39 = vperm.slane %v5812_v5, 2  ;;  %v1641_v61 = vperm.slane %v5812_v5, 3  ;;  %v1648_v56 = vperm.slane %v5812_v5, 4  ;;  %v1669_v11 = vperm.slane %v5812_v5, 7 }
0x1774   :  { %1667 = vperm.xlu2 %3891, %v1662_v32   ;;  %1660 = vperm.xlu1 %3890, %v1655_v46   ;;  %v7402_v32 = vld [vmem:[#allocation18_spill] sm:$0xff] }
0x1775   :  { %1625 = vperm.xlu0 %3892, %v1620_v41   ;;  %v7403_v41 = vld [vmem:[#allocation4_spill] sm:$0xff] }
0x177d   :  { %1632 = vperm.xlu0 %3892, %v1627_v6  }
0x1785   :  { %1639 = vperm.xlu0 %3892, %v1634_v39  }
0x178d   :  { %1646 = vperm.xlu0 %3892, %v1641_v61  }
0x1795   :  { %1653 = vperm.xlu0 %3892, %v1648_v56  }
0x179d   :  { %1674 = vperm.xlu0 %3892, %v1669_v11  }
0x17ce   :  { %v1668_v25 = vpop.permute.xlu2 %1667 }
0x17cf   :  { %v1682_v6 = vmul.f32 %v7403_v41, %v1668_v25 }
0x17e6   :  { %v1661_v21 = vpop.permute.xlu1 %1660 }
0x17e7   :  { %v1626_v59 = vpop.permute.xlu0 %1625  ;;  %v1681_v28 = vmul.f32 %v7401_v63, %v1661_v21 }
0x17e8   :  { %v1676_v34 = vmul.f32 %v7399_v31, %v1626_v59 }
0x17e9   :  { %v1719_v61 = vsel %vm144_vm0, %v1681_v28, 0.0 }
0x17ea   :  { %v1684_v19 = vsel %vm144_vm0, %v1676_v34, 0.0 }
0x17eb   :  { %v1685_v49 = vrot.slane %v1684_v19, 4 }
0x17ed   :  { %v1686_v59 = vadd.f32 %v1685_v49, %v1684_v19 }
0x17ef   :  { %v1633_v53 = vpop.permute.xlu0 %1632 }
0x17f0   :  { %v1677_v58 = vmul.f32 %v7398_v15, %v1633_v53  ;;  %v1726_v15 = vsel %vm144_vm0, %v1682_v6, 0.0 }
0x17f1   :  { %v1727_v63 = vrot.slane %v1726_v15, 4 }
0x17f2   :  { %v1691_v29 = vsel %vm144_vm0, %v1677_v58, 0.0  ;;  %v1720_v58 = vrot.slane %v1719_v61, 4 }
0x17f3   :  { %v1692_v17 = vrot.slane %v1691_v29, 4 }
0x17f5   :  { %v1693_v39 = vadd.f32 %v1692_v17, %v1691_v29  ;;  %v1721_v29 = vadd.f32 %v1720_v58, %v1719_v61 }
0x17f7   :  { %v1640_v13 = vpop.permute.xlu0 %1639 }
0x17f8   :  { %v1678_v9 = vmul.f32 %v7400_v45, %v1640_v13  ;;  %v1694_v13 = vrot.slane %v1693_v39, 2  ;;  %v1687_v45 = vrot.slane %v1686_v59, 2 }
0x17fa   :  { %v1698_v1 = vsel %vm144_vm0, %v1678_v9, 0.0  ;;  %v1695_v17 = vadd.f32 %v1694_v13, %v1693_v39 }
0x17fb   :  { %v1699_v57 = vrot.slane %v1698_v1, 4 }
0x17fc   :  { %v1696_v41 = vrot.slane %v1695_v17, 1 }
0x17fd   :  { %v1700_v56 = vadd.f32 %v1699_v57, %v1698_v1  ;;  %v1688_v57 = vadd.f32 %v1687_v45, %v1686_v59 }
0x17fe   :  { %v1697_v39 = vadd.f32 %v1696_v41, %v1695_v17 }
0x17ff   :  { %v1647_v47 = vpop.permute.xlu0 %1646  ;;  %v1701_v34 = vrot.slane %v1700_v56, 2 }
0x1800   :  { %v1679_v46 = vmul.f32 %v7402_v32, %v1647_v47  ;;  %v7404_v47 = vld [vmem:[#allocation3_spill] sm:$0xff]  ;;  %v1728_v32 = vadd.f32 %v1727_v63, %v1726_v15 }
0x1801   :  { %v1702_v28 = vadd.f32 %v1701_v34, %v1700_v56 }
0x1802   :  { %v1705_v11 = vsel %vm144_vm0, %v1679_v46, 0.0  ;;  %v1722_v46 = vrot.slane %v1721_v29, 2  ;;  %v1729_v16 = vrot.slane %v1728_v32, 2 }
0x1803   :  { %v1706_v53 = vrot.slane %v1705_v11, 4 }
0x1804   :  { %v1723_v61 = vadd.f32 %v1722_v46, %v1721_v29  ;;  %v1730_v45 = vadd.f32 %v1729_v16, %v1728_v32  ;;  %v1784_v46 = vpop.f32.mrf.mxu1 }
0x1805   :  { %v1707_v31 = vadd.f32 %v1706_v53, %v1705_v11  ;;  %v1703_v11 = vrot.slane %v1702_v28, 1  ;;  %v1689_v53 = vrot.slane %v1688_v57, 1 }
0x1807   :  { %v1708_v9 = vrot.slane %v1707_v31, 2  ;;  %v1654_v21 = vpop.permute.xlu0 %1653  ;;  %v1704_v58 = vadd.f32 %v1703_v11, %v1702_v28  ;;  %v1690_v13 = vadd.f32 %v1689_v53, %v1688_v57 }
0x1808   :  { %v1680_v25 = vmul.f32 %v7404_v47, %v1654_v21 }
0x1809   :  { %v1709_v19 = vadd.f32 %v1708_v9, %v1707_v31  ;;  %v1724_v9 = vrot.slane %v1723_v61, 1  ;;  %v1796_v63 = vsel %vm429_vm4, %v1697_v39, %v1690_v13 }
0x180a   :  { %v1712_v1 = vsel %vm144_vm0, %v1680_v25, 0.0 }
0x180b   :  { %v1713_v49 = vrot.slane %v1712_v1, 4  ;;  %v1710_v48 = vrot.slane %v1709_v19, 1  ;;  %v1725_v29 = vadd.f32 %v1724_v9, %v1723_v61 }
0x180d   :  { %v1714_v6 = vadd.f32 %v1713_v49, %v1712_v1  ;;  %v1711_v31 = vadd.f32 %v1710_v48, %v1709_v19  ;;  %v1797_v1 = vsel %vm431_vm5, %v1704_v58, %v1796_v63  ;;  %v5869_v63 = vadd.f32 %v5812_v5, %v5597_v14 }
0x180f   :  { %v1715_v43 = vrot.slane %v1714_v6, 2  ;;  %v1675_v26 = vpop.permute.xlu0 %1674 }
0x1810   :  { %v1683_v21 = vmul.f32 %v7405_v37, %v1675_v26  ;;  %v1798_v37 = vsel %vm433_vm6, %v1711_v31, %v1797_v1  ;;  %v1731_v26 = vrot.slane %v1730_v45, 1 }
0x1811   :  { %v1716_v56 = vadd.f32 %v1715_v43, %v1714_v6  ;;  %v1785_v6 = vadd.f32 %v5574_v50, %v1784_v46 }
0x1812   :  { %v1733_v59 = vsel %vm144_vm0, %v1683_v21, 0.0  ;;  %v1732_v57 = vadd.f32 %v1731_v26, %v1730_v45 }
0x1813   :  { %v1717_v15 = vrot.slane %v1716_v56, 1  ;;  %v1734_v34 = vrot.slane %v1733_v59, 4  ;;  %v1787_v11 = vmax.f32 %v1785_v6, 0.0 }
0x1815   :  { %v1718_v47 = vadd.f32 %v1717_v15, %v1716_v56  ;;  %v1735_v25 = vadd.f32 %v1734_v34, %v1733_v59 }
0x1817   :  { %v1736_v49 = vrot.slane %v1735_v25, 2  ;;  %v1799_v43 = vsel %vm435_vm7, %v1718_v47, %v1798_v37 }
0x1818   :  { %v1800_v48 = vsel %vm437_vm8, %v1725_v29, %v1799_v43  ;;  %v5890_v29 = vld [vmem:[%s7183_s6 + $0xf8] sm:$0xff] }
0x1819   :  { %v1737_v17 = vadd.f32 %v1736_v49, %v1735_v25  ;;  %v1801_v19 = vsel %vm439_vm9, %v1732_v57, %v1800_v48  ;;  %v5909_v48 = vld [vmem:[%s7192_s11 + $0x50] sm:$0xff]  ;;  %v5924_v57 = vld [vmem:[%s7183_s6 + $0xe0] sm:$0xff] }
0x181b   :  { %v1738_v28 = vrot.slane %v1737_v17, 1 }
0x181d   :  { %v1739_v16 = vadd.f32 %v1738_v28, %v1737_v17  ;;  %v5896_v17 = vld [vmem:[%s7192_s11 + $0x58] sm:$0xff]  ;;  %v5903_v28 = vld [vmem:[%s7183_s6 + $0xf0] sm:$0xff] }
0x181f   :  { %v1802_v32 = vsel %vm441_vm10, %v1739_v16, %v1801_v19 }
0x1820   :  { %1803 = vrot.lane.b32.xlu0 %v1802_v32, %s4335_s30  ;;  %v7407_v32 = vld [vmem:[#allocation5_spill] sm:$0xff] }
0x1828   :  { %1806 = vrot.lane.b32.xlu0 %v5606_v52, %s4338_s27 }
0x1892   :  { %v1804_v41 = vpop.permute.xlu0 %1803 }
0x1893   :  { %v1809_v53 = vsel %vm144_vm0, %v1787_v11, %v1804_v41 }
0x189a   :  { %v1807_v21 = vpop.permute.xlu0 %1806 }
0x189b   :  { %v1810_v61 = vsel %vm447_vm11, %v1809_v53, %v1807_v21 }
0x189c   :  { %3830 = vmatmul.msk.f32.vlgmr.msrb.gmra.mxu0 %vm7406_vm14, %v1810_v61 }
0x189d   :  { %2444 = vmatpush.msrb.mxu0 %v5463_v24 }
0x189f   :  { %2445 = vmatpush.msrb.mxu0 %v5469_v12 }
0x18a1   :  { %2446 = vmatpush.msrb.mxu0 %v5475_v22 }
0x18a3   :  { %2447 = vmatpush.msrb.mxu0 %v5481_v40 }
0x18a5   :  { %2448 = vmatpush.msrb.mxu0 %v5487_v30 }
0x1919   :  { %v1831_v52 = vpop.f32.mrf.mxu0 }
0x191a   :  { %v1832_v50 = vadd.f32 %v5588_v0, %v1831_v52 }
0x191c   :  { %3977 = vtanh.f32 %v1832_v50  ;;  %v3831_v56 = vmul.f32 -1.442695, %v1832_v50 }
0x191e   :  { %3979 = vpow2.f32 %v3831_v56 }
0x1922   :  { %v3978_v39 = vpop.eup %3977 }
0x1923   :  { %1856 = vrot.lane.b32.xlu2 %v3978_v39, %s4337_s19 }
0x1924   :  { %v3980_v58 = vpop.eup %3979 }
0x1925   :  { %v1837_v59 = vadd.f32 1.0, %v3980_v58 }
0x1927   :  { %3981 = vrcp.f32 %v1837_v59  ;;  %v1849_v40 = vand.u32 2147483648, %v1837_v59  ;;  %vm1843_vm12 = vweird.f32 %v1837_v59  ;;  %v1847_v30 = vand.u32 2147483647, %v1837_v59 }
0x1929   :  { %v1850_v15 = vor.u32 1.1754944e-38, %v1849_v40  ;;  %vm1848_vm14 = vcmp.eq.f32.partialorder %v1847_v30, 8.507059e+37 }
0x192d   :  { %v3982_v24 = vpop.eup %3981 }
0x192e   :  { %v1839_v12 = vmul.f32 %v3982_v24, %v1837_v59  ;;  %vm1844_vm15 = vweird.f32 %v3982_v24 }
0x192f   :  { %vm1845_vm13 = vmor %vm1843_vm12, %vm1844_vm15 }
0x1930   :  { %v1840_v13 = vsub.f32 1.0, %v1839_v12  ;;  %v7408_v12 = vld [vmem:[#allocation6_spill] sm:$0xff] }
0x1932   :  { %v1841_v22 = vmul.f32 %v3982_v24, %v1840_v13 }
0x1934   :  { %v1842_v31 = vadd.f32 %v3982_v24, %v1841_v22 }
0x1936   :  { %v1846_v0 = vsel %vm1845_vm13, %v3982_v24, %v1842_v31 }
0x1937   :  { %v1851_v45 = vsel %vm1848_vm14, %v1850_v15, %v1846_v0 }
0x1938   :  { %v1854_v47 = vmul.f32 %v1851_v45, %v5602_v51 }
0x197d   :  { %v1857_v34 = vpop.permute.xlu2 %1856 }
0x197e   :  { %v1859_v9 = vmul.f32 %v1857_v34, %v1851_v45  ;;  %v6035_v34 = vld [vmem:[%s7184_s1 + $0x8] sm:$0xff] }
0x1980   :  { %1861 = vrot.lane.b32.xlu1 %v1859_v9, %s4335_s30 }
0x1988   :  { %1875 = vrot.lane.b32.xlu1 %v5746_v62, %s4337_s19 }
0x1990   :  { %1972 = vrot.lane.b32.xlu1 %v5869_v63, %s4335_s30 }
0x19f2   :  { %v1862_v25 = vpop.permute.xlu1 %1861 }
0x19f3   :  { %v5874_v1 = vadd.f32 %v1862_v25, %v1854_v47  ;;  %v6042_v47 = vld [vmem:[%s7306_s12 + $0x48] sm:$0xff]  ;;  %v6048_v25 = vld [vmem:[%s7306_s12 + $0x38] sm:$0xff] }
0x19f5   :  { %3983 = vtanh.f32 %v5874_v1 }
0x19fa   :  { %v1876_v14 = vpop.permute.xlu1 %1875 }
0x19fb   :  { %v3984_v49 = vpop.eup %3983 }
0x19fc   :  { %1867 = vrot.lane.b32.xlu0 %v3984_v49, %s4337_s19  ;;  %v6054_v49 = vld [vmem:[%s7306_s12 + $0x28] sm:$0xff] }
0x1a02   :  { %v1973_v62 = vpop.permute.xlu1 %1972 }
0x1a6e   :  { %v1868_v37 = vpop.permute.xlu0 %1867 }
0x1a6f   :  { %v5878_v26 = vmul.f32 %v1868_v37, %v1851_v45 }
0x1a71   :  { %1872 = vrot.lane.b32.xlu2 %v5878_v26, %s4335_s30 }
0x1acb   :  { %v1873_v5 = vpop.permute.xlu2 %1872 }
0x1acc   :  { %v1878_v43 = vsel %vm144_vm0, %v1873_v5, %v1876_v14  ;;  %v1975_v51 = vsel %vm144_vm0, %v1873_v5, %v1973_v62  ;;  %v6060_v14 = vld [vmem:[%s7306_s12 + $0x18] sm:$0xff]  ;;  %v6066_v62 = vld [vmem:[%s7306_s12 + $0x8] sm:$0xff] }
0x1acd   :  { %3832 = vmatmul.msk.f32.vlgmr.msra.gmra.mxu1 %vm447_vm11, %v1878_v43  ;;  %3838 = vmatmul.msk.f32.vlgmr.msrb.gmra.mxu2 %vm146_vm1, %v1975_v51  ;;  %v6072_v5 = vld [vmem:[%s7190_s9 + $0x8] sm:$0xff]  ;;  %v6078_v43 = vld [vmem:[%s7190_s9] sm:$0xff] }
0x1ace   :  { %3839 = vmatmul.msk.f32.vlgmr.msrb.gmra.mxu3 %vm146_vm1, %v1975_v51  ;;  %2043 = vmatpush.msra.mxu1 %v5890_v29  ;;  %7409 = vst [vmem:[#allocation27_spill] sm:$0xff] %v6072_v5  ;;  %v3834_v51 = vld [vmem:[%s7197_s4 + $0x18] sm:$0xff] }
0x1acf   :  { %2272 = vmatpush.msrb.mxu2 %v5896_v17  ;;  %2344 = vmatpush.msrb.mxu3 %v5623_v33  ;;  %v5916_v33 = vld [vmem:[%s7183_s6 + $0xe8] sm:$0xff]  ;;  %7410 = vst [vmem:[#allocation24_spill] sm:$0xff] %v6078_v43 }
0x1ad0   :  { %2044 = vmatpush.msra.mxu1 %v5903_v28 }
0x1ad1   :  { %2273 = vmatpush.msrb.mxu2 %v5909_v48  ;;  %2345 = vmatpush.msrb.mxu3 %v5629_v60  ;;  %v5932_v60 = vld [vmem:[%s7183_s6 + $0xd8] sm:$0xff] }
0x1ad2   :  { %2045 = vmatpush.msra.mxu1 %v5916_v33 }
0x1ad3   :  { %2274 = vmatpush.msrb.mxu2 %v5662_v20  ;;  %2346 = vmatpush.msrb.mxu3 %v5635_v4  ;;  %v5940_v4 = vld [vmem:[%s7183_s6 + $0xd0] sm:$0xff] }
0x1ad4   :  { %2046 = vmatpush.msra.mxu1 %v5924_v57  ;;  %v5971_v20 = vld [vmem:[%s7183_s6 + $0xb0] sm:$0xff] }
0x1ad5   :  { %2275 = vmatpush.msrb.mxu2 %v5674_v23  ;;  %2347 = vmatpush.msrb.mxu3 %v5641_v54  ;;  %v5948_v54 = vld [vmem:[%s7183_s6 + $0xc8] sm:$0xff]  ;;  %v5985_v23 = vld [vmem:[%s7183_s6 + $0xa0] sm:$0xff] }
0x1ad6   :  { %2047 = vmatpush.msra.mxu1 %v5932_v60 }
0x1ad7   :  { %2276 = vmatpush.msrb.mxu2 %v5686_v7  ;;  %2348 = vmatpush.msrb.mxu3 %v5649_v55  ;;  %v5956_v55 = vld [vmem:[%s7183_s6 + $0xc0] sm:$0xff]  ;;  %v5998_v7 = vld [vmem:[%s7183_s6 + $0x90] sm:$0xff] }
0x1ad8   :  { %2048 = vmatpush.msra.mxu1 %v5940_v4 }
0x1ad9   :  { %2277 = vmatpush.msrb.mxu2 %v5692_v2  ;;  %2349 = vmatpush.msrb.mxu3 %v5656_v35  ;;  %v5964_v35 = vld [vmem:[%s7183_s6 + $0xb8] sm:$0xff]  ;;  %v6004_v2 = vld [vmem:[%s7183_s6 + $0x88] sm:$0xff] }
0x1ada   :  { %2049 = vmatpush.msra.mxu1 %v5948_v54 }
0x1adb   :  { %2278 = vmatpush.msrb.mxu2 %v5698_v8  ;;  %2350 = vmatpush.msrb.mxu3 %v5668_v36  ;;  %v5978_v36 = vld [vmem:[%s7183_s6 + $0xa8] sm:$0xff]  ;;  %v6010_v8 = vld [vmem:[%s7183_s6 + $0x80] sm:$0xff] }
0x1adc   :  { %2050 = vmatpush.msra.mxu1 %v5956_v55 }
0x1add   :  { %2279 = vmatpush.msrb.mxu2 %v5704_v3  ;;  %2351 = vmatpush.msrb.mxu3 %v5680_v42  ;;  %v5992_v42 = vld [vmem:[%s7183_s6 + $0x98] sm:$0xff] }
0x1ade   :  { %2051 = vmatpush.msra.mxu1 %v5964_v35 }
0x1adf   :  { %2280 = vmatpush.msrb.mxu2 %v5710_v27 }
0x1ae0   :  { %2052 = vmatpush.msra.mxu1 %v5971_v20 }
0x1ae1   :  { %2281 = vmatpush.msrb.mxu2 %v5716_v10 }
0x1ae2   :  { %2053 = vmatpush.msra.mxu1 %v5978_v36 }
0x1ae3   :  { %2282 = vmatpush.msrb.mxu2 %v5722_v38  ;;  %v6017_v38 = vld [vmem:[%s7184_s1] sm:$0xff] }
0x1ae4   :  { %2054 = vmatpush.msra.mxu1 %v5985_v23 }
0x1ae5   :  { %2283 = vmatpush.msrb.mxu2 %v5728_v44 }
0x1ae6   :  { %2055 = vmatpush.msra.mxu1 %v5992_v42 }
0x1ae8   :  { %2056 = vmatpush.msra.mxu1 %v5998_v7 }
0x1aea   :  { %2057 = vmatpush.msra.mxu1 %v6004_v2 }
0x1aec   :  { %2058 = vmatpush.msra.mxu1 %v6010_v8 }
0x1b4a   :  { %v1899_v3 = vpop.f32.mrf.mxu1 }
0x1b4b   :  { %v1900_v27 = vadd.f32 %v5734_v18, %v1899_v3 }
0x1b4d   :  { %3985 = vtanh.f32 %v1900_v27  ;;  %v3833_v46 = vmul.f32 -1.442695, %v1900_v27 }
0x1b50   :  { %v1996_v10 = vpop.f32.mrf.mxu2 }
0x1b51   :  { %v2019_v44 = vadd.f32 %v6017_v38, %v1996_v10  ;;  %v2016_v15 = vpop.f32.mrf.mxu3 }
0x1b52   :  { %v2020_v45 = vadd.f32 %v6035_v34, %v2016_v15 }
0x1b53   :  { %v3986_v16 = vpop.eup %3985  ;;  %3987 = vtanh.f32 %v2019_v44  ;;  %v6092_v44 = vld [vmem:[%s7183_s6 + $0x78] sm:$0xff] }
0x1b54   :  { %1924 = vrot.lane.b32.xlu0 %v3986_v16, %s4337_s19  ;;  %3989 = vpow2.f32 %v3833_v46  ;;  %7411 = vst [vmem:[#allocation28_spill] sm:$0xff] %v6092_v44  ;;  %v6098_v16 = vld [vmem:[%s7183_s6 + $0x70] sm:$0xff] }
0x1b55   :  { %7412 = vst [vmem:[#allocation25_spill] sm:$0xff] %v6098_v16 }
0x1b59   :  { %v3988_v19 = vpop.eup %3987 }
0x1b5a   :  { %2039 = vmatmul.f32.vlgmr.msra.gmra.mxu0 %v3988_v19  ;;  %v3990_v18 = vpop.eup %3989  ;;  %v6104_v19 = vld [vmem:[%s7185_s3] sm:$0xff] }
0x1b5b   :  { %2666 = vmatpush.msra.mxu0 %v7407_v32  ;;  %v1905_v41 = vadd.f32 1.0, %v3990_v18  ;;  %7413 = vst [vmem:[#allocation29_spill] sm:$0xff] %v6104_v19  ;;  %v6110_v18 = vld [vmem:[%s7183_s6 + $0x68] sm:$0xff] }
0x1b5c   :  { %7414 = vst [vmem:[#allocation26_spill] sm:$0xff] %v6110_v18 }
0x1b5d   :  { %3991 = vrcp.f32 %v1905_v41  ;;  %v1917_v52 = vand.u32 2147483648, %v1905_v41  ;;  %vm1911_vm12 = vweird.f32 %v1905_v41  ;;  %v1915_v50 = vand.u32 2147483647, %v1905_v41 }
0x1b5f   :  { %v1918_v56 = vor.u32 1.1754944e-38, %v1917_v52  ;;  %vm1916_vm14 = vcmp.eq.f32.partialorder %v1915_v50, 8.507059e+37  ;;  %v6141_v52 = vld [vmem:[%s7183_s6 + $0x40] sm:$0xff]  ;;  %v6147_v50 = vld [vmem:[%s7183_s6 + $0x38] sm:$0xff] }
0x1b60   :  { %7419 = vst [vmem:[#allocation10_spill] sm:$0xff] %v6141_v52 }
0x1b61   :  { %7420 = vst [vmem:[#allocation11_spill] sm:$0xff] %v6147_v50 }
0x1b63   :  { %v3992_v6 = vpop.eup %3991 }
0x1b64   :  { %v1907_v11 = vmul.f32 %v3992_v6, %v1905_v41  ;;  %vm1912_vm15 = vweird.f32 %v3992_v6 }
0x1b65   :  { %vm1913_vm13 = vmor %vm1911_vm12, %vm1912_vm15  ;;  %vm7440_vm15 = vcmask 785408  }
0x1b66   :  { %v1908_v53 = vsub.f32 1.0, %v1907_v11 }
0x1b68   :  { %v1909_v21 = vmul.f32 %v3992_v6, %v1908_v53  ;;  %v6123_v53 = vld [vmem:[%s7183_s6 + $0x58] sm:$0xff] }
0x1b69   :  { %7416 = vst [vmem:[#allocation7_spill] sm:$0xff] %v6123_v53 }
0x1b6a   :  { %v1910_v61 = vadd.f32 %v3992_v6, %v1909_v21  ;;  %v6129_v21 = vld [vmem:[%s7183_s6 + $0x50] sm:$0xff] }
0x1b6b   :  { %7417 = vst [vmem:[#allocation8_spill] sm:$0xff] %v6129_v21 }
0x1b6c   :  { %v1914_v39 = vsel %vm1913_vm13, %v3992_v6, %v1910_v61  ;;  %v6116_v6 = vld [vmem:[%s7183_s6 + $0x60] sm:$0xff]  ;;  %v6135_v61 = vld [vmem:[%s7183_s6 + $0x48] sm:$0xff] }
0x1b6d   :  { %v1919_v59 = vsel %vm1916_vm14, %v1918_v56, %v1914_v39  ;;  %7415 = vst [vmem:[#allocation30_spill] sm:$0xff] %v6116_v6  ;;  %v6153_v39 = vld [vmem:[%s7183_s6 + $0x30] sm:$0xff]  ;;  %v6159_v56 = vld [vmem:[%s7183_s6 + $0x28] sm:$0xff] }
0x1b6e   :  { %v1922_v13 = vmul.f32 %v1919_v59, %v7408_v12  ;;  %7418 = vst [vmem:[#allocation9_spill] sm:$0xff] %v6135_v61  ;;  %v6183_v12 = vld [vmem:[%s7183_s6 + $0x8] sm:$0xff] }
0x1b6f   :  { %7421 = vst [vmem:[#allocation12_spill] sm:$0xff] %v6153_v39 }
0x1b70   :  { %7422 = vst [vmem:[#allocation13_spill] sm:$0xff] %v6159_v56 }
0x1b71   :  { %7426 = vst [vmem:[#allocation16_spill] sm:$0xff] %v6183_v12 }
0x1bc6   :  { %v1925_v58 = vpop.permute.xlu0 %1924 }
0x1bc7   :  { %v1927_v24 = vmul.f32 %v1925_v58, %v1919_v59  ;;  %v6165_v58 = vld [vmem:[%s7183_s6 + $0x20] sm:$0xff] }
0x1bc8   :  { %7423 = vst [vmem:[#allocation14_spill] sm:$0xff] %v6165_v58 }
0x1bc9   :  { %1929 = vrot.lane.b32.xlu2 %v1927_v24, %s4335_s30  ;;  %v6177_v24 = vld [vmem:[%s7183_s6 + $0x10] sm:$0xff] }
0x1bca   :  { %7425 = vst [vmem:[#allocation17_spill] sm:$0xff] %v6177_v24 }
0x1bd7   :  { %v2040_v10 = vpop.f32.mrf.mxu0 }
0x1bd8   :  { %v2041_v32 = vadd.f32 %v6104_v19, %v2040_v10  ;;  %v7430_v10 = vld [vmem:[#allocation20_spill] sm:$0xff] }
0x1c23   :  { %v1930_v22 = vpop.permute.xlu2 %1929 }
0x1c24   :  { %v6024_v31 = vadd.f32 %v1930_v22, %v1922_v13  ;;  %v6189_v13 = vld [vmem:[%s7183_s6] sm:$0xff] }
0x1c25   :  { %7427 = vst [vmem:[#allocation19_spill] sm:$0xff] %v6189_v13 }
0x1c26   :  { %3993 = vtanh.f32 %v6024_v31 }
0x1c27   :  { %3995 = vtanh.f32 %v2020_v45  ;;  %v6195_v45 = vld [vmem:[%s7188_s8] ss:$0 sm:$0xff] }
0x1c28   :  { %7428 = vst [vmem:[#allocation18_spill] sm:$0xff] %v6195_v45 }
0x1c2c   :  { %v3994_v40 = vpop.eup %3993 }
0x1c2d   :  { %1935 = vrot.lane.b32.xlu0 %v3994_v40, %s4337_s19  ;;  %v3996_v37 = vpop.eup %3995 }
0x1c9f   :  { %v1936_v30 = vpop.permute.xlu0 %1935 }
0x1ca0   :  { %v6028_v0 = vmul.f32 %v1936_v30, %v1919_v59  ;;  %v6171_v59 = vld [vmem:[%s7183_s6 + $0x18] sm:$0xff] }
0x1ca1   :  { %7424 = vst [vmem:[#allocation15_spill] sm:$0xff] %v6171_v59 }
0x1ca2   :  { %1942 = vrot.lane.b32.xlu2 %v6028_v0, %s4335_s30 }
0x1cfc   :  { %v1943_v9 = vpop.permute.xlu2 %1942 }
0x1cfd   :  { %3835 = vmatmul.msk.f32.vlgmr.msrb.gmra.mxu1 %vm144_vm0, %v1943_v9 }
0x1cfe   :  { %2464 = vmatpush.msrb.mxu1 %v6042_v47 }
0x1d00   :  { %2465 = vmatpush.msrb.mxu1 %v6048_v25 }
0x1d02   :  { %2466 = vmatpush.msrb.mxu1 %v6054_v49 }
0x1d04   :  { %2467 = vmatpush.msrb.mxu1 %v6060_v14 }
0x1d05   :  { %2059 = vmatmul.f32.vlgmr.msra.gmra.mxu1 %v3996_v37 }
0x1d06   :  { %2468 = vmatpush.msrb.mxu1 %v6066_v62 }
0x1d08   :  { %2689 = vmatpush.msra.mxu1 %v6072_v5 }
0x1d0a   :  { %2690 = vmatpush.msra.mxu1 %v6078_v43 }
0x1d7a   :  { %v1963_v3 = vpop.f32.mrf.mxu1 }
0x1d7b   :  { %v1964_v27 = vadd.f32 %v3834_v51, %v1963_v3 }
0x1d7d   :  { %3836 = vst.msk [vmem:[%s7198_s16 + $0x18] sm:$0xff] %vm234_vm2, %v1964_v27  ;;  %3840 = vmatmul.msk.f32.vlgmr.msra.gmra.mxu2 %vm234_vm2, %v1964_v27  ;;  %v7429_v27 = vld [vmem:[#allocation21_spill] sm:$0xff] }
0x1d7e   :  { %2477 = vmatpush.msra.mxu2 %v6092_v44 }
0x1d80   :  { %2478 = vmatpush.msra.mxu2 %v6098_v16 }
0x1d82   :  { %v2060_v46 = vpop.f32.mrf.mxu1  ;;  %2479 = vmatpush.msra.mxu2 %v6110_v18 }
0x1d83   :  { %v2061_v41 = vadd.f32 %v2060_v46, %v2041_v32  ;;  %v7431_v32 = vld [vmem:[#allocation22_spill] sm:$0xff]  ;;  %v7432_v46 = vld [vmem:[#allocation23_spill] sm:$0xff] }
0x1d84   :  { %2480 = vmatpush.msra.mxu2 %v6116_v6 }
0x1d85   :  { %v2063_v11 = vsel %vm234_vm2, %v2061_v41, -inf }
0x1d86   :  { %2064 = vmax.xlane.f32.xlu1 %v2063_v11  ;;  %2481 = vmatpush.msra.mxu2 %v6123_v53 }
0x1d88   :  { %2482 = vmatpush.msra.mxu2 %v6129_v21 }
0x1d8a   :  { %2483 = vmatpush.msra.mxu2 %v6135_v61 }
0x1d8c   :  { %2484 = vmatpush.msra.mxu2 %v6141_v52 }
0x1d8e   :  { %2485 = vmatpush.msra.mxu2 %v6147_v50 }
0x1d90   :  { %2486 = vmatpush.msra.mxu2 %v6153_v39 }
0x1d92   :  { %2487 = vmatpush.msra.mxu2 %v6159_v56 }
0x1d94   :  { %2488 = vmatpush.msra.mxu2 %v6165_v58 }
0x1d96   :  { %2489 = vmatpush.msra.mxu2 %v6171_v59 }
0x1d98   :  { %2490 = vmatpush.msra.mxu2 %v6177_v24 }
0x1d9a   :  { %2491 = vmatpush.msra.mxu2 %v6183_v12 }
0x1d9c   :  { %2492 = vmatpush.msra.mxu2 %v6189_v13 }
0x1df9   :  { %v2065_v22 = vpop.xlane.xlu1 %2064 }
0x1dfa   :  { %v2066_v40 = vsub.f32 %v2061_v41, %v2065_v22 }
0x1dfc   :  { %v2067_v30 = vmul.f32 1.442695, %v2066_v40 }
0x1dfe   :  { %3997 = vpow2.f32 %v2067_v30 }
0x1e00   :  { %v2214_v15 = vpop.f32.mrf.mxu2 }
0x1e01   :  { %v2215_v9 = vadd.f32 %v6195_v45, %v2214_v15 }
0x1e03   :  { %v2217_v37 = vmax.f32 %v2215_v9, 0.0 }
0x1e04   :  { %v3998_v51 = vpop.eup %3997 }
0x1e05   :  { %3841 = vmatmul.msk.f32.vlgmr.msra.gmra.mxu3 %vm396_vm3, %v2217_v37  ;;  %v2069_v3 = vsel %vm234_vm2, %v3998_v51, 0.0 }
0x1e06   :  { %2070 = vadd.xlane.f32.xlu0 %v2069_v3  ;;  %2412 = vmatpush.msra.mxu3 %v7429_v27 }
0x1e08   :  { %2413 = vmatpush.msra.mxu3 %v7430_v10 }
0x1e0a   :  { %2414 = vmatpush.msra.mxu3 %v7431_v32 }
0x1e0c   :  { %2415 = vmatpush.msra.mxu3 %v7432_v46  ;;  %v6222_v46 = vld [vmem:[%s7191_s0 + $0x8] sm:$0xff] }
0x1e0d   :  { %7433 = vst [vmem:[#allocation4_spill] sm:$0xff] %v6222_v46 }
0x1e79   :  { %v2071_v41 = vpop.xlane.xlu0 %2070 }
0x1e7a   :  { %3999 = vrcp.f32 %v2071_v41 }
0x1e80   :  { %v4000_v11 = vpop.eup %3999 }
0x1e81   :  { %v6204_v22 = vmul.f32 %v4000_v11, %v3998_v51 }
0x1e83   :  { %3849 = vst.msk [vmem:[%s7187_s17 + $0x20] sm:$0xff] %vm234_vm2, %v6204_v22  ;;  %v2116_v40 = vperm.slane %v6204_v22, 6  ;;  %v2109_v30 = vperm.slane %v6204_v22, 5  ;;  %v2074_v15 = vperm.slane %v6204_v22, 0  ;;  %v2081_v9 = vperm.slane %v6204_v22, 1 }
0x1e84   :  { %v2088_v37 = vperm.slane %v6204_v22, 2  ;;  %v2095_v51 = vperm.slane %v6204_v22, 3  ;;  %v2102_v3 = vperm.slane %v6204_v22, 4  ;;  %v2123_v27 = vperm.slane %v6204_v22, 7 }
0x1e85   :  { %2121 = vperm.xlu0 %3892, %v2116_v40   ;;  %2114 = vperm.xlu1 %3890, %v2109_v30   ;;  %v6228_v40 = vld [vmem:[%s7191_s0] sm:$0xff] }
0x1e86   :  { %2079 = vperm.xlu2 %3891, %v2074_v15   ;;  %7434 = vst [vmem:[#allocation3_spill] sm:$0xff] %v6228_v40  ;;  %v6234_v15 = vld [vmem:[%s7191_s0 + $0x10] sm:$0xff] }
0x1e87   :  { %7435 = vst [vmem:[#allocation2_spill] sm:$0xff] %v6234_v15 }
0x1e8e   :  { %2086 = vperm.xlu2 %3891, %v2081_v9  }
0x1e96   :  { %2093 = vperm.xlu2 %3891, %v2088_v37  }
0x1e9e   :  { %2100 = vperm.xlu2 %3891, %v2095_v51  }
0x1ea6   :  { %2107 = vperm.xlu2 %3891, %v2102_v3  }
0x1eae   :  { %2128 = vperm.xlu2 %3891, %v2123_v27  }
0x1ee0   :  { %v2080_v10 = vpop.permute.xlu2 %2079 }
0x1ee1   :  { %v2130_v30 = vmul.f32 %v6228_v40, %v2080_v10  ;;  %v6243_v10 = vld [vmem:[%s7191_s0 + $0x28] sm:$0xff] }
0x1ee2   :  { %7436 = vst [vmem:[#allocation5_spill] sm:$0xff] %v6243_v10 }
0x1ee3   :  { %v2138_v3 = vsel %vm144_vm0, %v2130_v30, 0.0 }
0x1ee4   :  { %v2139_v13 = vrot.slane %v2138_v3, 4 }
0x1ee8   :  { %v2087_v32 = vpop.permute.xlu2 %2086 }
0x1ee9   :  { %v2131_v41 = vmul.f32 %v6222_v46, %v2087_v32 }
0x1eeb   :  { %v2145_v37 = vsel %vm144_vm0, %v2131_v41, 0.0  ;;  %v6249_v41 = vld [vmem:[%s7191_s0 + $0x18] sm:$0xff] }
0x1eec   :  { %v2146_v27 = vrot.slane %v2145_v37, 4  ;;  %7437 = vst [vmem:[#allocation6_spill] sm:$0xff] %v6249_v41 }
0x1eee   :  { %v2147_v30 = vadd.f32 %v2146_v27, %v2145_v37 }
0x1ef0   :  { %v2094_v11 = vpop.permute.xlu2 %2093  ;;  %v2148_v56 = vrot.slane %v2147_v30, 2 }
0x1ef1   :  { %v2132_v9 = vmul.f32 %v6234_v15, %v2094_v11 }
0x1ef3   :  { %v2152_v51 = vsel %vm144_vm0, %v2132_v9, 0.0  ;;  %v6255_v9 = vld [vmem:[%s7191_s0 + $0x30] sm:$0xff] }
0x1ef4   :  { %v2153_v32 = vrot.slane %v2152_v51, 4  ;;  %7438 = vst [vmem:[#allocation21_spill] sm:$0xff] %v6255_v9 }
0x1ef6   :  { %v2154_v24 = vadd.f32 %v2153_v32, %v2152_v51  ;;  %v2149_v51 = vadd.f32 %v2148_v56, %v2147_v30 }
0x1ef7   :  { %v2122_v46 = vpop.permute.xlu0 %2121  ;;  %v2115_v45 = vpop.permute.xlu1 %2114 }
0x1ef8   :  { %v2135_v40 = vmul.f32 %v6243_v10, %v2115_v45  ;;  %v2101_v12 = vpop.permute.xlu2 %2100  ;;  %v2136_v15 = vmul.f32 %v6255_v9, %v2122_v46  ;;  %v2140_v10 = vadd.f32 %v2139_v13, %v2138_v3  ;;  %v2155_v37 = vrot.slane %v2154_v24, 2  ;;  %v6264_v46 = vld [vmem:[%s7191_s0 + $0x20] sm:$0xff] }
0x1ef9   :  { %v2133_v11 = vmul.f32 %v6249_v41, %v2101_v12  ;;  %7439 = vst [vmem:[#allocation20_spill] sm:$0xff] %v6264_v46  ;;  %v2150_v9 = vrot.slane %v2149_v51, 1 }
0x1efa   :  { %v2173_v59 = vsel %vm144_vm0, %v2135_v40, 0.0  ;;  %v2180_v39 = vsel %vm144_vm0, %v2136_v15, 0.0  ;;  %v2141_v27 = vrot.slane %v2140_v10, 2  ;;  %v2156_v3 = vadd.f32 %v2155_v37, %v2154_v24 }
0x1efb   :  { %v2159_v45 = vsel %vm144_vm0, %v2133_v11, 0.0  ;;  %v2174_v50 = vrot.slane %v2173_v59, 4  ;;  %v2181_v61 = vrot.slane %v2180_v39, 4  ;;  %v2151_v56 = vadd.f32 %v2150_v9, %v2149_v51 }
0x1efc   :  { %v2160_v58 = vrot.slane %v2159_v45, 4  ;;  %v2142_v15 = vadd.f32 %v2141_v27, %v2140_v10  ;;  %v2157_v6 = vrot.slane %v2156_v3, 1 }
0x1efd   :  { %v2175_v13 = vadd.f32 %v2174_v50, %v2173_v59 }
0x1efe   :  { %v2161_v12 = vadd.f32 %v2160_v58, %v2159_v45  ;;  %v2182_v45 = vadd.f32 %v2181_v61, %v2180_v39  ;;  %v2143_v18 = vrot.slane %v2142_v15, 1  ;;  %v2158_v61 = vadd.f32 %v2157_v6, %v2156_v3 }
0x1eff   :  { %v2176_v21 = vrot.slane %v2175_v13, 2 }
0x1f00   :  { %v2162_v41 = vrot.slane %v2161_v12, 2  ;;  %v2108_v52 = vpop.permute.xlu2 %2107  ;;  %v2183_v43 = vrot.slane %v2182_v45, 2  ;;  %v2144_v10 = vadd.f32 %v2143_v18, %v2142_v15 }
0x1f01   :  { %v2134_v40 = vmul.f32 %v6264_v46, %v2108_v52  ;;  %v6271_v52 = vld [vmem:[%s7191_s0 + $0x38] sm:$0xff]  ;;  %v2177_v59 = vadd.f32 %v2176_v21, %v2175_v13 }
0x1f02   :  { %v2163_v11 = vadd.f32 %v2162_v41, %v2161_v12  ;;  %v2184_v37 = vadd.f32 %v2183_v43, %v2182_v45  ;;  %v2250_v27 = vsel %vm429_vm4, %v2151_v56, %v2144_v10 }
0x1f03   :  { %v2166_v32 = vsel %vm144_vm0, %v2134_v40, 0.0  ;;  %v2178_v40 = vrot.slane %v2177_v59, 1  ;;  %v2251_v46 = vsel %vm431_vm5, %v2158_v61, %v2250_v27  ;;  %v6315_v61 = vld [vmem:[%s7306_s12 + $0x10] sm:$0xff] }
0x1f04   :  { %v2167_v58 = vrot.slane %v2166_v32, 4  ;;  %v2164_v19 = vrot.slane %v2163_v11, 1  ;;  %v2185_v21 = vrot.slane %v2184_v37, 1 }
0x1f05   :  { %v2179_v6 = vadd.f32 %v2178_v40, %v2177_v59  ;;  %v6303_v59 = vld [vmem:[%s7306_s12 + $0x30] sm:$0xff] }
0x1f06   :  { %v2168_v53 = vadd.f32 %v2167_v58, %v2166_v32  ;;  %v2165_v41 = vadd.f32 %v2164_v19, %v2163_v11  ;;  %v2186_v9 = vadd.f32 %v2185_v21, %v2184_v37 }
0x1f08   :  { %v2169_v16 = vrot.slane %v2168_v53, 2  ;;  %v2129_v44 = vpop.permute.xlu2 %2128 }
0x1f09   :  { %v2137_v50 = vmul.f32 %v6271_v52, %v2129_v44  ;;  %v2252_v44 = vsel %vm433_vm6, %v2165_v41, %v2251_v46  ;;  %v2238_v46 = vpop.f32.mrf.mxu3  ;;  %v6327_v41 = vld [vmem:[%s7336_s18] ss:$0 sm:$0xff] }
0x1f0a   :  { %v2170_v24 = vadd.f32 %v2169_v16, %v2168_v53 }
0x1f0b   :  { %v2187_v39 = vsel %vm144_vm0, %v2137_v50, 0.0 }
0x1f0c   :  { %v2171_v30 = vrot.slane %v2170_v24, 1  ;;  %v2188_v12 = vrot.slane %v2187_v39, 4 }
0x1f0e   :  { %v2172_v32 = vadd.f32 %v2171_v30, %v2170_v24  ;;  %v2189_v58 = vadd.f32 %v2188_v12, %v2187_v39  ;;  %v6309_v24 = vld [vmem:[%s7306_s12 + $0x20] sm:$0xff] }
0x1f0f   :  { %v6321_v39 = vld [vmem:[%s7306_s12] sm:$0xff] }
0x1f10   :  { %v2190_v5 = vrot.slane %v2189_v58, 2  ;;  %v2253_v16 = vsel %vm435_vm7, %v2172_v32, %v2252_v44 }
0x1f11   :  { %v2254_v19 = vsel %vm437_vm8, %v2179_v6, %v2253_v16 }
0x1f12   :  { %v2191_v53 = vadd.f32 %v2190_v5, %v2189_v58  ;;  %v2255_v51 = vsel %vm439_vm9, %v2186_v9, %v2254_v19  ;;  %v6288_v5 = vld [vmem:[%s7189_s10] ss:$0 sm:$0xff] }
0x1f13   :  { %v2239_v15 = vadd.f32 %v6288_v5, %v2238_v46 }
0x1f14   :  { %v2192_v18 = vrot.slane %v2191_v53, 1 }
0x1f15   :  { %v2241_v11 = vmax.f32 %v2239_v15, 0.0 }
0x1f16   :  { %v2193_v43 = vadd.f32 %v2192_v18, %v2191_v53 }
0x1f18   :  { %v2256_v13 = vsel %vm441_vm10, %v2193_v43, %v2255_v51 }
0x1f19   :  { %2257 = vrot.lane.b32.xlu2 %v2256_v13, %s4335_s30  ;;  %v6336_v13 = vadd.f32 %v6204_v22, %v5869_v63 }
0x1f21   :  { %2260 = vrot.lane.b32.xlu2 %v5878_v26, %s4338_s27  ;;  %v6297_v26 = vld [vmem:[%s7306_s12 + $0x40] sm:$0xff] }
0x1f73   :  { %v2258_v3 = vpop.permute.xlu2 %2257 }
0x1f74   :  { %v2263_v45 = vsel %vm144_vm0, %v2241_v11, %v2258_v3 }
0x1f7b   :  { %v2261_v50 = vpop.permute.xlu2 %2260 }
0x1f7c   :  { %v2264_v56 = vsel %vm447_vm11, %v2263_v45, %v2261_v50 }
0x1f7d   :  { %3842 = vmatmul.msk.f32.vlgmr.msrb.gmra.mxu2 %vm7440_vm15, %v2264_v56 }
0x1f7e   :  { %2898 = vmatpush.msrb.mxu2 %v6297_v26 }
0x1f80   :  { %2899 = vmatpush.msrb.mxu2 %v6303_v59 }
0x1f82   :  { %2900 = vmatpush.msrb.mxu2 %v6309_v24 }
0x1f84   :  { %2901 = vmatpush.msrb.mxu2 %v6315_v61 }
0x1f86   :  { %2902 = vmatpush.msrb.mxu2 %v6321_v39 }
0x2000   :  { %v2285_v10 = vpop.f32.mrf.mxu2 }
0x2001   :  { %v2286_v30 = vadd.f32 %v6327_v41, %v2285_v10  ;;  %v6359_v10 = vld [vmem:[%s7195_s13 + $0x38] sm:$0xff] }
0x2003   :  { %4001 = vtanh.f32 %v2286_v30  ;;  %v3843_v37 = vmul.f32 -1.442695, %v2286_v30  ;;  %v6367_v30 = vld [vmem:[%s7195_s13 + $0x30] sm:$0xff] }
0x2005   :  { %4003 = vpow2.f32 %v3843_v37  ;;  %v6432_v37 = vld [vmem:[%s7195_s13 + $0x8] sm:$0xff] }
0x2009   :  { %v4002_v12 = vpop.eup %4001 }
0x200a   :  { %2310 = vrot.lane.b32.xlu0 %v4002_v12, %s4337_s19  ;;  %v6419_v12 = vld [vmem:[%s7195_s13 + $0x10] sm:$0xff] }
0x200b   :  { %v4004_v27 = vpop.eup %4003 }
0x200c   :  { %v2291_v40 = vadd.f32 1.0, %v4004_v27  ;;  %v6445_v27 = vld [vmem:[%s7195_s13] sm:$0xff] }
0x200e   :  { %4005 = vrcp.f32 %v2291_v40  ;;  %v2303_v6 = vand.u32 2147483648, %v2291_v40  ;;  %vm2297_vm13 = vweird.f32 %v2291_v40  ;;  %v2301_v53 = vand.u32 2147483647, %v2291_v40 }
0x2010   :  { %v2304_v19 = vor.u32 1.1754944e-38, %v2303_v6  ;;  %vm2302_vm15 = vcmp.eq.f32.partialorder %v2301_v53, 8.507059e+37 }
0x2014   :  { %v4006_v32 = vpop.eup %4005 }
0x2015   :  { %v2293_v58 = vmul.f32 %v4006_v32, %v2291_v40  ;;  %vm2298_vm12 = vweird.f32 %v4006_v32  ;;  %v6459_v40 = vld [vmem:[%s7192_s11 + $0x10] sm:$0xff] }
0x2016   :  { %vm2299_vm14 = vmor %vm2297_vm13, %vm2298_vm12 }
0x2017   :  { %v2294_v44 = vsub.f32 1.0, %v2293_v58  ;;  %v6484_v58 = vld [vmem:[%s7194_s14] ss:$0 sm:$0xff] }
0x2019   :  { %v2295_v21 = vmul.f32 %v4006_v32, %v2294_v44 }
0x201b   :  { %v2296_v16 = vadd.f32 %v4006_v32, %v2295_v21 }
0x201d   :  { %v2300_v18 = vsel %vm2299_vm14, %v4006_v32, %v2296_v16 }
0x201e   :  { %v2305_v43 = vsel %vm2302_vm15, %v2304_v19, %v2300_v18 }
0x201f   :  { %v2308_v46 = vmul.f32 %v2305_v43, %v5874_v1 }
0x207c   :  { %v2311_v9 = vpop.permute.xlu0 %2310 }
0x207d   :  { %v2313_v51 = vmul.f32 %v2311_v9, %v2305_v43 }
0x207f   :  { %2315 = vrot.lane.b32.xlu1 %v2313_v51, %s4335_s30 }
0x2087   :  { %2329 = vrot.lane.b32.xlu1 %v6028_v0, %s4337_s19 }
0x208f   :  { %2426 = vrot.lane.b32.xlu1 %v6336_v13, %s4335_s30 }
0x20f1   :  { %v2316_v3 = vpop.permute.xlu1 %2315 }
0x20f2   :  { %v6341_v15 = vadd.f32 %v2316_v3, %v2308_v46 }
0x20f4   :  { %4007 = vtanh.f32 %v6341_v15 }
0x20f9   :  { %v2330_v63 = vpop.permute.xlu1 %2329 }
0x20fa   :  { %v4008_v11 = vpop.eup %4007 }
0x20fb   :  { %2321 = vrot.lane.b32.xlu2 %v4008_v11, %s4337_s19 }
0x2101   :  { %v2427_v0 = vpop.permute.xlu1 %2426 }
0x2155   :  { %v2322_v45 = vpop.permute.xlu2 %2321 }
0x2156   :  { %v6345_v50 = vmul.f32 %v2322_v45, %v2305_v43 }
0x2158   :  { %2326 = vrot.lane.b32.xlu0 %v6345_v50, %s4335_s30 }
0x21ca   :  { %v2327_v22 = vpop.permute.xlu0 %2326 }
0x21cb   :  { %v2332_v56 = vsel %vm144_vm0, %v2327_v22, %v2330_v63  ;;  %v2429_v1 = vsel %vm144_vm0, %v2327_v22, %v2427_v0 }
0x21cc   :  { %3844 = vmatmul.msk.f32.vlgmr.msrb.gmra.mxu3 %vm447_vm11, %v2332_v56  ;;  %3850 = vmatmul.msk.f32.vlgmr.msrb.gmra.mxu0 %vm146_vm1, %v2429_v1 }
0x21cd   :  { %3851 = vmatmul.msk.f32.vlgmr.msrb.gmra.mxu1 %vm146_vm1, %v2429_v1  ;;  %2497 = vmatpush.msrb.mxu3 %v5890_v29  ;;  %v6374_v29 = vld [vmem:[%s7192_s11 + $0x48] sm:$0xff] }
0x21ce   :  { %2726 = vmatpush.msrb.mxu0 %v5896_v17  ;;  %2798 = vmatpush.msrb.mxu1 %v6359_v10  ;;  %v6380_v17 = vld [vmem:[%s7195_s13 + $0x28] sm:$0xff] }
0x21cf   :  { %2498 = vmatpush.msrb.mxu3 %v5903_v28  ;;  %v6387_v28 = vld [vmem:[%s7192_s11 + $0x40] sm:$0xff] }
0x21d0   :  { %2727 = vmatpush.msrb.mxu0 %v5909_v48  ;;  %2799 = vmatpush.msrb.mxu1 %v6367_v30  ;;  %v6393_v48 = vld [vmem:[%s7195_s13 + $0x20] sm:$0xff] }
0x21d1   :  { %2499 = vmatpush.msrb.mxu3 %v5916_v33  ;;  %v6400_v33 = vld [vmem:[%s7192_s11 + $0x38] sm:$0xff] }
0x21d2   :  { %2728 = vmatpush.msrb.mxu0 %v6374_v29  ;;  %2800 = vmatpush.msrb.mxu1 %v6380_v17 }
0x21d3   :  { %2500 = vmatpush.msrb.mxu3 %v5924_v57  ;;  %v6406_v57 = vld [vmem:[%s7195_s13 + $0x18] sm:$0xff] }
0x21d4   :  { %2729 = vmatpush.msrb.mxu0 %v6387_v28  ;;  %2801 = vmatpush.msrb.mxu1 %v6393_v48 }
0x21d5   :  { %2501 = vmatpush.msrb.mxu3 %v5932_v60  ;;  %v6413_v60 = vld [vmem:[%s7192_s11 + $0x30] sm:$0xff] }
0x21d6   :  { %2730 = vmatpush.msrb.mxu0 %v6400_v33  ;;  %2802 = vmatpush.msrb.mxu1 %v6406_v57 }
0x21d7   :  { %2502 = vmatpush.msrb.mxu3 %v5940_v4  ;;  %v6426_v4 = vld [vmem:[%s7192_s11 + $0x28] sm:$0xff] }
0x21d8   :  { %2731 = vmatpush.msrb.mxu0 %v6413_v60  ;;  %2803 = vmatpush.msrb.mxu1 %v6419_v12 }
0x21d9   :  { %2503 = vmatpush.msrb.mxu3 %v5948_v54  ;;  %v6439_v54 = vld [vmem:[%s7192_s11 + $0x20] sm:$0xff] }
0x21da   :  { %2732 = vmatpush.msrb.mxu0 %v6426_v4  ;;  %2804 = vmatpush.msrb.mxu1 %v6432_v37 }
0x21db   :  { %2504 = vmatpush.msrb.mxu3 %v5956_v55  ;;  %v6452_v55 = vld [vmem:[%s7192_s11 + $0x18] sm:$0xff] }
0x21dc   :  { %2733 = vmatpush.msrb.mxu0 %v6439_v54  ;;  %2805 = vmatpush.msrb.mxu1 %v6445_v27 }
0x21dd   :  { %2505 = vmatpush.msrb.mxu3 %v5964_v35  ;;  %v6466_v35 = vld [vmem:[%s7192_s11 + $0x8] sm:$0xff] }
0x21de   :  { %2734 = vmatpush.msrb.mxu0 %v6452_v55 }
0x21df   :  { %2506 = vmatpush.msrb.mxu3 %v5971_v20  ;;  %v6473_v20 = vld [vmem:[%s7192_s11] sm:$0xff] }
0x21e0   :  { %2735 = vmatpush.msrb.mxu0 %v6459_v40 }
0x21e1   :  { %2507 = vmatpush.msrb.mxu3 %v5978_v36 }
0x21e2   :  { %2736 = vmatpush.msrb.mxu0 %v6466_v35 }
0x21e3   :  { %2508 = vmatpush.msrb.mxu3 %v5985_v23 }
0x21e4   :  { %2737 = vmatpush.msrb.mxu0 %v6473_v20 }
0x21e5   :  { %2509 = vmatpush.msrb.mxu3 %v5992_v42  ;;  %v6490_v42 = vld [vmem:[%s7186_s7] sm:$0xff] }
0x21e6   :  { %7441 = vst [vmem:[#allocation22_spill] sm:$0xff] %v6490_v42 }
0x21e7   :  { %2510 = vmatpush.msrb.mxu3 %v5998_v7 }
0x21e9   :  { %2511 = vmatpush.msrb.mxu3 %v6004_v2 }
0x21eb   :  { %2512 = vmatpush.msrb.mxu3 %v6010_v8 }
0x2249   :  { %v2450_v36 = vpop.f32.mrf.mxu0 }
0x224a   :  { %v2473_v32 = vadd.f32 %v6017_v38, %v2450_v36 }
0x224c   :  { %4009 = vtanh.f32 %v2473_v32  ;;  %v2470_v32 = vpop.f32.mrf.mxu1 }
0x224f   :  { %v2353_v23 = vpop.f32.mrf.mxu3 }
0x2250   :  { %v2354_v44 = vadd.f32 %v6484_v58, %v2353_v23  ;;  %v2474_v23 = vadd.f32 %v6035_v34, %v2470_v32  ;;  %v3846_v34 = vld [vmem:[%s7197_s4 + $0x20] sm:$0xff] }
0x2252   :  { %v4010_v21 = vpop.eup %4009  ;;  %4011 = vtanh.f32 %v2354_v44  ;;  %v3845_v2 = vmul.f32 -1.442695, %v2354_v44 }
0x2253   :  { %2493 = vmatmul.f32.vlgmr.msra.gmra.mxu2 %v4010_v21  ;;  %v7443_v21 = vld [vmem:[#allocation27_spill] sm:$0xff] }
0x2254   :  { %3120 = vmatpush.msra.mxu2 %v6490_v42  ;;  %4013 = vpow2.f32 %v3845_v2 }
0x2258   :  { %v4012_v7 = vpop.eup %4011 }
0x2259   :  { %2378 = vrot.lane.b32.xlu2 %v4012_v7, %s4337_s19  ;;  %v7444_v7 = vld [vmem:[#allocation24_spill] sm:$0xff] }
0x225a   :  { %v4014_v8 = vpop.eup %4013 }
0x225b   :  { %v2359_v38 = vadd.f32 1.0, %v4014_v8 }
0x225d   :  { %4015 = vrcp.f32 %v2359_v38  ;;  %v2371_v9 = vand.u32 2147483648, %v2359_v38  ;;  %vm2365_vm13 = vweird.f32 %v2359_v38  ;;  %v2369_v43 = vand.u32 2147483647, %v2359_v38 }
0x225f   :  { %v2372_v46 = vor.u32 1.1754944e-38, %v2371_v9  ;;  %vm2370_vm15 = vcmp.eq.f32.partialorder %v2369_v43, 8.507059e+37  ;;  %v7451_v9 = vld [vmem:[#allocation8_spill] sm:$0xff]  ;;  %v7452_v43 = vld [vmem:[#allocation9_spill] sm:$0xff] }
0x2263   :  { %v4016_v16 = vpop.eup %4015 }
0x2264   :  { %v2361_v6 = vmul.f32 %v4016_v16, %v2359_v38  ;;  %vm2366_vm12 = vweird.f32 %v4016_v16 }
0x2265   :  { %vm2367_vm14 = vmor %vm2365_vm13, %vm2366_vm12  ;;  %vm7474_vm12 = vcmask 785408  }
0x2266   :  { %v2362_v53 = vsub.f32 1.0, %v2361_v6 }
0x2268   :  { %v2363_v18 = vmul.f32 %v4016_v16, %v2362_v53  ;;  %v7449_v53 = vld [vmem:[#allocation30_spill] sm:$0xff] }
0x226a   :  { %v2364_v19 = vadd.f32 %v4016_v16, %v2363_v18 }
0x226c   :  { %v2368_v51 = vsel %vm2367_vm14, %v4016_v16, %v2364_v19  ;;  %v7448_v16 = vld [vmem:[#allocation26_spill] sm:$0xff]  ;;  %v7450_v19 = vld [vmem:[#allocation7_spill] sm:$0xff] }
0x226d   :  { %v2373_v11 = vsel %vm2370_vm15, %v2372_v46, %v2368_v51  ;;  %v7453_v51 = vld [vmem:[#allocation10_spill] sm:$0xff]  ;;  %v7454_v46 = vld [vmem:[#allocation11_spill] sm:$0xff] }
0x226e   :  { %v2376_v63 = vmul.f32 %v2373_v11, %v6024_v31 }
0x22b3   :  { %v2379_v3 = vpop.permute.xlu2 %2378 }
0x22b4   :  { %v2381_v45 = vmul.f32 %v2379_v3, %v2373_v11  ;;  %v7455_v3 = vld [vmem:[#allocation12_spill] sm:$0xff] }
0x22b6   :  { %2383 = vrot.lane.b32.xlu0 %v2381_v45, %s4335_s30  ;;  %v7457_v45 = vld [vmem:[#allocation14_spill] sm:$0xff] }
0x2328   :  { %v2384_v0 = vpop.permute.xlu0 %2383 }
0x2329   :  { %v6496_v22 = vadd.f32 %v2384_v0, %v2376_v63  ;;  %v7458_v63 = vld [vmem:[#allocation15_spill] sm:$0xff]  ;;  %v7459_v0 = vld [vmem:[#allocation17_spill] sm:$0xff] }
0x232b   :  { %7442 = vst [vmem:[#allocation23_spill] sm:$0xff] %v6496_v22  ;;  %4017 = vtanh.f32 %v6496_v22 }
0x232c   :  { %4019 = vtanh.f32 %v2474_v23 }
0x2331   :  { %v4018_v56 = vpop.eup %4017 }
0x2332   :  { %2389 = vrot.lane.b32.xlu2 %v4018_v56, %s4337_s19  ;;  %v4020_v31 = vpop.eup %4019  ;;  %v7460_v56 = vld [vmem:[#allocation16_spill] sm:$0xff] }
0x238c   :  { %v2390_v1 = vpop.permute.xlu2 %2389 }
0x238d   :  { %v6500_v36 = vmul.f32 %v2390_v1, %v2373_v11  ;;  %v7456_v11 = vld [vmem:[#allocation13_spill] sm:$0xff]  ;;  %v7461_v1 = vld [vmem:[#allocation19_spill] sm:$0xff] }
0x238f   :  { %2396 = vrot.lane.b32.xlu0 %v6500_v36, %s4335_s30 }
0x2401   :  { %v2397_v44 = vpop.permute.xlu0 %2396 }
0x2402   :  { %3847 = vmatmul.msk.f32.vlgmr.msra.gmra.mxu3 %vm144_vm0, %v2397_v44 }
0x2403   :  { %2918 = vmatpush.msra.mxu3 %v6042_v47 }
0x2405   :  { %2919 = vmatpush.msra.mxu3 %v6048_v25  ;;  %v2494_v25 = vpop.f32.mrf.mxu2 }
0x2407   :  { %2920 = vmatpush.msra.mxu3 %v6054_v49  ;;  %v7445_v49 = vld [vmem:[#allocation28_spill] sm:$0xff] }
0x2409   :  { %2921 = vmatpush.msra.mxu3 %v6060_v14  ;;  %v7446_v14 = vld [vmem:[#allocation25_spill] sm:$0xff] }
0x240a   :  { %2513 = vmatmul.f32.vlgmr.msrb.gmra.mxu3 %v4020_v31  ;;  %v7462_v31 = vld [vmem:[#allocation18_spill] sm:$0xff] }
0x240b   :  { %2922 = vmatpush.msra.mxu3 %v6066_v62  ;;  %v7447_v62 = vld [vmem:[#allocation29_spill] sm:$0xff] }
0x240c   :  { %v2495_v8 = vadd.f32 %v7447_v62, %v2494_v25  ;;  %v6563_v62 = vld [vmem:[%s7196_s15] sm:$0xff] }
0x240d   :  { %3143 = vmatpush.msrb.mxu3 %v7443_v21  ;;  %7466 = vst [vmem:[#allocation25_spill] sm:$0xff] %v6563_v62 }
0x240f   :  { %3144 = vmatpush.msrb.mxu3 %v7444_v7 }
0x2485   :  { %v2417_v2 = vpop.f32.mrf.mxu3 }
0x2486   :  { %v2418_v47 = vadd.f32 %v3846_v34, %v2417_v2  ;;  %v6544_v2 = vld [vmem:[%s7196_s15 + $0x18] sm:$0xff] }
0x2487   :  { %7463 = vst [vmem:[#allocation27_spill] sm:$0xff] %v6544_v2 }
0x2488   :  { %3848 = vst.msk [vmem:[%s7198_s16 + $0x20] sm:$0xff] %vm234_vm2, %v2418_v47  ;;  %3852 = vmatmul.msk.f32.vlgmr.msra.gmra.mxu0 %vm234_vm2, %v2418_v47  ;;  %v6550_v47 = vld [vmem:[%s7196_s15 + $0x10] sm:$0xff] }
0x2489   :  { %2931 = vmatpush.msra.mxu0 %v7445_v49  ;;  %7464 = vst [vmem:[#allocation24_spill] sm:$0xff] %v6550_v47  ;;  %v6556_v49 = vld [vmem:[%s7196_s15 + $0x8] sm:$0xff] }
0x248a   :  { %7465 = vst [vmem:[#allocation28_spill] sm:$0xff] %v6556_v49 }
0x248b   :  { %2932 = vmatpush.msra.mxu0 %v7446_v14 }
0x248d   :  { %v2514_v38 = vpop.f32.mrf.mxu3  ;;  %2933 = vmatpush.msra.mxu0 %v7448_v16 }
0x248e   :  { %v2515_v6 = vadd.f32 %v2514_v38, %v2495_v8 }
0x248f   :  { %2934 = vmatpush.msra.mxu0 %v7449_v53 }
0x2490   :  { %v2517_v18 = vsel %vm234_vm2, %v2515_v6, -inf }
0x2491   :  { %2518 = vmax.xlane.f32.xlu1 %v2517_v18  ;;  %2935 = vmatpush.msra.mxu0 %v7450_v19 }
0x2493   :  { %2936 = vmatpush.msra.mxu0 %v7451_v9 }
0x2495   :  { %2937 = vmatpush.msra.mxu0 %v7452_v43 }
0x2497   :  { %2938 = vmatpush.msra.mxu0 %v7453_v51 }
0x2499   :  { %2939 = vmatpush.msra.mxu0 %v7454_v46 }
0x249b   :  { %2940 = vmatpush.msra.mxu0 %v7455_v3 }
0x249d   :  { %2941 = vmatpush.msra.mxu0 %v7456_v11 }
0x249f   :  { %2942 = vmatpush.msra.mxu0 %v7457_v45  ;;  %v7467_v45 = vld [vmem:[#allocation4_spill] sm:$0xff] }
0x24a1   :  { %2943 = vmatpush.msra.mxu0 %v7458_v63 }
0x24a3   :  { %2944 = vmatpush.msra.mxu0 %v7459_v0 }
0x24a5   :  { %2945 = vmatpush.msra.mxu0 %v7460_v56  ;;  %v7468_v56 = vld [vmem:[#allocation3_spill] sm:$0xff] }
0x24a7   :  { %2946 = vmatpush.msra.mxu0 %v7461_v1 }
0x2504   :  { %v2519_v32 = vpop.xlane.xlu1 %2518 }
0x2505   :  { %v2520_v23 = vsub.f32 %v2515_v6, %v2519_v32  ;;  %v2668_v44 = vpop.f32.mrf.mxu0  ;;  %v7469_v32 = vld [vmem:[#allocation2_spill] sm:$0xff] }
0x2506   :  { %v2669_v21 = vadd.f32 %v7462_v31, %v2668_v44 }
0x2507   :  { %v2521_v7 = vmul.f32 1.442695, %v2520_v23 }
0x2508   :  { %v2671_v34 = vmax.f32 %v2669_v21, 0.0 }
0x2509   :  { %4021 = vpow2.f32 %v2521_v7 }
0x250a   :  { %3853 = vmatmul.msk.f32.vlgmr.msra.gmra.mxu1 %vm396_vm3, %v2671_v34 }
0x250b   :  { %2866 = vmatpush.msra.mxu1 %v6544_v2 }
0x250d   :  { %2867 = vmatpush.msra.mxu1 %v6550_v47 }
0x250f   :  { %v4022_v25 = vpop.eup %4021  ;;  %2868 = vmatpush.msra.mxu1 %v6556_v49 }
0x2510   :  { %v2523_v14 = vsel %vm234_vm2, %v4022_v25, 0.0 }
0x2511   :  { %2524 = vadd.xlane.f32.xlu2 %v2523_v14  ;;  %2869 = vmatpush.msra.mxu1 %v6563_v62  ;;  %v7470_v14 = vld [vmem:[#allocation5_spill] sm:$0xff] }
0x2584   :  { %v2525_v8 = vpop.xlane.xlu2 %2524 }
0x2585   :  { %4023 = vrcp.f32 %v2525_v8 }
0x258b   :  { %v4024_v38 = vpop.eup %4023 }
0x258c   :  { %v6566_v16 = vmul.f32 %v4024_v38, %v4022_v25 }
0x258e   :  { %3861 = vst.msk [vmem:[%s7187_s17 + $0x28] sm:$0xff] %vm234_vm2, %v6566_v16  ;;  %v2570_v6 = vperm.slane %v6566_v16, 6  ;;  %v2563_v53 = vperm.slane %v6566_v16, 5  ;;  %v2528_v18 = vperm.slane %v6566_v16, 0  ;;  %v2535_v19 = vperm.slane %v6566_v16, 1 }
0x258f   :  { %v2542_v9 = vperm.slane %v6566_v16, 2  ;;  %v2549_v43 = vperm.slane %v6566_v16, 3  ;;  %v2556_v51 = vperm.slane %v6566_v16, 4  ;;  %v2577_v46 = vperm.slane %v6566_v16, 7 }
0x2590   :  { %2575 = vperm.xlu2 %3891, %v2570_v6   ;;  %2568 = vperm.xlu1 %3890, %v2563_v53  }
0x2591   :  { %2533 = vperm.xlu0 %3892, %v2528_v18   ;;  %v7471_v18 = vld [vmem:[#allocation6_spill] sm:$0xff] }
0x2599   :  { %2540 = vperm.xlu0 %3892, %v2535_v19  }
0x25a1   :  { %2547 = vperm.xlu0 %3892, %v2542_v9   ;;  %v7472_v9 = vld [vmem:[#allocation21_spill] sm:$0xff] }
0x25a9   :  { %2554 = vperm.xlu0 %3892, %v2549_v43  }
0x25b1   :  { %2561 = vperm.xlu0 %3892, %v2556_v51  }
0x25b9   :  { %2582 = vperm.xlu0 %3892, %v2577_v46  }
0x25ea   :  { %v2576_v25 = vpop.permute.xlu2 %2575 }
0x25eb   :  { %v2590_v43 = vmul.f32 %v7472_v9, %v2576_v25 }
0x2602   :  { %v2569_v31 = vpop.permute.xlu1 %2568 }
0x2603   :  { %v2534_v3 = vpop.permute.xlu0 %2533  ;;  %v2589_v8 = vmul.f32 %v7470_v14, %v2569_v31 }
0x2604   :  { %v2584_v1 = vmul.f32 %v7468_v56, %v2534_v3 }
0x2605   :  { %v2627_v46 = vsel %vm144_vm0, %v2589_v8, 0.0 }
0x2606   :  { %v2592_v7 = vsel %vm144_vm0, %v2584_v1, 0.0  ;;  %v2628_v56 = vrot.slane %v2627_v46, 4 }
0x2607   :  { %v2593_v6 = vrot.slane %v2592_v7, 4 }
0x260b   :  { %v2541_v11 = vpop.permute.xlu0 %2540 }
0x260c   :  { %v2585_v63 = vmul.f32 %v7467_v45, %v2541_v11  ;;  %v2594_v45 = vadd.f32 %v2593_v6, %v2592_v7 }
0x260e   :  { %v2599_v44 = vsel %vm144_vm0, %v2585_v63, 0.0  ;;  %v2595_v31 = vrot.slane %v2594_v45, 2 }
0x260f   :  { %v2600_v34 = vrot.slane %v2599_v44, 4 }
0x2611   :  { %v2601_v51 = vadd.f32 %v2600_v34, %v2599_v44  ;;  %v2629_v44 = vadd.f32 %v2628_v56, %v2627_v46 }
0x2613   :  { %v2548_v0 = vpop.permute.xlu0 %2547  ;;  %v2602_v1 = vrot.slane %v2601_v51, 2  ;;  %v2630_v9 = vrot.slane %v2629_v44, 2 }
0x2614   :  { %v2586_v23 = vmul.f32 %v7469_v32, %v2548_v0  ;;  %v2634_v0 = vsel %vm144_vm0, %v2590_v43, 0.0 }
0x2615   :  { %v2603_v34 = vadd.f32 %v2602_v1, %v2601_v51  ;;  %v2631_v46 = vadd.f32 %v2630_v9, %v2629_v44 }
0x2616   :  { %v2606_v21 = vsel %vm144_vm0, %v2586_v23, 0.0 }
0x2617   :  { %v2607_v38 = vrot.slane %v2606_v21, 4  ;;  %v2604_v43 = vrot.slane %v2603_v34, 1 }
0x2619   :  { %v2608_v3 = vadd.f32 %v2607_v38, %v2606_v21  ;;  %v2596_v38 = vadd.f32 %v2595_v31, %v2594_v45  ;;  %v2605_v51 = vadd.f32 %v2604_v43, %v2603_v34 }
0x261b   :  { %v2555_v53 = vpop.permute.xlu0 %2554  ;;  %v2609_v23 = vrot.slane %v2608_v3, 2 }
0x261c   :  { %v2587_v19 = vmul.f32 %v7471_v18, %v2555_v53  ;;  %v2635_v53 = vrot.slane %v2634_v0, 4  ;;  %v7473_v18 = vld [vmem:[#allocation20_spill] sm:$0xff] }
0x261d   :  { %v2610_v8 = vadd.f32 %v2609_v23, %v2608_v3 }
0x261e   :  { %v2613_v11 = vsel %vm144_vm0, %v2587_v19, 0.0  ;;  %v2636_v19 = vadd.f32 %v2635_v53, %v2634_v0 }
0x261f   :  { %v2614_v63 = vrot.slane %v2613_v11, 4 }
0x2620   :  { %v2637_v42 = vrot.slane %v2636_v19, 2 }
0x2621   :  { %v2615_v32 = vadd.f32 %v2614_v63, %v2613_v11  ;;  %v2611_v11 = vrot.slane %v2610_v8, 1  ;;  %v2597_v63 = vrot.slane %v2596_v38, 1 }
0x2622   :  { %v2638_v31 = vadd.f32 %v2637_v42, %v2636_v19  ;;  %v2692_v19 = vpop.f32.mrf.mxu1 }
0x2623   :  { %v2616_v14 = vrot.slane %v2615_v32, 2  ;;  %v2562_v62 = vpop.permute.xlu0 %2561  ;;  %v2612_v56 = vadd.f32 %v2611_v11, %v2610_v8  ;;  %v2598_v1 = vadd.f32 %v2597_v63, %v2596_v38  ;;  %v2693_v43 = vadd.f32 %v6288_v5, %v2692_v19 }
0x2624   :  { %v2588_v25 = vmul.f32 %v7473_v18, %v2562_v62 }
0x2625   :  { %v2617_v7 = vadd.f32 %v2616_v14, %v2615_v32  ;;  %v2632_v14 = vrot.slane %v2631_v46, 1  ;;  %v2704_v53 = vsel %vm429_vm4, %v2605_v51, %v2598_v1  ;;  %v2695_v11 = vmax.f32 %v2693_v43, 0.0 }
0x2626   :  { %v2620_v21 = vsel %vm144_vm0, %v2588_v25, 0.0 }
0x2627   :  { %v2621_v6 = vrot.slane %v2620_v21, 4  ;;  %v2618_v47 = vrot.slane %v2617_v7, 1 }
0x2629   :  { %v2622_v49 = vadd.f32 %v2621_v6, %v2620_v21  ;;  %v2619_v32 = vadd.f32 %v2618_v47, %v2617_v7  ;;  %v2705_v21 = vsel %vm431_vm5, %v2612_v56, %v2704_v53  ;;  %v6623_v53 = vadd.f32 %v6566_v16, %v6336_v13 }
0x262b   :  { %v2623_v2 = vrot.slane %v2622_v49, 2  ;;  %v2583_v22 = vpop.permute.xlu0 %2582 }
0x262c   :  { %v2591_v62 = vmul.f32 %v6271_v52, %v2583_v22  ;;  %v2706_v52 = vsel %vm433_vm6, %v2619_v32, %v2705_v21  ;;  %v2639_v22 = vrot.slane %v2638_v31, 1 }
0x262d   :  { %v2624_v3 = vadd.f32 %v2623_v2, %v2622_v49  ;;  %v2633_v49 = vadd.f32 %v2632_v14, %v2631_v46 }
0x262e   :  { %v2641_v45 = vsel %vm144_vm0, %v2591_v62, 0.0  ;;  %v2640_v8 = vadd.f32 %v2639_v22, %v2638_v31 }
0x262f   :  { %v2625_v0 = vrot.slane %v2624_v3, 1  ;;  %v2642_v23 = vrot.slane %v2641_v45, 4 }
0x2631   :  { %v2626_v18 = vadd.f32 %v2625_v0, %v2624_v3  ;;  %v2643_v25 = vadd.f32 %v2642_v23, %v2641_v45 }
0x2633   :  { %v2644_v6 = vrot.slane %v2643_v25, 2  ;;  %v2707_v2 = vsel %vm435_vm7, %v2626_v18, %v2706_v52 }
0x2634   :  { %v2708_v47 = vsel %vm437_vm8, %v2633_v49, %v2707_v2  ;;  %v6644_v49 = vld [vmem:[%s7183_s6 + $0xf8] sm:$0xff] }
0x2635   :  { %v2645_v44 = vadd.f32 %v2644_v6, %v2643_v25  ;;  %v2709_v38 = vsel %vm439_vm9, %v2640_v8, %v2708_v47  ;;  %v6663_v47 = vld [vmem:[%s7192_s11 + $0x50] sm:$0xff]  ;;  %v6678_v8 = vld [vmem:[%s7183_s6 + $0xe0] sm:$0xff] }
0x2637   :  { %v2646_v34 = vrot.slane %v2645_v44, 1 }
0x2639   :  { %v2647_v42 = vadd.f32 %v2646_v34, %v2645_v44  ;;  %v6650_v44 = vld [vmem:[%s7192_s11 + $0x58] sm:$0xff]  ;;  %v6657_v34 = vld [vmem:[%s7183_s6 + $0xf0] sm:$0xff] }
0x263b   :  { %v2710_v7 = vsel %vm441_vm10, %v2647_v42, %v2709_v38 }
0x263c   :  { %2711 = vrot.lane.b32.xlu0 %v2710_v7, %s4335_s30  ;;  %v7475_v7 = vld [vmem:[#allocation22_spill] sm:$0xff] }
0x2644   :  { %2714 = vrot.lane.b32.xlu0 %v6345_v50, %s4338_s27 }
0x26ae   :  { %v2712_v9 = vpop.permute.xlu0 %2711 }
0x26af   :  { %v2717_v63 = vsel %vm144_vm0, %v2695_v11, %v2712_v9 }
0x26b6   :  { %v2715_v62 = vpop.permute.xlu0 %2714 }
0x26b7   :  { %v2718_v46 = vsel %vm447_vm11, %v2717_v63, %v2715_v62 }
0x26b8   :  { %3854 = vmatmul.msk.f32.vlgmr.msrb.gmra.mxu0 %vm7474_vm12, %v2718_v46 }
0x26b9   :  { %3352 = vmatpush.msrb.mxu0 %v6297_v26 }
0x26bb   :  { %3353 = vmatpush.msrb.mxu0 %v6303_v59 }
0x26bd   :  { %3354 = vmatpush.msrb.mxu0 %v6309_v24 }
0x26bf   :  { %3355 = vmatpush.msrb.mxu0 %v6315_v61 }
0x26c1   :  { %3356 = vmatpush.msrb.mxu0 %v6321_v39 }
0x2735   :  { %v2739_v50 = vpop.f32.mrf.mxu0 }
0x2736   :  { %v2740_v5 = vadd.f32 %v6327_v41, %v2739_v50 }
0x2738   :  { %4025 = vtanh.f32 %v2740_v5  ;;  %v3855_v3 = vmul.f32 -1.442695, %v2740_v5 }
0x273a   :  { %4027 = vpow2.f32 %v3855_v3 }
0x273e   :  { %v4026_v51 = vpop.eup %4025 }
0x273f   :  { %2764 = vrot.lane.b32.xlu1 %v4026_v51, %s4337_s19 }
0x2740   :  { %v4028_v56 = vpop.eup %4027 }
0x2741   :  { %v2745_v45 = vadd.f32 1.0, %v4028_v56 }
0x2743   :  { %4029 = vrcp.f32 %v2745_v45  ;;  %v2757_v61 = vand.u32 2147483648, %v2745_v45  ;;  %vm2751_vm14 = vweird.f32 %v2745_v45  ;;  %v2755_v39 = vand.u32 2147483647, %v2745_v45 }
0x2745   :  { %v2758_v0 = vor.u32 1.1754944e-38, %v2757_v61  ;;  %vm2756_vm12 = vcmp.eq.f32.partialorder %v2755_v39, 8.507059e+37 }
0x2749   :  { %v4030_v26 = vpop.eup %4029 }
0x274a   :  { %v2747_v59 = vmul.f32 %v4030_v26, %v2745_v45  ;;  %vm2752_vm13 = vweird.f32 %v4030_v26 }
0x274b   :  { %vm2753_vm15 = vmor %vm2751_vm14, %vm2752_vm13 }
0x274c   :  { %v2748_v1 = vsub.f32 1.0, %v2747_v59  ;;  %v7476_v59 = vld [vmem:[#allocation23_spill] sm:$0xff] }
0x274e   :  { %v2749_v24 = vmul.f32 %v4030_v26, %v2748_v1 }
0x2750   :  { %v2750_v32 = vadd.f32 %v4030_v26, %v2749_v24 }
0x2752   :  { %v2754_v41 = vsel %vm2753_vm15, %v4030_v26, %v2750_v32 }
0x2753   :  { %v2759_v31 = vsel %vm2756_vm12, %v2758_v0, %v2754_v41 }
0x2754   :  { %v2762_v18 = vmul.f32 %v2759_v31, %v6341_v15 }
0x27b1   :  { %v2765_v23 = vpop.permute.xlu1 %2764 }
0x27b2   :  { %v2767_v14 = vmul.f32 %v2765_v23, %v2759_v31  ;;  %v6789_v23 = vld [vmem:[%s7184_s1 + $0x8] sm:$0xff] }
0x27b4   :  { %2769 = vrot.lane.b32.xlu2 %v2767_v14, %s4335_s30 }
0x27bc   :  { %2783 = vrot.lane.b32.xlu2 %v6500_v36, %s4337_s19 }
0x27c4   :  { %2880 = vrot.lane.b32.xlu2 %v6623_v53, %s4335_s30 }
0x280e   :  { %v2770_v25 = vpop.permute.xlu2 %2769 }
0x280f   :  { %v6628_v21 = vadd.f32 %v2770_v25, %v2762_v18  ;;  %v4277_v18 = vld [vmem:[%s7306_s12 + $0x48] sm:$0xff]  ;;  %v4278_v25 = vld [vmem:[%s7306_s12 + $0x38] sm:$0xff] }
0x2811   :  { %4031 = vtanh.f32 %v6628_v21 }
0x2816   :  { %v2784_v13 = vpop.permute.xlu2 %2783 }
0x2817   :  { %v4032_v6 = vpop.eup %4031 }
0x2818   :  { %2775 = vrot.lane.b32.xlu0 %v4032_v6, %s4337_s19  ;;  %v4279_v6 = vld [vmem:[%s7306_s12 + $0x28] sm:$0xff] }
0x281e   :  { %v2881_v36 = vpop.permute.xlu2 %2880 }
0x288a   :  { %v2776_v52 = vpop.permute.xlu0 %2775 }
0x288b   :  { %v6632_v22 = vmul.f32 %v2776_v52, %v2759_v31 }
0x288d   :  { %2780 = vrot.lane.b32.xlu1 %v6632_v22, %s4335_s30 }
0x28ff   :  { %v2781_v16 = vpop.permute.xlu1 %2780 }
0x2900   :  { %v2786_v2 = vsel %vm144_vm0, %v2781_v16, %v2784_v13  ;;  %v2883_v15 = vsel %vm144_vm0, %v2781_v16, %v2881_v36  ;;  %v4280_v13 = vld [vmem:[%s7306_s12 + $0x18] sm:$0xff]  ;;  %v4281_v36 = vld [vmem:[%s7306_s12 + $0x8] sm:$0xff] }
0x2901   :  { %3856 = vmatmul.msk.f32.vlgmr.msrb.gmra.mxu1 %vm447_vm11, %v2786_v2  ;;  %3862 = vmatmul.msk.f32.vlgmr.msrb.gmra.mxu2 %vm146_vm1, %v2883_v15  ;;  %v4282_v16 = vld [vmem:[%s7190_s9 + $0x8] sm:$0xff]  ;;  %v4283_v2 = vld [vmem:[%s7190_s9] sm:$0xff] }
0x2902   :  { %3863 = vmatmul.msk.f32.vlgmr.msra.gmra.mxu3 %vm146_vm1, %v2883_v15  ;;  %2951 = vmatpush.msrb.mxu1 %v6644_v49  ;;  %v3858_v15 = vld [vmem:[%s7197_s4 + $0x28] sm:$0xff] }
0x2903   :  { %3180 = vmatpush.msrb.mxu2 %v6650_v44  ;;  %3252 = vmatpush.msra.mxu3 %v6359_v10  ;;  %v6670_v10 = vld [vmem:[%s7183_s6 + $0xe8] sm:$0xff] }
0x2904   :  { %2952 = vmatpush.msrb.mxu1 %v6657_v34 }
0x2905   :  { %3181 = vmatpush.msrb.mxu2 %v6663_v47  ;;  %3253 = vmatpush.msra.mxu3 %v6367_v30  ;;  %v6686_v30 = vld [vmem:[%s7183_s6 + $0xd8] sm:$0xff] }
0x2906   :  { %2953 = vmatpush.msrb.mxu1 %v6670_v10 }
0x2907   :  { %3182 = vmatpush.msrb.mxu2 %v6374_v29  ;;  %3254 = vmatpush.msra.mxu3 %v6380_v17  ;;  %v6694_v29 = vld [vmem:[%s7183_s6 + $0xd0] sm:$0xff]  ;;  %v6702_v17 = vld [vmem:[%s7183_s6 + $0xc8] sm:$0xff] }
0x2908   :  { %2954 = vmatpush.msrb.mxu1 %v6678_v8 }
0x2909   :  { %3183 = vmatpush.msrb.mxu2 %v6387_v28  ;;  %3255 = vmatpush.msra.mxu3 %v6393_v48  ;;  %v6710_v28 = vld [vmem:[%s7183_s6 + $0xc0] sm:$0xff]  ;;  %v6718_v48 = vld [vmem:[%s7183_s6 + $0xb8] sm:$0xff] }
0x290a   :  { %2955 = vmatpush.msrb.mxu1 %v6686_v30 }
0x290b   :  { %3184 = vmatpush.msrb.mxu2 %v6400_v33  ;;  %3256 = vmatpush.msra.mxu3 %v6406_v57  ;;  %v6725_v33 = vld [vmem:[%s7183_s6 + $0xb0] sm:$0xff]  ;;  %v6732_v57 = vld [vmem:[%s7183_s6 + $0xa8] sm:$0xff] }
0x290c   :  { %2956 = vmatpush.msrb.mxu1 %v6694_v29 }
0x290d   :  { %3185 = vmatpush.msrb.mxu2 %v6413_v60  ;;  %3257 = vmatpush.msra.mxu3 %v6419_v12  ;;  %v6739_v60 = vld [vmem:[%s7183_s6 + $0xa0] sm:$0xff]  ;;  %v6746_v12 = vld [vmem:[%s7183_s6 + $0x98] sm:$0xff] }
0x290e   :  { %2957 = vmatpush.msrb.mxu1 %v6702_v17 }
0x290f   :  { %3186 = vmatpush.msrb.mxu2 %v6426_v4  ;;  %3258 = vmatpush.msra.mxu3 %v6432_v37  ;;  %v6752_v4 = vld [vmem:[%s7183_s6 + $0x90] sm:$0xff]  ;;  %v6758_v37 = vld [vmem:[%s7183_s6 + $0x88] sm:$0xff] }
0x2910   :  { %2958 = vmatpush.msrb.mxu1 %v6710_v28 }
0x2911   :  { %3187 = vmatpush.msrb.mxu2 %v6439_v54  ;;  %3259 = vmatpush.msra.mxu3 %v6445_v27  ;;  %v6764_v54 = vld [vmem:[%s7183_s6 + $0x80] sm:$0xff] }
0x2912   :  { %2959 = vmatpush.msrb.mxu1 %v6718_v48 }
0x2913   :  { %3188 = vmatpush.msrb.mxu2 %v6452_v55 }
0x2914   :  { %2960 = vmatpush.msrb.mxu1 %v6725_v33 }
0x2915   :  { %3189 = vmatpush.msrb.mxu2 %v6459_v40 }
0x2916   :  { %2961 = vmatpush.msrb.mxu1 %v6732_v57 }
0x2917   :  { %3190 = vmatpush.msrb.mxu2 %v6466_v35  ;;  %v6771_v35 = vld [vmem:[%s7184_s1] sm:$0xff] }
0x2918   :  { %2962 = vmatpush.msrb.mxu1 %v6739_v60 }
0x2919   :  { %3191 = vmatpush.msrb.mxu2 %v6473_v20 }
0x291a   :  { %2963 = vmatpush.msrb.mxu1 %v6746_v12 }
0x291c   :  { %2964 = vmatpush.msrb.mxu1 %v6752_v4 }
0x291e   :  { %2965 = vmatpush.msrb.mxu1 %v6758_v37 }
0x2920   :  { %2966 = vmatpush.msrb.mxu1 %v6764_v54 }
0x297e   :  { %v2807_v27 = vpop.f32.mrf.mxu1 }
0x297f   :  { %v2808_v55 = vadd.f32 %v6484_v58, %v2807_v27 }
0x2981   :  { %4033 = vtanh.f32 %v2808_v55  ;;  %v3857_v19 = vmul.f32 -1.442695, %v2808_v55 }
0x2984   :  { %v2904_v40 = vpop.f32.mrf.mxu2 }
0x2985   :  { %v2927_v20 = vadd.f32 %v6771_v35, %v2904_v40  ;;  %v2924_v0 = vpop.f32.mrf.mxu3 }
0x2986   :  { %v2928_v31 = vadd.f32 %v6789_v23, %v2924_v0 }
0x2987   :  { %v4034_v42 = vpop.eup %4033  ;;  %4035 = vtanh.f32 %v2927_v20  ;;  %v4284_v20 = vld [vmem:[%s7183_s6 + $0x78] sm:$0xff] }
0x2988   :  { %2832 = vrot.lane.b32.xlu0 %v4034_v42, %s4337_s19  ;;  %4037 = vpow2.f32 %v3857_v19  ;;  %v4285_v42 = vld [vmem:[%s7183_s6 + $0x70] sm:$0xff] }
0x298d   :  { %v4036_v38 = vpop.eup %4035 }
0x298e   :  { %2947 = vmatmul.f32.vlgmr.msra.gmra.mxu0 %v4036_v38  ;;  %v4038_v58 = vpop.eup %4037  ;;  %v6831_v38 = vld [vmem:[%s7185_s3] sm:$0xff] }
0x298f   :  { %3574 = vmatpush.msra.mxu0 %v7475_v7  ;;  %v2813_v9 = vadd.f32 1.0, %v4038_v58  ;;  %v4287_v58 = vld [vmem:[%s7183_s6 + $0x68] sm:$0xff] }
0x2991   :  { %4039 = vrcp.f32 %v2813_v9  ;;  %v2825_v50 = vand.u32 2147483648, %v2813_v9  ;;  %vm2819_vm14 = vweird.f32 %v2813_v9  ;;  %v2823_v5 = vand.u32 2147483647, %v2813_v9 }
0x2993   :  { %v2826_v3 = vor.u32 1.1754944e-38, %v2825_v50  ;;  %vm2824_vm12 = vcmp.eq.f32.partialorder %v2823_v5, 8.507059e+37  ;;  %v4292_v50 = vld [vmem:[%s7183_s6 + $0x40] sm:$0xff]  ;;  %v4293_v5 = vld [vmem:[%s7183_s6 + $0x38] sm:$0xff] }
0x2997   :  { %v4040_v43 = vpop.eup %4039 }
0x2998   :  { %v2815_v11 = vmul.f32 %v4040_v43, %v2813_v9  ;;  %vm2820_vm13 = vweird.f32 %v4040_v43 }
0x2999   :  { %vm2821_vm15 = vmor %vm2819_vm14, %vm2820_vm13  ;;  %vm7485_vm13 = vcmask 785408  }
0x299a   :  { %v2816_v63 = vsub.f32 1.0, %v2815_v11 }
0x299c   :  { %v2817_v62 = vmul.f32 %v4040_v43, %v2816_v63  ;;  %v4289_v63 = vld [vmem:[%s7183_s6 + $0x58] sm:$0xff] }
0x299e   :  { %v2818_v46 = vadd.f32 %v4040_v43, %v2817_v62  ;;  %v4290_v62 = vld [vmem:[%s7183_s6 + $0x50] sm:$0xff] }
0x29a0   :  { %v2822_v51 = vsel %vm2821_vm15, %v4040_v43, %v2818_v46  ;;  %v4288_v43 = vld [vmem:[%s7183_s6 + $0x60] sm:$0xff]  ;;  %v4291_v46 = vld [vmem:[%s7183_s6 + $0x48] sm:$0xff] }
0x29a1   :  { %v2827_v45 = vsel %vm2824_vm12, %v2826_v3, %v2822_v51  ;;  %v4294_v51 = vld [vmem:[%s7183_s6 + $0x30] sm:$0xff]  ;;  %v4295_v3 = vld [vmem:[%s7183_s6 + $0x28] sm:$0xff] }
0x29a2   :  { %v2830_v1 = vmul.f32 %v2827_v45, %v7476_v59  ;;  %v4299_v59 = vld [vmem:[%s7183_s6 + $0x8] sm:$0xff] }
0x29fa   :  { %v2833_v56 = vpop.permute.xlu0 %2832 }
0x29fb   :  { %v2835_v26 = vmul.f32 %v2833_v56, %v2827_v45  ;;  %v4296_v56 = vld [vmem:[%s7183_s6 + $0x20] sm:$0xff] }
0x29fd   :  { %2837 = vrot.lane.b32.xlu1 %v2835_v26, %s4335_s30  ;;  %v4298_v26 = vld [vmem:[%s7183_s6 + $0x10] sm:$0xff] }
0x2a0b   :  { %v2948_v40 = vpop.f32.mrf.mxu0 }
0x2a0c   :  { %v2949_v7 = vadd.f32 %v6831_v38, %v2948_v40 }
0x2a6f   :  { %v2838_v24 = vpop.permute.xlu1 %2837 }
0x2a70   :  { %v6778_v32 = vadd.f32 %v2838_v24, %v2830_v1  ;;  %v4300_v1 = vld [vmem:[%s7183_s6] sm:$0xff] }
0x2a72   :  { %4041 = vtanh.f32 %v6778_v32 }
0x2a73   :  { %4043 = vtanh.f32 %v2928_v31  ;;  %v6880_v31 = vld [vmem:[%s7188_s8] ss:$0 sm:$0xff] }
0x2a78   :  { %v4042_v61 = vpop.eup %4041 }
0x2a79   :  { %2843 = vrot.lane.b32.xlu0 %v4042_v61, %s4337_s19  ;;  %v4044_v52 = vpop.eup %4043 }
0x2aeb   :  { %v2844_v39 = vpop.permute.xlu0 %2843 }
0x2aec   :  { %v6782_v41 = vmul.f32 %v2844_v39, %v2827_v45  ;;  %v4297_v45 = vld [vmem:[%s7183_s6 + $0x18] sm:$0xff] }
0x2aee   :  { %2850 = vrot.lane.b32.xlu1 %v6782_v41, %s4335_s30 }
0x2b60   :  { %v2851_v14 = vpop.permute.xlu1 %2850 }
0x2b61   :  { %3859 = vmatmul.msk.f32.vlgmr.msra.gmra.mxu1 %vm144_vm0, %v2851_v14 }
0x2b62   :  { %3372 = vmatpush.msra.mxu1 %v4277_v18 }
0x2b64   :  { %3373 = vmatpush.msra.mxu1 %v4278_v25 }
0x2b66   :  { %3374 = vmatpush.msra.mxu1 %v4279_v6 }
0x2b68   :  { %3375 = vmatpush.msra.mxu1 %v4280_v13  ;;  %v7478_v13 = vld [vmem:[#allocation24_spill] sm:$0xff] }
0x2b69   :  { %2967 = vmatmul.f32.vlgmr.msrb.gmra.mxu1 %v4044_v52  ;;  %v7477_v52 = vld [vmem:[#allocation27_spill] sm:$0xff] }
0x2b6a   :  { %3376 = vmatpush.msra.mxu1 %v4281_v36  ;;  %v7479_v36 = vld [vmem:[#allocation28_spill] sm:$0xff] }
0x2b6c   :  { %3597 = vmatpush.msrb.mxu1 %v4282_v16  ;;  %v7480_v16 = vld [vmem:[#allocation25_spill] sm:$0xff] }
0x2b6e   :  { %3598 = vmatpush.msrb.mxu1 %v4283_v2 }
0x2bde   :  { %v2871_v27 = vpop.f32.mrf.mxu1 }
0x2bdf   :  { %v2872_v55 = vadd.f32 %v3858_v15, %v2871_v27 }
0x2be1   :  { %3860 = vst.msk [vmem:[%s7198_s16 + $0x28] sm:$0xff] %vm234_vm2, %v2872_v55  ;;  %3864 = vmatmul.msk.f32.vlgmr.msra.gmra.mxu2 %vm234_vm2, %v2872_v55 }
0x2be2   :  { %3385 = vmatpush.msra.mxu2 %v4284_v20 }
0x2be4   :  { %3386 = vmatpush.msra.mxu2 %v4285_v42 }
0x2be6   :  { %v2968_v19 = vpop.f32.mrf.mxu1  ;;  %3387 = vmatpush.msra.mxu2 %v4287_v58 }
0x2be7   :  { %v2969_v9 = vadd.f32 %v2968_v19, %v2949_v7 }
0x2be8   :  { %3388 = vmatpush.msra.mxu2 %v4288_v43 }
0x2be9   :  { %v2971_v11 = vsel %vm234_vm2, %v2969_v9, -inf }
0x2bea   :  { %2972 = vmax.xlane.f32.xlu2 %v2971_v11  ;;  %3389 = vmatpush.msra.mxu2 %v4289_v63  ;;  %v6907_v63 = vld [vmem:[%s7191_s0 + $0x8] sm:$0xff] }
0x2bec   :  { %3390 = vmatpush.msra.mxu2 %v4290_v62 }
0x2bee   :  { %3391 = vmatpush.msra.mxu2 %v4291_v46 }
0x2bf0   :  { %3392 = vmatpush.msra.mxu2 %v4292_v50  ;;  %v6913_v50 = vld [vmem:[%s7191_s0] sm:$0xff] }
0x2bf2   :  { %3393 = vmatpush.msra.mxu2 %v4293_v5 }
0x2bf4   :  { %3394 = vmatpush.msra.mxu2 %v4294_v51  ;;  %v6919_v51 = vld [vmem:[%s7191_s0 + $0x10] sm:$0xff] }
0x2bf6   :  { %3395 = vmatpush.msra.mxu2 %v4295_v3 }
0x2bf8   :  { %3396 = vmatpush.msra.mxu2 %v4296_v56 }
0x2bfa   :  { %3397 = vmatpush.msra.mxu2 %v4297_v45 }
0x2bfc   :  { %3398 = vmatpush.msra.mxu2 %v4298_v26 }
0x2bfe   :  { %3399 = vmatpush.msra.mxu2 %v4299_v59 }
0x2c00   :  { %3400 = vmatpush.msra.mxu2 %v4300_v1 }
0x2c5d   :  { %v2973_v24 = vpop.xlane.xlu2 %2972 }
0x2c5e   :  { %v2974_v61 = vsub.f32 %v2969_v9, %v2973_v24  ;;  %v6928_v24 = vld [vmem:[%s7191_s0 + $0x28] sm:$0xff] }
0x2c5f   :  { %7481 = vst [vmem:[#allocation29_spill] sm:$0xff] %v6928_v24 }
0x2c60   :  { %v2975_v39 = vmul.f32 1.442695, %v2974_v61 }
0x2c62   :  { %4045 = vpow2.f32 %v2975_v39 }
0x2c64   :  { %v3122_v0 = vpop.f32.mrf.mxu2 }
0x2c65   :  { %v3123_v14 = vadd.f32 %v6880_v31, %v3122_v0 }
0x2c67   :  { %v3125_v18 = vmax.f32 %v3123_v14, 0.0 }
0x2c68   :  { %v4046_v25 = vpop.eup %4045 }
0x2c69   :  { %3865 = vmatmul.msk.f32.vlgmr.msrb.gmra.mxu3 %vm396_vm3, %v3125_v18  ;;  %v2977_v6 = vsel %vm234_vm2, %v4046_v25, 0.0 }
0x2c6a   :  { %2978 = vadd.xlane.f32.xlu0 %v2977_v6  ;;  %3320 = vmatpush.msrb.mxu3 %v7477_v52  ;;  %v6940_v52 = vld [vmem:[%s7191_s0 + $0x30] sm:$0xff] }
0x2c6b   :  { %7483 = vst [vmem:[#allocation30_spill] sm:$0xff] %v6940_v52 }
0x2c6c   :  { %3321 = vmatpush.msrb.mxu3 %v7478_v13 }
0x2c6e   :  { %3322 = vmatpush.msrb.mxu3 %v7479_v36 }
0x2c70   :  { %3323 = vmatpush.msrb.mxu3 %v7480_v16 }
0x2cdd   :  { %v2979_v2 = vpop.xlane.xlu0 %2978 }
0x2cde   :  { %4047 = vrcp.f32 %v2979_v2 }
0x2ce4   :  { %v4048_v15 = vpop.eup %4047 }
0x2ce5   :  { %v6889_v27 = vmul.f32 %v4048_v15, %v4046_v25  ;;  %v6934_v25 = vld [vmem:[%s7191_s0 + $0x18] sm:$0xff] }
0x2ce6   :  { %7482 = vst [vmem:[#allocation26_spill] sm:$0xff] %v6934_v25 }
0x2ce7   :  { %3873 = vst.msk [vmem:[%s7187_s17 + $0x30] sm:$0xff] %vm234_vm2, %v6889_v27  ;;  %v3024_v55 = vperm.slane %v6889_v27, 6  ;;  %v3017_v40 = vperm.slane %v6889_v27, 5  ;;  %v2982_v20 = vperm.slane %v6889_v27, 0  ;;  %v2989_v42 = vperm.slane %v6889_v27, 1 }
0x2ce8   :  { %v2996_v7 = vperm.slane %v6889_v27, 2  ;;  %v3003_v19 = vperm.slane %v6889_v27, 3  ;;  %v3010_v58 = vperm.slane %v6889_v27, 4  ;;  %v3031_v9 = vperm.slane %v6889_v27, 7 }
0x2ce9   :  { %3029 = vperm.xlu0 %3892, %v3024_v55   ;;  %3022 = vperm.xlu2 %3891, %v3017_v40  }
0x2cea   :  { %2987 = vperm.xlu1 %3890, %v2982_v20  }
0x2cf2   :  { %2994 = vperm.xlu1 %3890, %v2989_v42  }
0x2cfa   :  { %3001 = vperm.xlu1 %3890, %v2996_v7  }
0x2d02   :  { %3008 = vperm.xlu1 %3890, %v3003_v19  }
0x2d0a   :  { %3015 = vperm.xlu1 %3890, %v3010_v58  }
0x2d12   :  { %3036 = vperm.xlu1 %3890, %v3031_v9  }
0x2d43   :  { %v3023_v45 = vpop.permute.xlu2 %3022 }
0x2d44   :  { %v3043_v61 = vmul.f32 %v6928_v24, %v3023_v45 }
0x2d46   :  { %v3081_v16 = vsel %vm144_vm0, %v3043_v61, 0.0 }
0x2d47   :  { %v3082_v20 = vrot.slane %v3081_v16, 4 }
0x2d5b   :  { %v3030_v39 = vpop.permute.xlu0 %3029 }
0x2d5c   :  { %v2988_v43 = vpop.permute.xlu1 %2987  ;;  %v3044_v13 = vmul.f32 %v6940_v52, %v3030_v39 }
0x2d5d   :  { %v3038_v5 = vmul.f32 %v6913_v50, %v2988_v43 }
0x2d5e   :  { %v3088_v42 = vsel %vm144_vm0, %v3044_v13, 0.0 }
0x2d5f   :  { %v3046_v59 = vsel %vm144_vm0, %v3038_v5, 0.0 }
0x2d60   :  { %v3047_v14 = vrot.slane %v3046_v59, 4 }
0x2d62   :  { %v3048_v55 = vadd.f32 %v3047_v14, %v3046_v59 }
0x2d64   :  { %v2995_v11 = vpop.permute.xlu1 %2994  ;;  %v3049_v9 = vrot.slane %v3048_v55, 2 }
0x2d65   :  { %v3039_v62 = vmul.f32 %v6907_v63, %v2995_v11 }
0x2d66   :  { %v3050_v59 = vadd.f32 %v3049_v9, %v3048_v55 }
0x2d67   :  { %v3053_v56 = vsel %vm144_vm0, %v3039_v62, 0.0  ;;  %v3089_v62 = vrot.slane %v3088_v42, 4 }
0x2d68   :  { %v3054_v1 = vrot.slane %v3053_v56, 4  ;;  %v3051_v13 = vrot.slane %v3050_v59, 1 }
0x2d69   :  { %v3090_v39 = vadd.f32 %v3089_v62, %v3088_v42 }
0x2d6a   :  { %v3055_v36 = vadd.f32 %v3054_v1, %v3053_v56 }
0x2d6b   :  { %v3091_v24 = vrot.slane %v3090_v39, 2 }
0x2d6c   :  { %v3002_v46 = vpop.permute.xlu1 %3001  ;;  %v3056_v7 = vrot.slane %v3055_v36, 2 }
0x2d6d   :  { %v3040_v3 = vmul.f32 %v6919_v51, %v3002_v46  ;;  %v6949_v46 = vld [vmem:[%s7191_s0 + $0x20] sm:$0xff] }
0x2d6e   :  { %7484 = vst [vmem:[#allocation7_spill] sm:$0xff] %v6949_v46  ;;  %v3057_v56 = vadd.f32 %v3056_v7, %v3055_v36  ;;  %v6956_v36 = vld [vmem:[%s7191_s0 + $0x38] sm:$0xff] }
0x2d6f   :  { %v3060_v26 = vsel %vm144_vm0, %v3040_v3, 0.0  ;;  %v3083_v3 = vadd.f32 %v3082_v20, %v3081_v16 }
0x2d70   :  { %v3061_v0 = vrot.slane %v3060_v26, 4  ;;  %v3058_v14 = vrot.slane %v3057_v56, 1 }
0x2d72   :  { %v3062_v2 = vadd.f32 %v3061_v0, %v3060_v26  ;;  %v3084_v0 = vrot.slane %v3083_v3, 2  ;;  %v3059_v55 = vadd.f32 %v3058_v14, %v3057_v56 }
0x2d74   :  { %v3009_v18 = vpop.permute.xlu1 %3008  ;;  %v3063_v58 = vrot.slane %v3062_v2, 2 }
0x2d75   :  { %v3041_v6 = vmul.f32 %v6934_v25, %v3009_v18 }
0x2d76   :  { %v3064_v45 = vadd.f32 %v3063_v58, %v3062_v2  ;;  %v3085_v2 = vadd.f32 %v3084_v0, %v3083_v3 }
0x2d77   :  { %v3067_v15 = vsel %vm144_vm0, %v3041_v6, 0.0 }
0x2d78   :  { %v3068_v40 = vrot.slane %v3067_v15, 4  ;;  %v3065_v6 = vrot.slane %v3064_v45, 1  ;;  %v3086_v62 = vrot.slane %v3085_v2, 1 }
0x2d7a   :  { %v3069_v19 = vadd.f32 %v3068_v40, %v3067_v15  ;;  %v3066_v42 = vadd.f32 %v3065_v6, %v3064_v45  ;;  %v3087_v45 = vadd.f32 %v3086_v62, %v3085_v2 }
0x2d7c   :  { %v3070_v43 = vrot.slane %v3069_v19, 2  ;;  %v3016_v11 = vpop.permute.xlu1 %3015 }
0x2d7d   :  { %v3042_v5 = vmul.f32 %v6949_v46, %v3016_v11  ;;  %v3092_v11 = vadd.f32 %v3091_v24, %v3090_v39 }
0x2d7e   :  { %v3071_v1 = vadd.f32 %v3070_v43, %v3069_v19  ;;  %v3052_v19 = vadd.f32 %v3051_v13, %v3050_v59 }
0x2d7f   :  { %v3074_v26 = vsel %vm144_vm0, %v3042_v5, 0.0  ;;  %v3093_v3 = vrot.slane %v3092_v11, 1 }
0x2d80   :  { %v3075_v61 = vrot.slane %v3074_v26, 4  ;;  %v3072_v15 = vrot.slane %v3071_v1, 1  ;;  %v3158_v5 = vsel %vm429_vm4, %v3059_v55, %v3052_v19 }
0x2d81   :  { %v3159_v46 = vsel %vm431_vm5, %v3066_v42, %v3158_v5  ;;  %v3094_v14 = vadd.f32 %v3093_v3, %v3092_v11 }
0x2d82   :  { %v3076_v18 = vadd.f32 %v3075_v61, %v3074_v26  ;;  %v3073_v58 = vadd.f32 %v3072_v15, %v3071_v1 }
0x2d84   :  { %v3077_v40 = vrot.slane %v3076_v18, 2  ;;  %v3037_v52 = vpop.permute.xlu1 %3036 }
0x2d85   :  { %v3045_v16 = vmul.f32 %v6956_v36, %v3037_v52  ;;  %v3160_v52 = vsel %vm433_vm6, %v3073_v58, %v3159_v46  ;;  %v3146_v46 = vpop.f32.mrf.mxu3 }
0x2d86   :  { %v3078_v20 = vadd.f32 %v3077_v40, %v3076_v18 }
0x2d87   :  { %v3095_v7 = vsel %vm144_vm0, %v3045_v16, 0.0 }
0x2d88   :  { %v3079_v9 = vrot.slane %v3078_v20, 1  ;;  %v3096_v43 = vrot.slane %v3095_v7, 4 }
0x2d8a   :  { %v3080_v26 = vadd.f32 %v3079_v9, %v3078_v20  ;;  %v3097_v61 = vadd.f32 %v3096_v43, %v3095_v7 }
0x2d8c   :  { %v3098_v25 = vrot.slane %v3097_v61, 2  ;;  %v3161_v56 = vsel %vm435_vm7, %v3080_v26, %v3160_v52 }
0x2d8d   :  { %v3162_v1 = vsel %vm437_vm8, %v3087_v45, %v3161_v56 }
0x2d8e   :  { %v3099_v0 = vadd.f32 %v3098_v25, %v3097_v61  ;;  %v3163_v39 = vsel %vm439_vm9, %v3094_v14, %v3162_v1  ;;  %v6973_v25 = vld [vmem:[%s7189_s10] ss:$0 sm:$0xff] }
0x2d8f   :  { %v3147_v13 = vadd.f32 %v6973_v25, %v3146_v46 }
0x2d90   :  { %v3100_v59 = vrot.slane %v3099_v0, 1 }
0x2d91   :  { %v3149_v15 = vmax.f32 %v3147_v13, 0.0  ;;  %v4312_v13 = vld [vmem:[%s7195_s13 + $0x38] sm:$0xff] }
0x2d92   :  { %v3101_v24 = vadd.f32 %v3100_v59, %v3099_v0  ;;  %v3332_v59 = vadd.f32 %v6889_v27, %v6623_v53 }
0x2d94   :  { %v3164_v18 = vsel %vm441_vm10, %v3101_v24, %v3163_v39 }
0x2d95   :  { %3165 = vrot.lane.b32.xlu1 %v3164_v18, %s4335_s30 }
0x2d9d   :  { %3168 = vrot.lane.b32.xlu1 %v6632_v22, %s4338_s27  ;;  %v6982_v22 = vld [vmem:[%s7336_s18] ss:$0 sm:$0xff] }
0x2e07   :  { %v3166_v6 = vpop.permute.xlu1 %3165 }
0x2e08   :  { %v3171_v40 = vsel %vm144_vm0, %v3149_v15, %v3166_v6  ;;  %v4313_v15 = vld [vmem:[%s7195_s13 + $0x30] sm:$0xff] }
0x2e0f   :  { %v3169_v16 = vpop.permute.xlu1 %3168 }
0x2e10   :  { %v3172_v2 = vsel %vm447_vm11, %v3171_v40, %v3169_v16  ;;  %v4320_v40 = vld [vmem:[%s7192_s11 + $0x30] sm:$0xff]  ;;  %v4322_v16 = vld [vmem:[%s7192_s11 + $0x28] sm:$0xff] }
0x2e11   :  { %3866 = vmatmul.msk.f32.vlgmr.msrb.gmra.mxu2 %vm7485_vm13, %v3172_v2  ;;  %v4324_v2 = vld [vmem:[%s7192_s11 + $0x20] sm:$0xff] }
0x2e94   :  { %v3193_v55 = vpop.f32.mrf.mxu2 }
0x2e95   :  { %v3194_v20 = vadd.f32 %v6982_v22, %v3193_v55  ;;  %v4326_v55 = vld [vmem:[%s7192_s11 + $0x18] sm:$0xff] }
0x2e97   :  { %4049 = vtanh.f32 %v3194_v20  ;;  %v3867_v7 = vmul.f32 -1.442695, %v3194_v20  ;;  %v4328_v20 = vld [vmem:[%s7192_s11 + $0x8] sm:$0xff] }
0x2e99   :  { %4051 = vpow2.f32 %v3867_v7 }
0x2e9d   :  { %v4050_v42 = vpop.eup %4049 }
0x2e9e   :  { %3218 = vrot.lane.b32.xlu0 %v4050_v42, %s4337_s19 }
0x2e9f   :  { %v4052_v19 = vpop.eup %4051 }
0x2ea0   :  { %v3199_v58 = vadd.f32 1.0, %v4052_v19 }
0x2ea2   :  { %4053 = vrcp.f32 %v3199_v58  ;;  %v3211_v26 = vand.u32 2147483648, %v3199_v58  ;;  %vm3205_vm15 = vweird.f32 %v3199_v58  ;;  %v3209_v61 = vand.u32 2147483647, %v3199_v58 }
0x2ea4   :  { %v3212_v3 = vor.u32 1.1754944e-38, %v3211_v26  ;;  %vm3210_vm13 = vcmp.eq.f32.partialorder %v3209_v61, 8.507059e+37 }
0x2ea8   :  { %v4054_v9 = vpop.eup %4053 }
0x2ea9   :  { %v3201_v43 = vmul.f32 %v4054_v9, %v3199_v58  ;;  %vm3206_vm14 = vweird.f32 %v4054_v9 }
0x2eaa   :  { %vm3207_vm12 = vmor %vm3205_vm15, %vm3206_vm14 }
0x2eab   :  { %v3202_v11 = vsub.f32 1.0, %v3201_v43 }
0x2ead   :  { %v3203_v62 = vmul.f32 %v4054_v9, %v3202_v11 }
0x2eaf   :  { %v3204_v5 = vadd.f32 %v4054_v9, %v3203_v62 }
0x2eb1   :  { %v3208_v52 = vsel %vm3207_vm12, %v4054_v9, %v3204_v5 }
0x2eb2   :  { %v3213_v45 = vsel %vm3210_vm13, %v3212_v3, %v3208_v52 }
0x2eb3   :  { %v3216_v1 = vmul.f32 %v3213_v45, %v6628_v21 }
0x2f10   :  { %v3219_v56 = vpop.permute.xlu0 %3218 }
0x2f11   :  { %v3221_v0 = vmul.f32 %v3219_v56, %v3213_v45 }
0x2f13   :  { %3223 = vrot.lane.b32.xlu2 %v3221_v0, %s4335_s30 }
0x2f1b   :  { %3237 = vrot.lane.b32.xlu2 %v6782_v41, %s4337_s19 }
0x2f23   :  { %3334 = vrot.lane.b32.xlu2 %v3332_v59, %s4335_s30 }
0x2f6d   :  { %v3224_v14 = vpop.permute.xlu2 %3223 }
0x2f6e   :  { %v6993_v24 = vadd.f32 %v3224_v14, %v3216_v1 }
0x2f70   :  { %4055 = vtanh.f32 %v6993_v24 }
0x2f75   :  { %v3238_v41 = vpop.permute.xlu2 %3237 }
0x2f76   :  { %v4056_v39 = vpop.eup %4055 }
0x2f77   :  { %3229 = vrot.lane.b32.xlu1 %v4056_v39, %s4337_s19 }
0x2f7d   :  { %v3335_v53 = vpop.permute.xlu2 %3334 }
0x2fe9   :  { %v3230_v18 = vpop.permute.xlu1 %3229 }
0x2fea   :  { %v6997_v46 = vmul.f32 %v3230_v18, %v3213_v45 }
0x2fec   :  { %3234 = vrot.lane.b32.xlu0 %v6997_v46, %s4335_s30 }
0x305e   :  { %v3235_v27 = vpop.permute.xlu0 %3234 }
0x305f   :  { %v3240_v6 = vsel %vm144_vm0, %v3235_v27, %v3238_v41  ;;  %v3337_v21 = vsel %vm144_vm0, %v3235_v27, %v3335_v53  ;;  %v3870_v27 = vld [vmem:[%s7197_s4 + $0x30] sm:$0xff] }
0x3060   :  { %3868 = vmatmul.msk.f32.vlgmr.msra.gmra.mxu3 %vm447_vm11, %v3240_v6  ;;  %3874 = vmatmul.msk.f32.vlgmr.msrb.gmra.mxu0 %vm146_vm1, %v3337_v21 }
0x3061   :  { %3875 = vmatmul.msk.f32.vlgmr.msra.gmra.mxu1 %vm146_vm1, %v3337_v21  ;;  %3405 = vmatpush.msra.mxu3 %v6644_v49  ;;  %v4314_v49 = vld [vmem:[%s7192_s11 + $0x48] sm:$0xff] }
0x3062   :  { %3634 = vmatpush.msrb.mxu0 %v6650_v44  ;;  %3706 = vmatpush.msra.mxu1 %v4312_v13  ;;  %v4315_v44 = vld [vmem:[%s7195_s13 + $0x28] sm:$0xff] }
0x3063   :  { %3406 = vmatpush.msra.mxu3 %v6657_v34  ;;  %v4316_v34 = vld [vmem:[%s7192_s11 + $0x40] sm:$0xff] }
0x3064   :  { %3635 = vmatpush.msrb.mxu0 %v6663_v47  ;;  %3707 = vmatpush.msra.mxu1 %v4313_v15  ;;  %v4317_v47 = vld [vmem:[%s7195_s13 + $0x20] sm:$0xff] }
0x3065   :  { %3407 = vmatpush.msra.mxu3 %v6670_v10  ;;  %v4318_v10 = vld [vmem:[%s7192_s11 + $0x38] sm:$0xff] }
0x3066   :  { %3636 = vmatpush.msrb.mxu0 %v4314_v49  ;;  %3708 = vmatpush.msra.mxu1 %v4315_v44 }
0x3067   :  { %3408 = vmatpush.msra.mxu3 %v6678_v8  ;;  %v4319_v8 = vld [vmem:[%s7195_s13 + $0x18] sm:$0xff] }
0x3068   :  { %3637 = vmatpush.msrb.mxu0 %v4316_v34  ;;  %3709 = vmatpush.msra.mxu1 %v4317_v47 }
0x3069   :  { %3409 = vmatpush.msra.mxu3 %v6686_v30  ;;  %v4321_v30 = vld [vmem:[%s7195_s13 + $0x10] sm:$0xff] }
0x306a   :  { %3638 = vmatpush.msrb.mxu0 %v4318_v10  ;;  %3710 = vmatpush.msra.mxu1 %v4319_v8 }
0x306b   :  { %3410 = vmatpush.msra.mxu3 %v6694_v29  ;;  %v4323_v29 = vld [vmem:[%s7195_s13 + $0x8] sm:$0xff] }
0x306c   :  { %3639 = vmatpush.msrb.mxu0 %v4320_v40  ;;  %3711 = vmatpush.msra.mxu1 %v4321_v30 }
0x306d   :  { %3411 = vmatpush.msra.mxu3 %v6702_v17  ;;  %v4325_v17 = vld [vmem:[%s7195_s13] sm:$0xff] }
0x306e   :  { %3640 = vmatpush.msrb.mxu0 %v4322_v16  ;;  %3712 = vmatpush.msra.mxu1 %v4323_v29  ;;  %v4331_v16 = vld [vmem:[%s7196_s15 + $0x18] sm:$0xff] }
0x306f   :  { %3412 = vmatpush.msra.mxu3 %v6710_v28  ;;  %v4327_v28 = vld [vmem:[%s7192_s11 + $0x10] sm:$0xff] }
0x3070   :  { %3641 = vmatpush.msrb.mxu0 %v4324_v2  ;;  %3713 = vmatpush.msra.mxu1 %v4325_v17  ;;  %v4334_v17 = vld [vmem:[%s7196_s15] sm:$0xff] }
0x3071   :  { %3413 = vmatpush.msra.mxu3 %v6718_v48  ;;  %v4329_v48 = vld [vmem:[%s7192_s11] sm:$0xff] }
0x3072   :  { %3642 = vmatpush.msrb.mxu0 %v4326_v55 }
0x3073   :  { %3414 = vmatpush.msra.mxu3 %v6725_v33 }
0x3074   :  { %3643 = vmatpush.msrb.mxu0 %v4327_v28 }
0x3075   :  { %3415 = vmatpush.msra.mxu3 %v6732_v57 }
0x3076   :  { %3644 = vmatpush.msrb.mxu0 %v4328_v20 }
0x3077   :  { %3416 = vmatpush.msra.mxu3 %v6739_v60  ;;  %v7082_v60 = vld [vmem:[%s7194_s14] ss:$0 sm:$0xff] }
0x3078   :  { %3645 = vmatpush.msrb.mxu0 %v4329_v48 }
0x3079   :  { %3417 = vmatpush.msra.mxu3 %v6746_v12 }
0x307b   :  { %3418 = vmatpush.msra.mxu3 %v6752_v4 }
0x307d   :  { %3419 = vmatpush.msra.mxu3 %v6758_v37 }
0x307f   :  { %3420 = vmatpush.msra.mxu3 %v6764_v54 }
0x30dd   :  { %v3358_v33 = vpop.f32.mrf.mxu0 }
0x30de   :  { %v3381_v57 = vadd.f32 %v6771_v35, %v3358_v33  ;;  %v3378_v18 = vpop.f32.mrf.mxu1 }
0x30df   :  { %v3382_v41 = vadd.f32 %v6789_v23, %v3378_v18 }
0x30e0   :  { %4057 = vtanh.f32 %v3381_v57 }
0x30e3   :  { %v3261_v42 = vpop.f32.mrf.mxu3 }
0x30e4   :  { %v3262_v7 = vadd.f32 %v7082_v60, %v3261_v42 }
0x30e6   :  { %v4058_v19 = vpop.eup %4057  ;;  %4059 = vtanh.f32 %v3262_v7  ;;  %v3869_v4 = vmul.f32 -1.442695, %v3262_v7 }
0x30e7   :  { %3401 = vmatmul.f32.vlgmr.msra.gmra.mxu2 %v4058_v19 }
0x30e8   :  { %4061 = vpow2.f32 %v3869_v4 }
0x30ec   :  { %v4060_v12 = vpop.eup %4059 }
0x30ed   :  { %3286 = vrot.lane.b32.xlu1 %v4060_v12, %s4337_s19 }
0x30ee   :  { %v4062_v37 = vpop.eup %4061 }
0x30ef   :  { %v3267_v54 = vadd.f32 1.0, %v4062_v37 }
0x30f1   :  { %4063 = vrcp.f32 %v3267_v54  ;;  %v3279_v62 = vand.u32 2147483648, %v3267_v54  ;;  %vm3273_vm14 = vweird.f32 %v3267_v54  ;;  %v3277_v5 = vand.u32 2147483647, %v3267_v54 }
0x30f3   :  { %v3280_v61 = vor.u32 1.1754944e-38, %v3279_v62  ;;  %vm3278_vm12 = vcmp.eq.f32.partialorder %v3277_v5, 8.507059e+37 }
0x30f7   :  { %v4064_v35 = vpop.eup %4063 }
0x30f8   :  { %v3269_v58 = vmul.f32 %v4064_v35, %v3267_v54  ;;  %vm3274_vm1 = vweird.f32 %v4064_v35 }
0x30f9   :  { %vm3275_vm15 = vmor %vm3273_vm14, %vm3274_vm1 }
0x30fa   :  { %v3270_v9 = vsub.f32 1.0, %v3269_v58 }
0x30fc   :  { %v3271_v43 = vmul.f32 %v4064_v35, %v3270_v9 }
0x30fe   :  { %v3272_v11 = vadd.f32 %v4064_v35, %v3271_v43 }
0x3100   :  { %v3276_v26 = vsel %vm3275_vm15, %v4064_v35, %v3272_v11 }
0x3101   :  { %v3281_v3 = vsel %vm3278_vm12, %v3280_v61, %v3276_v26 }
0x3102   :  { %v3284_v45 = vmul.f32 %v3281_v3, %v6778_v32 }
0x315f   :  { %v3287_v52 = vpop.permute.xlu1 %3286 }
0x3160   :  { %v3289_v56 = vmul.f32 %v3287_v52, %v3281_v3 }
0x3162   :  { %3291 = vrot.lane.b32.xlu0 %v3289_v56, %s4335_s30  ;;  %v7486_v56 = vld [vmem:[#allocation26_spill] sm:$0xff] }
0x316a   :  { %v3402_v23 = vpop.f32.mrf.mxu2 }
0x316b   :  { %v3403_v13 = vadd.f32 %v6831_v38, %v3402_v23  ;;  %v4332_v38 = vld [vmem:[%s7196_s15 + $0x10] sm:$0xff] }
0x31d4   :  { %v3292_v0 = vpop.permute.xlu0 %3291 }
0x31d5   :  { %v7088_v59 = vadd.f32 %v3292_v0, %v3284_v45  ;;  %v7487_v0 = vld [vmem:[#allocation29_spill] sm:$0xff] }
0x31d7   :  { %4065 = vtanh.f32 %v7088_v59 }
0x31d8   :  { %4067 = vtanh.f32 %v3382_v41 }
0x31dd   :  { %v4066_v1 = vpop.eup %4065 }
0x31de   :  { %3297 = vrot.lane.b32.xlu1 %v4066_v1, %s4337_s19  ;;  %v4068_v32 = vpop.eup %4067 }
0x3250   :  { %v3298_v14 = vpop.permute.xlu1 %3297 }
0x3251   :  { %v7092_v39 = vmul.f32 %v3298_v14, %v3281_v3 }
0x3253   :  { %3304 = vrot.lane.b32.xlu0 %v7092_v39, %s4335_s30 }
0x32c5   :  { %v3305_v53 = vpop.permute.xlu0 %3304 }
0x32c6   :  { %3871 = vmatmul.msk.f32.vlgmr.msrb.gmra.mxu3 %vm144_vm0, %v3305_v53 }
0x32ce   :  { %3421 = vmatmul.f32.vlgmr.msra.gmra.mxu3 %v4068_v32 }
0x3349   :  { %v3325_v6 = vpop.f32.mrf.mxu3 }
0x334a   :  { %v3326_v21 = vadd.f32 %v3870_v27, %v3325_v6 }
0x334c   :  { %3872 = vst.msk [vmem:[%s7198_s16 + $0x30] sm:$0xff] %vm234_vm2, %v3326_v21  ;;  %3876 = vmatmul.msk.f32.vlgmr.msra.gmra.mxu0 %vm234_vm2, %v3326_v21 }
0x3351   :  { %v3422_v15 = vpop.f32.mrf.mxu3 }
0x3352   :  { %v3423_v49 = vadd.f32 %v3422_v15, %v3403_v13 }
0x3354   :  { %v3425_v44 = vsel %vm234_vm2, %v3423_v49, -inf }
0x3355   :  { %3426 = vmax.xlane.f32.xlu2 %v3425_v44 }
0x33c8   :  { %v3427_v34 = vpop.xlane.xlu2 %3426 }
0x33c9   :  { %v3428_v47 = vsub.f32 %v3423_v49, %v3427_v34  ;;  %v3576_v10 = vpop.f32.mrf.mxu0  ;;  %v7488_v49 = vld [vmem:[#allocation7_spill] sm:$0xff] }
0x33ca   :  { %v3577_v8 = vadd.f32 %v6880_v31, %v3576_v10  ;;  %v4333_v31 = vld [vmem:[%s7196_s15 + $0x8] sm:$0xff] }
0x33cb   :  { %v3429_v40 = vmul.f32 1.442695, %v3428_v47 }
0x33cc   :  { %v3579_v30 = vmax.f32 %v3577_v8, 0.0 }
0x33cd   :  { %4069 = vpow2.f32 %v3429_v40 }
0x33ce   :  { %3877 = vmatmul.msk.f32.vlgmr.msrb.gmra.mxu1 %vm396_vm3, %v3579_v30  ;;  %vm7490_vm3 = vcmask 785408  }
0x33cf   :  { %3774 = vmatpush.msrb.mxu1 %v4331_v16 }
0x33d1   :  { %3775 = vmatpush.msrb.mxu1 %v4332_v38 }
0x33d3   :  { %v4070_v29 = vpop.eup %4069  ;;  %3776 = vmatpush.msrb.mxu1 %v4333_v31 }
0x33d4   :  { %v3431_v2 = vsel %vm234_vm2, %v4070_v29, 0.0 }
0x33d5   :  { %3432 = vadd.xlane.f32.xlu1 %v3431_v2  ;;  %3777 = vmatpush.msrb.mxu1 %v4334_v17 }
0x3448   :  { %v3433_v55 = vpop.xlane.xlu1 %3432 }
0x3449   :  { %4071 = vrcp.f32 %v3433_v55 }
0x344f   :  { %v4072_v28 = vpop.eup %4071 }
0x3450   :  { %v3435_v20 = vmul.f32 %v4072_v28, %v4070_v29 }
0x3452   :  { %3885 = vst.msk [vmem:[%s7187_s17 + $0x38] sm:$0xff] %vm234_vm2, %v3435_v20  ;;  %v3485_v48 = vperm.slane %v3435_v20, 7  ;;  %v3471_v33 = vperm.slane %v3435_v20, 5  ;;  %v3436_v57 = vperm.slane %v3435_v20, 0  ;;  %v3443_v42 = vperm.slane %v3435_v20, 1 }
0x3453   :  { %v3450_v7 = vperm.slane %v3435_v20, 2  ;;  %v3457_v19 = vperm.slane %v3435_v20, 3  ;;  %v3464_v12 = vperm.slane %v3435_v20, 4  ;;  %v3478_v4 = vperm.slane %v3435_v20, 6 }
0x3454   :  { %3490 = vperm.xlu1 %3890, %v3485_v48   ;;  %3476 = vperm.xlu2 %3891, %v3471_v33   ;;  %v7489_v33 = vld [vmem:[#allocation30_spill] sm:$0xff] }
0x3455   :  { %3441 = vperm.xlu0 %3892, %v3436_v57  }
0x345d   :  { %3448 = vperm.xlu0 %3892, %v3443_v42  }
0x3465   :  { %3455 = vperm.xlu0 %3892, %v3450_v7  }
0x346d   :  { %3462 = vperm.xlu0 %3892, %v3457_v19  }
0x3475   :  { %3469 = vperm.xlu0 %3892, %v3464_v12  }
0x347d   :  { %3483 = vperm.xlu0 %3892, %v3478_v4  }
0x34ae   :  { %v3477_v62 = vpop.permute.xlu2 %3476 }
0x34af   :  { %v3497_v1 = vmul.f32 %v7487_v0, %v3477_v62 }
0x34b1   :  { %v3535_v53 = vsel %vm144_vm0, %v3497_v1, 0.0 }
0x34b2   :  { %v3536_v13 = vrot.slane %v3535_v53, 4 }
0x34b4   :  { %v3537_v30 = vadd.f32 %v3536_v13, %v3535_v53 }
0x34b6   :  { %v3538_v20 = vrot.slane %v3537_v30, 2 }
0x34c6   :  { %v3491_v52 = vpop.permute.xlu1 %3490 }
0x34c7   :  { %v3442_v37 = vpop.permute.xlu0 %3441 }
0x34c8   :  { %v3492_v43 = vmul.f32 %v6913_v50, %v3442_v37  ;;  %v3499_v50 = vmul.f32 %v6956_v36, %v3491_v52 }
0x34ca   :  { %v3500_v26 = vsel %vm144_vm0, %v3492_v43, 0.0  ;;  %v3549_v21 = vsel %vm144_vm0, %v3499_v50, 0.0 }
0x34cb   :  { %v3550_v47 = vrot.slane %v3549_v21, 4 }
0x34cd   :  { %v3551_v31 = vadd.f32 %v3550_v47, %v3549_v21 }
0x34cf   :  { %v3449_v54 = vpop.permute.xlu0 %3448  ;;  %v3552_v19 = vrot.slane %v3551_v31, 2 }
0x34d0   :  { %v3493_v58 = vmul.f32 %v6907_v63, %v3449_v54  ;;  %v3501_v63 = vrot.slane %v3500_v26, 4 }
0x34d1   :  { %v3553_v62 = vadd.f32 %v3552_v19, %v3551_v31 }
0x34d2   :  { %v3507_v11 = vsel %vm144_vm0, %v3493_v58, 0.0  ;;  %v3502_v27 = vadd.f32 %v3501_v63, %v3500_v26  ;;  %v3539_v58 = vadd.f32 %v3538_v20, %v3537_v30 }
0x34d3   :  { %v3508_v3 = vrot.slane %v3507_v11, 4  ;;  %v3554_v1 = vrot.slane %v3553_v62, 1 }
0x34d4   :  { %v3503_v10 = vrot.slane %v3502_v27, 2 }
0x34d5   :  { %v3509_v41 = vadd.f32 %v3508_v3, %v3507_v11  ;;  %v3540_v3 = vrot.slane %v3539_v58, 1 }
0x34d6   :  { %v3504_v2 = vadd.f32 %v3503_v10, %v3502_v27 }
0x34d7   :  { %v3456_v35 = vpop.permute.xlu0 %3455  ;;  %v3510_v15 = vrot.slane %v3509_v41, 2  ;;  %v3541_v50 = vadd.f32 %v3540_v3, %v3539_v58 }
0x34d8   :  { %v3494_v9 = vmul.f32 %v6919_v51, %v3456_v35  ;;  %v3505_v12 = vrot.slane %v3504_v2, 1 }
0x34d9   :  { %v3511_v16 = vadd.f32 %v3510_v15, %v3509_v41  ;;  %v3555_v41 = vadd.f32 %v3554_v1, %v3553_v62 }
0x34da   :  { %v3514_v5 = vsel %vm144_vm0, %v3494_v9, 0.0 }
0x34db   :  { %v3515_v14 = vrot.slane %v3514_v5, 4  ;;  %v3512_v48 = vrot.slane %v3511_v16, 1 }
0x34dd   :  { %v3516_v32 = vadd.f32 %v3515_v14, %v3514_v5  ;;  %v3513_v9 = vadd.f32 %v3512_v48, %v3511_v16  ;;  %v3506_v5 = vadd.f32 %v3505_v12, %v3504_v2 }
0x34df   :  { %v3463_v61 = vpop.permute.xlu0 %3462  ;;  %v3517_v34 = vrot.slane %v3516_v32, 2 }
0x34e0   :  { %v3495_v45 = vmul.f32 %v7486_v56, %v3463_v61  ;;  %v3612_v56 = vsel %vm429_vm4, %v3513_v9, %v3506_v5 }
0x34e1   :  { %v3518_v38 = vadd.f32 %v3517_v34, %v3516_v32 }
0x34e2   :  { %v3521_v51 = vsel %vm144_vm0, %v3495_v45, 0.0 }
0x34e3   :  { %v3522_v18 = vrot.slane %v3521_v51, 4  ;;  %v3519_v42 = vrot.slane %v3518_v38, 1 }
0x34e5   :  { %v3523_v6 = vadd.f32 %v3522_v18, %v3521_v51  ;;  %v3520_v43 = vadd.f32 %v3519_v42, %v3518_v38 }
0x34e7   :  { %v3470_v23 = vpop.permute.xlu0 %3469  ;;  %v3524_v8 = vrot.slane %v3523_v6, 2  ;;  %v3613_v45 = vsel %vm431_vm5, %v3520_v43, %v3612_v56 }
0x34e8   :  { %v3496_v44 = vmul.f32 %v7488_v49, %v3470_v23 }
0x34e9   :  { %v3525_v17 = vadd.f32 %v3524_v8, %v3523_v6  ;;  %v3600_v6 = vpop.f32.mrf.mxu1 }
0x34ea   :  { %v3528_v36 = vsel %vm144_vm0, %v3496_v44, 0.0  ;;  %v3601_v23 = vadd.f32 %v6973_v25, %v3600_v6 }
0x34eb   :  { %v3529_v40 = vrot.slane %v3528_v36, 4  ;;  %v3526_v4 = vrot.slane %v3525_v17, 1 }
0x34ec   :  { %v3603_v13 = vmax.f32 %v3601_v23, 0.0 }
0x34ed   :  { %v3530_v29 = vadd.f32 %v3529_v40, %v3528_v36  ;;  %v3527_v26 = vadd.f32 %v3526_v4, %v3525_v17 }
0x34ef   :  { %v3531_v55 = vrot.slane %v3530_v29, 2  ;;  %v3484_v28 = vpop.permute.xlu0 %3483  ;;  %v3614_v14 = vsel %vm433_vm6, %v3527_v26, %v3613_v45 }
0x34f0   :  { %v3498_v57 = vmul.f32 %v7489_v33, %v3484_v28 }
0x34f1   :  { %v3532_v7 = vadd.f32 %v3531_v55, %v3530_v29 }
0x34f2   :  { %v3542_v37 = vsel %vm144_vm0, %v3498_v57, 0.0 }
0x34f3   :  { %v3533_v54 = vrot.slane %v3532_v7, 1  ;;  %v3543_v35 = vrot.slane %v3542_v37, 4 }
0x34f5   :  { %v3544_v11 = vadd.f32 %v3543_v35, %v3542_v37  ;;  %v3534_v61 = vadd.f32 %v3533_v54, %v3532_v7 }
0x34f7   :  { %v3545_v52 = vrot.slane %v3544_v11, 2  ;;  %v3615_v51 = vsel %vm435_vm7, %v3534_v61, %v3614_v14 }
0x34f8   :  { %v3616_v53 = vsel %vm437_vm8, %v3541_v50, %v3615_v51 }
0x34f9   :  { %v3546_v0 = vadd.f32 %v3545_v52, %v3544_v11 }
0x34fb   :  { %v3547_v63 = vrot.slane %v3546_v0, 1 }
0x34fd   :  { %v3548_v18 = vadd.f32 %v3547_v63, %v3546_v0 }
0x34ff   :  { %v3617_v32 = vsel %vm439_vm9, %v3548_v18, %v3616_v53 }
0x3500   :  { %v3618_v27 = vsel %vm441_vm10, %v3555_v41, %v3617_v32  ;;  %v3882_v41 = vld [vmem:[%s7197_s4 + $0x38] sm:$0xff] }
0x3501   :  { %3619 = vrot.lane.b32.xlu0 %v3618_v27, %s4335_s30 }
0x3509   :  { %3622 = vrot.lane.b32.xlu0 %v6997_v46, %s4338_s27 }
0x3573   :  { %v3620_v21 = vpop.permute.xlu0 %3619 }
0x3574   :  { %v3625_v15 = vsel %vm144_vm0, %v3603_v13, %v3620_v21 }
0x357b   :  { %v3623_v49 = vpop.permute.xlu0 %3622 }
0x357c   :  { %v3626_v44 = vsel %vm447_vm11, %v3625_v15, %v3623_v49 }
0x357d   :  { %3878 = vmatmul.msk.f32.vlgmr.msrb.gmra.mxu0 %vm7490_vm3, %v3626_v44 }
0x35fa   :  { %v3647_v34 = vpop.f32.mrf.mxu0 }
0x35fb   :  { %v3648_v47 = vadd.f32 %v6982_v22, %v3647_v34 }
0x35fd   :  { %4073 = vtanh.f32 %v3648_v47  ;;  %v3879_v46 = vmul.f32 -1.442695, %v3648_v47 }
0x35ff   :  { %4075 = vpow2.f32 %v3879_v46 }
0x3603   :  { %v4074_v10 = vpop.eup %4073 }
0x3604   :  { %3672 = vrot.lane.b32.xlu2 %v4074_v10, %s4337_s19 }
0x3605   :  { %v4076_v8 = vpop.eup %4075 }
0x3606   :  { %v3653_v36 = vadd.f32 1.0, %v4076_v8 }
0x3608   :  { %4077 = vrcp.f32 %v3653_v36  ;;  %v3665_v29 = vand.u32 2147483648, %v3653_v36  ;;  %vm3659_vm5 = vweird.f32 %v3653_v36  ;;  %v3663_v31 = vand.u32 2147483647, %v3653_v36 }
0x360a   :  { %v3666_v2 = vor.u32 1.1754944e-38, %v3665_v29  ;;  %vm3664_vm7 = vcmp.eq.f32.partialorder %v3663_v31, 8.507059e+37 }
0x360e   :  { %v4078_v25 = vpop.eup %4077 }
0x360f   :  { %v3655_v40 = vmul.f32 %v4078_v25, %v3653_v36  ;;  %vm3660_vm4 = vweird.f32 %v4078_v25 }
0x3610   :  { %vm3661_vm6 = vmor %vm3659_vm5, %vm3660_vm4 }
0x3611   :  { %v3656_v30 = vsub.f32 1.0, %v3655_v40 }
0x3613   :  { %v3657_v16 = vmul.f32 %v4078_v25, %v3656_v30 }
0x3615   :  { %v3658_v38 = vadd.f32 %v4078_v25, %v3657_v16 }
0x3617   :  { %v3662_v22 = vsel %vm3661_vm6, %v4078_v25, %v3658_v38 }
0x3618   :  { %v3667_v55 = vsel %vm3664_vm7, %v3666_v2, %v3662_v22 }
0x3619   :  { %v3670_v20 = vmul.f32 %v3667_v55, %v6993_v24 }
0x365e   :  { %v3673_v17 = vpop.permute.xlu2 %3672 }
0x365f   :  { %v3675_v28 = vmul.f32 %v3673_v17, %v3667_v55 }
0x3661   :  { %3677 = vrot.lane.b32.xlu0 %v3675_v28, %s4335_s30 }
0x3669   :  { %3691 = vrot.lane.b32.xlu0 %v7092_v39, %s4337_s19 }
0x36d3   :  { %v3678_v48 = vpop.permute.xlu0 %3677 }
0x36d4   :  { %v3680_v33 = vadd.f32 %v3678_v48, %v3670_v20 }
0x36d6   :  { %4079 = vtanh.f32 %v3680_v33 }
0x36db   :  { %v3692_v19 = vpop.permute.xlu0 %3691 }
0x36dc   :  { %v4080_v57 = vpop.eup %4079 }
0x36dd   :  { %3683 = vrot.lane.b32.xlu1 %v4080_v57, %s4337_s19 }
0x374f   :  { %v3684_v42 = vpop.permute.xlu1 %3683 }
0x3750   :  { %v3686_v7 = vmul.f32 %v3684_v42, %v3667_v55 }
0x3752   :  { %3688 = vrot.lane.b32.xlu2 %v3686_v7, %s4335_s30 }
0x37ac   :  { %v3689_v12 = vpop.permute.xlu2 %3688 }
0x37ad   :  { %v3694_v4 = vsel %vm144_vm0, %v3689_v12, %v3692_v19 }
0x37ae   :  { %3880 = vmatmul.msk.f32.vlgmr.msra.gmra.mxu1 %vm447_vm11, %v3694_v4 }
0x382b   :  { %v3715_v37 = vpop.f32.mrf.mxu1 }
0x382c   :  { %v3716_v39 = vadd.f32 %v7082_v60, %v3715_v37 }
0x382e   :  { %4081 = vtanh.f32 %v3716_v39  ;;  %v3881_v54 = vmul.f32 -1.442695, %v3716_v39 }
0x3830   :  { %4083 = vpow2.f32 %v3881_v54 }
0x3834   :  { %v4082_v24 = vpop.eup %4081 }
0x3835   :  { %3740 = vrot.lane.b32.xlu1 %v4082_v24, %s4337_s19 }
0x3836   :  { %v4084_v35 = vpop.eup %4083 }
0x3837   :  { %v3721_v58 = vadd.f32 1.0, %v4084_v35 }
0x3839   :  { %4085 = vrcp.f32 %v3721_v58  ;;  %v3733_v26 = vand.u32 2147483648, %v3721_v58  ;;  %vm3727_vm9 = vweird.f32 %v3721_v58  ;;  %v3731_v61 = vand.u32 2147483647, %v3721_v58 }
0x383b   :  { %v3734_v52 = vor.u32 1.1754944e-38, %v3733_v26  ;;  %vm3732_vm11 = vcmp.eq.f32.partialorder %v3731_v61, 8.507059e+37 }
0x383f   :  { %v4086_v9 = vpop.eup %4085 }
0x3840   :  { %v3723_v43 = vmul.f32 %v4086_v9, %v3721_v58  ;;  %vm3728_vm8 = vweird.f32 %v4086_v9 }
0x3841   :  { %vm3729_vm10 = vmor %vm3727_vm9, %vm3728_vm8 }
0x3842   :  { %v3724_v11 = vsub.f32 1.0, %v3723_v43 }
0x3844   :  { %v3725_v62 = vmul.f32 %v4086_v9, %v3724_v11 }
0x3846   :  { %v3726_v5 = vadd.f32 %v4086_v9, %v3725_v62 }
0x3848   :  { %v3730_v60 = vsel %vm3729_vm10, %v4086_v9, %v3726_v5 }
0x3849   :  { %v3735_v56 = vsel %vm3732_vm11, %v3734_v52, %v3730_v60 }
0x384a   :  { %v3738_v0 = vmul.f32 %v3735_v56, %v7088_v59 }
0x38a7   :  { %v3741_v3 = vpop.permute.xlu1 %3740 }
0x38a8   :  { %v3743_v45 = vmul.f32 %v3741_v3, %v3735_v56 }
0x38aa   :  { %3745 = vrot.lane.b32.xlu2 %v3743_v45, %s4335_s30 }
0x3904   :  { %v3746_v1 = vpop.permute.xlu2 %3745 }
0x3905   :  { %v3748_v14 = vadd.f32 %v3746_v1, %v3738_v0 }
0x3907   :  { %4087 = vtanh.f32 %v3748_v14 }
0x390d   :  { %v4088_v63 = vpop.eup %4087 }
0x390e   :  { %3751 = vrot.lane.b32.xlu0 %v4088_v63, %s4337_s19 }
0x3980   :  { %v3752_v51 = vpop.permute.xlu0 %3751 }
0x3981   :  { %v3754_v50 = vmul.f32 %v3752_v51, %v3735_v56 }
0x3983   :  { %3758 = vrot.lane.b32.xlu1 %v3754_v50, %s4335_s30 }
0x39f5   :  { %v3759_v18 = vpop.permute.xlu1 %3758 }
0x39f6   :  { %3883 = vmatmul.msk.f32.vlgmr.msrb.gmra.mxu1 %vm144_vm0, %v3759_v18 }
0x3a73   :  { %v3779_v53 = vpop.f32.mrf.mxu1 }
0x3a74   :  { %v3780_v32 = vadd.f32 %v3882_v41, %v3779_v53 }
0x3a76   :  { %3884 = vst.msk [vmem:[%s7198_s16 + $0x38] sm:$0xff] %vm234_vm2, %v3780_v32 }

</bundles_post_ra>
